<compile_context>
chip_gen: v7x
topology: tpu7x:2x2x1
jax: 0.10.0
libtpu: 0.0.40
codegen_flags: <defaults>
</compile_context>

<pallas_src>
import math

import jax
import jax.numpy as jnp
import numpy as np
from jax.experimental import pallas as pl
from jax.experimental.pallas import tpu as pltpu

INPUT_CHANNELS = 1
NUM_DEVICES = 10
CONV_OUT = 32
POOL_H, POOL_W = 5, 2
KSIZE = 3
N_PAD = 128              # FC output lanes padded to one full vreg width
BIAS_COLS = 2 * N_PAD    # [conv_bias(32) pad to 128 | fc_bias(10) pad to 128]


def _adaptive_bins(in_size, out_size):
    # PyTorch AdaptiveMaxPool2d bin boundaries.
    return [
        (int(math.floor(i * in_size / out_size)),
         int(math.ceil((i + 1) * in_size / out_size)))
        for i in range(out_size)
    ]


def _pick_block_b(B):
    # The Pallas grid is a serial loop on a TensorCore: for small batches a
    # single fat step beats paying ~0.35us/step overhead (grid_b == 1).  For
    # large batches, cap the block so the f32 (block_b*Hp, 32*W) conv
    # activation plus double-buffered inputs stays well inside v7x's 64 MiB
    # VMEM while still amortizing per-step overhead.
    return B if B <= 32 else 32


def _make_kernel(block_b, H, W, h_bins, w_bins):
    Hp, Wp = H + 2, W + 2
    R = block_b * Hp

    def kernel(img_ref, wband_ref, fcw_ref, bias_ref, out_ref):
        # img_ref: (R, Wp) bf16, zero-padded image rows; row r = b*Hp + hp.
        img = img_ref[...]

        # 3x3 conv as three banded matmuls contracting over the padded width:
        #   P_dh[r, co*W + w] = sum_{w'} img[r+dh, w'] * band_dh[w', co*W + w]
        # with band_dh[w', co*W+w] = conv_w[co, 0, dh, w'-w] (0 outside band).
        conv = None
        for dh in range(KSIZE):
            if dh == 0:
                lhs = img
            else:
                # dh row shift = cheap static sublane slice of the tiny image;
                # zero tail rows only feed output rows that are never read.
                lhs = jnp.concatenate(
                    [img[dh:, :], jnp.zeros((dh, Wp), img.dtype)], axis=0)
            part = jnp.dot(lhs, wband_ref[dh],
                           preferred_element_type=jnp.float32)  # (R, 32*W) f32
            conv = part if conv is None else conv + part

        conv3 = conv.reshape(R, CONV_OUT, W)      # lane split: (co, w)
        conv_bias = bias_ref[:, :CONV_OUT]        # (1, 32)
        fc_bias = bias_ref[:, N_PAD:]             # (1, 128)

        # Adaptive max pool + FC.  Bias add and ReLU commute with max pooling,
        # so they are applied after the w-pool.  FC accumulates 10 small
        # (Bb,32)x(32,128) matmuls -> lane-dense (Bb,128); no 320-lane concat.
        acc = jnp.zeros((block_b, N_PAD), jnp.float32)
        for pw, (w0, w1) in enumerate(w_bins):
            wpool = jnp.max(conv3[:, :, w0:w1], axis=-1)         # (R, 32)
            wpool = jnp.maximum(wpool + conv_bias, 0.0)          # bias + ReLU
            wpool3 = wpool.reshape(block_b, Hp, CONV_OUT)
            for ph, (h0, h1) in enumerate(h_bins):
                cell = jnp.max(wpool3[:, h0:h1, :], axis=1)      # (Bb, 32)
                acc = acc + jnp.dot(cell.astype(jnp.bfloat16),
                                    fcw_ref[ph * POOL_W + pw],
                                    preferred_element_type=jnp.float32)
        out_ref[...] = acc + fc_bias

    return kernel


def cnn_forward(x_nchw, conv_w, conv_b, fc_w, fc_b, block_b=None):
    B, Cin, H, W = x_nchw.shape
    assert Cin == INPUT_CHANNELS
    Hp, Wp = H + 2, W + 2
    if block_b is None:
        block_b = _pick_block_b(B)
    grid_b = pl.cdiv(B, block_b)
    B_pad = grid_b * block_b

    # Host prep: zero-pad batch + spatial, drop the singleton channel axis,
    # flatten (b, hp) into rows, ship as bf16 (only ever a matmul operand).
    x_pad = jnp.pad(x_nchw[:, 0].astype(jnp.float32),
                    ((0, B_pad - B), (1, 1), (1, 1)))
    x_rows = x_pad.reshape(B_pad * Hp, Wp).astype(jnp.bfloat16)

    # Banded conv weights: wband[dh, w', co*W + w] = conv_w[co, 0, dh, w'-w].
    cw = np.asarray(conv_w, np.float32)
    wband_np = np.zeros((KSIZE, Wp, CONV_OUT * W), np.float32)
    w_idx = np.arange(W)
    lanes = np.arange(CONV_OUT)[:, None] * W + w_idx[None, :]     # (32, W)
    for dh in range(KSIZE):
        for dw in range(KSIZE):
            wband_np[dh, (w_idx + dw)[None, :], lanes] = \
                cw[:, 0, dh, dw][:, None]
    wband = jnp.asarray(wband_np, jnp.bfloat16)

    # FC weights regrouped per pooled cell p = ph*POOL_W + pw:
    #   fcw[p, co, d] = fc_w[d, co*POOL_H*POOL_W + ph*POOL_W + pw]
    fw = np.asarray(fc_w, np.float32).reshape(
        NUM_DEVICES, CONV_OUT, POOL_H, POOL_W)
    fcw_np = np.zeros((POOL_H * POOL_W, CONV_OUT, N_PAD), np.float32)
    fcw_np[:, :, :NUM_DEVICES] = np.transpose(fw, (2, 3, 1, 0)).reshape(
        POOL_H * POOL_W, CONV_OUT, NUM_DEVICES)
    fcw = jnp.asarray(fcw_np, jnp.bfloat16)

    # Both biases packed into one lane-aligned (1, 256) f32 tile.
    bias_np = np.zeros((1, BIAS_COLS), np.float32)
    bias_np[0, :CONV_OUT] = np.asarray(conv_b, np.float32)
    bias_np[0, N_PAD:N_PAD + NUM_DEVICES] = np.asarray(fc_b, np.float32)
    bias = jnp.asarray(bias_np)

    h_bins = _adaptive_bins(H, POOL_H)
    w_bins = _adaptive_bins(W, POOL_W)
    kernel = _make_kernel(block_b, H, W, h_bins, w_bins)

    out = pl.pallas_call(
        kernel,
        out_shape=jax.ShapeDtypeStruct((B_pad, N_PAD), jnp.float32),
        grid=(grid_b,),
        in_specs=[
            pl.BlockSpec((block_b * Hp, Wp), lambda b: (b, 0)),
            pl.BlockSpec((KSIZE, Wp, CONV_OUT * W), lambda b: (0, 0, 0)),
            pl.BlockSpec((POOL_H * POOL_W, CONV_OUT, N_PAD),
                         lambda b: (0, 0, 0)),
            pl.BlockSpec((1, BIAS_COLS), lambda b: (0, 0)),
        ],
        out_specs=pl.BlockSpec((block_b, N_PAD), lambda b: (b, 0)),
        compiler_params=pltpu.CompilerParams(
            dimension_semantics=("parallel",),
            vmem_limit_bytes=32 * 1024 * 1024),
    )(x_rows, wband, fcw, bias)

    return out[:B, :NUM_DEVICES]


def reference_forward(x_nchw, conv_w, conv_b, fc_w, fc_b):
    """Pure-JAX f32 reference mirroring the PyTorch module exactly."""
    y = jax.lax.conv_general_dilated(
        x_nchw, conv_w, window_strides=(1, 1), padding=((1, 1), (1, 1)),
        dimension_numbers=("NCHW", "OIHW", "NCHW"))
    y = jnp.maximum(y + conv_b.reshape(1, CONV_OUT, 1, 1), 0.0)
    B, C, H, W = y.shape
    rows = []
    for ph, (h0, h1) in enumerate(_adaptive_bins(H, POOL_H)):
        cols = []
        for pw, (w0, w1) in enumerate(_adaptive_bins(W, POOL_W)):
            cols.append(jnp.max(y[:, :, h0:h1, w0:w1], axis=(2, 3)))
        rows.append(jnp.stack(cols, axis=-1))
    pooled = jnp.stack(rows, axis=-2)                    # (B, 32, 5, 2)
    flat = pooled.reshape(B, -1)
    return flat @ fc_w.T + fc_b


if __name__ == "__main__":
    key = jax.random.PRNGKey(0)
    kx, kw1, kb1, kw2, kb2 = jax.random.split(key, 5)

    # Small input consistent with the module: (batch=2, C=1, H=16, W=16), NCHW.
    x = jax.random.normal(kx, (2, INPUT_CHANNELS, 16, 16), jnp.float32)

    # Deterministic synthetic parameters (shapes from nn.Module __init__).
    conv_w = 0.1 * jax.random.normal(kw1, (CONV_OUT, INPUT_CHANNELS, 3, 3),
                                     jnp.float32)
    conv_b = 0.1 * jax.random.normal(kb1, (CONV_OUT,), jnp.float32)
    fc_w = 0.05 * jax.random.normal(kw2,
                                    (NUM_DEVICES, CONV_OUT * POOL_H * POOL_W),
                                    jnp.float32)
    fc_b = 0.05 * jax.random.normal(kb2, (NUM_DEVICES,), jnp.float32)

    out = cnn_forward(x, conv_w, conv_b, fc_w, fc_b)
    out = jax.block_until_ready(out)

    ref = reference_forward(x, conv_w, conv_b, fc_w, fc_b)
    assert out.shape == (2, NUM_DEVICES)
    # Loose tolerance: kernel uses bf16 MXU operands (f32 accumulation) while
    # the reference is pure f32; observed error is ~1e-2 absolute.
    np.testing.assert_allclose(np.asarray(out), np.asarray(ref),
                               rtol=5e-2, atol=5e-2)
    print("KERNEL_OK")
</pallas_src>

<mosaic_0001>
module attributes {stable_mosaic.version = 11 : i64} {
  func.func @kernel(%arg0: i32, %arg1: memref<36x18xbf16, #tpu.memory_space<vmem>>, %arg2: memref<3x18x512xbf16, #tpu.memory_space<vmem>>, %arg3: memref<10x32x128xbf16, #tpu.memory_space<vmem>>, %arg4: memref<1x256xf32, #tpu.memory_space<vmem>>, %arg5: memref<2x128xf32, #tpu.memory_space<vmem>>) attributes {dimension_semantics = [#tpu.dimension_semantics<parallel>], iteration_bounds = array<i64: 1>, scalar_prefetch = 0 : i64, scratch_operands = 0 : i64, tpu.core_type = #tpu.core_type<tc>, window_params = [{transform_indices = @transform_0, window_bounds = array<i64: 36, 18>}, {pipeline_mode = #tpu.pipeline_mode<synchronous>, transform_indices = @transform_1, window_bounds = array<i64: 3, 18, 512>}, {pipeline_mode = #tpu.pipeline_mode<synchronous>, transform_indices = @transform_2, window_bounds = array<i64: 10, 32, 128>}, {pipeline_mode = #tpu.pipeline_mode<synchronous>, transform_indices = @transform_3, window_bounds = array<i64: 1, 256>}, {transform_indices = @transform_4, window_bounds = array<i64: 2, 128>}]} {
    %c0 = arith.constant 0 : index
    %c0_0 = arith.constant 0 : index
    %0 = vector.load %arg1[%c0, %c0_0] : memref<36x18xbf16, #tpu.memory_space<vmem>>, vector<36x18xbf16>
    %c0_1 = arith.constant 0 : index
    %c0_2 = arith.constant 0 : index
    %c0_3 = arith.constant 0 : index
    %1 = vector.load %arg2[%c0_1, %c0_2, %c0_3] : memref<3x18x512xbf16, #tpu.memory_space<vmem>>, vector<1x18x512xbf16>
    %2 = vector.shape_cast %1 : vector<1x18x512xbf16> to vector<18x512xbf16>
    %cst = arith.constant dense<0.000000e+00> : vector<36x512xf32>
    %3 = tpu.matmul %0, %2, %cst {dimension_numbers = #tpu.dot_dimension_numbers<[1], [0], [0], [1], [0, 0, 1, 1], [], []>} : vector<36x18xbf16>, vector<18x512xbf16>, vector<36x512xf32> -> vector<36x512xf32>
    %4 = vector.extract_strided_slice %0 {offsets = [1, 0], sizes = [35, 18], strides = [1, 1]} : vector<36x18xbf16> to vector<35x18xbf16>
    %cst_4 = arith.constant 0.000000e+00 : bf16
    %5 = vector.broadcast %cst_4 : bf16 to vector<1x18xbf16>
    %6 = tpu.concatenate %4, %5 in 0 : vector<35x18xbf16>, vector<1x18xbf16> -> vector<36x18xbf16>
    %c1 = arith.constant 1 : index
    %c0_5 = arith.constant 0 : index
    %c0_6 = arith.constant 0 : index
    %7 = vector.load %arg2[%c1, %c0_5, %c0_6] : memref<3x18x512xbf16, #tpu.memory_space<vmem>>, vector<1x18x512xbf16>
    %8 = vector.shape_cast %7 : vector<1x18x512xbf16> to vector<18x512xbf16>
    %cst_7 = arith.constant dense<0.000000e+00> : vector<36x512xf32>
    %9 = tpu.matmul %6, %8, %cst_7 {dimension_numbers = #tpu.dot_dimension_numbers<[1], [0], [0], [1], [0, 0, 1, 1], [], []>} : vector<36x18xbf16>, vector<18x512xbf16>, vector<36x512xf32> -> vector<36x512xf32>
    %10 = arith.addf %3, %9 : vector<36x512xf32>
    %11 = vector.extract_strided_slice %0 {offsets = [2, 0], sizes = [34, 18], strides = [1, 1]} : vector<36x18xbf16> to vector<34x18xbf16>
    %cst_8 = arith.constant 0.000000e+00 : bf16
    %12 = vector.broadcast %cst_8 : bf16 to vector<2x18xbf16>
    %13 = tpu.concatenate %11, %12 in 0 : vector<34x18xbf16>, vector<2x18xbf16> -> vector<36x18xbf16>
    %c2 = arith.constant 2 : index
    %c0_9 = arith.constant 0 : index
    %c0_10 = arith.constant 0 : index
    %14 = vector.load %arg2[%c2, %c0_9, %c0_10] : memref<3x18x512xbf16, #tpu.memory_space<vmem>>, vector<1x18x512xbf16>
    %15 = vector.shape_cast %14 : vector<1x18x512xbf16> to vector<18x512xbf16>
    %cst_11 = arith.constant dense<0.000000e+00> : vector<36x512xf32>
    %16 = tpu.matmul %13, %15, %cst_11 {dimension_numbers = #tpu.dot_dimension_numbers<[1], [0], [0], [1], [0, 0, 1, 1], [], []>} : vector<36x18xbf16>, vector<18x512xbf16>, vector<36x512xf32> -> vector<36x512xf32>
    %17 = arith.addf %10, %16 : vector<36x512xf32>
    %18 = vector.shape_cast %17 : vector<36x512xf32> to vector<36x32x16xf32>
    %c0_12 = arith.constant 0 : index
    %c0_13 = arith.constant 0 : index
    %19 = vector.load %arg4[%c0_12, %c0_13] : memref<1x256xf32, #tpu.memory_space<vmem>>, vector<1x32xf32>
    %c0_14 = arith.constant 0 : index
    %c128 = arith.constant 128 : index
    %20 = vector.load %arg4[%c0_14, %c128] : memref<1x256xf32, #tpu.memory_space<vmem>>, vector<1x128xf32>
    %cst_15 = arith.constant 0.000000e+00 : f32
    %21 = vector.broadcast %cst_15 : f32 to vector<2x128xf32>
    %22 = vector.extract_strided_slice %18 {offsets = [0, 0, 0], sizes = [36, 32, 8], strides = [1, 1, 1]} : vector<36x32x16xf32> to vector<36x32x8xf32>
    %cst_16 = arith.constant dense<0xFF800000> : vector<36x32xf32>
    %23 = vector.multi_reduction <maximumf>, %22, %cst_16 [2] : vector<36x32x8xf32> to vector<36x32xf32>
    %24 = vector.broadcast %19 : vector<1x32xf32> to vector<36x32xf32>
    %25 = arith.addf %23, %24 : vector<36x32xf32>
    %cst_17 = arith.constant 0.000000e+00 : f32
    %26 = vector.broadcast %cst_17 : f32 to vector<36x32xf32>
    %27 = arith.maximumf %25, %26 : vector<36x32xf32>
    %28 = vector.shape_cast %27 : vector<36x32xf32> to vector<2x18x32xf32>
    %29 = vector.extract_strided_slice %28 {offsets = [0, 0, 0], sizes = [2, 4, 32], strides = [1, 1, 1]} : vector<2x18x32xf32> to vector<2x4x32xf32>
    %cst_18 = arith.constant dense<0xFF800000> : vector<2x32xf32>
    %30 = vector.multi_reduction <maximumf>, %29, %cst_18 [1] : vector<2x4x32xf32> to vector<2x32xf32>
    %31 = arith.truncf %30 : vector<2x32xf32> to vector<2x32xbf16>
    %c0_19 = arith.constant 0 : index
    %c0_20 = arith.constant 0 : index
    %c0_21 = arith.constant 0 : index
    %32 = vector.load %arg3[%c0_19, %c0_20, %c0_21] : memref<10x32x128xbf16, #tpu.memory_space<vmem>>, vector<1x32x128xbf16>
    %33 = vector.shape_cast %32 : vector<1x32x128xbf16> to vector<32x128xbf16>
    %cst_22 = arith.constant dense<0.000000e+00> : vector<2x128xf32>
    %34 = tpu.matmul %31, %33, %cst_22 {dimension_numbers = #tpu.dot_dimension_numbers<[1], [0], [0], [1], [0, 0, 1, 1], [], []>} : vector<2x32xbf16>, vector<32x128xbf16>, vector<2x128xf32> -> vector<2x128xf32>
    %35 = arith.addf %21, %34 : vector<2x128xf32>
    %36 = vector.extract_strided_slice %28 {offsets = [0, 3, 0], sizes = [2, 4, 32], strides = [1, 1, 1]} : vector<2x18x32xf32> to vector<2x4x32xf32>
    %cst_23 = arith.constant dense<0xFF800000> : vector<2x32xf32>
    %37 = vector.multi_reduction <maximumf>, %36, %cst_23 [1] : vector<2x4x32xf32> to vector<2x32xf32>
    %38 = arith.truncf %37 : vector<2x32xf32> to vector<2x32xbf16>
    %c2_24 = arith.constant 2 : index
    %c0_25 = arith.constant 0 : index
    %c0_26 = arith.constant 0 : index
    %39 = vector.load %arg3[%c2_24, %c0_25, %c0_26] : memref<10x32x128xbf16, #tpu.memory_space<vmem>>, vector<1x32x128xbf16>
    %40 = vector.shape_cast %39 : vector<1x32x128xbf16> to vector<32x128xbf16>
    %cst_27 = arith.constant dense<0.000000e+00> : vector<2x128xf32>
    %41 = tpu.matmul %38, %40, %cst_27 {dimension_numbers = #tpu.dot_dimension_numbers<[1], [0], [0], [1], [0, 0, 1, 1], [], []>} : vector<2x32xbf16>, vector<32x128xbf16>, vector<2x128xf32> -> vector<2x128xf32>
    %42 = arith.addf %35, %41 : vector<2x128xf32>
    %43 = vector.extract_strided_slice %28 {offsets = [0, 6, 0], sizes = [2, 4, 32], strides = [1, 1, 1]} : vector<2x18x32xf32> to vector<2x4x32xf32>
    %cst_28 = arith.constant dense<0xFF800000> : vector<2x32xf32>
    %44 = vector.multi_reduction <maximumf>, %43, %cst_28 [1] : vector<2x4x32xf32> to vector<2x32xf32>
    %45 = arith.truncf %44 : vector<2x32xf32> to vector<2x32xbf16>
    %c4 = arith.constant 4 : index
    %c0_29 = arith.constant 0 : index
    %c0_30 = arith.constant 0 : index
    %46 = vector.load %arg3[%c4, %c0_29, %c0_30] : memref<10x32x128xbf16, #tpu.memory_space<vmem>>, vector<1x32x128xbf16>
    %47 = vector.shape_cast %46 : vector<1x32x128xbf16> to vector<32x128xbf16>
    %cst_31 = arith.constant dense<0.000000e+00> : vector<2x128xf32>
    %48 = tpu.matmul %45, %47, %cst_31 {dimension_numbers = #tpu.dot_dimension_numbers<[1], [0], [0], [1], [0, 0, 1, 1], [], []>} : vector<2x32xbf16>, vector<32x128xbf16>, vector<2x128xf32> -> vector<2x128xf32>
    %49 = arith.addf %42, %48 : vector<2x128xf32>
    %50 = vector.extract_strided_slice %28 {offsets = [0, 9, 0], sizes = [2, 4, 32], strides = [1, 1, 1]} : vector<2x18x32xf32> to vector<2x4x32xf32>
    %cst_32 = arith.constant dense<0xFF800000> : vector<2x32xf32>
    %51 = vector.multi_reduction <maximumf>, %50, %cst_32 [1] : vector<2x4x32xf32> to vector<2x32xf32>
    %52 = arith.truncf %51 : vector<2x32xf32> to vector<2x32xbf16>
    %c6 = arith.constant 6 : index
    %c0_33 = arith.constant 0 : index
    %c0_34 = arith.constant 0 : index
    %53 = vector.load %arg3[%c6, %c0_33, %c0_34] : memref<10x32x128xbf16, #tpu.memory_space<vmem>>, vector<1x32x128xbf16>
    %54 = vector.shape_cast %53 : vector<1x32x128xbf16> to vector<32x128xbf16>
    %cst_35 = arith.constant dense<0.000000e+00> : vector<2x128xf32>
    %55 = tpu.matmul %52, %54, %cst_35 {dimension_numbers = #tpu.dot_dimension_numbers<[1], [0], [0], [1], [0, 0, 1, 1], [], []>} : vector<2x32xbf16>, vector<32x128xbf16>, vector<2x128xf32> -> vector<2x128xf32>
    %56 = arith.addf %49, %55 : vector<2x128xf32>
    %57 = vector.extract_strided_slice %28 {offsets = [0, 12, 0], sizes = [2, 4, 32], strides = [1, 1, 1]} : vector<2x18x32xf32> to vector<2x4x32xf32>
    %cst_36 = arith.constant dense<0xFF800000> : vector<2x32xf32>
    %58 = vector.multi_reduction <maximumf>, %57, %cst_36 [1] : vector<2x4x32xf32> to vector<2x32xf32>
    %59 = arith.truncf %58 : vector<2x32xf32> to vector<2x32xbf16>
    %c8 = arith.constant 8 : index
    %c0_37 = arith.constant 0 : index
    %c0_38 = arith.constant 0 : index
    %60 = vector.load %arg3[%c8, %c0_37, %c0_38] : memref<10x32x128xbf16, #tpu.memory_space<vmem>>, vector<1x32x128xbf16>
    %61 = vector.shape_cast %60 : vector<1x32x128xbf16> to vector<32x128xbf16>
    %cst_39 = arith.constant dense<0.000000e+00> : vector<2x128xf32>
    %62 = tpu.matmul %59, %61, %cst_39 {dimension_numbers = #tpu.dot_dimension_numbers<[1], [0], [0], [1], [0, 0, 1, 1], [], []>} : vector<2x32xbf16>, vector<32x128xbf16>, vector<2x128xf32> -> vector<2x128xf32>
    %63 = arith.addf %56, %62 : vector<2x128xf32>
    %64 = vector.extract_strided_slice %18 {offsets = [0, 0, 8], sizes = [36, 32, 8], strides = [1, 1, 1]} : vector<36x32x16xf32> to vector<36x32x8xf32>
    %cst_40 = arith.constant dense<0xFF800000> : vector<36x32xf32>
    %65 = vector.multi_reduction <maximumf>, %64, %cst_40 [2] : vector<36x32x8xf32> to vector<36x32xf32>
    %66 = vector.broadcast %19 : vector<1x32xf32> to vector<36x32xf32>
    %67 = arith.addf %65, %66 : vector<36x32xf32>
    %cst_41 = arith.constant 0.000000e+00 : f32
    %68 = vector.broadcast %cst_41 : f32 to vector<36x32xf32>
    %69 = arith.maximumf %67, %68 : vector<36x32xf32>
    %70 = vector.shape_cast %69 : vector<36x32xf32> to vector<2x18x32xf32>
    %71 = vector.extract_strided_slice %70 {offsets = [0, 0, 0], sizes = [2, 4, 32], strides = [1, 1, 1]} : vector<2x18x32xf32> to vector<2x4x32xf32>
    %cst_42 = arith.constant dense<0xFF800000> : vector<2x32xf32>
    %72 = vector.multi_reduction <maximumf>, %71, %cst_42 [1] : vector<2x4x32xf32> to vector<2x32xf32>
    %73 = arith.truncf %72 : vector<2x32xf32> to vector<2x32xbf16>
    %c1_43 = arith.constant 1 : index
    %c0_44 = arith.constant 0 : index
    %c0_45 = arith.constant 0 : index
    %74 = vector.load %arg3[%c1_43, %c0_44, %c0_45] : memref<10x32x128xbf16, #tpu.memory_space<vmem>>, vector<1x32x128xbf16>
    %75 = vector.shape_cast %74 : vector<1x32x128xbf16> to vector<32x128xbf16>
    %cst_46 = arith.constant dense<0.000000e+00> : vector<2x128xf32>
    %76 = tpu.matmul %73, %75, %cst_46 {dimension_numbers = #tpu.dot_dimension_numbers<[1], [0], [0], [1], [0, 0, 1, 1], [], []>} : vector<2x32xbf16>, vector<32x128xbf16>, vector<2x128xf32> -> vector<2x128xf32>
    %77 = arith.addf %63, %76 : vector<2x128xf32>
    %78 = vector.extract_strided_slice %70 {offsets = [0, 3, 0], sizes = [2, 4, 32], strides = [1, 1, 1]} : vector<2x18x32xf32> to vector<2x4x32xf32>
    %cst_47 = arith.constant dense<0xFF800000> : vector<2x32xf32>
    %79 = vector.multi_reduction <maximumf>, %78, %cst_47 [1] : vector<2x4x32xf32> to vector<2x32xf32>
    %80 = arith.truncf %79 : vector<2x32xf32> to vector<2x32xbf16>
    %c3 = arith.constant 3 : index
    %c0_48 = arith.constant 0 : index
    %c0_49 = arith.constant 0 : index
    %81 = vector.load %arg3[%c3, %c0_48, %c0_49] : memref<10x32x128xbf16, #tpu.memory_space<vmem>>, vector<1x32x128xbf16>
    %82 = vector.shape_cast %81 : vector<1x32x128xbf16> to vector<32x128xbf16>
    %cst_50 = arith.constant dense<0.000000e+00> : vector<2x128xf32>
    %83 = tpu.matmul %80, %82, %cst_50 {dimension_numbers = #tpu.dot_dimension_numbers<[1], [0], [0], [1], [0, 0, 1, 1], [], []>} : vector<2x32xbf16>, vector<32x128xbf16>, vector<2x128xf32> -> vector<2x128xf32>
    %84 = arith.addf %77, %83 : vector<2x128xf32>
    %85 = vector.extract_strided_slice %70 {offsets = [0, 6, 0], sizes = [2, 4, 32], strides = [1, 1, 1]} : vector<2x18x32xf32> to vector<2x4x32xf32>
    %cst_51 = arith.constant dense<0xFF800000> : vector<2x32xf32>
    %86 = vector.multi_reduction <maximumf>, %85, %cst_51 [1] : vector<2x4x32xf32> to vector<2x32xf32>
    %87 = arith.truncf %86 : vector<2x32xf32> to vector<2x32xbf16>
    %c5 = arith.constant 5 : index
    %c0_52 = arith.constant 0 : index
    %c0_53 = arith.constant 0 : index
    %88 = vector.load %arg3[%c5, %c0_52, %c0_53] : memref<10x32x128xbf16, #tpu.memory_space<vmem>>, vector<1x32x128xbf16>
    %89 = vector.shape_cast %88 : vector<1x32x128xbf16> to vector<32x128xbf16>
    %cst_54 = arith.constant dense<0.000000e+00> : vector<2x128xf32>
    %90 = tpu.matmul %87, %89, %cst_54 {dimension_numbers = #tpu.dot_dimension_numbers<[1], [0], [0], [1], [0, 0, 1, 1], [], []>} : vector<2x32xbf16>, vector<32x128xbf16>, vector<2x128xf32> -> vector<2x128xf32>
    %91 = arith.addf %84, %90 : vector<2x128xf32>
    %92 = vector.extract_strided_slice %70 {offsets = [0, 9, 0], sizes = [2, 4, 32], strides = [1, 1, 1]} : vector<2x18x32xf32> to vector<2x4x32xf32>
    %cst_55 = arith.constant dense<0xFF800000> : vector<2x32xf32>
    %93 = vector.multi_reduction <maximumf>, %92, %cst_55 [1] : vector<2x4x32xf32> to vector<2x32xf32>
    %94 = arith.truncf %93 : vector<2x32xf32> to vector<2x32xbf16>
    %c7 = arith.constant 7 : index
    %c0_56 = arith.constant 0 : index
    %c0_57 = arith.constant 0 : index
    %95 = vector.load %arg3[%c7, %c0_56, %c0_57] : memref<10x32x128xbf16, #tpu.memory_space<vmem>>, vector<1x32x128xbf16>
    %96 = vector.shape_cast %95 : vector<1x32x128xbf16> to vector<32x128xbf16>
    %cst_58 = arith.constant dense<0.000000e+00> : vector<2x128xf32>
    %97 = tpu.matmul %94, %96, %cst_58 {dimension_numbers = #tpu.dot_dimension_numbers<[1], [0], [0], [1], [0, 0, 1, 1], [], []>} : vector<2x32xbf16>, vector<32x128xbf16>, vector<2x128xf32> -> vector<2x128xf32>
    %98 = arith.addf %91, %97 : vector<2x128xf32>
    %99 = vector.extract_strided_slice %70 {offsets = [0, 12, 0], sizes = [2, 4, 32], strides = [1, 1, 1]} : vector<2x18x32xf32> to vector<2x4x32xf32>
    %cst_59 = arith.constant dense<0xFF800000> : vector<2x32xf32>
    %100 = vector.multi_reduction <maximumf>, %99, %cst_59 [1] : vector<2x4x32xf32> to vector<2x32xf32>
    %101 = arith.truncf %100 : vector<2x32xf32> to vector<2x32xbf16>
    %c9 = arith.constant 9 : index
    %c0_60 = arith.constant 0 : index
    %c0_61 = arith.constant 0 : index
    %102 = vector.load %arg3[%c9, %c0_60, %c0_61] : memref<10x32x128xbf16, #tpu.memory_space<vmem>>, vector<1x32x128xbf16>
    %103 = vector.shape_cast %102 : vector<1x32x128xbf16> to vector<32x128xbf16>
    %cst_62 = arith.constant dense<0.000000e+00> : vector<2x128xf32>
    %104 = tpu.matmul %101, %103, %cst_62 {dimension_numbers = #tpu.dot_dimension_numbers<[1], [0], [0], [1], [0, 0, 1, 1], [], []>} : vector<2x32xbf16>, vector<32x128xbf16>, vector<2x128xf32> -> vector<2x128xf32>
    %105 = arith.addf %98, %104 : vector<2x128xf32>
    %106 = vector.broadcast %20 : vector<1x128xf32> to vector<2x128xf32>
    %107 = arith.addf %105, %106 : vector<2x128xf32>
    %c0_63 = arith.constant 0 : index
    %c0_64 = arith.constant 0 : index
    %108 = vector.load %arg5[%c0_63, %c0_64] : memref<2x128xf32, #tpu.memory_space<vmem>>, vector<2x128xf32>
    tpu.vector_store %arg5[%c0_63, %c0_64], %107 {strides = array<i32>} : memref<2x128xf32, #tpu.memory_space<vmem>>, vector<2x128xf32>,
    return
  }
  func.func @transform_0(%arg0: i32) -> (i32, i32) {
    %c0_i32 = arith.constant 0 : i32
    %c0_i32_0 = arith.constant 0 : i32
    return %arg0, %c0_i32 : i32, i32
  }
  func.func @transform_1(%arg0: i32) -> (i32, i32, i32) {
    %c0_i32 = arith.constant 0 : i32
    %c0_i32_0 = arith.constant 0 : i32
    %c0_i32_1 = arith.constant 0 : i32
    %c0_i32_2 = arith.constant 0 : i32
    return %c0_i32, %c0_i32_0, %c0_i32_1 : i32, i32, i32
  }
  func.func @transform_2(%arg0: i32) -> (i32, i32, i32) {
    %c0_i32 = arith.constant 0 : i32
    %c0_i32_0 = arith.constant 0 : i32
    %c0_i32_1 = arith.constant 0 : i32
    %c0_i32_2 = arith.constant 0 : i32
    return %c0_i32, %c0_i32_0, %c0_i32_1 : i32, i32, i32
  }
  func.func @transform_3(%arg0: i32) -> (i32, i32) {
    %c0_i32 = arith.constant 0 : i32
    %c0_i32_0 = arith.constant 0 : i32
    %c0_i32_1 = arith.constant 0 : i32
    return %c0_i32, %c0_i32_0 : i32, i32
  }
  func.func @transform_4(%arg0: i32) -> (i32, i32) {
    %c0_i32 = arith.constant 0 : i32
    %c0_i32_0 = arith.constant 0 : i32
    return %arg0, %c0_i32 : i32, i32
  }
}

</mosaic_0001>

<bundles_post_ra>
// kernel: tpu_custom_call.1
= control target key start
LH: loop header
LB: loop body
LE: loop exit
PB: predicated region body
PF: predicated region fallthrough
CT: control target
= control target key end

     0   :  { %9 = vsyncpa [#allocation3], 0  ;;  %s11988_s0 = inlined_call_operand.vmem [shape: bf16[36,18], index: 0, kind: input, shape index: {}]   ;;  %s11989_s1 = inlined_call_operand.hbm [shape: bf16[3,18,512], index: 1, kind: input, shape index: {}]   ;;  %s11990_s2 = inlined_call_operand.hbm [shape: bf16[10,32,128], index: 2, kind: input, shape index: {}]   ;;  %s11991_s3 = inlined_call_operand.vmem [shape: f32[1,256], index: 3, kind: input, shape index: {}]   ;;  %s11992_s4 = inlined_call_operand.hbm [shape: f32[2,128], index: 4, kind: output, shape index: {}]  }
   0x1   :  { %10 = vsyncpa [#allocation6], 0 }
   0x2   :  { %11 = vsyncpa [#allocation4], 0  ;;  %s7034_s15 = smov [#allocation2]   ;;  %s6962_s19 = scalar_lea.hbm %s11989_s1, 2304 }
   0x3   :  { %s19_s16 = sshll.u32 %s7034_s15, 4  ;;  %p6963_p0 = scmp.ne.s32.totalorder %s11989_s1, %s6962_s19  ;;  %s20_s16 = int_to_ptr.vmem [resolvable:$true] %s19_s16 }
   0x4   :  { %p6966_p1 = scmp.lt.u32.totalorder %s6962_s19, %s11989_s1 }
   0x6   :  { %p6968_p2 = pnand %p6966_p1, %p6963_p0 }
   0x8   :  { %6971 = shalt.err (!%p6968_p2)
}
   0x9   :  { %s6972_s24 = scalar_lea.vmem %s20_s16, 2304  ;;  %p6977_p4 = scmp.lt.s32.totalorder %s20_s16, %s20_s16 }
   0xa   :  { %p6973_p3 = scmp.ne.s32.totalorder %s20_s16, %s6972_s24  ;;  %p6978_p5 = scmp.lt.s32.totalorder %s6972_s24, %s6972_s24 }
   0xc   :  { %p6979_p6 = por %p6978_p5, %p6977_p4 }
   0xe   :  { %p6980_p7 = pnand %p6979_p6, %p6973_p3 }
  0x10   :  { %6983 = shalt.err (!%p6980_p7)
}
  0x11   :  { %s7035_s25 = smov 256   ;;  %s7036_s26 = smov 16  }
  0x12   :  { %25 = dma.hbm_to_vmem [thread:$0]  %s11989_s1, 2304, %s20_s16, [#allocation3], %s7035_s25, %s7035_s25, %s7036_s26  }
  0x13   :  { %s7037_s29 = smov [#allocation5]   ;;  %s6984_s7 = scalar_lea.hbm %s11990_s2, 2560 }
  0x14   :  { %s31_s30 = sshll.u32 %s7037_s29, 4  ;;  %p6985_p8 = scmp.ne.s32.totalorder %s11990_s2, %s6984_s7  ;;  %s32_s30 = int_to_ptr.vmem [resolvable:$true] %s31_s30 }
  0x15   :  { %p6988_p9 = scmp.lt.u32.totalorder %s6984_s7, %s11990_s2 }
  0x17   :  { %p6990_p10 = pnand %p6988_p9, %p6985_p8 }
  0x19   :  { %6993 = shalt.err (!%p6990_p10)
}
  0x1a   :  { %s6994_s12 = scalar_lea.vmem %s32_s30, 2560  ;;  %p6999_p12 = scmp.lt.s32.totalorder %s32_s30, %s32_s30 }
  0x1b   :  { %p6995_p11 = scmp.ne.s32.totalorder %s32_s30, %s6994_s12  ;;  %p7000_p13 = scmp.lt.s32.totalorder %s6994_s12, %s6994_s12 }
  0x1d   :  { %p7001_p0 = por %p7000_p13, %p6999_p12 }
  0x1f   :  { %p7002_p1 = pnand %p7001_p0, %p6995_p11 }
  0x21   :  { %7005 = shalt.err (!%p7002_p1)
}
  0x22   :  { %s7038_s1 = smov 64   ;;  %s7039_s13 = smov 4  }
  0x23   :  { %37 = dma.hbm_to_vmem [thread:$0]  %s11990_s2, 2560, %s32_s30, [#allocation6], %s7038_s1, %s7038_s1, %s7039_s13  }
  0x24   :  { %7028 = dma.done.wait [#allocation3], 2304  }
  0x25   :  { %7029 = vsyncadd [#allocation3], 4294964992 }
  0x26   :  { %7030 = dma.done.wait [#allocation6], 2560  }
  0x27   :  { %7031 = vsyncadd [#allocation6], 4294964736  ;;  %v7040_v0 = vmov 0   ;;  %v6909_v1 = vld [vmem:[#allocation2 + $0x34] ss:$16 sps:$4 sm:$0xff]   ;;  %vm147_vm0 = vcmask 1040384  }
  0x28   :  { %192 = vmatprep.mubr.bf16.mxu0 %v7040_v0  ;;  %253 = vmatprep.mubr.bf16.mxu1 %v7040_v0  ;;  %v6911_v2 = vld [vmem:[#allocation2 + $0x3c] ss:$16 sps:$4 sm:$0xff]   ;;  %v6913_v3 = vld [vmem:[#allocation2 + $0x30] ss:$16 sps:$4 sm:$0xff]   ;;  %v6914_v4 = vld [vmem:[#allocation2 + $0x38] ss:$16 sps:$4 sm:$0xff]  }
  0x29   :  { %6908 = vset.pattern.permute.xlu1 %v7040_v0  ;;  %6907 = vset.pattern.permute.xlu0 %v7040_v0  ;;  %v105_v5 = vld [vmem:[#allocation2 + $0x50] sm:$0x11]  ;;  %v106_v7 = vld [vmem:[#allocation2 + $0x58] sm:$0x11]  ;;  %v7110_v11 = vld [vmem:[%s11988_s0] sm:$0xff]   ;;  %vm137_vm2 = vcmask 146432  }
  0x2a   :  { %160 = vmatprep.subr.bf16.mxu0 %v6909_v1  ;;  %221 = vmatprep.subr.bf16.mxu1 %v6911_v2  ;;  %v6657_v6 = vcombine.high %v105_v5, %v105_v5  ;;  %v6656_v8 = vcombine.low %v105_v5, %v105_v5  ;;  %v6659_v9 = vcombine.high %v106_v7, %v106_v7  ;;  %v7117_v13 = vld [vmem:[%s11988_s0 + $0x8] sm:$0xff]   ;;  %vm71_vm1 = vsmask.f32 7424  ;;  %v7127_v21 = vld [vmem:[%s11988_s0 + $0x10] ss:$0 sps:$4 sm:$0x33]  }
  0x2b   :  { %161 = vmatpush1.bf16.msra.mxu0 %v6913_v3  ;;  %222 = vmatpush1.bf16.msra.mxu1 %v6914_v4  ;;  %v6658_v10 = vcombine.low %v106_v7, %v106_v7  ;;  %v73_v15 = vshrl.u32 %v7110_v11, 16  ;;  %v75_v16 = vshll.u32 %v7110_v11, 16  ;;  %v80_v17 = vshll.u32 %v7117_v13, 16  ;;  %v6923_v18 = vld [vmem:[#allocation2 + $0x4] ss:$16 sps:$4 sm:$0xff]   ;;  %s7041_s0 = smov 96  }
  0x2c   :  { %6660 = vmatprep.subr.msk.bf16.mxu0 %vm147_vm0, %v6657_v6  ;;  %v149_v12 = vsel %vm147_vm0, %v6656_v8, 0  ;;  %6664 = vmatprep.subr.msk.bf16.mxu1 %vm147_vm0, %v6659_v9  ;;  %v6921_v20 = vld [vmem:[#allocation2] ss:$16 sps:$4 sm:$0xff]   ;;  %v84_v24 = vshrl.u32 %v7117_v13, 16  ;;  %v6928_v25 = vld [vmem:[#allocation2 + $0xc] ss:$16 sps:$4 sm:$0xff]  }
  0x2d   :  { %v155_v14 = vsel %vm147_vm0, %v6658_v10, 0  ;;  %v77_v19 = vrot.slane %v75_v16, 1  ;;  %v56_v22 = vld [vmem:[#allocation2 + $0x20] sm:$0x11]  ;;  %v82_v23 = vrot.slane %v80_v17, 1  ;;  %v88_v27 = vshll.u32 %v7127_v21, 16 }
  0x2e   :  { %v6672_v28 = vcombine.low %v56_v22, %v56_v22  ;;  %v92_v29 = vshrl.u32 %v7127_v21, 16  ;;  %v57_v30 = vld [vmem:[#allocation2 + $0x28] sm:$0x11]  ;;  %v6673_v31 = vcombine.high %v56_v22, %v56_v22  ;;  %vm96_vm3 = vcmask 1041408   ;;  %v6934_v40 = vld [vmem:[#allocation2 + $0x64] ss:$16 sps:$4 sm:$0xff]  }
  0x2f   :  { %163 = vmatpush1.bf16.msra.mxu0 %v149_v12  ;;  %224 = vmatpush1.bf16.msra.mxu1 %v155_v14  ;;  %v78_v26 = vor.u32 %v77_v19, %v73_v15  ;;  %vm97_vm4 = vsmask.f32 1280  ;;  %v90_v33 = vrot.slane %v88_v27, 1  ;;  %v6926_v34 = vld [vmem:[#allocation2 + $0x8] ss:$16 sps:$4 sm:$0xff]   ;;  %v6675_v35 = vcombine.high %v57_v30, %v57_v30  ;;  %s7042_s21 = smov 112  }
  0x30   :  { %330 = vmatprep.subr.bf16.mxu0 %v6923_v18  ;;  %391 = vmatprep.subr.bf16.mxu1 %v6928_v25  ;;  %v6674_v36 = vcombine.low %v57_v30, %v57_v30  ;;  %v86_v37 = vor.u32 %v84_v24, %v82_v23  ;;  %v319_v38 = vsel %vm147_vm0, %v6672_v28, 0  ;;  %vm98_vm5 = vmand %vm96_vm3, %vm97_vm4  ;;  %v6938_v43 = vld [vmem:[#allocation2 + $0x6c] ss:$16 sps:$4 sm:$0xff]   ;;  %v466_v45 = vld [vmem:[#allocation2 + $0x80] sm:$0x11]  ;;  %v453_v55 = vrot.slane %v7110_v11, 1 }
  0x31   :  { %v83_v32 = vsel %vm71_vm1, %v78_v26, %v82_v23  ;;  %v94_v39 = vor.u32 %v92_v29, %v90_v33  ;;  %v6932_v46 = vld [vmem:[#allocation2 + $0x60] ss:$16 sps:$4 sm:$0xff]   ;;  %v467_v47 = vld [vmem:[#allocation2 + $0x88] sm:$0x11]  ;;  %v6689_v48 = vcombine.high %v466_v45, %v466_v45  ;;  %v6688_v49 = vcombine.low %v466_v45, %v466_v45  ;;  %s7043_s22 = smov 80   ;;  %s7044_s23 = smov 32  }
  0x32   :  { %6661 = vmatmul.mubr.msk.bf16.vlgmr.msra.gmra.mrb[0].mxu0 %vm137_vm2, %v83_v32  ;;  %6665 = vmatmul.mubr.msk.bf16.vlgmr.msra.gmra.mrb[0].mxu1 %vm137_vm2, %v83_v32  ;;  %v325_v42 = vsel %vm147_vm0, %v6674_v36, 0  ;;  %v91_v44 = vsel %vm71_vm1, %v86_v37, %v90_v33  ;;  %v6936_v50 = vld [vmem:[#allocation2 + $0x68] ss:$16 sps:$4 sm:$0xff]   ;;  %v6691_v51 = vcombine.high %v467_v47, %v467_v47  ;;  %v6690_v52 = vcombine.low %v467_v47, %v467_v47  ;;  %s7045_s24 = smov 48   ;;  %s7050_s29 = smov [#allocation7]  }
  0x33   :  { %331 = vmatpush1.bf16.msra.mxu0 %v6921_v20  ;;  %202 = vmatprep.mubr.bf16.mxu0 %v7040_v0  ;;  %v99_v41 = vsel %vm98_vm5, %v94_v39, 0  ;;  %v507_v53 = vsel %vm147_vm0, %v6688_v49, 0  ;;  %v454_v56 = vrot.slane %v7117_v13, 1  ;;  %vm452_vm6 = vcmask 1046528   ;;  %s6639_s30 = sshll.u32 %s7050_s29, 4  ;;  %s6640_s30 = int_to_ptr.vmem [resolvable:$true] %s6639_s30 }
  0x34   :  { %263 = vmatprep.mubr.bf16.mxu1 %v7040_v0  ;;  %6676 = vmatprep.subr.msk.bf16.mxu0 %vm147_vm0, %v6673_v31  ;;  %v513_v54 = vsel %vm147_vm0, %v6690_v52, 0  ;;  %v456_v58 = vrot.slane %v7127_v21, 1  ;;  %vm3406_vm7 = vcmask 64512   ;;  %vm4240_vm8 = vcmask 130112   ;;  %s7006_s5 = scalar_lea.vmem %s6640_s30, 32  ;;  %p7011_p3 = scmp.lt.s32.totalorder %s6640_s30, %s6640_s30 }
  0x35   :  { %392 = vmatpush1.bf16.msra.mxu1 %v6926_v34  ;;  %v455_v57 = vsel %vm452_vm6, %v453_v55, %v454_v56  ;;  %vm4071_vm9 = vcmask 7168   ;;  %vm7049_vm10 = vmmov 0   ;;  %vm4247_vm11 = vcmask 195712   ;;  %p7007_p2 = scmp.ne.s32.totalorder %s6640_s30, %s7006_s5  ;;  %p7012_p4 = scmp.lt.s32.totalorder %s7006_s5, %s7006_s5 }
  0x36   :  { %6680 = vmatprep.subr.msk.bf16.mxu1 %vm147_vm0, %v6675_v35  ;;  %v457_v59 = vsel %vm452_vm6, %v454_v56, %v456_v58  ;;  %v460_v60 = vsel %vm147_vm0, %v456_v58, 0  ;;  %vm4254_vm12 = vcmask 261312   ;;  %vm4275_vm13 = vcmask 1041409  }
  0x37   :  { %333 = vmatpush1.bf16.msra.mxu0 %v319_v38  ;;  %vm4290_vm14 = vcmask 261120   ;;  %p7013_p5 = por %p7012_p4, %p7011_p3 }
  0x38   :  { %518 = vmatprep.subr.bf16.mxu0 %v6934_v40 }
  0x39   :  { %394 = vmatpush1.bf16.msra.mxu1 %v325_v42  ;;  %p7014_p6 = pnand %p7013_p5, %p7007_p2 }
  0x3a   :  { %6662 = vmatmul.mubr.msk.bf16.gmra.mrb[4].mxu0 %vm137_vm2, %v91_v44  ;;  %6666 = vmatmul.mubr.msk.bf16.gmra.mrb[4].mxu1 %vm137_vm2, %v91_v44 }
  0x3b   :  { %212 = vmatprep.mubr.bf16.mxu0 %v7040_v0  ;;  %273 = vmatprep.mubr.bf16.mxu1 %v7040_v0 }
  0x3c   :  { %579 = vmatprep.subr.bf16.mxu1 %v6938_v43 }
  0x42   :  { %6663 = vmatmul.mubr.msk.bf16.gmra.mrb[8].mxu0 %vm137_vm2, %v99_v41  ;;  %6667 = vmatmul.mubr.msk.bf16.gmra.mrb[8].mxu1 %vm137_vm2, %v99_v41 }
  0x43   :  { %362 = vmatprep.mubr.bf16.mxu0 %v7040_v0  ;;  %423 = vmatprep.mubr.bf16.mxu1 %v7040_v0 }
  0x4a   :  { %6677 = vmatmul.mubr.msk.bf16.vlgmr.msra.gmra.mrb[0].mxu0 %vm137_vm2, %v7110_v11  ;;  %6681 = vmatmul.mubr.msk.bf16.vlgmr.msra.gmra.mrb[0].mxu1 %vm137_vm2, %v7110_v11 }
  0x4b   :  { %519 = vmatpush1.bf16.msra.mxu0 %v6932_v46  ;;  %372 = vmatprep.mubr.bf16.mxu0 %v7040_v0 }
  0x4c   :  { %433 = vmatprep.mubr.bf16.mxu1 %v7040_v0  ;;  %6692 = vmatprep.subr.msk.bf16.mxu0 %vm147_vm0, %v6689_v48 }
  0x4d   :  { %580 = vmatpush1.bf16.msra.mxu1 %v6936_v50 }
  0x4e   :  { %6696 = vmatprep.subr.msk.bf16.mxu1 %vm147_vm0, %v6691_v51 }
  0x4f   :  { %521 = vmatpush1.bf16.msra.mxu0 %v507_v53 }
  0x51   :  { %582 = vmatpush1.bf16.msra.mxu1 %v513_v54 }
  0x52   :  { %6678 = vmatmul.mubr.msk.bf16.gmra.mrb[4].mxu0 %vm137_vm2, %v7117_v13  ;;  %6682 = vmatmul.mubr.msk.bf16.gmra.mrb[4].mxu1 %vm137_vm2, %v7117_v13 }
  0x53   :  { %382 = vmatprep.mubr.bf16.mxu0 %v7040_v0  ;;  %443 = vmatprep.mubr.bf16.mxu1 %v7040_v0 }
  0x5a   :  { %6679 = vmatmul.mubr.msk.bf16.gmra.mrb[8].mxu0 %vm137_vm2, %v7127_v21  ;;  %6683 = vmatmul.mubr.msk.bf16.gmra.mrb[8].mxu1 %vm137_vm2, %v7127_v21 }
  0x5b   :  { %550 = vmatprep.mubr.bf16.mxu0 %v7040_v0  ;;  %611 = vmatprep.mubr.bf16.mxu1 %v7040_v0 }
  0x62   :  { %6693 = vmatmul.mubr.msk.bf16.vlgmr.msra.gmra.mrb[0].mxu0 %vm137_vm2, %v455_v57  ;;  %6697 = vmatmul.mubr.msk.bf16.vlgmr.msra.gmra.mrb[0].mxu1 %vm137_vm2, %v455_v57 }
  0x63   :  { %560 = vmatprep.mubr.bf16.mxu0 %v7040_v0  ;;  %621 = vmatprep.mubr.bf16.mxu1 %v7040_v0 }
  0x6a   :  { %6694 = vmatmul.mubr.msk.bf16.gmra.mrb[4].mxu0 %vm137_vm2, %v457_v59  ;;  %6698 = vmatmul.mubr.msk.bf16.gmra.mrb[4].mxu1 %vm137_vm2, %v457_v59 }
  0x6b   :  { %570 = vmatprep.mubr.bf16.mxu0 %v7040_v0  ;;  %631 = vmatprep.mubr.bf16.mxu1 %v7040_v0 }
  0x72   :  { %6695 = vmatmul.mubr.msk.bf16.gmra.mrb[8].mxu0 %vm137_vm2, %v460_v60  ;;  %6699 = vmatmul.mubr.msk.bf16.gmra.mrb[8].mxu1 %vm137_vm2, %v460_v60 }
 0x135   :  { %v7186_v61 = vpop.f32.mrb[0].mxu0  ;;  %v7188_v62 = vpop.f32.mrb[0].mxu1 }
 0x136   :  { %v7190_v63 = vpop.f32.mrb[1].mxu1  ;;  %680 = vrot.lane.b32.xlu1 %v7186_v61, %s7041_s0  ;;  %665 = vrot.lane.b32.xlu0 %v7186_v61, %s7042_s21  ;;  %v7196_v0 = vpop.f32.mrb[1].mxu0 }
 0x137   :  { %12247 = vst [vmem:[#allocation11_spill] sm:$0xff] %v7190_v63  ;;  %v7198_v1 = vpop.f32.mrb[2].mxu0  ;;  %v7200_v2 = vpop.f32.mrb[2].mxu1 }
 0x138   :  { %12248 = vst [vmem:[#allocation12_spill] sm:$0xff] %v7198_v1  ;;  %12249 = vst [vmem:[#allocation13_spill] sm:$0xff] %v7200_v2  ;;  %v7202_v3 = vpop.f32.mrb[3].mxu0  ;;  %v7204_v4 = vpop.f32.mrb[3].mxu1 }
 0x139   :  { %12250 = vst [vmem:[#allocation14_spill] sm:$0xff] %v7202_v3  ;;  %12251 = vst [vmem:[#allocation15_spill] sm:$0xff] %v7204_v4 }
 0x13a   :  { %710 = vrot.lane.b32.xlu1 %v7186_v61, %s7038_s1  ;;  %695 = vrot.lane.b32.xlu0 %v7186_v61, %s7043_s22 }
 0x13d   :  { %v7210_v5 = vpop.f32.mrb[4].mxu0  ;;  %v7212_v6 = vpop.f32.mrb[4].mxu1 }
 0x13e   :  { %12252 = vst [vmem:[#allocation16_spill] sm:$0xff] %v7210_v5  ;;  %12253 = vst [vmem:[#allocation17_spill] sm:$0xff] %v7212_v6  ;;  %v7214_v7 = vpop.f32.mrb[5].mxu1  ;;  %740 = vrot.lane.b32.xlu1 %v7186_v61, %s7044_s23  ;;  %725 = vrot.lane.b32.xlu0 %v7186_v61, %s7045_s24  ;;  %v7220_v8 = vpop.f32.mrb[5].mxu0 }
 0x13f   :  { %12254 = vst [vmem:[#allocation18_spill] sm:$0xff] %v7214_v7  ;;  %12255 = vst [vmem:[#allocation19_spill] sm:$0xff] %v7220_v8  ;;  %v7222_v9 = vpop.f32.mrb[6].mxu0  ;;  %v7224_v10 = vpop.f32.mrb[6].mxu1 }
 0x140   :  { %12256 = vst [vmem:[#allocation20_spill] sm:$0xff] %v7222_v9  ;;  %12257 = vst [vmem:[#allocation21_spill] sm:$0xff] %v7224_v10  ;;  %v7226_v11 = vpop.f32.mrb[7].mxu0  ;;  %v7228_v12 = vpop.f32.mrb[7].mxu1 }
 0x141   :  { %12258 = vst [vmem:[#allocation22_spill] sm:$0xff] %v7226_v11  ;;  %12259 = vst [vmem:[#allocation23_spill] sm:$0xff] %v7228_v12 }
 0x142   :  { %900 = vrot.lane.b32.xlu1 %v7188_v62, %s7041_s0  ;;  %755 = vrot.lane.b32.xlu0 %v7186_v61, %s7036_s26 }
 0x145   :  { %v7234_v13 = vpop.f32.mrb[8].mxu0  ;;  %v7236_v14 = vpop.f32.mrb[8].mxu1 }
 0x146   :  { %12260 = vst [vmem:[#allocation24_spill] sm:$0xff] %v7234_v13  ;;  %12261 = vst [vmem:[#allocation25_spill] sm:$0xff] %v7236_v14  ;;  %v7238_v15 = vpop.f32.mrb[9].mxu1  ;;  %930 = vrot.lane.b32.xlu1 %v7188_v62, %s7038_s1  ;;  %885 = vrot.lane.b32.xlu0 %v7188_v62, %s7042_s21  ;;  %v7244_v16 = vpop.f32.mrb[9].mxu0 }
 0x147   :  { %12262 = vst [vmem:[#allocation26_spill] sm:$0xff] %v7238_v15  ;;  %12263 = vst [vmem:[#allocation27_spill] sm:$0xff] %v7244_v16  ;;  %v576_v17 = vpop.f32.mrb[10].mxu0  ;;  %v637_v18 = vpop.f32.mrb[10].mxu1 }
 0x148   :  { %v577_v19 = vpop.f32.mrb[11].mxu0  ;;  %v638_v20 = vpop.f32.mrb[11].mxu1 }
 0x14a   :  { %960 = vrot.lane.b32.xlu1 %v7188_v62, %s7044_s23  ;;  %915 = vrot.lane.b32.xlu0 %v7188_v62, %s7043_s22 }
 0x14e   :  { %945 = vrot.lane.b32.xlu0 %v7188_v62, %s7045_s24  ;;  %775 = vrot.lane.b32.xlu1 %v7196_v0, %s7042_s21 }
 0x152   :  { %975 = vrot.lane.b32.xlu0 %v7188_v62, %s7036_s26  ;;  %805 = vrot.lane.b32.xlu1 %v7196_v0, %s7043_s22 }
 0x156   :  { %790 = vrot.lane.b32.xlu0 %v7196_v0, %s7041_s0  ;;  %835 = vrot.lane.b32.xlu1 %v7196_v0, %s7045_s24 }
 0x15a   :  { %820 = vrot.lane.b32.xlu0 %v7196_v0, %s7038_s1  ;;  %865 = vrot.lane.b32.xlu1 %v7196_v0, %s7036_s26 }
 0x15e   :  { %850 = vrot.lane.b32.xlu0 %v7196_v0, %s7044_s23  ;;  %995 = vrot.lane.b32.xlu1 %v7190_v63, %s7042_s21 }
 0x162   :  { %1010 = vrot.lane.b32.xlu0 %v7190_v63, %s7041_s0  ;;  %1025 = vrot.lane.b32.xlu1 %v7190_v63, %s7043_s22 }
 0x166   :  { %1040 = vrot.lane.b32.xlu0 %v7190_v63, %s7038_s1  ;;  %1055 = vrot.lane.b32.xlu1 %v7190_v63, %s7045_s24 }
 0x16a   :  { %1070 = vrot.lane.b32.xlu0 %v7190_v63, %s7044_s23  ;;  %1085 = vrot.lane.b32.xlu1 %v7190_v63, %s7036_s26 }
 0x16e   :  { %697 = vrot.lane.b32.xlu1 %v7198_v1, %s7043_s22  ;;  %667 = vrot.lane.b32.xlu0 %v7198_v1, %s7042_s21 }
 0x172   :  { %727 = vrot.lane.b32.xlu1 %v7198_v1, %s7045_s24  ;;  %682 = vrot.lane.b32.xlu0 %v7198_v1, %s7041_s0 }
 0x176   :  { %757 = vrot.lane.b32.xlu1 %v7198_v1, %s7036_s26  ;;  %712 = vrot.lane.b32.xlu0 %v7198_v1, %s7038_s1 }
 0x17a   :  { %887 = vrot.lane.b32.xlu1 %v7200_v2, %s7042_s21  ;;  %742 = vrot.lane.b32.xlu0 %v7198_v1, %s7044_s23 }
 0x17e   :  { %917 = vrot.lane.b32.xlu1 %v7200_v2, %s7043_s22  ;;  %902 = vrot.lane.b32.xlu0 %v7200_v2, %s7041_s0 }
 0x182   :  { %947 = vrot.lane.b32.xlu1 %v7200_v2, %s7045_s24  ;;  %932 = vrot.lane.b32.xlu0 %v7200_v2, %s7038_s1 }
 0x186   :  { %977 = vrot.lane.b32.xlu1 %v7200_v2, %s7036_s26  ;;  %962 = vrot.lane.b32.xlu0 %v7200_v2, %s7044_s23 }
 0x18a   :  { %792 = vrot.lane.b32.xlu1 %v7202_v3, %s7041_s0  ;;  %777 = vrot.lane.b32.xlu0 %v7202_v3, %s7042_s21 }
 0x18e   :  { %822 = vrot.lane.b32.xlu1 %v7202_v3, %s7038_s1  ;;  %807 = vrot.lane.b32.xlu0 %v7202_v3, %s7043_s22 }
 0x192   :  { %852 = vrot.lane.b32.xlu1 %v7202_v3, %s7044_s23  ;;  %837 = vrot.lane.b32.xlu0 %v7202_v3, %s7045_s24 }
 0x196   :  { %1012 = vrot.lane.b32.xlu1 %v7204_v4, %s7041_s0  ;;  %867 = vrot.lane.b32.xlu0 %v7202_v3, %s7036_s26 }
 0x19a   :  { %1042 = vrot.lane.b32.xlu1 %v7204_v4, %s7038_s1  ;;  %997 = vrot.lane.b32.xlu0 %v7204_v4, %s7042_s21 }
 0x19e   :  { %1072 = vrot.lane.b32.xlu1 %v7204_v4, %s7044_s23  ;;  %1027 = vrot.lane.b32.xlu0 %v7204_v4, %s7043_s22 }
 0x1a2   :  { %1057 = vrot.lane.b32.xlu0 %v7204_v4, %s7045_s24  ;;  %669 = vrot.lane.b32.xlu1 %v7210_v5, %s7042_s21 }
 0x1a6   :  { %1087 = vrot.lane.b32.xlu0 %v7204_v4, %s7036_s26  ;;  %684 = vrot.lane.b32.xlu1 %v7210_v5, %s7041_s0 }
 0x1a8   :  { %v7342_v21 = vpop.permute.xlu1 %680  ;;  %v7344_v22 = vpop.permute.xlu0 %665 }
 0x1aa   :  { %699 = vrot.lane.b32.xlu0 %v7210_v5, %s7043_s22  ;;  %714 = vrot.lane.b32.xlu1 %v7210_v5, %s7038_s1 }
 0x1ac   :  { %v7350_v23 = vpop.permute.xlu1 %710  ;;  %v7352_v24 = vpop.permute.xlu0 %695 }
 0x1ae   :  { %729 = vrot.lane.b32.xlu0 %v7210_v5, %s7045_s24  ;;  %744 = vrot.lane.b32.xlu1 %v7210_v5, %s7044_s23 }
 0x1b0   :  { %v7358_v25 = vpop.permute.xlu1 %740  ;;  %v7360_v26 = vpop.permute.xlu0 %725 }
 0x1b2   :  { %759 = vrot.lane.b32.xlu0 %v7210_v5, %s7036_s26  ;;  %904 = vrot.lane.b32.xlu1 %v7212_v6, %s7041_s0 }
 0x1b4   :  { %v7366_v27 = vpop.permute.xlu1 %900  ;;  %v7368_v28 = vpop.permute.xlu0 %755 }
 0x1b6   :  { %889 = vrot.lane.b32.xlu0 %v7212_v6, %s7042_s21  ;;  %934 = vrot.lane.b32.xlu1 %v7212_v6, %s7038_s1 }
 0x1b8   :  { %v7374_v29 = vpop.permute.xlu1 %930  ;;  %v7376_v30 = vpop.permute.xlu0 %885 }
 0x1ba   :  { %919 = vrot.lane.b32.xlu0 %v7212_v6, %s7043_s22  ;;  %964 = vrot.lane.b32.xlu1 %v7212_v6, %s7044_s23 }
 0x1bc   :  { %v7382_v31 = vpop.permute.xlu1 %960  ;;  %v7384_v32 = vpop.permute.xlu0 %915 }
 0x1be   :  { %949 = vrot.lane.b32.xlu0 %v7212_v6, %s7045_s24  ;;  %779 = vrot.lane.b32.xlu1 %v7220_v8, %s7042_s21 }
 0x1c0   :  { %v7390_v33 = vpop.permute.xlu0 %945  ;;  %v7392_v34 = vpop.permute.xlu1 %775 }
 0x1c2   :  { %979 = vrot.lane.b32.xlu0 %v7212_v6, %s7036_s26  ;;  %809 = vrot.lane.b32.xlu1 %v7220_v8, %s7043_s22 }
 0x1c4   :  { %v7398_v35 = vpop.permute.xlu0 %975  ;;  %v7400_v36 = vpop.permute.xlu1 %805 }
 0x1c6   :  { %794 = vrot.lane.b32.xlu0 %v7220_v8, %s7041_s0  ;;  %839 = vrot.lane.b32.xlu1 %v7220_v8, %s7045_s24 }
 0x1c8   :  { %v7406_v37 = vpop.permute.xlu0 %790  ;;  %v7408_v38 = vpop.permute.xlu1 %835 }
 0x1ca   :  { %824 = vrot.lane.b32.xlu0 %v7220_v8, %s7038_s1  ;;  %869 = vrot.lane.b32.xlu1 %v7220_v8, %s7036_s26 }
 0x1cc   :  { %v7414_v39 = vpop.permute.xlu0 %820  ;;  %v7416_v40 = vpop.permute.xlu1 %865 }
 0x1ce   :  { %854 = vrot.lane.b32.xlu0 %v7220_v8, %s7044_s23  ;;  %999 = vrot.lane.b32.xlu1 %v7214_v7, %s7042_s21 }
 0x1d0   :  { %v7422_v41 = vpop.permute.xlu0 %850  ;;  %v7424_v42 = vpop.permute.xlu1 %995 }
 0x1d1   :  { %12264 = vst [vmem:[#allocation28_spill] sm:$0xff] %v7424_v42 }
 0x1d2   :  { %1014 = vrot.lane.b32.xlu0 %v7214_v7, %s7041_s0  ;;  %1029 = vrot.lane.b32.xlu1 %v7214_v7, %s7043_s22 }
 0x1d4   :  { %v7430_v43 = vpop.permute.xlu0 %1010  ;;  %v7432_v44 = vpop.permute.xlu1 %1025 }
 0x1d5   :  { %12265 = vst [vmem:[#allocation29_spill] sm:$0xff] %v7430_v43  ;;  %12266 = vst [vmem:[#allocation30_spill] sm:$0xff] %v7432_v44 }
 0x1d6   :  { %1044 = vrot.lane.b32.xlu0 %v7214_v7, %s7038_s1  ;;  %1059 = vrot.lane.b32.xlu1 %v7214_v7, %s7045_s24 }
 0x1d8   :  { %v7438_v45 = vpop.permute.xlu0 %1040  ;;  %v7440_v46 = vpop.permute.xlu1 %1055 }
 0x1da   :  { %1074 = vrot.lane.b32.xlu0 %v7214_v7, %s7044_s23  ;;  %1089 = vrot.lane.b32.xlu1 %v7214_v7, %s7036_s26 }
 0x1dc   :  { %v7446_v47 = vpop.permute.xlu0 %1070  ;;  %v7448_v48 = vpop.permute.xlu1 %1085 }
 0x1de   :  { %686 = vrot.lane.b32.xlu0 %v7222_v9, %s7041_s0  ;;  %671 = vrot.lane.b32.xlu1 %v7222_v9, %s7042_s21 }
 0x1e0   :  { %v7454_v49 = vpop.permute.xlu1 %697  ;;  %v7456_v50 = vpop.permute.xlu0 %667 }
 0x1e1   :  { %12267 = vst [vmem:[#allocation31_spill] sm:$0xff] %v7454_v49  ;;  %12268 = vst [vmem:[#allocation32_spill] sm:$0xff] %v7456_v50 }
 0x1e2   :  { %716 = vrot.lane.b32.xlu0 %v7222_v9, %s7038_s1  ;;  %701 = vrot.lane.b32.xlu1 %v7222_v9, %s7043_s22 }
 0x1e4   :  { %v7462_v51 = vpop.permute.xlu1 %727  ;;  %v7464_v52 = vpop.permute.xlu0 %682 }
 0x1e5   :  { %12269 = vst [vmem:[#allocation33_spill] sm:$0xff] %v7462_v51  ;;  %12270 = vst [vmem:[#allocation34_spill] sm:$0xff] %v7464_v52 }
 0x1e6   :  { %746 = vrot.lane.b32.xlu0 %v7222_v9, %s7044_s23  ;;  %731 = vrot.lane.b32.xlu1 %v7222_v9, %s7045_s24 }
 0x1e8   :  { %v7470_v53 = vpop.permute.xlu1 %757  ;;  %v7472_v54 = vpop.permute.xlu0 %712 }
 0x1e9   :  { %12271 = vst [vmem:[#allocation35_spill] sm:$0xff] %v7470_v53  ;;  %12272 = vst [vmem:[#allocation36_spill] sm:$0xff] %v7472_v54 }
 0x1ea   :  { %906 = vrot.lane.b32.xlu0 %v7224_v10, %s7041_s0  ;;  %761 = vrot.lane.b32.xlu1 %v7222_v9, %s7036_s26 }
 0x1ec   :  { %v7478_v55 = vpop.permute.xlu1 %887  ;;  %v7480_v56 = vpop.permute.xlu0 %742 }
 0x1ed   :  { %12273 = vst [vmem:[#allocation37_spill] sm:$0xff] %v7478_v55  ;;  %12274 = vst [vmem:[#allocation38_spill] sm:$0xff] %v7480_v56 }
 0x1ee   :  { %936 = vrot.lane.b32.xlu0 %v7224_v10, %s7038_s1  ;;  %891 = vrot.lane.b32.xlu1 %v7224_v10, %s7042_s21 }
 0x1f0   :  { %v7486_v57 = vpop.permute.xlu1 %917  ;;  %v7488_v58 = vpop.permute.xlu0 %902 }
 0x1f1   :  { %12275 = vst [vmem:[#allocation39_spill] sm:$0xff] %v7486_v57  ;;  %12276 = vst [vmem:[#allocation40_spill] sm:$0xff] %v7488_v58 }
 0x1f2   :  { %966 = vrot.lane.b32.xlu0 %v7224_v10, %s7044_s23  ;;  %921 = vrot.lane.b32.xlu1 %v7224_v10, %s7043_s22 }
 0x1f4   :  { %v7494_v59 = vpop.permute.xlu1 %947  ;;  %v7496_v60 = vpop.permute.xlu0 %932 }
 0x1f5   :  { %12277 = vst [vmem:[#allocation41_spill] sm:$0xff] %v7494_v59  ;;  %12278 = vst [vmem:[#allocation42_spill] sm:$0xff] %v7496_v60 }
 0x1f6   :  { %781 = vrot.lane.b32.xlu0 %v7226_v11, %s7042_s21  ;;  %951 = vrot.lane.b32.xlu1 %v7224_v10, %s7045_s24 }
 0x1f8   :  { %v7502_v17 = vpop.permute.xlu1 %977  ;;  %v7504_v18 = vpop.permute.xlu0 %962 }
 0x1f9   :  { %12279 = vst [vmem:[#allocation43_spill] sm:$0xff] %v7502_v17  ;;  %12280 = vst [vmem:[#allocation44_spill] sm:$0xff] %v7504_v18 }
 0x1fa   :  { %811 = vrot.lane.b32.xlu0 %v7226_v11, %s7043_s22  ;;  %981 = vrot.lane.b32.xlu1 %v7224_v10, %s7036_s26 }
 0x1fc   :  { %v7510_v19 = vpop.permute.xlu1 %792  ;;  %v7512_v20 = vpop.permute.xlu0 %777 }
 0x1fd   :  { %12281 = vst [vmem:[#allocation45_spill] sm:$0xff] %v7510_v19  ;;  %12282 = vst [vmem:[#allocation46_spill] sm:$0xff] %v7512_v20 }
 0x1fe   :  { %841 = vrot.lane.b32.xlu0 %v7226_v11, %s7045_s24  ;;  %796 = vrot.lane.b32.xlu1 %v7226_v11, %s7041_s0 }
 0x200   :  { %v7518_v9 = vpop.permute.xlu1 %822  ;;  %v7520_v6 = vpop.permute.xlu0 %807 }
 0x201   :  { %12283 = vst [vmem:[#allocation47_spill] sm:$0xff] %v7518_v9  ;;  %12284 = vst [vmem:[#allocation48_spill] sm:$0xff] %v7520_v6 }
 0x202   :  { %871 = vrot.lane.b32.xlu0 %v7226_v11, %s7036_s26  ;;  %826 = vrot.lane.b32.xlu1 %v7226_v11, %s7038_s1 }
 0x204   :  { %v7526_v10 = vpop.permute.xlu1 %852  ;;  %v7528_v8 = vpop.permute.xlu0 %837 }
 0x205   :  { %12285 = vst [vmem:[#allocation49_spill] sm:$0xff] %v7526_v10  ;;  %12286 = vst [vmem:[#allocation50_spill] sm:$0xff] %v7528_v8  ;;  %v1236_v8 = vcombine.low %v7196_v0, %v7406_v37 }
 0x206   :  { %1001 = vrot.lane.b32.xlu0 %v7228_v12, %s7042_s21  ;;  %856 = vrot.lane.b32.xlu1 %v7226_v11, %s7044_s23 }
 0x208   :  { %v7534_v5 = vpop.permute.xlu1 %1012  ;;  %v7536_v4 = vpop.permute.xlu0 %867 }
 0x209   :  { %12287 = vst [vmem:[#allocation51_spill] sm:$0xff] %v7534_v5  ;;  %12288 = vst [vmem:[#allocation52_spill] sm:$0xff] %v7536_v4  ;;  %v1284_v4 = vcombine.low %v7408_v38, %v7416_v40 }
 0x20a   :  { %1031 = vrot.lane.b32.xlu0 %v7228_v12, %s7043_s22  ;;  %1016 = vrot.lane.b32.xlu1 %v7228_v12, %s7041_s0 }
 0x20c   :  { %v7542_v3 = vpop.permute.xlu1 %1042  ;;  %v7544_v19 = vpop.permute.xlu0 %997 }
 0x20d   :  { %12289 = vst [vmem:[#allocation53_spill] sm:$0xff] %v7542_v3  ;;  %12290 = vst [vmem:[#allocation54_spill] sm:$0xff] %v7544_v19 }
 0x20e   :  { %1061 = vrot.lane.b32.xlu0 %v7228_v12, %s7045_s24  ;;  %1046 = vrot.lane.b32.xlu1 %v7228_v12, %s7038_s1 }
 0x210   :  { %v7550_v11 = vpop.permute.xlu1 %1072  ;;  %v7552_v5 = vpop.permute.xlu0 %1027 }
 0x211   :  { %12291 = vst [vmem:[#allocation55_spill] sm:$0xff] %v7550_v11  ;;  %12292 = vst [vmem:[#allocation56_spill] sm:$0xff] %v7552_v5 }
 0x212   :  { %1091 = vrot.lane.b32.xlu0 %v7228_v12, %s7036_s26  ;;  %1076 = vrot.lane.b32.xlu1 %v7228_v12, %s7044_s23 }
 0x214   :  { %v7558_v2 = vpop.permute.xlu0 %1057  ;;  %v7560_v3 = vpop.permute.xlu1 %669 }
 0x215   :  { %12293 = vst [vmem:[#allocation57_spill] sm:$0xff] %v7558_v2  ;;  %12294 = vst [vmem:[#allocation58_spill] sm:$0xff] %v7560_v3 }
 0x216   :  { %673 = vrot.lane.b32.xlu0 %v7234_v13, %s7042_s21  ;;  %688 = vrot.lane.b32.xlu1 %v7234_v13, %s7041_s0 }
 0x218   :  { %v7566_v19 = vpop.permute.xlu0 %1087  ;;  %v7568_v11 = vpop.permute.xlu1 %684 }
 0x219   :  { %12295 = vst [vmem:[#allocation59_spill] sm:$0xff] %v7566_v19  ;;  %12296 = vst [vmem:[#allocation60_spill] sm:$0xff] %v7568_v11 }
 0x21a   :  { %703 = vrot.lane.b32.xlu0 %v7234_v13, %s7043_s22  ;;  %718 = vrot.lane.b32.xlu1 %v7234_v13, %s7038_s1 }
 0x21c   :  { %v7574_v12 = vpop.permute.xlu0 %699  ;;  %v7576_v5 = vpop.permute.xlu1 %714 }
 0x21d   :  { %12297 = vst [vmem:[#allocation61_spill] sm:$0xff] %v7574_v12  ;;  %12298 = vst [vmem:[#allocation62_spill] sm:$0xff] %v7576_v5 }
 0x21e   :  { %733 = vrot.lane.b32.xlu0 %v7234_v13, %s7045_s24  ;;  %748 = vrot.lane.b32.xlu1 %v7234_v13, %s7044_s23 }
 0x220   :  { %v7582_v3 = vpop.permute.xlu0 %729  ;;  %v7584_v2 = vpop.permute.xlu1 %744 }
 0x221   :  { %12299 = vst [vmem:[#allocation63_spill] sm:$0xff] %v7582_v3  ;;  %12300 = vst [vmem:[#allocation64_spill] sm:$0xff] %v7584_v2 }
 0x222   :  { %763 = vrot.lane.b32.xlu0 %v7234_v13, %s7036_s26  ;;  %908 = vrot.lane.b32.xlu1 %v7236_v14, %s7041_s0 }
 0x224   :  { %v7590_v11 = vpop.permute.xlu0 %759  ;;  %v7592_v12 = vpop.permute.xlu1 %904 }
 0x225   :  { %12301 = vst [vmem:[#allocation65_spill] sm:$0xff] %v7590_v11  ;;  %12302 = vst [vmem:[#allocation66_spill] sm:$0xff] %v7592_v12  ;;  %v12048_v11 = vlaneseq }
 0x226   :  { %893 = vrot.lane.b32.xlu0 %v7236_v14, %s7042_s21  ;;  %938 = vrot.lane.b32.xlu1 %v7236_v14, %s7038_s1 }
 0x228   :  { %v7598_v5 = vpop.permute.xlu0 %889  ;;  %v7600_v3 = vpop.permute.xlu1 %934 }
 0x229   :  { %12303 = vst [vmem:[#allocation67_spill] sm:$0xff] %v7598_v5  ;;  %12304 = vst [vmem:[#allocation68_spill] sm:$0xff] %v7600_v3 }
 0x22a   :  { %923 = vrot.lane.b32.xlu0 %v7236_v14, %s7043_s22  ;;  %968 = vrot.lane.b32.xlu1 %v7236_v14, %s7044_s23 }
 0x22c   :  { %v7606_v13 = vpop.permute.xlu0 %919  ;;  %v7608_v2 = vpop.permute.xlu1 %964 }
 0x22d   :  { %12305 = vst [vmem:[#allocation69_spill] sm:$0xff] %v7606_v13  ;;  %12306 = vst [vmem:[#allocation70_spill] sm:$0xff] %v7608_v2 }
 0x22e   :  { %953 = vrot.lane.b32.xlu0 %v7236_v14, %s7045_s24  ;;  %783 = vrot.lane.b32.xlu1 %v7244_v16, %s7042_s21 }
 0x230   :  { %v7614_v12 = vpop.permute.xlu0 %949  ;;  %v7616_v5 = vpop.permute.xlu1 %779 }
 0x231   :  { %12307 = vst [vmem:[#allocation71_spill] sm:$0xff] %v7614_v12  ;;  %12308 = vst [vmem:[#allocation72_spill] sm:$0xff] %v7616_v5 }
 0x232   :  { %983 = vrot.lane.b32.xlu0 %v7236_v14, %s7036_s26  ;;  %813 = vrot.lane.b32.xlu1 %v7244_v16, %s7043_s22 }
 0x234   :  { %v7622_v3 = vpop.permute.xlu0 %979  ;;  %v7624_v13 = vpop.permute.xlu1 %809 }
 0x235   :  { %12309 = vst [vmem:[#allocation73_spill] sm:$0xff] %v7622_v3  ;;  %12310 = vst [vmem:[#allocation74_spill] sm:$0xff] %v7624_v13 }
 0x236   :  { %798 = vrot.lane.b32.xlu0 %v7244_v16, %s7041_s0  ;;  %843 = vrot.lane.b32.xlu1 %v7244_v16, %s7045_s24 }
 0x238   :  { %v7630_v2 = vpop.permute.xlu0 %794  ;;  %v7632_v12 = vpop.permute.xlu1 %839 }
 0x239   :  { %12311 = vst [vmem:[#allocation75_spill] sm:$0xff] %v7630_v2  ;;  %12312 = vst [vmem:[#allocation76_spill] sm:$0xff] %v7632_v12  ;;  %v7046_v12 = vmov 1983009808  }
 0x23a   :  { %828 = vrot.lane.b32.xlu0 %v7244_v16, %s7038_s1  ;;  %873 = vrot.lane.b32.xlu1 %v7244_v16, %s7036_s26  ;;  %v1103_v3 = vunpack.c.l.s4 %v7046_v12 }
 0x23c   :  { %v7638_v14 = vpop.permute.xlu0 %824  ;;  %v7640_v5 = vpop.permute.xlu1 %869 }
 0x23d   :  { %12313 = vst [vmem:[#allocation77_spill] sm:$0xff] %v7638_v14  ;;  %12314 = vst [vmem:[#allocation78_spill] sm:$0xff] %v7640_v5 }
 0x23e   :  { %858 = vrot.lane.b32.xlu0 %v7244_v16, %s7044_s23  ;;  %1003 = vrot.lane.b32.xlu1 %v7238_v15, %s7042_s21  ;;  %v1104_v16 = vunpack.c.0.s8 %v1103_v3  ;;  %v7047_v3 = vmov 1934713408  }
 0x23f   :  { %v1167_v57 = vunpack.c.l.s4 %v7047_v3 }
 0x240   :  { %v7646_v13 = vpop.permute.xlu0 %854  ;;  %v7648_v2 = vpop.permute.xlu1 %999 }
 0x241   :  { %12315 = vst [vmem:[#allocation79_spill] sm:$0xff] %v7646_v13  ;;  %12316 = vst [vmem:[#allocation80_spill] sm:$0xff] %v7648_v2  ;;  %v7661_v13 = vshrl.u32 %v12048_v11, 7  ;;  %v1168_v10 = vunpack.c.0.s8 %v1167_v57 }
 0x242   :  { %1018 = vrot.lane.b32.xlu0 %v7238_v15, %s7041_s0  ;;  %1033 = vrot.lane.b32.xlu1 %v7238_v15, %s7043_s22 }
 0x243   :  { %12319 = vst [vmem:[#allocation83_spill] sm:$0xff] %v7661_v13  ;;  %v7676_v11 = vsub.s32 %v1104_v16, %v7661_v13  ;;  %v7699_v18 = vsub.s32 %v1168_v10, %v7661_v13  ;;  %v1100_v10 = vcombine.low %v7186_v61, %v7342_v21 }
 0x244   :  { %v7654_v5 = vpop.permute.xlu0 %1014  ;;  %v7656_v14 = vpop.permute.xlu1 %1029 }
 0x245   :  { %12317 = vst [vmem:[#allocation81_spill] sm:$0xff] %v7654_v5  ;;  %12318 = vst [vmem:[#allocation82_spill] sm:$0xff] %v7656_v14  ;;  %v2543_v12 = vcombine.high %v7214_v7, %v7654_v5  ;;  %v2559_v58 = vcombine.high %v7648_v2, %v7656_v14  ;;  %v1292_v52 = vrot.slane %v1284_v4, %v7676_v11 }
 0x246   :  { %1048 = vrot.lane.b32.xlu0 %v7238_v15, %s7038_s1  ;;  %1063 = vrot.lane.b32.xlu1 %v7238_v15, %s7045_s24 }
 0x247   :  { %v2557_v7 = vrot.slane %v2543_v12, %v7676_v11  ;;  %v2573_v5 = vrot.slane %v2559_v58, %v7676_v11  ;;  %v1148_v58 = vcombine.low %v7360_v26, %v7368_v28 }
 0x248   :  { %v7665_v19 = vpop.permute.xlu0 %1044  ;;  %v7671_v55 = vpop.permute.xlu1 %1059 }
 0x249   :  { %12320 = vst [vmem:[#allocation84_spill] sm:$0xff] %v7665_v19  ;;  %12321 = vst [vmem:[#allocation85_spill] sm:$0xff] %v7671_v55  ;;  %v2614_v6 = vcombine.low %v2557_v7, %v2573_v5  ;;  %v2615_v60 = vcombine.high %v2557_v7, %v2573_v5  ;;  %v1132_v5 = vcombine.low %v7350_v23, %v7358_v25 }
 0x24a   :  { %1078 = vrot.lane.b32.xlu0 %v7238_v15, %s7044_s23  ;;  %1093 = vrot.lane.b32.xlu1 %v7238_v15, %s7036_s26 }
 0x24c   :  { %v7680_v9 = vpop.permute.xlu0 %1074  ;;  %v7686_v14 = vpop.permute.xlu1 %1089 }
 0x24d   :  { %12322 = vst [vmem:[#allocation86_spill] sm:$0xff] %v7680_v9  ;;  %v2575_v2 = vcombine.high %v7665_v19, %v7680_v9  ;;  %12323 = vst [vmem:[#allocation87_spill] sm:$0xff] %v7686_v14  ;;  %v2591_v3 = vcombine.high %v7671_v55, %v7686_v14  ;;  %v1524_v14 = vcombine.low %v7424_v42, %v7432_v44 }
 0x24f   :  { %v2589_v16 = vrot.slane %v2575_v2, %v7676_v11  ;;  %v2605_v20 = vrot.slane %v2591_v3, %v7676_v11  ;;  %v1116_v3 = vcombine.low %v7344_v22, %v7352_v24 }
 0x250   :  { %v7692_v15 = vpop.permute.xlu0 %686  ;;  %v7694_v12 = vpop.permute.xlu1 %671 }
 0x251   :  { %12324 = vst [vmem:[#allocation88_spill] sm:$0xff] %v7692_v15  ;;  %12325 = vst [vmem:[#allocation89_spill] sm:$0xff] %v7694_v12  ;;  %v2638_v19 = vcombine.low %v2589_v16, %v2605_v20  ;;  %v2639_v9 = vcombine.high %v2589_v16, %v2605_v20  ;;  %v2622_v15 = vrot.slane %v2614_v6, %v7699_v18 }
 0x252   :  { %v2629_v20 = vrot.slane %v2615_v60, %v7699_v18  ;;  %v7716_v16 = vrot.slane %v1148_v58, %v7676_v11  ;;  %v1420_v12 = vcombine.low %v7390_v33, %v7398_v35  ;;  %v7731_v60 = vrot.slane %v1116_v3, %v7676_v11 }
 0x253   :  { %v2646_v2 = vrot.slane %v2638_v19, %v7699_v18  ;;  %v2653_v57 = vrot.slane %v2639_v9, %v7699_v18  ;;  %v1388_v58 = vcombine.low %v7376_v30, %v7384_v32 }
 0x254   :  { %v7701_v55 = vpop.permute.xlu0 %716  ;;  %v7709_v7 = vpop.permute.xlu1 %701 }
 0x255   :  { %12326 = vst [vmem:[#allocation90_spill] sm:$0xff] %v7701_v55  ;;  %12327 = vst [vmem:[#allocation91_spill] sm:$0xff] %v7709_v7  ;;  %v7718_v19 = vcombine.low %v2622_v15, %v2646_v2  ;;  %v7720_v9 = vcombine.high %v2622_v15, %v2646_v2  ;;  %v7722_v13 = vcombine.low %v2629_v20, %v2653_v57 }
 0x256   :  { %v7724_v55 = vcombine.high %v2629_v20, %v2653_v57  ;;  %v7734_v7 = vrot.slane %v1132_v5, %v7676_v11  ;;  %v1404_v2 = vcombine.low %v7374_v29, %v7382_v31  ;;  %v7743_v57 = vrot.slane %v1100_v10, %v7676_v11 }
 0x257   :  { %12328 = vst [vmem:[#allocation92_spill] sm:$0xff] %v7718_v19  ;;  %12329 = vst [vmem:[#allocation93_spill] sm:$0xff] %v7720_v9  ;;  %v1372_v20 = vcombine.low %v7188_v62, %v7366_v27  ;;  %v7750_v5 = vrot.slane %v1420_v12, %v7676_v11  ;;  %v1508_v12 = vcombine.low %v7190_v63, %v7430_v43 }
 0x258   :  { %12330 = vst [vmem:[#allocation94_spill] sm:$0xff] %v7722_v13  ;;  %12331 = vst [vmem:[#allocation95_spill] sm:$0xff] %v7724_v55  ;;  %v7728_v6 = vpop.permute.xlu0 %746  ;;  %v7738_v15 = vpop.permute.xlu1 %731  ;;  %v1196_v3 = vcombine.low %v7734_v7, %v7716_v16  ;;  %v1540_v55 = vcombine.low %v7438_v45, %v7446_v47  ;;  %v1556_v13 = vcombine.low %v7440_v46, %v7448_v48 }
 0x259   :  { %12332 = vst [vmem:[#allocation96_spill] sm:$0xff] %v7728_v6  ;;  %12333 = vst [vmem:[#allocation97_spill] sm:$0xff] %v7738_v15  ;;  %v1164_v10 = vcombine.low %v7743_v57, %v7731_v60  ;;  %v7761_v6 = vrot.slane %v1388_v58, %v7676_v11  ;;  %v7766_v19 = vrot.slane %v1404_v2, %v7676_v11 }
 0x25a   :  { %v7773_v59 = vrot.slane %v1372_v20, %v7676_v11  ;;  %v7781_v2 = vrot.slane %v1540_v55, %v7676_v11  ;;  %v7784_v17 = vrot.slane %v1556_v13, %v7676_v11  ;;  %v7798_v55 = vrot.slane %v1508_v12, %v7676_v11 }
 0x25b   :  { %v1468_v58 = vcombine.low %v7766_v19, %v7750_v5  ;;  %v7801_v13 = vrot.slane %v1524_v14, %v7676_v11  ;;  %v7816_v14 = vrot.slane %v1236_v8, %v7676_v11  ;;  %v1197_v4 = vcombine.high %v7734_v7, %v7716_v16 }
 0x25c   :  { %v7756_v9 = vpop.permute.xlu0 %906  ;;  %v7763_v15 = vpop.permute.xlu1 %761  ;;  %v1436_v20 = vcombine.low %v7773_v59, %v7761_v6  ;;  %v1604_v51 = vcombine.low %v7781_v2, %v7784_v17 }
 0x25d   :  { %12334 = vst [vmem:[#allocation98_spill] sm:$0xff] %v7756_v9  ;;  %12335 = vst [vmem:[#allocation99_spill] sm:$0xff] %v7763_v15  ;;  %v1204_v9 = vrot.slane %v1196_v3, %v7699_v18  ;;  %v1268_v15 = vcombine.low %v7414_v39, %v7422_v41  ;;  %v1172_v3 = vrot.slane %v1164_v10, %v7699_v18 }
 0x25e   :  { %v1476_v1 = vrot.slane %v1468_v58, %v7699_v18  ;;  %v1572_v54 = vcombine.low %v7798_v55, %v7801_v13  ;;  %v1444_v56 = vrot.slane %v1436_v20, %v7699_v18  ;;  %v1612_v8 = vrot.slane %v1604_v51, %v7699_v18 }
 0x25f   :  { %v1276_v10 = vrot.slane %v1268_v15, %v7676_v11  ;;  %v7835_v63 = vcombine.high %v1172_v3, %v1204_v9 }
 0x260   :  { %v7786_v50 = vpop.permute.xlu0 %936  ;;  %v7790_v49 = vpop.permute.xlu1 %891  ;;  %v7827_v58 = vcombine.low %v1444_v56, %v1476_v1 }
 0x261   :  { %12336 = vst [vmem:[#allocation100_spill] sm:$0xff] %v7786_v50  ;;  %12337 = vst [vmem:[#allocation101_spill] sm:$0xff] %v7790_v49  ;;  %v7803_v50 = vcombine.low %v1172_v3, %v1204_v9  ;;  %v1252_v49 = vcombine.low %v7392_v34, %v7400_v36  ;;  %v1211_v9 = vrot.slane %v1197_v4, %v7699_v18 }
 0x262   :  { %12342 = vst [vmem:[#allocation106_spill] sm:$0xff] %v7827_v58  ;;  %12344 = vst [vmem:[#allocation108_spill] sm:$0xff] %v7835_v63  ;;  %v3413_v51 = vsel %vm3406_vm7, %v7827_v58, -inf }
 0x263   :  { %12338 = vst [vmem:[#allocation102_spill] sm:$0xff] %v7803_v50  ;;  %v3407_v15 = vsel %vm3406_vm7, %v7803_v50, -inf  ;;  %v1260_v42 = vrot.slane %v1252_v49, %v7676_v11  ;;  %v1580_v50 = vrot.slane %v1572_v54, %v7699_v18  ;;  %v1165_v49 = vcombine.high %v7743_v57, %v7731_v60 }
 0x264   :  { %v7810_v53 = vpop.permute.xlu0 %966  ;;  %v7813_v12 = vpop.permute.xlu1 %921  ;;  %v1469_v54 = vcombine.high %v7766_v19, %v7750_v5  ;;  %v3419_v60 = vsel %vm3406_vm7, %v7835_v63, -inf  ;;  %v7856_v57 = vcombine.high %v1444_v56, %v1476_v1  ;;  %v1101_v5 = vcombine.high %v7186_v61, %v7342_v21 }
 0x265   :  { %12339 = vst [vmem:[#allocation103_spill] sm:$0xff] %v7810_v53  ;;  %12340 = vst [vmem:[#allocation104_spill] sm:$0xff] %v7813_v12  ;;  %v1332_v53 = vcombine.low %v1276_v10, %v1292_v52  ;;  %v1300_v20 = vcombine.low %v7816_v14, %v1260_v42  ;;  %v7844_v43 = vcombine.low %v1580_v50, %v1612_v8 }
 0x266   :  { %12348 = vst [vmem:[#allocation112_spill] sm:$0xff] %v7856_v57  ;;  %v1179_v56 = vrot.slane %v1165_v49, %v7699_v18  ;;  %v1133_v61 = vcombine.high %v7350_v23, %v7358_v25  ;;  %v1373_v23 = vcombine.high %v7188_v62, %v7366_v27  ;;  %v1405_v27 = vcombine.high %v7374_v29, %v7382_v31 }
 0x267   :  { %12346 = vst [vmem:[#allocation110_spill] sm:$0xff] %v7844_v43  ;;  %v7847_v7 = vrot.slane %v1332_v53, %v7699_v18  ;;  %v7859_v3 = vrot.slane %v1300_v20, %v7699_v18  ;;  %v1117_v53 = vcombine.high %v7344_v22, %v7352_v24  ;;  %v3416_v19 = vsel %vm3406_vm7, %v7844_v43, -inf  ;;  %v12410_v43 = vld [vmem:[#allocation42_spill] sm:$0xff] }
 0x268   :  { %v7825_v44 = vpop.permute.xlu0 %781  ;;  %v7832_v12 = vpop.permute.xlu1 %951  ;;  %v1149_v22 = vcombine.high %v7360_v26, %v7368_v28  ;;  %v1605_v26 = vcombine.high %v7781_v2, %v7784_v17  ;;  %v1421_v17 = vcombine.high %v7390_v33, %v7398_v35  ;;  %v7921_v62 = vrot.slane %v1133_v61, %v7676_v11 }
 0x269   :  { %12341 = vst [vmem:[#allocation105_spill] sm:$0xff] %v7825_v44  ;;  %12343 = vst [vmem:[#allocation107_spill] sm:$0xff] %v7832_v12  ;;  %3408 = vmax.xlane.f32.xlu0 %v3407_v15  ;;  %v1437_v15 = vcombine.high %v7773_v59, %v7761_v6  ;;  %v7871_v1 = vcombine.high %v7859_v3, %v7847_v7  ;;  %v3425_v59 = vsel %vm3406_vm7, %v7856_v57, -inf  ;;  %v12409_v57 = vld [vmem:[#allocation44_spill] sm:$0xff]  ;;  %v12431_v12 = vld [vmem:[#allocation54_spill] sm:$0xff] }
 0x26a   :  { %v7883_v6 = vcombine.low %v1179_v56, %v1211_v9  ;;  %v7887_v20 = vrot.slane %v1117_v53, %v7676_v11  ;;  %v7907_v25 = vrot.slane %v1149_v22, %v7676_v11  ;;  %v1389_v33 = vcombine.high %v7376_v30, %v7384_v32 }
 0x26b   :  { %12350 = vst [vmem:[#allocation114_spill] sm:$0xff] %v7871_v1  ;;  %v1451_v21 = vrot.slane %v1437_v15, %v7699_v18  ;;  %v1269_v35 = vcombine.high %v7414_v39, %v7422_v41  ;;  %v7941_v30 = vrot.slane %v1421_v17, %v7676_v11  ;;  %v1285_v31 = vcombine.high %v7408_v38, %v7416_v40 }
 0x26c   :  { %v7840_v44 = vpop.permute.xlu0 %811  ;;  %v7849_v16 = vpop.permute.xlu1 %981  ;;  %12352 = vst [vmem:[#allocation116_spill] sm:$0xff] %v7883_v6  ;;  %v1212_v29 = vcombine.low %v7921_v62, %v7907_v25  ;;  %v7947_v39 = vcombine.high %v1179_v56, %v1211_v9  ;;  %v7950_v41 = vrot.slane %v1373_v23, %v7676_v11  ;;  %v7961_v38 = vrot.slane %v1389_v33, %v7676_v11  ;;  %v12365_v23 = vld [vmem:[#allocation11_spill] sm:$0xff] }
 0x26d   :  { %12345 = vst [vmem:[#allocation109_spill] sm:$0xff] %v7840_v44  ;;  %12347 = vst [vmem:[#allocation111_spill] sm:$0xff] %v7849_v16  ;;  %3414 = vmax.xlane.f32.xlu0 %v3413_v51  ;;  %v1333_v51 = vcombine.high %v1276_v10, %v1292_v52  ;;  %v1301_v52 = vcombine.high %v7816_v14, %v1260_v42  ;;  %v1483_v10 = vrot.slane %v1469_v54, %v7699_v18 }
 0x26e   :  { %3420 = vmax.xlane.f32.xlu1 %v3419_v60  ;;  %v3422_v42 = vsel %vm3406_vm7, %v7871_v1, -inf  ;;  %v7898_v14 = vcombine.high %v1580_v50, %v1612_v8  ;;  %v7902_v54 = vrot.slane %v1101_v5, %v7676_v11  ;;  %v1573_v50 = vcombine.high %v7798_v55, %v7801_v13  ;;  %12360 = vst [vmem:[#allocation124_spill] sm:$0xff] %v7947_v39 }
 0x26f   :  { %v1347_v49 = vrot.slane %v1333_v51, %v7699_v18  ;;  %v3431_v8 = vsel %vm3406_vm7, %v7883_v6, -inf  ;;  %v7917_v60 = vcombine.low %v1451_v21, %v1483_v10  ;;  %v1315_v53 = vrot.slane %v1301_v52, %v7699_v18 }
 0x270   :  { %v7865_v4 = vpop.permute.xlu0 %841  ;;  %v7878_v24 = vpop.permute.xlu1 %796  ;;  %12354 = vst [vmem:[#allocation118_spill] sm:$0xff] %v7898_v14  ;;  %v1180_v55 = vcombine.low %v7902_v54, %v7887_v20  ;;  %v3428_v15 = vsel %vm3406_vm7, %v7898_v14, -inf  ;;  %v1237_v5 = vcombine.high %v7196_v0, %v7406_v37  ;;  %v1587_v52 = vrot.slane %v1573_v50, %v7699_v18  ;;  %v12366_v50 = vld [vmem:[#allocation30_spill] sm:$0xff]  ;;  %v12406_v14 = vld [vmem:[#allocation32_spill] sm:$0xff] }
 0x271   :  { %12349 = vst [vmem:[#allocation113_spill] sm:$0xff] %v7865_v4  ;;  %12351 = vst [vmem:[#allocation115_spill] sm:$0xff] %v7878_v24  ;;  %3417 = vmax.xlane.f32.xlu0 %v3416_v19  ;;  %v7935_v51 = vcombine.low %v1315_v53, %v1347_v49  ;;  %v1619_v19 = vrot.slane %v1605_v26, %v7699_v18  ;;  %v3437_v22 = vsel %vm3406_vm7, %v7917_v60, -inf  ;;  %v12430_v24 = vld [vmem:[#allocation56_spill] sm:$0xff] }
 0x272   :  { %3426 = vmax.xlane.f32.xlu1 %v3425_v59  ;;  %12356 = vst [vmem:[#allocation120_spill] sm:$0xff] %v7917_v60  ;;  %v7958_v59 = vrot.slane %v1405_v27, %v7676_v11  ;;  %v1253_v40 = vcombine.high %v7392_v34, %v7400_v36  ;;  %v7966_v9 = vrot.slane %v1269_v35, %v7676_v11 }
 0x273   :  { %12358 = vst [vmem:[#allocation122_spill] sm:$0xff] %v7935_v51  ;;  %v1541_v0 = vcombine.high %v7438_v45, %v7446_v47  ;;  %v1557_v37 = vcombine.high %v7440_v46, %v7448_v48  ;;  %v3434_v61 = vsel %vm3406_vm7, %v7935_v51, -inf  ;;  %v7976_v26 = vcombine.low %v1587_v52, %v1619_v19  ;;  %v12364_v48 = vld [vmem:[#allocation29_spill] sm:$0xff] }
 0x274   :  { %v7894_v28 = vpop.permute.xlu0 %871  ;;  %v7911_v2 = vpop.permute.xlu1 %826  ;;  %v1484_v34 = vcombine.low %v7958_v59, %v7941_v30  ;;  %v7981_v36 = vrot.slane %v1285_v31, %v7676_v11  ;;  %v3443_v45 = vsel %vm3406_vm7, %v7947_v39, -inf  ;;  %v1220_v46 = vrot.slane %v1212_v29, %v7699_v18 }
 0x275   :  { %12353 = vst [vmem:[#allocation117_spill] sm:$0xff] %v7894_v28  ;;  %12355 = vst [vmem:[#allocation119_spill] sm:$0xff] %v7911_v2  ;;  %3423 = vmax.xlane.f32.xlu0 %v3422_v42  ;;  %v7989_v47 = vrot.slane %v1237_v5, %v7676_v11  ;;  %v1509_v17 = vcombine.high %v12365_v23, %v12364_v48  ;;  %v7995_v33 = vcombine.high %v1451_v21, %v1483_v10  ;;  %v12433_v2 = vld [vmem:[#allocation15_spill] sm:$0xff] }
 0x276   :  { %3432 = vmax.xlane.f32.xlu1 %v3431_v8  ;;  %12362 = vst [vmem:[#allocation126_spill] sm:$0xff] %v7976_v26  ;;  %v12367_v8 = vld [vmem:[#allocation28_spill] sm:$0xff]  ;;  %v1452_v35 = vcombine.low %v7950_v41, %v7961_v38  ;;  %v1348_v29 = vcombine.low %v7966_v9, %v7981_v36  ;;  %v1188_v31 = vrot.slane %v1180_v55, %v7699_v18  ;;  %v3440_v21 = vsel %vm3406_vm7, %v7976_v26, -inf }
 0x277   :  { %v1525_v27 = vcombine.high %v12367_v8, %v12366_v50  ;;  %12368 = vst [vmem:[#allocation29_spill] sm:$0xff] %v7995_v33  ;;  %v8006_v5 = vrot.slane %v1541_v0, %v7676_v11  ;;  %v1492_v55 = vrot.slane %v1484_v34, %v7699_v18  ;;  %v8039_v8 = vcombine.high %v1587_v52, %v1619_v19 }
 0x278   :  { %v7931_v13 = vpop.permute.xlu0 %1001  ;;  %v7945_v32 = vpop.permute.xlu1 %856  ;;  %v8019_v48 = vcombine.low %v1188_v31, %v1220_v46  ;;  %v1948_v63 = vcombine.low %v12410_v43, %v12409_v57  ;;  %v2068_v16 = vcombine.low %v12431_v12, %v12430_v24 }
 0x279   :  { %12357 = vst [vmem:[#allocation121_spill] sm:$0xff] %v7931_v13  ;;  %12359 = vst [vmem:[#allocation123_spill] sm:$0xff] %v7945_v32  ;;  %3429 = vmax.xlane.f32.xlu0 %v3428_v15  ;;  %v8000_v15 = vrot.slane %v1253_v40, %v7676_v11  ;;  %v3452_v19 = vsel %vm3406_vm7, %v8039_v8, -inf  ;;  %v12422_v13 = vld [vmem:[#allocation14_spill] sm:$0xff] }
 0x27a   :  { %3438 = vmax.xlane.f32.xlu1 %v3437_v22  ;;  %v8009_v22 = vrot.slane %v1557_v37, %v7676_v11  ;;  %12372 = vst [vmem:[#allocation128_spill] sm:$0xff] %v8019_v48  ;;  %v8025_v37 = vrot.slane %v1509_v17, %v7676_v11  ;;  %12374 = vst [vmem:[#allocation130_spill] sm:$0xff] %v8039_v8  ;;  %v1356_v17 = vrot.slane %v1348_v29, %v7699_v18 }
 0x27b   :  { %v1316_v0 = vcombine.low %v7989_v47, %v8000_v15  ;;  %v1485_v8 = vcombine.high %v7958_v59, %v7941_v30  ;;  %v1349_v30 = vcombine.high %v7966_v9, %v7981_v36  ;;  %v8196_v4 = vrot.slane %v1948_v63, %v7676_v11 }
 0x27c   :  { %v7972_v56 = vpop.permute.xlu0 %1031  ;;  %v7983_v42 = vpop.permute.xlu1 %1016  ;;  %v1620_v23 = vcombine.low %v8006_v5, %v8009_v22 }
 0x27d   :  { %12361 = vst [vmem:[#allocation125_spill] sm:$0xff] %v7972_v56  ;;  %12363 = vst [vmem:[#allocation127_spill] sm:$0xff] %v7983_v42  ;;  %3435 = vmax.xlane.f32.xlu0 %v3434_v61  ;;  %v8015_v61 = vcombine.high %v1315_v53, %v1347_v49  ;;  %v3449_v49 = vsel %vm3406_vm7, %v7995_v33, -inf  ;;  %v1460_v53 = vrot.slane %v1452_v35, %v7699_v18  ;;  %v3455_v35 = vsel %vm3406_vm7, %v8019_v48, -inf }
 0x27e   :  { %3444 = vmax.xlane.f32.xlu1 %v3443_v45  ;;  %v8028_v45 = vrot.slane %v1525_v27, %v7676_v11  ;;  %v1324_v33 = vrot.slane %v1316_v0, %v7699_v18  ;;  %v1628_v29 = vrot.slane %v1620_v23, %v7699_v18  ;;  %v1213_v48 = vcombine.high %v7921_v62, %v7907_v25 }
 0x27f   :  { %12370 = vst [vmem:[#allocation30_spill] sm:$0xff] %v8015_v61  ;;  %v3446_v34 = vsel %vm3406_vm7, %v8015_v61, -inf  ;;  %v8064_v0 = vcombine.high %v1188_v31, %v1220_v46  ;;  %v1181_v23 = vcombine.high %v7902_v54, %v7887_v20  ;;  %v1453_v62 = vcombine.high %v7950_v41, %v7961_v38 }
 0x280   :  { %v8011_v10 = vpop.permute.xlu0 %1061  ;;  %v8017_v40 = vpop.permute.xlu1 %1046  ;;  %v8055_v52 = vcombine.low %v1324_v33, %v1356_v17  ;;  %v8085_v20 = vcombine.high %v1460_v53, %v1492_v55  ;;  %v1227_v54 = vrot.slane %v1213_v48, %v7699_v18  ;;  %v1499_v31 = vrot.slane %v1485_v8, %v7699_v18 }
 0x281   :  { %12369 = vst [vmem:[#allocation11_spill] sm:$0xff] %v8011_v10  ;;  %12371 = vst [vmem:[#allocation28_spill] sm:$0xff] %v8017_v40  ;;  %3441 = vmax.xlane.f32.xlu0 %v3440_v21  ;;  %v1588_v21 = vcombine.low %v8025_v37, %v8028_v45  ;;  %v3467_v59 = vsel %vm3406_vm7, %v8064_v0, -inf  ;;  %v1195_v9 = vrot.slane %v1181_v23, %v7699_v18  ;;  %v12423_v10 = vld [vmem:[#allocation59_spill] sm:$0xff] }
 0x282   :  { %3450 = vmax.xlane.f32.xlu1 %v3449_v49  ;;  %v8048_v49 = vcombine.low %v1460_v53, %v1492_v55  ;;  %12378 = vst [vmem:[#allocation134_spill] sm:$0xff] %v8055_v52  ;;  %12380 = vst [vmem:[#allocation136_spill] sm:$0xff] %v8064_v0  ;;  %v1467_v48 = vrot.slane %v1453_v62, %v7699_v18  ;;  %v3473_v55 = vsel %vm3406_vm7, %v8085_v20, -inf  ;;  %v12402_v0 = vld [vmem:[#allocation50_spill] sm:$0xff] }
 0x283   :  { %12384 = vst [vmem:[#allocation140_spill] sm:$0xff] %v8085_v20  ;;  %v8103_v53 = vcombine.low %v1195_v9, %v1227_v54  ;;  %v8110_v8 = vcombine.high %v1195_v9, %v1227_v54  ;;  %v12396_v54 = vld [vmem:[#allocation34_spill] sm:$0xff]  ;;  %v12397_v9 = vld [vmem:[#allocation12_spill] sm:$0xff]  ;;  %v12399_v20 = vld [vmem:[#allocation35_spill] sm:$0xff] }
 0x284   :  { %v8035_v50 = vpop.permute.xlu0 %1091  ;;  %v8042_v27 = vpop.permute.xlu1 %1076  ;;  %12376 = vst [vmem:[#allocation132_spill] sm:$0xff] %v8048_v49  ;;  %v3461_v61 = vsel %vm3406_vm7, %v8048_v49, -inf  ;;  %v8145_v60 = vcombine.high %v1467_v48, %v1499_v31 }
 0x285   :  { %12373 = vst [vmem:[#allocation129_spill] sm:$0xff] %v8035_v50  ;;  %12375 = vst [vmem:[#allocation131_spill] sm:$0xff] %v8042_v27  ;;  %3447 = vmax.xlane.f32.xlu0 %v3446_v34 }
 0x286   :  { %3456 = vmax.xlane.f32.xlu1 %v3455_v35  ;;  %v1596_v35 = vrot.slane %v1588_v21, %v7699_v18  ;;  %v8095_v21 = vcombine.high %v1324_v33, %v1356_v17  ;;  %12388 = vst [vmem:[#allocation144_spill] sm:$0xff] %v8103_v53  ;;  %v8108_v33 = vcombine.low %v1467_v48, %v1499_v31  ;;  %12390 = vst [vmem:[#allocation146_spill] sm:$0xff] %v8110_v8  ;;  %v12412_v31 = vld [vmem:[#allocation48_spill] sm:$0xff]  ;;  %v12413_v48 = vld [vmem:[#allocation46_spill] sm:$0xff] }
 0x287   :  { %v1589_v17 = vcombine.high %v8025_v37, %v8028_v45  ;;  %v3479_v37 = vsel %vm3406_vm7, %v8103_v53, -inf  ;;  %12404 = vst [vmem:[#allocation12_spill] sm:$0xff] %v8145_v60 }
 0x288   :  { %v8051_v26 = vpop.permute.xlu0 %673  ;;  %v8058_v34 = vpop.permute.xlu1 %688  ;;  %v8075_v25 = vcombine.low %v1596_v35, %v1628_v29  ;;  %12386 = vst [vmem:[#allocation142_spill] sm:$0xff] %v8095_v21  ;;  %12389 = vst [vmem:[#allocation145_spill] sm:$0xff] %v8108_v33  ;;  %v8118_v62 = vcombine.high %v1596_v35, %v1628_v29  ;;  %v3485_v35 = vsel %vm3406_vm7, %v8108_v33, -inf }
 0x289   :  { %12377 = vst [vmem:[#allocation133_spill] sm:$0xff] %v8051_v26  ;;  %12379 = vst [vmem:[#allocation135_spill] sm:$0xff] %v8058_v34  ;;  %3453 = vmax.xlane.f32.xlu0 %v3452_v19  ;;  %v3458_v19 = vsel %vm3406_vm7, %v8055_v52, -inf  ;;  %v1603_v51 = vrot.slane %v1589_v17, %v7699_v18  ;;  %v1796_v17 = vcombine.low %v12413_v48, %v12412_v31  ;;  %v12417_v26 = vld [vmem:[#allocation37_spill] sm:$0xff] }
 0x28a   :  { %3462 = vmax.xlane.f32.xlu1 %v3461_v61  ;;  %12382 = vst [vmem:[#allocation138_spill] sm:$0xff] %v8075_v25  ;;  %v1317_v61 = vcombine.high %v7989_v47, %v8000_v15  ;;  %v3464_v38 = vsel %vm3406_vm7, %v8075_v25, -inf  ;;  %v1363_v47 = vrot.slane %v1349_v30, %v7699_v18  ;;  %v1621_v15 = vcombine.high %v8006_v5, %v8009_v22  ;;  %v12401_v25 = vld [vmem:[#allocation52_spill] sm:$0xff] }
 0x28b   :  { %12392 = vst [vmem:[#allocation148_spill] sm:$0xff] %v8118_v62  ;;  %v1828_v52 = vcombine.low %v12402_v0, %v12401_v25  ;;  %v3476_v53 = vsel %vm3406_vm7, %v8118_v62, -inf  ;;  %v8201_v28 = vrot.slane %v1796_v17, %v7676_v11 }
 0x28c   :  { %v8071_v39 = vpop.permute.xlu0 %703  ;;  %v8079_v46 = vpop.permute.xlu1 %718  ;;  %v1331_v30 = vrot.slane %v1317_v61, %v7699_v18  ;;  %v3491_v61 = vsel %vm3406_vm7, %v8110_v8, -inf  ;;  %v12407_v8 = vld [vmem:[#allocation43_spill] sm:$0xff] }
 0x28d   :  { %12381 = vst [vmem:[#allocation137_spill] sm:$0xff] %v8071_v39  ;;  %12383 = vst [vmem:[#allocation139_spill] sm:$0xff] %v8079_v46  ;;  %3459 = vmax.xlane.f32.xlu0 %v3458_v19  ;;  %v3470_v19 = vsel %vm3406_vm7, %v8095_v21, -inf  ;;  %v12400_v21 = vld [vmem:[#allocation33_spill] sm:$0xff]  ;;  %v8179_v42 = vrot.slane %v1828_v52, %v7676_v11 }
 0x28e   :  { %3468 = vmax.xlane.f32.xlu1 %v3467_v59  ;;  %v12393_v59 = vld [vmem:[#allocation38_spill] sm:$0xff]  ;;  %v8129_v45 = vcombine.low %v1331_v30, %v1363_v47  ;;  %v1692_v29 = vcombine.low %v12400_v21, %v12399_v20  ;;  %v8185_v40 = vcombine.high %v1331_v30, %v1363_v47  ;;  %v12429_v30 = vld [vmem:[#allocation53_spill] sm:$0xff] }
 0x290   :  { %v8091_v41 = vpop.permute.xlu0 %733  ;;  %v8098_v36 = vpop.permute.xlu1 %748  ;;  %v8168_v46 = vrot.slane %v1692_v29, %v7676_v11  ;;  %12426 = vst [vmem:[#allocation50_spill] sm:$0xff] %v8185_v40 }
 0x291   :  { %12385 = vst [vmem:[#allocation141_spill] sm:$0xff] %v8091_v41  ;;  %12387 = vst [vmem:[#allocation143_spill] sm:$0xff] %v8098_v36  ;;  %3465 = vmax.xlane.f32.xlu0 %v3464_v38  ;;  %v12394_v38 = vld [vmem:[#allocation36_spill] sm:$0xff]  ;;  %v12416_v36 = vld [vmem:[#allocation39_spill] sm:$0xff] }
 0x292   :  { %3474 = vmax.xlane.f32.xlu1 %v3473_v55  ;;  %v1676_v5 = vcombine.low %v12394_v38, %v12393_v59  ;;  %v1644_v55 = vcombine.low %v12397_v9, %v12396_v54  ;;  %12398 = vst [vmem:[#allocation36_spill] sm:$0xff] %v8129_v45  ;;  %v1932_v39 = vcombine.low %v12417_v26, %v12416_v36 }
 0x294   :  { %v8114_v23 = vpop.permute.xlu0 %763  ;;  %v8123_v22 = vpop.permute.xlu1 %908  ;;  %v8150_v6 = vrot.slane %v1676_v5, %v7676_v11  ;;  %v8159_v62 = vrot.slane %v1644_v55, %v7676_v11  ;;  %v3482_v5 = vsel %vm3406_vm7, %v8129_v45, -inf  ;;  %v12424_v45 = vld [vmem:[#allocation57_spill] sm:$0xff]  ;;  %v8213_v63 = vrot.slane %v1932_v39, %v7676_v11 }
 0x295   :  { %12391 = vst [vmem:[#allocation147_spill] sm:$0xff] %v8114_v23  ;;  %12395 = vst [vmem:[#allocation38_spill] sm:$0xff] %v8123_v22  ;;  %3471 = vmax.xlane.f32.xlu0 %v3470_v19  ;;  %v1635_v19 = vrot.slane %v1621_v15, %v7699_v18  ;;  %v12408_v15 = vld [vmem:[#allocation41_spill] sm:$0xff]  ;;  %v2100_v50 = vcombine.low %v12424_v45, %v12423_v10 }
 0x296   :  { %3480 = vmax.xlane.f32.xlu1 %v3479_v37  ;;  %v12405_v37 = vld [vmem:[#allocation31_spill] sm:$0xff]  ;;  %v1964_v1 = vcombine.low %v12408_v15, %v12407_v8  ;;  %v12414_v22 = vld [vmem:[#allocation49_spill] sm:$0xff] }
 0x297   :  { %v1660_v33 = vcombine.low %v12406_v14, %v12405_v37  ;;  %v8174_v55 = vcombine.low %v1603_v51, %v1635_v19  ;;  %v12421_v23 = vld [vmem:[#allocation45_spill] sm:$0xff]  ;;  %v8228_v24 = vrot.slane %v2100_v50, %v7676_v11  ;;  %v1661_v10 = vcombine.high %v12406_v14, %v12405_v37 }
 0x298   :  { %v8140_v49 = vpop.permute.xlu0 %893  ;;  %v8156_v58 = vpop.permute.xlu1 %938  ;;  %v1780_v56 = vcombine.low %v12422_v13, %v12421_v23  ;;  %v8193_v44 = vrot.slane %v1964_v1, %v7676_v11 }
 0x299   :  { %12403 = vst [vmem:[#allocation34_spill] sm:$0xff] %v8140_v49  ;;  %12411 = vst [vmem:[#allocation35_spill] sm:$0xff] %v8156_v58  ;;  %3477 = vmax.xlane.f32.xlu0 %v3476_v53  ;;  %v12415_v49 = vld [vmem:[#allocation47_spill] sm:$0xff]  ;;  %v12418_v58 = vld [vmem:[#allocation40_spill] sm:$0xff]  ;;  %v8188_v27 = vrot.slane %v1660_v33, %v7676_v11 }
 0x29a   :  { %v1812_v34 = vcombine.low %v12415_v49, %v12414_v22  ;;  %v12419_v53 = vld [vmem:[#allocation13_spill] sm:$0xff]  ;;  %3486 = vmax.xlane.f32.xlu1 %v3485_v35  ;;  %12420 = vst [vmem:[#allocation33_spill] sm:$0xff] %v8174_v55  ;;  %v1740_v35 = vcombine.low %v8150_v6, %v8168_v46  ;;  %v12428_v33 = vld [vmem:[#allocation55_spill] sm:$0xff]  ;;  %v8221_v17 = vrot.slane %v1780_v56, %v7676_v11 }
 0x29b   :  { %v1916_v41 = vcombine.low %v12419_v53, %v12418_v58  ;;  %v1708_v1 = vcombine.low %v8159_v62, %v8188_v27  ;;  %v8238_v56 = vcombine.low %v7859_v3, %v7847_v7  ;;  %v8253_v7 = vcombine.high %v1603_v51, %v1635_v19 }
 0x29c   :  { %v8183_v29 = vpop.permute.xlu0 %923  ;;  %v8198_v52 = vpop.permute.xlu1 %968  ;;  %v8204_v47 = vrot.slane %v1812_v34, %v7676_v11  ;;  %v3488_v34 = vsel %vm3406_vm7, %v8174_v55, -inf  ;;  %v1748_v55 = vrot.slane %v1740_v35, %v7699_v18  ;;  %v1844_v50 = vcombine.low %v8221_v17, %v8201_v28 }
 0x29d   :  { %12425 = vst [vmem:[#allocation52_spill] sm:$0xff] %v8183_v29  ;;  %12427 = vst [vmem:[#allocation31_spill] sm:$0xff] %v8198_v52  ;;  %3483 = vmax.xlane.f32.xlu0 %v3482_v5  ;;  %v2084_v29 = vcombine.low %v12429_v30, %v12428_v33  ;;  %v8216_v5 = vrot.slane %v1916_v41, %v7676_v11  ;;  %v12432_v52 = vld [vmem:[#allocation51_spill] sm:$0xff]  ;;  %v1716_v3 = vrot.slane %v1708_v1, %v7699_v18 }
 0x29e   :  { %3492 = vmax.xlane.f32.xlu1 %v3491_v61  ;;  %v2052_v32 = vcombine.low %v12433_v2, %v12432_v52  ;;  %v1876_v12 = vcombine.low %v8204_v47, %v8179_v42  ;;  %v3497_v61 = vsel %vm3406_vm7, %v8145_v60, -inf  ;;  %12435 = vst [vmem:[#allocation43_spill] sm:$0xff] %v8238_v56  ;;  %v2012_v2 = vcombine.low %v8196_v4, %v8193_v44 }
 0x29f   :  { %v3494_v60 = vsel %vm3406_vm7, %v8185_v40, -inf  ;;  %12436 = vst [vmem:[#allocation41_spill] sm:$0xff] %v8253_v7  ;;  %v1980_v35 = vcombine.low %v8216_v5, %v8213_v63  ;;  %v3410_v51 = vsel %vm3406_vm7, %v8238_v56, -inf  ;;  %v8270_v1 = vcombine.low %v1716_v3, %v1748_v55 }
 0x2a0   :  { %v8230_v39 = vpop.permute.xlu0 %953  ;;  %v8232_v41 = vpop.permute.xlu1 %783  ;;  %v8259_v52 = vrot.slane %v2052_v32, %v7676_v11  ;;  %v1852_v32 = vrot.slane %v1844_v50, %v7699_v18  ;;  %v2020_v40 = vrot.slane %v2012_v2, %v7699_v18  ;;  %v1645_v33 = vcombine.high %v12397_v9, %v12396_v54  ;;  %v12440_v50 = vld [vmem:[#allocation27_spill] sm:$0xff] }
 0x2a1   :  { %12434 = vst [vmem:[#allocation32_spill] sm:$0xff] %v8230_v39  ;;  %3489 = vmax.xlane.f32.xlu0 %v3488_v34  ;;  %v8246_v39 = vrot.slane %v2084_v29, %v7676_v11  ;;  %v8249_v34 = vrot.slane %v2068_v16, %v7676_v11  ;;  %v1884_v16 = vrot.slane %v1876_v12, %v7699_v18  ;;  %12438 = vst [vmem:[#allocation42_spill] sm:$0xff] %v8270_v1 }
 0x2a2   :  { %3498 = vmax.xlane.f32.xlu1 %v3497_v61  ;;  %v3500_v12 = vsel %vm3406_vm7, %v8253_v7, -inf  ;;  %v1988_v56 = vrot.slane %v1980_v35, %v7699_v18  ;;  %v3503_v54 = vsel %vm3406_vm7, %v8270_v1, -inf  ;;  %v8291_v7 = vrot.slane %v1645_v33, %v7676_v11 }
 0x2a3   :  { %v2148_v29 = vcombine.low %v8246_v39, %v8228_v24  ;;  %v2116_v19 = vcombine.low %v8259_v52, %v8249_v34  ;;  %v1709_v35 = vcombine.high %v8159_v62, %v8188_v27  ;;  %v8307_v27 = vcombine.high %v1716_v3, %v1748_v55 }
 0x2a4   :  { %v8263_v30 = vpop.permute.xlu0 %983  ;;  %v814_v61 = vpop.permute.xlu1 %813  ;;  %v8287_v9 = vcombine.low %v1988_v56, %v2020_v40  ;;  %v1677_v3 = vcombine.high %v12394_v38, %v12393_v59  ;;  %v1981_v59 = vcombine.high %v8216_v5, %v8213_v63 }
 0x2a5   :  { %12437 = vst [vmem:[#allocation44_spill] sm:$0xff] %v8263_v30  ;;  %3495 = vmax.xlane.f32.xlu0 %v3494_v60  ;;  %v8278_v60 = vcombine.low %v1852_v32, %v1884_v16  ;;  %v2156_v45 = vrot.slane %v2148_v29, %v7699_v18  ;;  %12443 = vst [vmem:[#allocation47_spill] sm:$0xff] %v8307_v27  ;;  %v1723_v55 = vrot.slane %v1709_v35, %v7699_v18 }
 0x2a6   :  { %3411 = vmax.xlane.f32.xlu1 %v3410_v51  ;;  %12441 = vst [vmem:[#allocation46_spill] sm:$0xff] %v8287_v9  ;;  %v2124_v51 = vrot.slane %v2116_v19, %v7699_v18  ;;  %v3262_v19 = vcombine.low %v8232_v41, %v814_v61  ;;  %v8318_v61 = vcombine.high %v1852_v32, %v1884_v16  ;;  %v3515_v16 = vsel %vm3406_vm7, %v8307_v27, -inf  ;;  %v12509_v27 = vld [vmem:[#allocation18_spill] sm:$0xff] }
 0x2a7   :  { %12439 = vst [vmem:[#allocation48_spill] sm:$0xff] %v8278_v60  ;;  %v3506_v14 = vsel %vm3406_vm7, %v8278_v60, -inf  ;;  %v8331_v32 = vcombine.high %v1988_v56, %v2020_v40  ;;  %v8348_v63 = vrot.slane %v1677_v3, %v7676_v11 }
 0x2a8   :  { %v799_v30 = vpop.permute.xlu0 %798  ;;  %v844_v2 = vpop.permute.xlu1 %843  ;;  %v8297_v37 = vcombine.low %v2124_v51, %v2156_v45  ;;  %12444 = vst [vmem:[#allocation39_spill] sm:$0xff] %v8318_v61 }
 0x2a9   :  { %v3254_v13 = vcombine.low %v12440_v50, %v799_v30  ;;  %3501 = vmax.xlane.f32.xlu0 %v3500_v12  ;;  %v8300_v30 = vrot.slane %v1661_v10, %v7676_v11  ;;  %v1741_v12 = vcombine.high %v8150_v6, %v8168_v46  ;;  %v3509_v50 = vsel %vm3406_vm7, %v8287_v9, -inf  ;;  %12445 = vst [vmem:[#allocation37_spill] sm:$0xff] %v8331_v32 }
 0x2aa   :  { %3504 = vmax.xlane.f32.xlu1 %v3503_v54  ;;  %12442 = vst [vmem:[#allocation49_spill] sm:$0xff] %v8297_v37  ;;  %v1693_v54 = vcombine.high %v12400_v21, %v12399_v20  ;;  %v1877_v6 = vcombine.high %v8204_v47, %v8179_v42  ;;  %v3512_v41 = vsel %vm3406_vm7, %v8297_v37, -inf  ;;  %v3269_v20 = vrot.slane %v3262_v19, %v7676_v11 }
 0x2ab   :  { %v1724_v62 = vcombine.low %v8291_v7, %v8300_v30  ;;  %v3261_v10 = vrot.slane %v3254_v13, %v7676_v11  ;;  %v1755_v13 = vrot.slane %v1741_v12, %v7699_v18  ;;  %v2013_v42 = vcombine.high %v8196_v4, %v8193_v44 }
 0x2ac   :  { %v829_v29 = vpop.permute.xlu0 %828  ;;  %v874_v33 = vpop.permute.xlu1 %873  ;;  %v1845_v47 = vcombine.high %v8221_v17, %v8201_v28  ;;  %v2149_v44 = vcombine.high %v8246_v39, %v8228_v24  ;;  %v3518_v4 = vsel %vm3406_vm7, %v8318_v61, -inf  ;;  %v8341_v28 = vcombine.high %v2124_v51, %v2156_v45  ;;  %v12505_v61 = vld [vmem:[#allocation85_spill] sm:$0xff] }
 0x2ad   :  { %3507 = vmax.xlane.f32.xlu0 %v3506_v14  ;;  %v3278_v60 = vcombine.low %v844_v2, %v874_v33  ;;  %v3286_v38 = vcombine.low %v3261_v10, %v3269_v20  ;;  %v1891_v40 = vrot.slane %v1877_v6, %v7699_v18  ;;  %v8345_v17 = vrot.slane %v1693_v54, %v7676_v11 }
 0x2ae   :  { %3510 = vmax.xlane.f32.xlu1 %v3509_v50  ;;  %12446 = vst [vmem:[#allocation40_spill] sm:$0xff] %v8341_v28  ;;  %v8350_v56 = vcombine.low %v1723_v55, %v1755_v13  ;;  %v2117_v24 = vcombine.high %v8259_v52, %v8249_v34  ;;  %v3521_v39 = vsel %vm3406_vm7, %v8331_v32, -inf  ;;  %v1859_v45 = vrot.slane %v1845_v47, %v7699_v18  ;;  %v12458_v47 = vld [vmem:[#allocation53_spill] sm:$0xff] }
 0x2af   :  { %v3285_v2 = vrot.slane %v3278_v60, %v7676_v11  ;;  %v2027_v60 = vrot.slane %v2013_v42, %v7699_v18  ;;  %v1965_v51 = vcombine.high %v12408_v15, %v12407_v8  ;;  %v3293_v14 = vrot.slane %v3286_v38, %v7699_v18  ;;  %v12457_v42 = vld [vmem:[#allocation55_spill] sm:$0xff]  ;;  %v12460_v38 = vld [vmem:[#allocation54_spill] sm:$0xff] }
 0x2b0   :  { %v859_v46 = vpop.permute.xlu0 %858  ;;  %12447 = vst [vmem:[#allocation13_spill] sm:$0xff] %v8350_v56  ;;  %v1829_v52 = vcombine.high %v12402_v0, %v12401_v25  ;;  %v3524_v34 = vsel %vm3406_vm7, %v8341_v28, -inf  ;;  %v8367_v19 = vcombine.low %v1859_v45, %v1891_v40  ;;  %v2163_v33 = vrot.slane %v2149_v44, %v7699_v18  ;;  %v12496_v28 = vld [vmem:[#allocation67_spill] sm:$0xff] }
 0x2b1   :  { %v3270_v21 = vcombine.low %v829_v29, %v859_v46  ;;  %3513 = vmax.xlane.f32.xlu0 %v3512_v41  ;;  %v1995_v29 = vrot.slane %v1981_v59, %v7699_v18  ;;  %v1949_v8 = vcombine.high %v12410_v43, %v12409_v57  ;;  %v1797_v15 = vcombine.high %v12413_v48, %v12412_v31  ;;  %v12452_v48 = vld [vmem:[#allocation14_spill] sm:$0xff]  ;;  %v12454_v41 = vld [vmem:[#allocation57_spill] sm:$0xff]  ;;  %v12459_v59 = vld [vmem:[#allocation56_spill] sm:$0xff] }
 0x2b2   :  { %3516 = vmax.xlane.f32.xlu1 %v3515_v16  ;;  %12448 = vst [vmem:[#allocation45_spill] sm:$0xff] %v8367_v19  ;;  %v1813_v0 = vcombine.high %v12415_v49, %v12414_v22  ;;  %v3527_v25 = vsel %vm3406_vm7, %v8350_v56, -inf  ;;  %v2131_v6 = vrot.slane %v2117_v24, %v7699_v18  ;;  %v1756_v43 = vcombine.low %v8348_v63, %v8345_v17  ;;  %v12453_v22 = vld [vmem:[#allocation59_spill] sm:$0xff] }
 0x2b3   :  { %v3277_v35 = vrot.slane %v3270_v21, %v7676_v11  ;;  %v8382_v10 = vcombine.low %v1995_v29, %v2027_v60  ;;  %v1933_v57 = vcombine.high %v12417_v26, %v12416_v36  ;;  %v1917_v31 = vcombine.high %v12419_v53, %v12418_v58 }
 0x2b4   :  { %v1781_v46 = vcombine.high %v12452_v48, %v12421_v23  ;;  %v8394_v49 = vrot.slane %v1829_v52, %v7676_v11  ;;  %v2101_v3 = vcombine.high %v12454_v41, %v12453_v22  ;;  %v3530_v20 = vsel %vm3406_vm7, %v8367_v19, -inf  ;;  %v12502_v19 = vld [vmem:[#allocation86_spill] sm:$0xff] }
 0x2b5   :  { %v3294_v5 = vcombine.low %v3277_v35, %v3285_v2  ;;  %3519 = vmax.xlane.f32.xlu0 %v3518_v4  ;;  %12451 = vst [vmem:[#allocation150_spill] sm:$0xff] %v8382_v10  ;;  %v8400_v21 = vcombine.low %v2131_v6, %v2163_v33  ;;  %v8403_v26 = vrot.slane %v1965_v51, %v7676_v11  ;;  %v3533_v35 = vsel %vm3406_vm7, %v8382_v10, -inf }
 0x2b6   :  { %3522 = vmax.xlane.f32.xlu1 %v3521_v39  ;;  %v8406_v58 = vrot.slane %v1949_v8, %v7676_v11  ;;  %v8409_v36 = vrot.slane %v1797_v15, %v7676_v11  ;;  %v8411_v23 = vcombine.high %v1723_v55, %v1755_v13  ;;  %v8414_v53 = vrot.slane %v1813_v0, %v7676_v11  ;;  %v12461_v13 = vld [vmem:[#allocation51_spill] sm:$0xff] }
 0x2b7   :  { %v3301_v12 = vrot.slane %v3294_v5, %v7699_v18  ;;  %12455 = vst [vmem:[#allocation14_spill] sm:$0xff] %v8400_v21  ;;  %v2085_v16 = vcombine.high %v12458_v47, %v12457_v42  ;;  %v2069_v2 = vcombine.high %v12460_v38, %v12459_v59  ;;  %v8423_v44 = vrot.slane %v1933_v57, %v7676_v11  ;;  %v12462_v5 = vld [vmem:[#allocation15_spill] sm:$0xff] }
 0x2b8   :  { %12456 = vst [vmem:[#allocation59_spill] sm:$0xff] %v8411_v23  ;;  %v1931_v4 = vrot.slane %v1917_v31, %v7676_v11  ;;  %v8427_v55 = vrot.slane %v1781_v46, %v7676_v11  ;;  %v2053_v24 = vcombine.high %v12462_v5, %v12461_v13  ;;  %v1892_v39 = vcombine.low %v8414_v53, %v8394_v49 }
 0x2b9   :  { %3525 = vmax.xlane.f32.xlu0 %v3524_v34  ;;  %v8374_v50 = vcombine.low %v3293_v14, %v3301_v12  ;;  %v8376_v54 = vcombine.high %v3293_v14, %v3301_v12  ;;  %v8434_v51 = vrot.slane %v2101_v3, %v7676_v11  ;;  %v3536_v14 = vsel %vm3406_vm7, %v8400_v21, -inf }
 0x2ba   :  { %3528 = vmax.xlane.f32.xlu1 %v3527_v25  ;;  %v8438_v12 = vcombine.high %v1859_v45, %v1891_v40  ;;  %v2028_v52 = vcombine.low %v8406_v58, %v8403_v26  ;;  %v3539_v34 = vsel %vm3406_vm7, %v8411_v23, -inf  ;;  %v1764_v8 = vrot.slane %v1756_v43, %v7699_v18  ;;  %v12507_v23 = vld [vmem:[#allocation17_spill] sm:$0xff] }
 0x2bb   :  { %12449 = vst [vmem:[#allocation27_spill] sm:$0xff] %v8374_v50  ;;  %12450 = vst [vmem:[#allocation149_spill] sm:$0xff] %v8376_v54  ;;  %v1860_v15 = vcombine.low %v8427_v55, %v8409_v36  ;;  %v8448_v0 = vrot.slane %v2085_v16, %v7676_v11  ;;  %v8451_v25 = vrot.slane %v2069_v2, %v7676_v11  ;;  %v12582_v50 = vld [vmem:[#allocation23_spill] sm:$0xff] }
 0x2bc   :  { %12463 = vst [vmem:[#allocation57_spill] sm:$0xff] %v8438_v12  ;;  %v8453_v40 = vcombine.high %v1995_v29, %v2027_v60  ;;  %v1996_v45 = vcombine.low %v1931_v4, %v8423_v44  ;;  %v8457_v57 = vrot.slane %v2053_v24, %v7676_v11  ;;  %v1732_v43 = vrot.slane %v1724_v62, %v7699_v18 }
 0x2bd   :  { %3531 = vmax.xlane.f32.xlu0 %v3530_v20  ;;  %v2164_v31 = vcombine.low %v8448_v0, %v8434_v51  ;;  %v3542_v48 = vsel %vm3406_vm7, %v8438_v12, -inf  ;;  %v8467_v46 = vcombine.high %v2131_v6, %v2163_v33  ;;  %v1900_v60 = vrot.slane %v1892_v39, %v7699_v18 }
 0x2be   :  { %3534 = vmax.xlane.f32.xlu1 %v3533_v35  ;;  %12464 = vst [vmem:[#allocation55_spill] sm:$0xff] %v8453_v40  ;;  %v8470_v29 = vcombine.low %v1732_v43, %v1764_v8  ;;  %v2132_v22 = vcombine.low %v8457_v57, %v8451_v25  ;;  %v3545_v41 = vsel %vm3406_vm7, %v8453_v40, -inf  ;;  %v1868_v62 = vrot.slane %v1860_v15, %v7699_v18 }
 0x2bf   :  { %12465 = vst [vmem:[#allocation53_spill] sm:$0xff] %v8467_v46  ;;  %v2036_v3 = vrot.slane %v2028_v52, %v7699_v18  ;;  %v3548_v33 = vsel %vm3406_vm7, %v8467_v46, -inf  ;;  %v2004_v20 = vrot.slane %v1996_v45, %v7699_v18  ;;  %v2172_v42 = vrot.slane %v2164_v31, %v7699_v18  ;;  %v12476_v31 = vld [vmem:[#allocation65_spill] sm:$0xff]  ;;  %v12494_v46 = vld [vmem:[#allocation76_spill] sm:$0xff] }
 0x2c0   :  { %12466 = vst [vmem:[#allocation56_spill] sm:$0xff] %v8470_v29  ;;  %v8480_v6 = vcombine.low %v1868_v62, %v1900_v60  ;;  %v3551_v47 = vsel %vm3406_vm7, %v8470_v29, -inf  ;;  %v2140_v59 = vrot.slane %v2132_v22, %v7699_v18  ;;  %v1757_v38 = vcombine.high %v8348_v63, %v8345_v17  ;;  %v12506_v29 = vld [vmem:[#allocation66_spill] sm:$0xff] }
 0x2c1   :  { %3537 = vmax.xlane.f32.xlu0 %v3536_v14  ;;  %v8486_v16 = vcombine.low %v2004_v20, %v2036_v3  ;;  %v2029_v2 = vcombine.high %v8406_v58, %v8403_v26  ;;  %v1725_v5 = vcombine.high %v8291_v7, %v8300_v30  ;;  %v1997_v24 = vcombine.high %v1931_v4, %v8423_v44 }
 0x2c2   :  { %3540 = vmax.xlane.f32.xlu1 %v3539_v34  ;;  %12467 = vst [vmem:[#allocation54_spill] sm:$0xff] %v8480_v6  ;;  %v3554_v35 = vsel %vm3406_vm7, %v8480_v6, -inf  ;;  %v8495_v13 = vcombine.low %v2140_v59, %v2172_v42  ;;  %v1893_v39 = vcombine.high %v8414_v53, %v8394_v49  ;;  %v8504_v63 = vcombine.high %v1732_v43, %v1764_v8 }
 0x2c3   :  { %12468 = vst [vmem:[#allocation51_spill] sm:$0xff] %v8486_v16  ;;  %v3557_v17 = vsel %vm3406_vm7, %v8486_v16, -inf  ;;  %v1771_v26 = vrot.slane %v1757_v38, %v7699_v18  ;;  %v1861_v58 = vcombine.high %v8427_v55, %v8409_v36  ;;  %v8511_v30 = vcombine.high %v1868_v62, %v1900_v60 }
 0x2c4   :  { %12469 = vst [vmem:[#allocation15_spill] sm:$0xff] %v8495_v13  ;;  %12470 = vst [vmem:[#allocation151_spill] sm:$0xff] %v8504_v63  ;;  %v3560_v7 = vsel %vm3406_vm7, %v8495_v13, -inf  ;;  %v8514_v44 = vrot.slane %v2029_v2, %v7699_v18  ;;  %v1739_v49 = vrot.slane %v1725_v5, %v7699_v18  ;;  %v3563_v53 = vsel %vm3406_vm7, %v8504_v63, -inf  ;;  %v12493_v13 = vld [vmem:[#allocation78_spill] sm:$0xff] }
 0x2c5   :  { %3543 = vmax.xlane.f32.xlu0 %v3542_v48  ;;  %12471 = vst [vmem:[#allocation152_spill] sm:$0xff] %v8511_v30  ;;  %v8519_v4 = vcombine.high %v2004_v20, %v2036_v3  ;;  %v1907_v14 = vrot.slane %v1893_v39, %v7699_v18  ;;  %v2011_v36 = vrot.slane %v1997_v24, %v7699_v18  ;;  %v3566_v34 = vsel %vm3406_vm7, %v8511_v30, -inf  ;;  %v12477_v48 = vld [vmem:[#allocation63_spill] sm:$0xff]  ;;  %v12481_v3 = vld [vmem:[#allocation64_spill] sm:$0xff] }
 0x2c6   :  { %3546 = vmax.xlane.f32.xlu1 %v3545_v41  ;;  %v2165_v55 = vcombine.high %v8448_v0, %v8434_v51  ;;  %v8525_v52 = vcombine.low %v1739_v49, %v1771_v26  ;;  %v8529_v8 = vcombine.high %v2140_v59, %v2172_v42  ;;  %v1875_v15 = vrot.slane %v1861_v58, %v7699_v18  ;;  %v12478_v51 = vld [vmem:[#allocation61_spill] sm:$0xff]  ;;  %v12479_v0 = vld [vmem:[#allocation58_spill] sm:$0xff]  ;;  %v12487_v24 = vld [vmem:[#allocation60_spill] sm:$0xff] }
 0x2c7   :  { %12472 = vst [vmem:[#allocation153_spill] sm:$0xff] %v8519_v4  ;;  %v8533_v45 = vcombine.low %v2011_v36, %v8514_v44  ;;  %v2133_v43 = vcombine.high %v8457_v57, %v8451_v25  ;;  %v2236_v60 = vcombine.low %v12477_v48, %v12476_v31  ;;  %v2204_v22 = vcombine.low %v12479_v0, %v12478_v51  ;;  %v12485_v59 = vld [vmem:[#allocation77_spill] sm:$0xff]  ;;  %v12488_v39 = vld [vmem:[#allocation16_spill] sm:$0xff] }
 0x2c8   :  { %12473 = vst [vmem:[#allocation154_spill] sm:$0xff] %v8525_v52  ;;  %12474 = vst [vmem:[#allocation155_spill] sm:$0xff] %v8529_v8  ;;  %v3569_v41 = vsel %vm3406_vm7, %v8519_v4, -inf  ;;  %v8543_v62 = vcombine.low %v1875_v15, %v1907_v14  ;;  %v3575_v42 = vsel %vm3406_vm7, %v8525_v52, -inf  ;;  %v2179_v25 = vrot.slane %v2165_v55, %v7699_v18  ;;  %v12501_v30 = vld [vmem:[#allocation72_spill] sm:$0xff] }
 0x2c9   :  { %3549 = vmax.xlane.f32.xlu0 %v3548_v33  ;;  %12475 = vst [vmem:[#allocation156_spill] sm:$0xff] %v8533_v45  ;;  %v12482_v33 = vld [vmem:[#allocation62_spill] sm:$0xff]  ;;  %v8550_v57 = vcombine.high %v1739_v49, %v1771_v26  ;;  %v3572_v2 = vsel %vm3406_vm7, %v8529_v8, -inf  ;;  %v8558_v5 = vcombine.high %v1875_v15, %v1907_v14  ;;  %v2244_v58 = vrot.slane %v2236_v60, %v7676_v11  ;;  %v12495_v60 = vld [vmem:[#allocation69_spill] sm:$0xff]  ;;  %v12503_v4 = vld [vmem:[#allocation84_spill] sm:$0xff] }
 0x2ca   :  { %3552 = vmax.xlane.f32.xlu1 %v3551_v47  ;;  %12480 = vst [vmem:[#allocation65_spill] sm:$0xff] %v8543_v62  ;;  %v2220_v20 = vcombine.low %v12482_v33, %v12481_v3  ;;  %v12484_v47 = vld [vmem:[#allocation79_spill] sm:$0xff]  ;;  %v2147_v49 = vrot.slane %v2133_v43, %v7699_v18  ;;  %v2212_v55 = vrot.slane %v2204_v22, %v7676_v11  ;;  %v3578_v15 = vsel %vm3406_vm7, %v8543_v62, -inf  ;;  %v12500_v22 = vld [vmem:[#allocation74_spill] sm:$0xff] }
 0x2cb   :  { %12483 = vst [vmem:[#allocation63_spill] sm:$0xff] %v8550_v57  ;;  %v2338_v38 = vcombine.low %v12485_v59, %v12484_v47  ;;  %12486 = vst [vmem:[#allocation61_spill] sm:$0xff] %v8558_v5  ;;  %v2354_v14 = vcombine.low %v12494_v46, %v12493_v13  ;;  %v2440_v37 = vcombine.low %v12496_v28, %v12495_v60  ;;  %v12504_v62 = vld [vmem:[#allocation87_spill] sm:$0xff] }
 0x2cc   :  { %v2228_v21 = vrot.slane %v2220_v20, %v7676_v11  ;;  %v8578_v43 = vcombine.low %v2147_v49, %v2179_v25  ;;  %v2322_v6 = vcombine.low %v12501_v30, %v12500_v22  ;;  %v2574_v16 = vcombine.low %v12503_v4, %v12502_v19  ;;  %v12510_v19 = vld [vmem:[#allocation82_spill] sm:$0xff]  ;;  %v12511_v4 = vld [vmem:[#allocation80_spill] sm:$0xff] }
 0x2cd   :  { %3555 = vmax.xlane.f32.xlu0 %v3554_v35  ;;  %v3581_v35 = vsel %vm3406_vm7, %v8533_v45, -inf  ;;  %v12497_v45 = vld [vmem:[#allocation70_spill] sm:$0xff]  ;;  %v2346_v12 = vrot.slane %v2338_v38, %v7676_v11  ;;  %v2590_v20 = vcombine.low %v12505_v61, %v12504_v62  ;;  %v2424_v10 = vcombine.low %v12507_v23, %v12506_v29  ;;  %v12508_v38 = vld [vmem:[#allocation81_spill] sm:$0xff] }
 0x2ce   :  { %3558 = vmax.xlane.f32.xlu1 %v3557_v17  ;;  %v2188_v17 = vcombine.low %v12488_v39, %v12487_v24  ;;  %12499 = vst [vmem:[#allocation58_spill] sm:$0xff] %v8578_v43  ;;  %v2276_v63 = vcombine.high %v2228_v21, %v2244_v58  ;;  %v2362_v32 = vrot.slane %v2354_v14, %v7676_v11 }
 0x2cf   :  { %v2542_v9 = vcombine.low %v12509_v27, %v12508_v38  ;;  %v2558_v1 = vcombine.low %v12511_v4, %v12510_v19  ;;  %v2448_v62 = vrot.slane %v2440_v37, %v7676_v11  ;;  %v2330_v58 = vrot.slane %v2322_v6, %v7676_v11 }
 0x2d0   :  { %v2196_v40 = vrot.slane %v2188_v17, %v7676_v11  ;;  %v3584_v17 = vsel %vm3406_vm7, %v8578_v43, -inf  ;;  %v2598_v14 = vrot.slane %v2590_v20, %v7676_v11  ;;  %v2432_v27 = vrot.slane %v2424_v10, %v7676_v11  ;;  %v12563_v43 = vld [vmem:[#allocation22_spill] sm:$0xff] }
 0x2d1   :  { %3561 = vmax.xlane.f32.xlu0 %v3560_v7  ;;  %v12489_v7 = vld [vmem:[#allocation73_spill] sm:$0xff]  ;;  %v8608_v37 = vcombine.high %v2011_v36, %v8514_v44  ;;  %v2550_v6 = vrot.slane %v2542_v9, %v7676_v11  ;;  %v3590_v20 = vsel %vm3406_vm7, %v8558_v5, -inf  ;;  %v8625_v36 = vpop.permute.xlu0 %1018  ;;  %v2205_v38 = vcombine.high %v12479_v0, %v12478_v51 }
 0x2d2   :  { %3564 = vmax.xlane.f32.xlu1 %v3563_v53  ;;  %v12490_v53 = vld [vmem:[#allocation71_spill] sm:$0xff]  ;;  %v2252_v61 = vcombine.high %v2196_v40, %v2212_v55  ;;  %v3587_v40 = vsel %vm3406_vm7, %v8550_v57, -inf  ;;  %12516 = vst [vmem:[#allocation60_spill] sm:$0xff] %v8625_v36  ;;  %v2339_v19 = vcombine.high %v12485_v59, %v12484_v47  ;;  %v2355_v47 = vcombine.high %v12494_v46, %v12493_v13  ;;  %v12564_v5 = vld [vmem:[#allocation117_spill] sm:$0xff] }
 0x2d3   :  { %v2472_v26 = vcombine.low %v12490_v53, %v12489_v7  ;;  %12512 = vst [vmem:[#allocation64_spill] sm:$0xff] %v8608_v37  ;;  %v2473_v0 = vcombine.high %v12490_v53, %v12489_v7  ;;  %v2441_v7 = vcombine.high %v12496_v28, %v12495_v60  ;;  %v2323_v46 = vcombine.high %v12501_v30, %v12500_v22  ;;  %v12565_v57 = vld [vmem:[#allocation113_spill] sm:$0xff] }
 0x2d4   :  { %v2259_v10 = vrot.slane %v2252_v61, %v7699_v18  ;;  %v8672_v13 = vrot.slane %v2339_v19, %v7676_v11  ;;  %v2425_v30 = vcombine.high %v12507_v23, %v12506_v29 }
 0x2d5   :  { %3567 = vmax.xlane.f32.xlu0 %v3566_v34  ;;  %v12491_v34 = vld [vmem:[#allocation75_spill] sm:$0xff]  ;;  %v8707_v29 = vrot.slane %v2323_v46, %v7676_v11 }
 0x2d6   :  { %3570 = vmax.xlane.f32.xlu1 %v3569_v41  ;;  %v12492_v41 = vld [vmem:[#allocation19_spill] sm:$0xff] }
 0x2d7   :  { %v2306_v8 = vcombine.low %v12492_v41, %v12491_v34 }
 0x2d9   :  { %3573 = vmax.xlane.f32.xlu0 %v3572_v2  ;;  %v12498_v2 = vld [vmem:[#allocation68_spill] sm:$0xff]  ;;  %v2314_v56 = vrot.slane %v2306_v8, %v7676_v11  ;;  %v2394_v8 = vcombine.high %v2346_v12, %v2362_v32  ;;  %v2566_v32 = vrot.slane %v2558_v1, %v7676_v11  ;;  %v8613_v12 = vcombine.high %v2147_v49, %v2179_v25  ;;  %v8623_v1 = vpop.permute.xlu1 %1003 }
 0x2da   :  { %v2456_v52 = vcombine.low %v12498_v2, %v12497_v45  ;;  %3576 = vmax.xlane.f32.xlu1 %v3575_v42  ;;  %v2480_v42 = vrot.slane %v2472_v26, %v7676_v11  ;;  %v2582_v26 = vrot.slane %v2574_v16, %v7676_v11  ;;  %v2488_v16 = vcombine.high %v2432_v27, %v2448_v62 }
 0x2db   :  { %v2370_v55 = vcombine.high %v2314_v56, %v2330_v58  ;;  %12513 = vst [vmem:[#allocation62_spill] sm:$0xff] %v8613_v12  ;;  %v2401_v44 = vrot.slane %v2394_v8, %v7699_v18  ;;  %v2606_v9 = vcombine.high %v2550_v6, %v2566_v32  ;;  %12515 = vst [vmem:[#allocation77_spill] sm:$0xff] %v8623_v1  ;;  %v3593_v25 = vsel %vm3406_vm7, %v8608_v37, -inf  ;;  %v12583_v1 = vld [vmem:[#allocation125_spill] sm:$0xff] }
 0x2dc   :  { %v2464_v21 = vrot.slane %v2456_v52, %v7676_v11  ;;  %v2283_v52 = vrot.slane %v2276_v63, %v7699_v18  ;;  %v2237_v63 = vcombine.high %v12477_v48, %v12476_v31  ;;  %v2221_v31 = vcombine.high %v12482_v33, %v12481_v3 }
 0x2dd   :  { %3579 = vmax.xlane.f32.xlu0 %v3578_v15  ;;  %v2630_v15 = vcombine.high %v2582_v26, %v2598_v14  ;;  %v2377_v49 = vrot.slane %v2370_v55, %v7699_v18  ;;  %v3596_v48 = vsel %vm3406_vm7, %v8613_v12, -inf  ;;  %v2495_v61 = vrot.slane %v2488_v16, %v7699_v18  ;;  %v12562_v12 = vld [vmem:[#allocation115_spill] sm:$0xff] }
 0x2de   :  { %3582 = vmax.xlane.f32.xlu1 %v3581_v35  ;;  %v2512_v35 = vcombine.high %v2464_v21, %v2480_v42  ;;  %v8621_v56 = vcombine.low %v2259_v10, %v2283_v52  ;;  %v2189_v21 = vcombine.high %v12488_v39, %v12487_v24  ;;  %v8646_v51 = vrot.slane %v2237_v63, %v7676_v11 }
 0x2df   :  { %v8639_v4 = vcombine.low %v2377_v49, %v2401_v44  ;;  %v2637_v62 = vrot.slane %v2630_v15, %v7699_v18  ;;  %v2307_v33 = vcombine.high %v12492_v41, %v12491_v34  ;;  %v2613_v24 = vrot.slane %v2606_v9, %v7699_v18  ;;  %v8674_v34 = vpop.permute.xlu1 %1033  ;;  %v8676_v41 = vpop.permute.xlu0 %1048 }
 0x2e0   :  { %12514 = vst [vmem:[#allocation79_spill] sm:$0xff] %v8621_v56  ;;  %v2519_v42 = vrot.slane %v2512_v35, %v7699_v18  ;;  %v3599_v3 = vsel %vm3406_vm7, %v8621_v56, -inf  ;;  %v8660_v39 = vrot.slane %v2205_v38, %v7676_v11  ;;  %v2457_v53 = vcombine.high %v12498_v2, %v12497_v45  ;;  %12519 = vst [vmem:[#allocation71_spill] sm:$0xff] %v8674_v34  ;;  %v12584_v34 = vld [vmem:[#allocation121_spill] sm:$0xff] }
 0x2e1   :  { %3585 = vmax.xlane.f32.xlu0 %v3584_v17  ;;  %12517 = vst [vmem:[#allocation16_spill] sm:$0xff] %v8639_v4  ;;  %v8663_v17 = vrot.slane %v2221_v31, %v7676_v11  ;;  %12520 = vst [vmem:[#allocation75_spill] sm:$0xff] %v8676_v41  ;;  %v3602_v58 = vsel %vm3406_vm7, %v8639_v4, -inf  ;;  %v8680_v8 = vcombine.low %v2613_v24, %v2637_v62 }
 0x2e2   :  { %3588 = vmax.xlane.f32.xlu1 %v3587_v40  ;;  %v8656_v59 = vcombine.low %v2495_v61, %v2519_v42  ;;  %v8683_v28 = vrot.slane %v2189_v21, %v7676_v11  ;;  %v8689_v60 = vcombine.high %v2259_v10, %v2283_v52  ;;  %v2487_v2 = vrot.slane %v2473_v0, %v7676_v11 }
 0x2e3   :  { %12521 = vst [vmem:[#allocation19_spill] sm:$0xff] %v8680_v8  ;;  %v2284_v45 = vcombine.low %v8663_v17, %v8646_v51  ;;  %v8693_v22 = vrot.slane %v2307_v33, %v7676_v11  ;;  %v8696_v26 = vrot.slane %v2355_v47, %v7676_v11  ;;  %v8703_v40 = vrot.slane %v2441_v7, %v7676_v11  ;;  %v8719_v15 = vpop.permute.xlu1 %1063 }
 0x2e4   :  { %12518 = vst [vmem:[#allocation73_spill] sm:$0xff] %v8656_v59  ;;  %12522 = vst [vmem:[#allocation78_spill] sm:$0xff] %v8689_v60  ;;  %v3605_v14 = vsel %vm3406_vm7, %v8656_v59, -inf  ;;  %v2260_v27 = vcombine.low %v8683_v28, %v8660_v39  ;;  %v2471_v23 = vrot.slane %v2457_v53, %v7676_v11  ;;  %v3608_v35 = vsel %vm3406_vm7, %v8680_v8, -inf }
 0x2e5   :  { %3591 = vmax.xlane.f32.xlu0 %v3590_v20  ;;  %v2402_v52 = vcombine.low %v8672_v13, %v8696_v26  ;;  %v8713_v55 = vcombine.high %v2377_v49, %v2401_v44  ;;  %v2439_v6 = vrot.slane %v2425_v30, %v7676_v11  ;;  %v2292_v32 = vrot.slane %v2284_v45, %v7699_v18  ;;  %v8721_v20 = vpop.permute.xlu0 %1078 }
 0x2e6   :  { %3594 = vmax.xlane.f32.xlu1 %v3593_v25  ;;  %v2520_v10 = vcombine.low %v2471_v23, %v2487_v2  ;;  %v2378_v16 = vcombine.low %v8693_v22, %v8707_v29  ;;  %12524 = vst [vmem:[#allocation69_spill] sm:$0xff] %v8719_v15  ;;  %12525 = vst [vmem:[#allocation67_spill] sm:$0xff] %v8721_v20  ;;  %v3611_v63 = vsel %vm3406_vm7, %v8689_v60, -inf  ;;  %v12579_v60 = vld [vmem:[#allocation98_spill] sm:$0xff] }
 0x2e7   :  { %12523 = vst [vmem:[#allocation76_spill] sm:$0xff] %v8713_v55  ;;  %v8725_v9 = vcombine.high %v2495_v61, %v2519_v42  ;;  %v2268_v44 = vrot.slane %v2260_v27, %v7699_v18  ;;  %v2496_v25 = vcombine.low %v2439_v6, %v8703_v40  ;;  %v3614_v49 = vsel %vm3406_vm7, %v8713_v55, -inf  ;;  %v8742_v0 = vpop.permute.xlu1 %1093  ;;  %v12580_v55 = vld [vmem:[#allocation21_spill] sm:$0xff] }
 0x2e8   :  { %v8731_v38 = vcombine.high %v2613_v24, %v2637_v62  ;;  %v2410_v31 = vrot.slane %v2402_v52, %v7699_v18  ;;  %v2386_v61 = vrot.slane %v2378_v16, %v7699_v18  ;;  %v2528_v21 = vrot.slane %v2520_v10, %v7699_v18  ;;  %12530 = vst [vmem:[#allocation86_spill] sm:$0xff] %v8742_v0 }
 0x2e9   :  { %3597 = vmax.xlane.f32.xlu0 %v3596_v48  ;;  %12526 = vst [vmem:[#allocation70_spill] sm:$0xff] %v8725_v9  ;;  %v3617_v19 = vsel %vm3406_vm7, %v8725_v9, -inf  ;;  %v8738_v42 = vcombine.low %v2268_v44, %v2292_v32  ;;  %v2504_v33 = vrot.slane %v2496_v25, %v7699_v18  ;;  %v2285_v53 = vcombine.high %v8663_v17, %v8646_v51  ;;  %v12576_v9 = vld [vmem:[#allocation129_spill] sm:$0xff] }
 0x2ea   :  { %3600 = vmax.xlane.f32.xlu1 %v3599_v3  ;;  %12527 = vst [vmem:[#allocation68_spill] sm:$0xff] %v8731_v38  ;;  %v3620_v62 = vsel %vm3406_vm7, %v8731_v38, -inf  ;;  %v8746_v3 = vcombine.low %v2386_v61, %v2410_v31  ;;  %v2521_v45 = vcombine.high %v2471_v23, %v2487_v2  ;;  %v2261_v30 = vcombine.high %v8683_v28, %v8660_v39  ;;  %v12538_v23 = vld [vmem:[#allocation92_spill] sm:$0xff]  ;;  %v12577_v38 = vld [vmem:[#allocation11_spill] sm:$0xff] }
 0x2eb   :  { %12529 = vst [vmem:[#allocation72_spill] sm:$0xff] %v8738_v42  ;;  %v3623_v24 = vsel %vm3406_vm7, %v8738_v42, -inf  ;;  %v8753_v7 = vcombine.low %v2504_v33, %v2528_v21  ;;  %v2497_v51 = vcombine.high %v2439_v6, %v8703_v40  ;;  %v2379_v17 = vcombine.high %v8693_v22, %v8707_v29  ;;  %v12572_v42 = vld [vmem:[#allocation109_spill] sm:$0xff] }
 0x2ec   :  { %12531 = vst [vmem:[#allocation84_spill] sm:$0xff] %v8746_v3  ;;  %v3632_v39 = vsel %vm3406_vm7, %v12538_v23, -inf  ;;  %v8778_v28 = vcombine.high %v2386_v61, %v2410_v31  ;;  %v8788_v6 = vcombine.high %v2504_v33, %v2528_v21  ;;  %v2275_v22 = vrot.slane %v2261_v30, %v7699_v18  ;;  %v12545_v31 = vld [vmem:[#allocation97_spill] sm:$0xff]  ;;  %v12552_v30 = vld [vmem:[#allocation90_spill] sm:$0xff] }
 0x2ed   :  { %3603 = vmax.xlane.f32.xlu0 %v3602_v58  ;;  %12533 = vst [vmem:[#allocation85_spill] sm:$0xff] %v8753_v7  ;;  %v3626_v58 = vsel %vm3406_vm7, %v8746_v3, -inf  ;;  %v3629_v52 = vsel %vm3406_vm7, %v8753_v7, -inf  ;;  %v2511_v10 = vrot.slane %v2497_v51, %v7699_v18  ;;  %v2393_v25 = vrot.slane %v2379_v17, %v7699_v18  ;;  %v12554_v51 = vld [vmem:[#allocation119_spill] sm:$0xff]  ;;  %v12571_v7 = vld [vmem:[#allocation101_spill] sm:$0xff] }
 0x2ee   :  { %3606 = vmax.xlane.f32.xlu1 %v3605_v14  ;;  %v2403_v14 = vcombine.high %v8672_v13, %v8696_v26  ;;  %12539 = vst [vmem:[#allocation82_spill] sm:$0xff] %v8778_v28  ;;  %v2299_v13 = vrot.slane %v2285_v53, %v7699_v18  ;;  %v8782_v26 = vrot.slane %v2521_v45, %v7699_v18  ;;  %12541 = vst [vmem:[#allocation157_spill] sm:$0xff] %v8788_v6  ;;  %v12550_v53 = vld [vmem:[#allocation89_spill] sm:$0xff]  ;;  %v12551_v45 = vld [vmem:[#allocation96_spill] sm:$0xff] }
 0x2ef   :  { %v2796_v37 = vcombine.low %v12563_v43, %v12562_v12  ;;  %v3084_v36 = vcombine.low %v12584_v34, %v12583_v1 }
 0x2f0   :  { %v2417_v29 = vrot.slane %v2403_v14, %v7699_v18  ;;  %v8803_v61 = vcombine.low %v2511_v10, %v8782_v26  ;;  %v2692_v14 = vcombine.low %v12552_v30, %v12551_v45 }
 0x2f1   :  { %3609 = vmax.xlane.f32.xlu0 %v3608_v35  ;;  %v8769_v35 = vcombine.high %v2268_v44, %v2292_v32  ;;  %v8797_v44 = vcombine.low %v2275_v22, %v2299_v13  ;;  %v8876_v4 = vrot.slane %v2796_v37, %v7676_v11 }
 0x2f2   :  { %3612 = vmax.xlane.f32.xlu1 %v3611_v63  ;;  %v3638_v63 = vsel %vm3406_vm7, %v8778_v28, -inf  ;;  %v8809_v33 = vcombine.low %v2393_v25, %v2417_v29  ;;  %v12570_v28 = vld [vmem:[#allocation104_spill] sm:$0xff] }
 0x2f3   :  { %12536 = vst [vmem:[#allocation81_spill] sm:$0xff] %v8769_v35  ;;  %v3635_v40 = vsel %vm3406_vm7, %v8769_v35, -inf  ;;  %12543 = vst [vmem:[#allocation159_spill] sm:$0xff] %v8797_v44  ;;  %v2948_v23 = vcombine.low %v12571_v7, %v12570_v28 }
 0x2f4   :  { %12548 = vst [vmem:[#allocation160_spill] sm:$0xff] %v8809_v33 }
 0x2f5   :  { %3615 = vmax.xlane.f32.xlu0 %v3614_v49  ;;  %v12544_v49 = vld [vmem:[#allocation99_spill] sm:$0xff]  ;;  %v8893_v37 = vrot.slane %v2948_v23, %v7676_v11 }
 0x2f6   :  { %v8734_v48 = vpop.xlane.xlu0 %3408  ;;  %3618 = vmax.xlane.f32.xlu1 %v3617_v19  ;;  %v2708_v19 = vcombine.low %v12545_v31, %v12544_v49  ;;  %12546 = vst [vmem:[#allocation99_spill] sm:$0xff] %v8803_v61 }
 0x2f7   :  { %12528 = vst [vmem:[#allocation74_spill] sm:$0xff] %v8734_v48 }
 0x2f9   :  { %3621 = vmax.xlane.f32.xlu0 %v3620_v62  ;;  %v3641_v62 = vsel %vm3406_vm7, %v8788_v6, -inf }
 0x2fa   :  { %v8749_v47 = vpop.xlane.xlu0 %3414  ;;  %3624 = vmax.xlane.f32.xlu1 %v3623_v24  ;;  %v12549_v24 = vld [vmem:[#allocation91_spill] sm:$0xff] }
 0x2fb   :  { %12532 = vst [vmem:[#allocation87_spill] sm:$0xff] %v8749_v47  ;;  %v8757_v46 = vpop.xlane.xlu1 %3420  ;;  %v12559_v47 = vld [vmem:[#allocation20_spill] sm:$0xff] }
 0x2fc   :  { %12534 = vst [vmem:[#allocation66_spill] sm:$0xff] %v8757_v46  ;;  %v12561_v46 = vld [vmem:[#allocation107_spill] sm:$0xff] }
 0x2fd   :  { %3627 = vmax.xlane.f32.xlu0 %v3626_v58  ;;  %v2676_v58 = vcombine.low %v12550_v53, %v12549_v24 }
 0x2fe   :  { %v8765_v27 = vpop.xlane.xlu0 %3417  ;;  %3630 = vmax.xlane.f32.xlu1 %v3629_v52  ;;  %v12553_v52 = vld [vmem:[#allocation123_spill] sm:$0xff] }
 0x2ff   :  { %12535 = vst [vmem:[#allocation17_spill] sm:$0xff] %v8765_v27  ;;  %v8774_v2 = vpop.xlane.xlu1 %3426  ;;  %v2828_v17 = vcombine.low %v12554_v51, %v12553_v52  ;;  %v12558_v27 = vld [vmem:[#allocation88_spill] sm:$0xff]  ;;  %v8845_v6 = vrot.slane %v2676_v58, %v7676_v11 }
 0x300   :  { %12537 = vst [vmem:[#allocation18_spill] sm:$0xff] %v8774_v2  ;;  %v8823_v2 = vcombine.high %v2275_v22, %v2299_v13  ;;  %v2844_v13 = vcombine.low %v12565_v57, %v12564_v5 }
 0x301   :  { %3633 = vmax.xlane.f32.xlu0 %v3632_v39 }
 0x302   :  { %v8784_v32 = vpop.xlane.xlu0 %3423  ;;  %3636 = vmax.xlane.f32.xlu1 %v3635_v40  ;;  %v12556_v40 = vld [vmem:[#allocation93_spill] sm:$0xff]  ;;  %12557 = vst [vmem:[#allocation89_spill] sm:$0xff] %v8823_v2  ;;  %v8879_v54 = vrot.slane %v2844_v13, %v7676_v11 }
 0x303   :  { %12540 = vst [vmem:[#allocation80_spill] sm:$0xff] %v8784_v32  ;;  %v8793_v16 = vpop.xlane.xlu1 %3432  ;;  %v8828_v32 = vrot.slane %v2708_v19, %v7676_v11  ;;  %v8842_v19 = vcombine.high %v2393_v25, %v2417_v29  ;;  %v12574_v29 = vld [vmem:[#allocation131_spill] sm:$0xff]  ;;  %v12575_v25 = vld [vmem:[#allocation28_spill] sm:$0xff] }
 0x304   :  { %12542 = vst [vmem:[#allocation158_spill] sm:$0xff] %v8793_v16  ;;  %v2660_v16 = vcombine.low %v12559_v47, %v12558_v27  ;;  %v3100_v58 = vcombine.low %v12575_v25, %v12574_v29 }
 0x305   :  { %3639 = vmax.xlane.f32.xlu0 %v3638_v63  ;;  %v3644_v63 = vsel %vm3406_vm7, %v12556_v40, -inf  ;;  %12567 = vst [vmem:[#allocation90_spill] sm:$0xff] %v8842_v19  ;;  %v12569_v40 = vld [vmem:[#allocation100_spill] sm:$0xff] }
 0x306   :  { %v8805_v21 = vpop.xlane.xlu0 %3429  ;;  %3642 = vmax.xlane.f32.xlu1 %v3641_v62  ;;  %v12560_v62 = vld [vmem:[#allocation111_spill] sm:$0xff]  ;;  %v8866_v8 = vrot.slane %v2660_v16, %v7676_v11 }
 0x307   :  { %12547 = vst [vmem:[#allocation97_spill] sm:$0xff] %v8805_v21  ;;  %v8817_v39 = vpop.xlane.xlu1 %3438  ;;  %v3647_v21 = vsel %vm3406_vm7, %v8797_v44, -inf  ;;  %v2980_v48 = vcombine.low %v12561_v46, %v12560_v62  ;;  %v3650_v44 = vsel %vm3406_vm7, %v8809_v33, -inf  ;;  %v8857_v33 = vrot.slane %v2828_v17, %v7676_v11 }
 0x308   :  { %12555 = vst [vmem:[#allocation91_spill] sm:$0xff] %v8817_v39  ;;  %v3653_v39 = vsel %vm3406_vm7, %v8803_v61, -inf  ;;  %v12568_v61 = vld [vmem:[#allocation103_spill] sm:$0xff]  ;;  %v2724_v0 = vcombine.low %v8866_v8, %v8845_v6 }
 0x309   :  { %3645 = vmax.xlane.f32.xlu0 %v3644_v63  ;;  %v8848_v63 = vrot.slane %v2692_v14, %v7676_v11  ;;  %v2964_v35 = vcombine.low %v12569_v40, %v12568_v61  ;;  %v3116_v14 = vcombine.low %v12577_v38, %v12576_v9  ;;  %v8873_v17 = vrot.slane %v2980_v48, %v7676_v11 }
 0x30a   :  { %v8838_v22 = vpop.xlane.xlu0 %3435  ;;  %3648 = vmax.xlane.f32.xlu1 %v3647_v21  ;;  %v2932_v21 = vcombine.low %v12580_v55, %v12579_v60  ;;  %v2892_v20 = vcombine.low %v8857_v33, %v8879_v54 }
 0x30b   :  { %12566 = vst [vmem:[#allocation96_spill] sm:$0xff] %v8838_v22  ;;  %v12573_v22 = vld [vmem:[#allocation105_spill] sm:$0xff]  ;;  %v8863_v59 = vpop.xlane.xlu1 %3444  ;;  %v2756_v56 = vcombine.low %v8848_v63, %v8828_v32  ;;  %v8890_v48 = vrot.slane %v2964_v35, %v7676_v11  ;;  %v8906_v34 = vrot.slane %v3116_v14, %v7676_v11 }
 0x30c   :  { %v2812_v3 = vcombine.low %v12573_v22, %v12572_v42  ;;  %12578 = vst [vmem:[#allocation123_spill] sm:$0xff] %v8863_v59  ;;  %v12581_v59 = vld [vmem:[#allocation127_spill] sm:$0xff]  ;;  %v8911_v23 = vrot.slane %v2932_v21, %v7676_v11  ;;  %v8927_v21 = vrot.slane %v3084_v36, %v7676_v11  ;;  %v2900_v1 = vrot.slane %v2892_v20, %v7699_v18 }
 0x30d   :  { %3651 = vmax.xlane.f32.xlu0 %v3650_v44  ;;  %v3068_v16 = vcombine.low %v12582_v50, %v12581_v59  ;;  %v12586_v44 = vld [vmem:[#allocation94_spill] sm:$0xff] }
 0x30e   :  { %v8885_v15 = vpop.xlane.xlu0 %3441  ;;  %3654 = vmax.xlane.f32.xlu1 %v3653_v39  ;;  %v3656_v13 = vsel %vm3406_vm7, %v12586_v44, -inf  ;;  %v8898_v41 = vrot.slane %v2812_v3, %v7676_v11  ;;  %v3659_v39 = vsel %vm3406_vm7, %v8823_v2, -inf  ;;  %v8916_v3 = vcombine.high %v2511_v10, %v8782_v26 }
 0x30f   :  { %12585 = vst [vmem:[#allocation119_spill] sm:$0xff] %v8885_v15  ;;  %v8903_v15 = vrot.slane %v3100_v58, %v7676_v11  ;;  %v8908_v35 = vpop.xlane.xlu1 %3450  ;;  %v2764_v44 = vrot.slane %v2756_v56, %v7699_v18  ;;  %v3028_v58 = vcombine.low %v8890_v48, %v8873_v17  ;;  %v3662_v26 = vsel %vm3406_vm7, %v8842_v19, -inf }
 0x310   :  { %12587 = vst [vmem:[#allocation88_spill] sm:$0xff] %v8908_v35  ;;  %12588 = vst [vmem:[#allocation20_spill] sm:$0xff] %v8916_v3  ;;  %v2860_v14 = vcombine.low %v8876_v4, %v8898_v41  ;;  %v8924_v35 = vrot.slane %v3068_v16, %v7676_v11  ;;  %v2996_v56 = vcombine.low %v8911_v23, %v8893_v37  ;;  %v3665_v36 = vsel %vm3406_vm7, %v8916_v3, -inf }
 0x311   :  { %3657 = vmax.xlane.f32.xlu0 %v3656_v13  ;;  %v3164_v10 = vcombine.low %v8903_v15, %v8906_v34  ;;  %v2732_v16 = vrot.slane %v2724_v0, %v7699_v18  ;;  %v3036_v59 = vrot.slane %v3028_v58, %v7699_v18  ;;  %v12593_v0 = vld [vmem:[#allocation95_spill] sm:$0xff] }
 0x312   :  { %v8929_v13 = vpop.xlane.xlu0 %3447  ;;  %3660 = vmax.xlane.f32.xlu1 %v3659_v39  ;;  %v3132_v39 = vcombine.low %v8924_v35, %v8927_v21  ;;  %v2868_v50 = vrot.slane %v2860_v14, %v7699_v18  ;;  %v3668_v20 = vsel %vm3406_vm7, %v12593_v0, -inf  ;;  %v3004_v3 = vrot.slane %v2996_v56, %v7699_v18 }
 0x313   :  { %12589 = vst [vmem:[#allocation111_spill] sm:$0xff] %v8929_v13  ;;  %v8937_v2 = vpop.xlane.xlu1 %3456  ;;  %v8947_v19 = vcombine.low %v2732_v16, %v2764_v44  ;;  %v3172_v38 = vrot.slane %v3164_v10, %v7699_v18  ;;  %v2757_v56 = vcombine.high %v8848_v63, %v8828_v32  ;;  %v2661_v63 = vcombine.high %v12559_v47, %v12558_v27 }
 0x314   :  { %12590 = vst [vmem:[#allocation107_spill] sm:$0xff] %v8937_v2  ;;  %v8963_v9 = vcombine.low %v3004_v3, %v3036_v59  ;;  %v3140_v58 = vrot.slane %v3132_v39, %v7699_v18  ;;  %v2677_v39 = vcombine.high %v12550_v53, %v12549_v24  ;;  %v8990_v32 = vcombine.high %v2868_v50, %v2900_v1 }
 0x315   :  { %3663 = vmax.xlane.f32.xlu0 %v3662_v26  ;;  %v8955_v26 = vcombine.low %v2868_v50, %v2900_v1  ;;  %v3671_v14 = vsel %vm3406_vm7, %v8947_v19, -inf  ;;  %v2771_v24 = vrot.slane %v2757_v56, %v7699_v18  ;;  %v9003_v53 = vcombine.high %v3004_v3, %v3036_v59 }
 0x316   :  { %v8945_v13 = vpop.xlane.xlu0 %3453  ;;  %3666 = vmax.xlane.f32.xlu1 %v3665_v36  ;;  %v8970_v0 = vcombine.low %v3140_v58, %v3172_v38  ;;  %v9006_v50 = vrot.slane %v2677_v39, %v7676_v11  ;;  %v2693_v1 = vcombine.high %v12552_v30, %v12551_v45  ;;  %v2997_v47 = vcombine.high %v8911_v23, %v8893_v37 }
 0x317   :  { %12591 = vst [vmem:[#allocation115_spill] sm:$0xff] %v8945_v13  ;;  %v8951_v2 = vpop.xlane.xlu1 %3462  ;;  %12594 = vst [vmem:[#allocation117_spill] sm:$0xff] %v8955_v26  ;;  %v3686_v59 = vsel %vm3406_vm7, %v8990_v32, -inf  ;;  %v9023_v45 = vrot.slane %v2661_v63, %v7676_v11  ;;  %v2709_v30 = vcombine.high %v12545_v31, %v12544_v49  ;;  %v2829_v31 = vcombine.high %v12554_v51, %v12553_v52 }
 0x318   :  { %12592 = vst [vmem:[#allocation22_spill] sm:$0xff] %v8951_v2  ;;  %v3674_v2 = vsel %vm3406_vm7, %v8955_v26, -inf  ;;  %v9040_v49 = vrot.slane %v2693_v1, %v7676_v11  ;;  %v2933_v56 = vcombine.high %v12580_v55, %v12579_v60  ;;  %v2981_v52 = vcombine.high %v12561_v46, %v12560_v62  ;;  %v12603_v62 = vld [vmem:[#allocation11_spill] sm:$0xff] }
 0x319   :  { %3669 = vmax.xlane.f32.xlu0 %v3668_v20  ;;  %v3677_v20 = vsel %vm3406_vm7, %v8963_v9, -inf  ;;  %v2740_v3 = vcombine.low %v9023_v45, %v9006_v50  ;;  %v2845_v51 = vcombine.high %v12565_v57, %v12564_v5  ;;  %v2797_v39 = vcombine.high %v12563_v43, %v12562_v12  ;;  %v12602_v12 = vld [vmem:[#allocation129_spill] sm:$0xff] }
 0x31a   :  { %v8959_v13 = vpop.xlane.xlu0 %3459  ;;  %3672 = vmax.xlane.f32.xlu1 %v3671_v14  ;;  %v2725_v14 = vcombine.high %v8866_v8, %v8845_v6  ;;  %v3029_v8 = vcombine.high %v8890_v48, %v8873_v17  ;;  %v2861_v6 = vcombine.high %v8876_v4, %v8898_v41  ;;  %v3165_v4 = vcombine.high %v8903_v15, %v8906_v34 }
 0x31b   :  { %12595 = vst [vmem:[#allocation113_spill] sm:$0xff] %v8959_v13  ;;  %v8966_v36 = vpop.xlane.xlu1 %3468  ;;  %v8978_v13 = vcombine.high %v2732_v16, %v2764_v44  ;;  %v9019_v17 = vcombine.high %v3140_v58, %v3172_v38  ;;  %v3133_v34 = vcombine.high %v8924_v35, %v8927_v21  ;;  %v3689_v38 = vsel %vm3406_vm7, %v9003_v53, -inf }
 0x31c   :  { %12596 = vst [vmem:[#allocation103_spill] sm:$0xff] %v8966_v36  ;;  %v2893_v36 = vcombine.high %v8857_v33, %v8879_v54  ;;  %v2739_v27 = vrot.slane %v2725_v14, %v7699_v18  ;;  %v2875_v44 = vrot.slane %v2861_v6, %v7699_v18  ;;  %v3043_v23 = vrot.slane %v3029_v8, %v7699_v18 }
 0x31d   :  { %3675 = vmax.xlane.f32.xlu0 %v3674_v2  ;;  %v3680_v2 = vsel %vm3406_vm7, %v8970_v0, -inf  ;;  %v3683_v33 = vsel %vm3406_vm7, %v8978_v13, -inf  ;;  %v3692_v21 = vsel %vm3406_vm7, %v9019_v17, -inf  ;;  %v3011_v58 = vrot.slane %v2997_v47, %v7699_v18  ;;  %v12607_v47 = vld [vmem:[#allocation125_spill] sm:$0xff] }
 0x31e   :  { %v8974_v10 = vpop.xlane.xlu0 %3465  ;;  %3678 = vmax.xlane.f32.xlu1 %v3677_v20  ;;  %v2907_v48 = vrot.slane %v2893_v36, %v7699_v18  ;;  %v9027_v37 = vcombine.low %v2739_v27, %v2771_v24  ;;  %v3179_v36 = vrot.slane %v3165_v4, %v7699_v18  ;;  %v9055_v20 = vrot.slane %v2709_v30, %v7676_v11  ;;  %v12608_v4 = vld [vmem:[#allocation121_spill] sm:$0xff] }
 0x31f   :  { %12597 = vst [vmem:[#allocation100_spill] sm:$0xff] %v8974_v10  ;;  %v8986_v26 = vpop.xlane.xlu1 %3474  ;;  %v9067_v63 = vcombine.low %v3011_v58, %v3043_v23  ;;  %v3147_v60 = vrot.slane %v3133_v34, %v7699_v18  ;;  %v2965_v55 = vcombine.high %v12569_v40, %v12568_v61  ;;  %v2949_v46 = vcombine.high %v12571_v7, %v12570_v28  ;;  %v12644_v10 = vld [vmem:[#allocation25_spill] sm:$0xff] }
 0x320   :  { %12598 = vst [vmem:[#allocation104_spill] sm:$0xff] %v8986_v26  ;;  %v9048_v16 = vcombine.low %v2875_v44, %v2907_v48  ;;  %v2813_v57 = vcombine.high %v12573_v22, %v12572_v42  ;;  %v9077_v5 = vrot.slane %v2829_v31, %v7676_v11  ;;  %v3101_v43 = vcombine.high %v12575_v25, %v12574_v29  ;;  %v12605_v25 = vld [vmem:[#allocation127_spill] sm:$0xff]  ;;  %v12640_v26 = vld [vmem:[#allocation86_spill] sm:$0xff] }
 0x321   :  { %3681 = vmax.xlane.f32.xlu0 %v3680_v2  ;;  %v3695_v2 = vsel %vm3406_vm7, %v9027_v37, -inf  ;;  %v3117_v8 = vcombine.high %v12603_v62, %v12602_v12  ;;  %v9087_v40 = vcombine.low %v3147_v60, %v3179_v36  ;;  %v2772_v42 = vcombine.low %v9040_v49, %v9055_v20 }
 0x322   :  { %v8999_v54 = vpop.xlane.xlu0 %3471  ;;  %3684 = vmax.xlane.f32.xlu1 %v3683_v33  ;;  %v3698_v61 = vsel %vm3406_vm7, %v9048_v16, -inf  ;;  %v9092_v7 = vrot.slane %v2981_v52, %v7676_v11  ;;  %v9095_v28 = vrot.slane %v2845_v51, %v7676_v11  ;;  %v9097_v22 = vcombine.high %v2739_v27, %v2771_v24  ;;  %v12606_v33 = vld [vmem:[#allocation23_spill] sm:$0xff] }
 0x323   :  { %v9015_v41 = vpop.xlane.xlu1 %3480  ;;  %v9100_v29 = vrot.slane %v2797_v39, %v7676_v11  ;;  %v3069_v1 = vcombine.high %v12606_v33, %v12605_v25  ;;  %v3701_v34 = vsel %vm3406_vm7, %v9067_v63, -inf  ;;  %v9114_v24 = vrot.slane %v2949_v46, %v7676_v11 }
 0x324   :  { %12599 = vst [vmem:[#allocation101_spill] sm:$0xff] %v9015_v41  ;;  %v9117_v27 = vrot.slane %v2813_v57, %v7676_v11  ;;  %v2908_v31 = vcombine.low %v9077_v5, %v9095_v28  ;;  %v9125_v52 = vrot.slane %v3117_v8, %v7676_v11  ;;  %v3704_v39 = vsel %vm3406_vm7, %v9087_v40, -inf }
 0x325   :  { %3687 = vmax.xlane.f32.xlu0 %v3686_v59  ;;  %v3085_v59 = vcombine.high %v12608_v4, %v12607_v47  ;;  %v3707_v57 = vsel %vm3406_vm7, %v9097_v22, -inf  ;;  %v9144_v62 = vrot.slane %v3069_v1, %v7676_v11  ;;  %v9162_v1 = vcombine.high %v3147_v60, %v3179_v36 }
 0x326   :  { %v9031_v15 = vpop.xlane.xlu0 %3477  ;;  %3690 = vmax.xlane.f32.xlu1 %v3689_v38  ;;  %v9111_v38 = vrot.slane %v2965_v55, %v7676_v11  ;;  %v9134_v55 = vrot.slane %v2933_v56, %v7676_v11  ;;  %v2876_v12 = vcombine.low %v9100_v29, %v9117_v27  ;;  %v9151_v56 = vcombine.high %v3011_v58, %v3043_v23 }
 0x327   :  { %12600 = vst [vmem:[#allocation109_spill] sm:$0xff] %v9031_v15  ;;  %v9044_v35 = vpop.xlane.xlu1 %3486  ;;  %v2916_v47 = vrot.slane %v2908_v31, %v7699_v18  ;;  %v3716_v60 = vsel %vm3406_vm7, %v9162_v1, -inf }
 0x328   :  { %12601 = vst [vmem:[#allocation105_spill] sm:$0xff] %v9044_v35  ;;  %v3044_v46 = vcombine.low %v9111_v38, %v9092_v7  ;;  %v3012_v8 = vcombine.low %v9134_v55, %v9114_v24 }
 0x329   :  { %3693 = vmax.xlane.f32.xlu0 %v3692_v21  ;;  %v9122_v21 = vrot.slane %v3101_v43, %v7676_v11  ;;  %v2780_v43 = vrot.slane %v2772_v42, %v7699_v18 }
 0x32a   :  { %v9063_v14 = vpop.xlane.xlu0 %3483  ;;  %3696 = vmax.xlane.f32.xlu1 %v3695_v2  ;;  %v9131_v2 = vcombine.high %v2875_v44, %v2907_v48  ;;  %v9147_v48 = vrot.slane %v3085_v59, %v7676_v11  ;;  %v2884_v59 = vrot.slane %v2876_v12, %v7699_v18 }
 0x32b   :  { %v9083_v6 = vpop.xlane.xlu1 %3492  ;;  %v3180_v42 = vcombine.low %v9122_v21, %v9125_v52 }
 0x32c   :  { %12604 = vst [vmem:[#allocation131_spill] sm:$0xff] %v9083_v6  ;;  %v3710_v33 = vsel %vm3406_vm7, %v9131_v2, -inf  ;;  %v3148_v58 = vcombine.low %v9144_v62, %v9147_v48  ;;  %v9179_v31 = vcombine.low %v2884_v59, %v2916_v47 }
 0x32d   :  { %3699 = vmax.xlane.f32.xlu0 %v3698_v61  ;;  %v2748_v61 = vrot.slane %v2740_v3, %v7699_v18  ;;  %v3713_v3 = vsel %vm3406_vm7, %v9151_v56, -inf }
 0x32e   :  { %v9106_v30 = vpop.xlane.xlu0 %3489  ;;  %3702 = vmax.xlane.f32.xlu1 %v3701_v34  ;;  %v3052_v34 = vrot.slane %v3044_v46, %v7699_v18  ;;  %v3156_v46 = vrot.slane %v3148_v58, %v7699_v18  ;;  %v2909_v58 = vcombine.high %v9077_v5, %v9095_v28  ;;  %v3013_v5 = vcombine.high %v9134_v55, %v9114_v24 }
 0x32f   :  { %12609 = vst [vmem:[#allocation28_spill] sm:$0xff] %v9106_v30  ;;  %v9127_v51 = vpop.xlane.xlu1 %3498  ;;  %v9165_v23 = vcombine.low %v2748_v61, %v2780_v43  ;;  %v3149_v55 = vcombine.high %v9144_v62, %v9147_v48  ;;  %v12626_v48 = vld [vmem:[#allocation143_spill] sm:$0xff] }
 0x330   :  { %12610 = vst [vmem:[#allocation98_spill] sm:$0xff] %v9127_v51  ;;  %v12639_v30 = vld [vmem:[#allocation75_spill] sm:$0xff]  ;;  %v12641_v51 = vld [vmem:[#allocation69_spill] sm:$0xff] }
 0x331   :  { %3705 = vmax.xlane.f32.xlu0 %v3704_v39  ;;  %v3020_v39 = vrot.slane %v3012_v8, %v7699_v18  ;;  %v3719_v12 = vsel %vm3406_vm7, %v9165_v23, -inf  ;;  %v2773_v8 = vcombine.high %v9040_v49, %v9055_v20  ;;  %v9212_v49 = vcombine.high %v2884_v59, %v2916_v47 }
 0x332   :  { %v9149_v44 = vpop.xlane.xlu0 %3495  ;;  %3708 = vmax.xlane.f32.xlu1 %v3707_v57  ;;  %v3188_v57 = vrot.slane %v3180_v42, %v7699_v18  ;;  %v3045_v20 = vcombine.high %v9111_v38, %v9092_v7  ;;  %v3181_v47 = vcombine.high %v9122_v21, %v9125_v52  ;;  %v2923_v7 = vrot.slane %v2909_v58, %v7699_v18  ;;  %v12621_v52 = vld [vmem:[#allocation147_spill] sm:$0xff]  ;;  %v12624_v58 = vld [vmem:[#allocation137_spill] sm:$0xff] }
 0x333   :  { %12611 = vst [vmem:[#allocation21_spill] sm:$0xff] %v9149_v44  ;;  %v9158_v25 = vpop.xlane.xlu1 %3411  ;;  %v3734_v38 = vsel %vm3406_vm7, %v9212_v49, -inf }
 0x334   :  { %12612 = vst [vmem:[#allocation129_spill] sm:$0xff] %v9158_v25  ;;  %v9187_v25 = vcombine.low %v3020_v39, %v3052_v34  ;;  %v9234_v24 = vcombine.high %v3156_v46, %v3188_v57  ;;  %v3059_v21 = vrot.slane %v3045_v20, %v7699_v18 }
 0x335   :  { %3711 = vmax.xlane.f32.xlu0 %v3710_v33 }
 0x336   :  { %v9169_v4 = vpop.xlane.xlu0 %3501  ;;  %3714 = vmax.xlane.f32.xlu1 %v3713_v3 }
 0x337   :  { %12613 = vst [vmem:[#allocation11_spill] sm:$0xff] %v9169_v4  ;;  %v9175_v36 = vpop.xlane.xlu1 %3504  ;;  %v9194_v4 = vcombine.low %v3156_v46, %v3188_v57  ;;  %v3027_v46 = vrot.slane %v3013_v5, %v7699_v18 }
 0x338   :  { %12614 = vst [vmem:[#allocation127_spill] sm:$0xff] %v9175_v36  ;;  %v3722_v36 = vsel %vm3406_vm7, %v9179_v31, -inf }
 0x339   :  { %3717 = vmax.xlane.f32.xlu0 %v3716_v60  ;;  %v3725_v60 = vsel %vm3406_vm7, %v9187_v25, -inf  ;;  %v9263_v5 = vcombine.low %v3027_v46, %v3059_v21 }
 0x33a   :  { %v9183_v33 = vpop.xlane.xlu0 %3507  ;;  %3720 = vmax.xlane.f32.xlu1 %v3719_v12  ;;  %v2741_v12 = vcombine.high %v9023_v45, %v9006_v50  ;;  %v9224_v45 = vcombine.high %v3020_v39, %v3052_v34  ;;  %v12622_v34 = vld [vmem:[#allocation141_spill] sm:$0xff] }
 0x33b   :  { %12615 = vst [vmem:[#allocation23_spill] sm:$0xff] %v9183_v33  ;;  %v9190_v3 = vpop.xlane.xlu1 %3510  ;;  %v9202_v33 = vcombine.high %v2748_v61, %v2780_v43  ;;  %v2877_v43 = vcombine.high %v9100_v29, %v9117_v27  ;;  %v2787_v61 = vrot.slane %v2773_v8, %v7699_v18  ;;  %v3228_v39 = vcombine.low %v12622_v34, %v12621_v52  ;;  %v12629_v34 = vld [vmem:[#allocation135_spill] sm:$0xff] }
 0x33c   :  { %12616 = vst [vmem:[#allocation125_spill] sm:$0xff] %v9190_v3  ;;  %v2755_v27 = vrot.slane %v2741_v12, %v7699_v18  ;;  %v12625_v12 = vld [vmem:[#allocation133_spill] sm:$0xff]  ;;  %v3740_v52 = vsel %vm3406_vm7, %v9234_v24, -inf }
 0x33d   :  { %3723 = vmax.xlane.f32.xlu0 %v3722_v36  ;;  %v3728_v36 = vsel %vm3406_vm7, %v9194_v4, -inf  ;;  %v3731_v50 = vsel %vm3406_vm7, %v9202_v33, -inf  ;;  %v2891_v59 = vrot.slane %v2877_v43, %v7699_v18  ;;  %v3212_v62 = vcombine.low %v12625_v12, %v12624_v58 }
 0x33e   :  { %v9198_v42 = vpop.xlane.xlu0 %3513  ;;  %3726 = vmax.xlane.f32.xlu1 %v3725_v60  ;;  %v3737_v60 = vsel %vm3406_vm7, %v9224_v45, -inf  ;;  %v9247_v57 = vcombine.low %v2755_v27, %v2787_v61  ;;  %v3163_v58 = vrot.slane %v3149_v55, %v7699_v18  ;;  %v3235_v12 = vrot.slane %v3228_v39, %v7676_v11  ;;  %v12634_v55 = vld [vmem:[#allocation31_spill] sm:$0xff] }
 0x33f   :  { %12617 = vst [vmem:[#allocation121_spill] sm:$0xff] %v9198_v42  ;;  %v9208_v3 = vpop.xlane.xlu1 %3516  ;;  %v9254_v20 = vcombine.low %v2891_v59, %v2923_v7  ;;  %v12635_v39 = vld [vmem:[#allocation35_spill] sm:$0xff] }
 0x340   :  { %12618 = vst [vmem:[#allocation161_spill] sm:$0xff] %v9208_v3 }
 0x341   :  { %3729 = vmax.xlane.f32.xlu0 %v3728_v36  ;;  %v12627_v36 = vld [vmem:[#allocation139_spill] sm:$0xff] }
 0x342   :  { %v9220_v28 = vpop.xlane.xlu0 %3519  ;;  %3732 = vmax.xlane.f32.xlu1 %v3731_v50  ;;  %v3220_v43 = vcombine.low %v12627_v36, %v12626_v48  ;;  %v3195_v50 = vrot.slane %v3181_v47, %v7699_v18  ;;  %v12632_v48 = vld [vmem:[#allocation32_spill] sm:$0xff]  ;;  %v3743_v47 = vsel %vm3406_vm7, %v9247_v57, -inf }
 0x343   :  { %12619 = vst [vmem:[#allocation162_spill] sm:$0xff] %v9220_v28  ;;  %v9230_v29 = vpop.xlane.xlu1 %3522  ;;  %v12636_v28 = vld [vmem:[#allocation52_spill] sm:$0xff] }
 0x344   :  { %12620 = vst [vmem:[#allocation163_spill] sm:$0xff] %v9230_v29  ;;  %v3227_v3 = vrot.slane %v3220_v43, %v7676_v11 }
 0x345   :  { %3735 = vmax.xlane.f32.xlu0 %v3734_v38 }
 0x346   :  { %v9243_v8 = vpop.xlane.xlu0 %3525  ;;  %3738 = vmax.xlane.f32.xlu1 %v3737_v60  ;;  %v12631_v60 = vld [vmem:[#allocation44_spill] sm:$0xff] }
 0x347   :  { %12623 = vst [vmem:[#allocation147_spill] sm:$0xff] %v9243_v8  ;;  %v9257_v38 = vpop.xlane.xlu1 %3528  ;;  %v12630_v8 = vld [vmem:[#allocation24_spill] sm:$0xff]  ;;  %v3328_v36 = vcombine.low %v12632_v48, %v12631_v60  ;;  %v12637_v60 = vld [vmem:[#allocation34_spill] sm:$0xff] }
 0x348   :  { %12628 = vst [vmem:[#allocation141_spill] sm:$0xff] %v9257_v38  ;;  %v3204_v29 = vcombine.low %v12630_v8, %v12629_v34  ;;  %v3219_v38 = vrot.slane %v3212_v62, %v7676_v11  ;;  %v3746_v8 = vsel %vm3406_vm7, %v9254_v20, -inf  ;;  %v3320_v34 = vcombine.low %v12635_v39, %v12634_v55 }
 0x349   :  { %3741 = vmax.xlane.f32.xlu0 %v3740_v52  ;;  %v9277_v52 = vcombine.low %v3163_v58, %v3195_v50  ;;  %v3312_v48 = vcombine.low %v12637_v60, %v12636_v28  ;;  %v3378_v62 = vcombine.low %v12641_v51, %v12640_v26  ;;  %v3749_v55 = vsel %vm3406_vm7, %v9263_v5, -inf  ;;  %v12647_v26 = vld [vmem:[#allocation71_spill] sm:$0xff]  ;;  %v12648_v51 = vld [vmem:[#allocation77_spill] sm:$0xff] }
 0x34a   :  { %v9269_v42 = vpop.xlane.xlu0 %3531  ;;  %3744 = vmax.xlane.f32.xlu1 %v3743_v47  ;;  %v3211_v43 = vrot.slane %v3204_v29, %v7676_v11  ;;  %v12643_v47 = vld [vmem:[#allocation38_spill] sm:$0xff]  ;;  %v9294_v39 = vcombine.high %v2755_v27, %v2787_v61  ;;  %v3244_v28 = vcombine.low %v3227_v3, %v3235_v12  ;;  %v3335_v60 = vrot.slane %v3328_v36, %v7676_v11 }
 0x34b   :  { %12633 = vst [vmem:[#allocation137_spill] sm:$0xff] %v9269_v42  ;;  %v12638_v42 = vld [vmem:[#allocation67_spill] sm:$0xff]  ;;  %v9287_v35 = vpop.xlane.xlu1 %3534  ;;  %v3304_v44 = vcombine.low %v12644_v10, %v12643_v47  ;;  %v3752_v10 = vsel %vm3406_vm7, %v9277_v52, -inf  ;;  %v3327_v61 = vrot.slane %v3320_v34, %v7676_v11  ;;  %v3319_v3 = vrot.slane %v3312_v48, %v7676_v11 }
 0x34c   :  { %v3370_v15 = vcombine.low %v12639_v30, %v12638_v42  ;;  %12642 = vst [vmem:[#allocation133_spill] sm:$0xff] %v9287_v35  ;;  %v12645_v30 = vld [vmem:[#allocation60_spill] sm:$0xff]  ;;  %v12646_v42 = vld [vmem:[#allocation26_spill] sm:$0xff]  ;;  %v3362_v35 = vcombine.low %v12648_v51, %v12647_v26  ;;  %v3236_v29 = vcombine.low %v3211_v43, %v3219_v38  ;;  %v3385_v12 = vrot.slane %v3378_v62, %v7676_v11 }
 0x34d   :  { %3747 = vmax.xlane.f32.xlu0 %v3746_v8  ;;  %v3354_v6 = vcombine.low %v12646_v42, %v12645_v30  ;;  %v9305_v8 = vcombine.high %v2891_v59, %v2923_v7  ;;  %v3311_v47 = vrot.slane %v3304_v44, %v7676_v11  ;;  %v3755_v38 = vsel %vm3406_vm7, %v9294_v39, -inf }
 0x34e   :  { %v9301_v41 = vpop.xlane.xlu0 %3537  ;;  %3750 = vmax.xlane.f32.xlu1 %v3749_v55  ;;  %v3377_v27 = vrot.slane %v3370_v15, %v7676_v11  ;;  %v9316_v43 = vcombine.high %v3027_v46, %v3059_v21  ;;  %v3344_v7 = vcombine.low %v3327_v61, %v3335_v60  ;;  %v3369_v34 = vrot.slane %v3362_v35, %v7676_v11 }
 0x34f   :  { %12649 = vst [vmem:[#allocation143_spill] sm:$0xff] %v9301_v41  ;;  %v9311_v36 = vpop.xlane.xlu1 %3540  ;;  %v3361_v59 = vrot.slane %v3354_v6, %v7676_v11  ;;  %v3251_v15 = vrot.slane %v3244_v28, %v7699_v18  ;;  %v3758_v62 = vsel %vm3406_vm7, %v9305_v8, -inf  ;;  %v3336_v44 = vcombine.low %v3311_v47, %v3319_v3 }
 0x350   :  { %12650 = vst [vmem:[#allocation139_spill] sm:$0xff] %v9311_v36  ;;  %v3394_v55 = vcombine.low %v3377_v27, %v3385_v12  ;;  %v9327_v42 = vcombine.high %v3163_v58, %v3195_v50  ;;  %v3243_v21 = vrot.slane %v3236_v29, %v7699_v18  ;;  %v3761_v11 = vsel %vm3406_vm7, %v9316_v43, -inf  ;;  %v12657_v27 = vld [vmem:[#allocation27_spill] sm:$0xff] }
 0x351   :  { %3753 = vmax.xlane.f32.xlu0 %v3752_v10  ;;  %v3386_v6 = vcombine.low %v3361_v59, %v3369_v34  ;;  %v3351_v28 = vrot.slane %v3344_v7, %v7699_v18  ;;  %v3343_v58 = vrot.slane %v3336_v44, %v7699_v18  ;;  %v3770_v12 = vsel %vm3406_vm7, %v12657_v27, -inf }
 0x352   :  { %v9320_v48 = vpop.xlane.xlu0 %3543  ;;  %3756 = vmax.xlane.f32.xlu1 %v3755_v38  ;;  %v9334_v35 = vcombine.low %v3243_v21, %v3251_v15  ;;  %v3764_v50 = vsel %vm3406_vm7, %v9327_v42, -inf  ;;  %v3401_v26 = vrot.slane %v3394_v55, %v7699_v18  ;;  %v9360_v59 = vcombine.high %v3243_v21, %v3251_v15 }
 0x353   :  { %12651 = vst [vmem:[#allocation135_spill] sm:$0xff] %v9320_v48  ;;  %v9325_v30 = vpop.xlane.xlu1 %3546  ;;  %v9347_v10 = vcombine.low %v3343_v58, %v3351_v28  ;;  %v3393_v61 = vrot.slane %v3386_v6, %v7699_v18  ;;  %v9370_v55 = vcombine.high %v3343_v58, %v3351_v28 }
 0x354   :  { %12652 = vst [vmem:[#allocation24_spill] sm:$0xff] %v9325_v30  ;;  %v3767_v29 = vsel %vm3406_vm7, %v9334_v35, -inf  ;;  %v3779_v44 = vsel %vm3406_vm7, %v9360_v59, -inf }
 0x355   :  { %3759 = vmax.xlane.f32.xlu0 %v3758_v62  ;;  %v9354_v47 = vcombine.low %v3393_v61, %v3401_v26  ;;  %v3773_v7 = vsel %vm3406_vm7, %v9347_v10, -inf  ;;  %v9376_v21 = vcombine.high %v3393_v61, %v3401_v26 }
 0x356   :  { %v9330_v46 = vpop.xlane.xlu0 %3549  ;;  %3762 = vmax.xlane.f32.xlu1 %v3761_v11  ;;  %v12662_v11 = vld [vmem:[#allocation149_spill] sm:$0xff] }
 0x357   :  { %12653 = vst [vmem:[#allocation44_spill] sm:$0xff] %v9330_v46  ;;  %v9337_v60 = vpop.xlane.xlu1 %3552  ;;  %v3776_v18 = vsel %vm3406_vm7, %v9354_v47, -inf  ;;  %v3782_v15 = vsel %vm3406_vm7, %v12662_v11, -inf  ;;  %v3788_v28 = vsel %vm3406_vm7, %v9376_v21, -inf }
 0x358   :  { %12654 = vst [vmem:[#allocation32_spill] sm:$0xff] %v9337_v60  ;;  %v12687_v60 = vld [vmem:[#allocation43_spill] sm:$0xff] }
 0x359   :  { %3765 = vmax.xlane.f32.xlu0 %v3764_v50  ;;  %v5035_v36 = vsel %vm4240_vm8, %v12687_v60, -inf }
 0x35a   :  { %v9343_v51 = vpop.xlane.xlu0 %3555  ;;  %3768 = vmax.xlane.f32.xlu1 %v3767_v29  ;;  %v3785_v29 = vsel %vm3406_vm7, %v9370_v55, -inf }
 0x35b   :  { %12655 = vst [vmem:[#allocation31_spill] sm:$0xff] %v9343_v51  ;;  %v9350_v3 = vpop.xlane.xlu1 %3558 }
 0x35c   :  { %12656 = vst [vmem:[#allocation35_spill] sm:$0xff] %v9350_v3 }
 0x35d   :  { %3771 = vmax.xlane.f32.xlu0 %v3770_v12 }
 0x35e   :  { %v9356_v38 = vpop.xlane.xlu0 %3561  ;;  %3774 = vmax.xlane.f32.xlu1 %v3773_v7 }
 0x35f   :  { %12658 = vst [vmem:[#allocation52_spill] sm:$0xff] %v9356_v38  ;;  %v9362_v34 = vpop.xlane.xlu1 %3564 }
 0x360   :  { %12659 = vst [vmem:[#allocation34_spill] sm:$0xff] %v9362_v34 }
 0x361   :  { %3777 = vmax.xlane.f32.xlu0 %v3776_v18 }
 0x362   :  { %v9366_v62 = vpop.xlane.xlu0 %3567  ;;  %3780 = vmax.xlane.f32.xlu1 %v3779_v44 }
 0x363   :  { %12660 = vst [vmem:[#allocation67_spill] sm:$0xff] %v9366_v62  ;;  %v9372_v6 = vpop.xlane.xlu1 %3570 }
 0x364   :  { %12661 = vst [vmem:[#allocation75_spill] sm:$0xff] %v9372_v6 }
 0x365   :  { %3783 = vmax.xlane.f32.xlu0 %v3782_v15  ;;  %v6700_v15 = vld [vmem:[%s11991_s3] ss:$0 sm:$0xff] }
 0x366   :  { %v9378_v50 = vpop.xlane.xlu0 %3573  ;;  %3786 = vmax.xlane.f32.xlu1 %v3785_v29 }
 0x367   :  { %12663 = vst [vmem:[#allocation86_spill] sm:$0xff] %v9378_v50  ;;  %v9382_v12 = vpop.xlane.xlu1 %3576 }
 0x368   :  { %12664 = vst [vmem:[#allocation69_spill] sm:$0xff] %v9382_v12 }
 0x369   :  { %3789 = vmax.xlane.f32.xlu0 %v3788_v28 }
 0x36a   :  { %v9386_v58 = vpop.xlane.xlu0 %3579 }
 0x36b   :  { %12665 = vst [vmem:[#allocation38_spill] sm:$0xff] %v9386_v58  ;;  %v9388_v7 = vpop.xlane.xlu1 %3582 }
 0x36c   :  { %12666 = vst [vmem:[#allocation25_spill] sm:$0xff] %v9388_v7 }
 0x36e   :  { %v9390_v18 = vpop.xlane.xlu0 %3585 }
 0x36f   :  { %12667 = vst [vmem:[#allocation60_spill] sm:$0xff] %v9390_v18  ;;  %v9392_v26 = vpop.xlane.xlu1 %3588 }
 0x370   :  { %12668 = vst [vmem:[#allocation26_spill] sm:$0xff] %v9392_v26 }
 0x372   :  { %v9394_v61 = vpop.xlane.xlu0 %3591 }
 0x373   :  { %12669 = vst [vmem:[#allocation71_spill] sm:$0xff] %v9394_v61  ;;  %v9396_v44 = vpop.xlane.xlu1 %3594 }
 0x374   :  { %12670 = vst [vmem:[#allocation77_spill] sm:$0xff] %v9396_v44 }
 0x376   :  { %v9401_v29 = vpop.xlane.xlu0 %3597 }
 0x377   :  { %12671 = vst [vmem:[#allocation27_spill] sm:$0xff] %v9401_v29  ;;  %3797 = vbcast.lane.b32.xlu1 %v6700_v15, 256  ;;  %v9403_v28 = vpop.xlane.xlu1 %3600 }
 0x378   :  { %12672 = vst [vmem:[#allocation149_spill] sm:$0xff] %v9403_v28  ;;  %v12695_v28 = vld [vmem:[#allocation112_spill] sm:$0xff] }
 0x37a   :  { %v9405_v12 = vpop.xlane.xlu0 %3603 }
 0x37b   :  { %12673 = vst [vmem:[#allocation164_spill] sm:$0xff] %v9405_v12  ;;  %3805 = vbcast.lane.b32.xlu1 %v6700_v15, 272  ;;  %v9407_v7 = vpop.xlane.xlu1 %3606  ;;  %v12699_v12 = vld [vmem:[#allocation116_spill] sm:$0xff] }
 0x37c   :  { %12674 = vst [vmem:[#allocation165_spill] sm:$0xff] %v9407_v7  ;;  %v12692_v7 = vld [vmem:[#allocation108_spill] sm:$0xff] }
 0x37d   :  { %v5044_v60 = vsel %vm4240_vm8, %v12692_v7, -inf }
 0x37e   :  { %v9409_v18 = vpop.xlane.xlu0 %3609 }
 0x37f   :  { %12675 = vst [vmem:[#allocation166_spill] sm:$0xff] %v9409_v18  ;;  %3801 = vbcast.lane.b32.xlu0 %v6700_v15, 264  ;;  %3809 = vbcast.lane.b32.xlu1 %v6700_v15, 280  ;;  %v9411_v26 = vpop.xlane.xlu1 %3612 }
 0x380   :  { %12676 = vst [vmem:[#allocation167_spill] sm:$0xff] %v9411_v26 }
 0x382   :  { %v9413_v44 = vpop.xlane.xlu0 %3615 }
 0x383   :  { %12677 = vst [vmem:[#allocation168_spill] sm:$0xff] %v9413_v44  ;;  %v9415_v61 = vpop.xlane.xlu1 %3618 }
 0x384   :  { %12678 = vst [vmem:[#allocation169_spill] sm:$0xff] %v9415_v61 }
 0x386   :  { %v9417_v58 = vpop.xlane.xlu0 %3621 }
 0x387   :  { %12679 = vst [vmem:[#allocation170_spill] sm:$0xff] %v9417_v58  ;;  %v9419_v29 = vpop.xlane.xlu1 %3624  ;;  %v12690_v58 = vld [vmem:[#allocation102_spill] sm:$0xff] }
 0x388   :  { %12680 = vst [vmem:[#allocation171_spill] sm:$0xff] %v9419_v29  ;;  %v5032_v61 = vsel %vm4240_vm8, %v12690_v58, -inf  ;;  %v12697_v58 = vld [vmem:[#allocation114_spill] sm:$0xff] }
 0x38a   :  { %v9421_v50 = vpop.xlane.xlu0 %3627 }
 0x38b   :  { %12681 = vst [vmem:[#allocation172_spill] sm:$0xff] %v9421_v50  ;;  %v9423_v6 = vpop.xlane.xlu1 %3630 }
 0x38c   :  { %12682 = vst [vmem:[#allocation173_spill] sm:$0xff] %v9423_v6  ;;  %v12689_v6 = vld [vmem:[#allocation106_spill] sm:$0xff] }
 0x38e   :  { %v9425_v38 = vpop.xlane.xlu0 %3633 }
 0x38f   :  { %12683 = vst [vmem:[#allocation174_spill] sm:$0xff] %v9425_v38  ;;  %v9427_v3 = vpop.xlane.xlu1 %3636  ;;  %v5038_v38 = vsel %vm4240_vm8, %v12689_v6, -inf }
 0x392   :  { %v9429_v30 = vpop.xlane.xlu0 %3639 }
 0x393   :  { %v9431_v15 = vpop.xlane.xlu1 %3642 }
 0x394   :  { %12684 = vst [vmem:[#allocation175_spill] sm:$0xff] %v9431_v15 }
 0x396   :  { %v9433_v46 = vpop.xlane.xlu0 %3645 }
 0x397   :  { %12685 = vst [vmem:[#allocation176_spill] sm:$0xff] %v9433_v46  ;;  %v9435_v62 = vpop.xlane.xlu1 %3648 }
 0x39a   :  { %v9437_v34 = vpop.xlane.xlu0 %3651 }
 0x39b   :  { %v9439_v51 = vpop.xlane.xlu1 %3654 }
 0x39c   :  { %12686 = vst [vmem:[#allocation177_spill] sm:$0xff] %v9439_v51  ;;  %v12711_v51 = vld [vmem:[#allocation29_spill] sm:$0xff] }
 0x39e   :  { %v9443_v48 = vpop.xlane.xlu0 %3657  ;;  %5036 = vmax.xlane.f32.xlu0 %v5035_v36  ;;  %v12694_v36 = vld [vmem:[#allocation110_spill] sm:$0xff] }
 0x39f   :  { %12688 = vst [vmem:[#allocation43_spill] sm:$0xff] %v9443_v48  ;;  %v9445_v41 = vpop.xlane.xlu1 %3660  ;;  %v5041_v26 = vsel %vm4240_vm8, %v12694_v36, -inf }
 0x3a2   :  { %v9449_v29 = vpop.xlane.xlu0 %3663  ;;  %5039 = vmax.xlane.f32.xlu0 %v5038_v38  ;;  %v5050_v38 = vsel %vm4240_vm8, %v12695_v28, -inf }
 0x3a3   :  { %5033 = vmax.xlane.f32.xlu1 %v5032_v61  ;;  %v9453_v18 = vpop.xlane.xlu1 %3666  ;;  %v5047_v61 = vsel %vm4240_vm8, %v12697_v58, -inf  ;;  %v12705_v58 = vld [vmem:[#allocation122_spill] sm:$0xff] }
 0x3a4   :  { %12691 = vst [vmem:[#allocation106_spill] sm:$0xff] %v9453_v18  ;;  %v12703_v18 = vld [vmem:[#allocation120_spill] sm:$0xff] }
 0x3a6   :  { %v9457_v50 = vpop.xlane.xlu0 %3669  ;;  %5045 = vmax.xlane.f32.xlu0 %v5044_v60  ;;  %v5056_v60 = vsel %vm4240_vm8, %v12699_v12, -inf }
 0x3a7   :  { %12693 = vst [vmem:[#allocation102_spill] sm:$0xff] %v9457_v50  ;;  %5042 = vmax.xlane.f32.xlu1 %v5041_v26  ;;  %v9461_v6 = vpop.xlane.xlu1 %3672  ;;  %v12701_v26 = vld [vmem:[#allocation118_spill] sm:$0xff] }
 0x3a8   :  { %v5053_v36 = vsel %vm4240_vm8, %v12701_v26, -inf  ;;  %v12709_v26 = vld [vmem:[#allocation126_spill] sm:$0xff] }
 0x3aa   :  { %v9465_v44 = vpop.xlane.xlu0 %3675  ;;  %5051 = vmax.xlane.f32.xlu0 %v5050_v38  ;;  %v5062_v38 = vsel %vm4240_vm8, %v12703_v18, -inf }
 0x3ab   :  { %12696 = vst [vmem:[#allocation108_spill] sm:$0xff] %v9465_v44  ;;  %5048 = vmax.xlane.f32.xlu1 %v5047_v61  ;;  %v9469_v7 = vpop.xlane.xlu1 %3678  ;;  %v5059_v61 = vsel %vm4240_vm8, %v12705_v58, -inf  ;;  %v12713_v58 = vld [vmem:[#allocation30_spill] sm:$0xff] }
 0x3ac   :  { %12698 = vst [vmem:[#allocation110_spill] sm:$0xff] %v9469_v7  ;;  %v12838_v44 = vld [vmem:[#allocation58_spill] sm:$0xff] }
 0x3ae   :  { %v9473_v50 = vpop.xlane.xlu0 %3681  ;;  %5057 = vmax.xlane.f32.xlu0 %v5056_v60 }
 0x3af   :  { %12700 = vst [vmem:[#allocation112_spill] sm:$0xff] %v9473_v50  ;;  %5054 = vmax.xlane.f32.xlu1 %v5053_v36  ;;  %v9477_v28 = vpop.xlane.xlu1 %3684  ;;  %v12707_v50 = vld [vmem:[#allocation124_spill] sm:$0xff]  ;;  %v5065_v36 = vsel %vm4240_vm8, %v12709_v26, -inf }
 0x3b0   :  { %12702 = vst [vmem:[#allocation114_spill] sm:$0xff] %v9477_v28  ;;  %v5068_v60 = vsel %vm4240_vm8, %v12707_v50, -inf  ;;  %v12714_v50 = vld [vmem:[#allocation128_spill] sm:$0xff]  ;;  %v12831_v28 = vld [vmem:[#allocation14_spill] sm:$0xff] }
 0x3b2   :  { %v9481_v48 = vpop.xlane.xlu0 %3687  ;;  %5063 = vmax.xlane.f32.xlu0 %v5062_v38  ;;  %v5074_v38 = vsel %vm4240_vm8, %v12711_v51, -inf  ;;  %v12718_v51 = vld [vmem:[#allocation132_spill] sm:$0xff] }
 0x3b3   :  { %12704 = vst [vmem:[#allocation116_spill] sm:$0xff] %v9481_v48  ;;  %5060 = vmax.xlane.f32.xlu1 %v5059_v61  ;;  %v9485_v12 = vpop.xlane.xlu1 %3690  ;;  %v5071_v61 = vsel %vm4240_vm8, %v12713_v58, -inf  ;;  %v12720_v58 = vld [vmem:[#allocation134_spill] sm:$0xff] }
 0x3b4   :  { %12706 = vst [vmem:[#allocation118_spill] sm:$0xff] %v9485_v12 }
 0x3b6   :  { %v9489_v7 = vpop.xlane.xlu0 %3693  ;;  %5069 = vmax.xlane.f32.xlu0 %v5068_v60 }
 0x3b7   :  { %12708 = vst [vmem:[#allocation120_spill] sm:$0xff] %v9489_v7  ;;  %5066 = vmax.xlane.f32.xlu1 %v5065_v36  ;;  %v9493_v18 = vpop.xlane.xlu1 %3696  ;;  %v5080_v7 = vsel %vm4240_vm8, %v12714_v50, -inf  ;;  %v12717_v36 = vld [vmem:[#allocation130_spill] sm:$0xff] }
 0x3b8   :  { %12710 = vst [vmem:[#allocation122_spill] sm:$0xff] %v9493_v18  ;;  %v5077_v18 = vsel %vm4240_vm8, %v12717_v36, -inf }
 0x3ba   :  { %v9497_v46 = vpop.xlane.xlu0 %3699  ;;  %5075 = vmax.xlane.f32.xlu0 %v5074_v38 }
 0x3bb   :  { %12712 = vst [vmem:[#allocation124_spill] sm:$0xff] %v9497_v46  ;;  %5072 = vmax.xlane.f32.xlu1 %v5071_v61  ;;  %v9505_v26 = vpop.xlane.xlu1 %3702  ;;  %v5086_v46 = vsel %vm4240_vm8, %v12718_v51, -inf  ;;  %v5083_v61 = vsel %vm4240_vm8, %v12720_v58, -inf  ;;  %v12725_v51 = vld [vmem:[#allocation16_spill] sm:$0xff]  ;;  %v12727_v58 = vld [vmem:[#allocation79_spill] sm:$0xff] }
 0x3bc   :  { %12716 = vst [vmem:[#allocation29_spill] sm:$0xff] %v9505_v26  ;;  %v12723_v26 = vld [vmem:[#allocation138_spill] sm:$0xff] }
 0x3bd   :  { %v5089_v36 = vsel %vm4240_vm8, %v12723_v26, -inf  ;;  %v12730_v26 = vld [vmem:[#allocation78_spill] sm:$0xff] }
 0x3be   :  { %v9503_v60 = vpop.xlane.xlu0 %3705  ;;  %5081 = vmax.xlane.f32.xlu0 %v5080_v7 }
 0x3bf   :  { %12715 = vst [vmem:[#allocation126_spill] sm:$0xff] %v9503_v60  ;;  %5078 = vmax.xlane.f32.xlu1 %v5077_v18  ;;  %v9515_v50 = vpop.xlane.xlu1 %3708  ;;  %v12722_v60 = vld [vmem:[#allocation136_spill] sm:$0xff] }
 0x3c0   :  { %12721 = vst [vmem:[#allocation128_spill] sm:$0xff] %v9515_v50  ;;  %v5092_v7 = vsel %vm4240_vm8, %v12722_v60, -inf  ;;  %v12728_v50 = vld [vmem:[#allocation76_spill] sm:$0xff] }
 0x3c1   :  { %v5239_v60 = vsel %vm4240_vm8, %v12728_v50, -inf  ;;  %v12735_v50 = vld [vmem:[#allocation68_spill] sm:$0xff] }
 0x3c2   :  { %5087 = vmax.xlane.f32.xlu0 %v5086_v46  ;;  %v9511_v38 = vpop.xlane.xlu0 %3711  ;;  %v5227_v46 = vsel %vm4240_vm8, %v12725_v51, -inf  ;;  %v12732_v51 = vld [vmem:[#allocation19_spill] sm:$0xff] }
 0x3c3   :  { %12719 = vst [vmem:[#allocation30_spill] sm:$0xff] %v9511_v38  ;;  %5084 = vmax.xlane.f32.xlu1 %v5083_v61  ;;  %v9525_v38 = vpop.xlane.xlu1 %3714  ;;  %v5224_v61 = vsel %vm4240_vm8, %v12727_v58, -inf }
 0x3c4   :  { %12726 = vst [vmem:[#allocation132_spill] sm:$0xff] %v9525_v38  ;;  %v12733_v38 = vld [vmem:[#allocation73_spill] sm:$0xff] }
 0x3c5   :  { %v5230_v58 = vsel %vm4240_vm8, %v12733_v38, -inf  ;;  %v12740_v38 = vld [vmem:[#allocation72_spill] sm:$0xff] }
 0x3c6   :  { %5093 = vmax.xlane.f32.xlu0 %v5092_v7  ;;  %v9521_v18 = vpop.xlane.xlu0 %3717 }
 0x3c7   :  { %5090 = vmax.xlane.f32.xlu1 %v5089_v36  ;;  %12724 = vst [vmem:[#allocation130_spill] sm:$0xff] %v9521_v18  ;;  %v5236_v36 = vsel %vm4240_vm8, %v12730_v26, -inf  ;;  %v9535_v18 = vpop.xlane.xlu1 %3720  ;;  %v12737_v26 = vld [vmem:[#allocation70_spill] sm:$0xff] }
 0x3c8   :  { %12731 = vst [vmem:[#allocation136_spill] sm:$0xff] %v9535_v18  ;;  %v12738_v18 = vld [vmem:[#allocation84_spill] sm:$0xff] }
 0x3ca   :  { %5228 = vmax.xlane.f32.xlu0 %v5227_v46  ;;  %v9531_v7 = vpop.xlane.xlu0 %3723  ;;  %v5233_v46 = vsel %vm4240_vm8, %v12732_v51, -inf  ;;  %v5251_v51 = vsel %vm4240_vm8, %v12738_v18, -inf  ;;  %v12745_v18 = vld [vmem:[#allocation82_spill] sm:$0xff] }
 0x3cb   :  { %5225 = vmax.xlane.f32.xlu1 %v5224_v61  ;;  %12729 = vst [vmem:[#allocation134_spill] sm:$0xff] %v9531_v7  ;;  %v9545_v7 = vpop.xlane.xlu1 %3726 }
 0x3cc   :  { %12736 = vst [vmem:[#allocation16_spill] sm:$0xff] %v9545_v7  ;;  %v12743_v7 = vld [vmem:[#allocation85_spill] sm:$0xff] }
 0x3ce   :  { %5240 = vmax.xlane.f32.xlu0 %v5239_v60  ;;  %v9541_v61 = vpop.xlane.xlu0 %3729  ;;  %v5245_v60 = vsel %vm4240_vm8, %v12735_v50, -inf  ;;  %v12742_v50 = vld [vmem:[#allocation92_spill] sm:$0xff] }
 0x3cf   :  { %5237 = vmax.xlane.f32.xlu1 %v5236_v36  ;;  %12734 = vst [vmem:[#allocation138_spill] sm:$0xff] %v9541_v61  ;;  %v5242_v36 = vsel %vm4240_vm8, %v12737_v26, -inf  ;;  %v9555_v61 = vpop.xlane.xlu1 %3732  ;;  %v5254_v26 = vsel %vm4240_vm8, %v12743_v7, -inf  ;;  %v12750_v7 = vld [vmem:[#allocation157_spill] sm:$0xff] }
 0x3d0   :  { %12741 = vst [vmem:[#allocation76_spill] sm:$0xff] %v9555_v61  ;;  %v12748_v61 = vld [vmem:[#allocation93_spill] sm:$0xff] }
 0x3d2   :  { %5234 = vmax.xlane.f32.xlu0 %v5233_v46  ;;  %v9551_v46 = vpop.xlane.xlu0 %3735 }
 0x3d3   :  { %5231 = vmax.xlane.f32.xlu1 %v5230_v58  ;;  %12739 = vst [vmem:[#allocation79_spill] sm:$0xff] %v9551_v46  ;;  %v5248_v58 = vsel %vm4240_vm8, %v12740_v38, -inf  ;;  %v9565_v46 = vpop.xlane.xlu1 %3738  ;;  %v12747_v38 = vld [vmem:[#allocation81_spill] sm:$0xff] }
 0x3d4   :  { %12746 = vst [vmem:[#allocation19_spill] sm:$0xff] %v9565_v46  ;;  %v12753_v46 = vld [vmem:[#allocation159_spill] sm:$0xff] }
 0x3d6   :  { %5246 = vmax.xlane.f32.xlu0 %v5245_v60  ;;  %v5257_v60 = vsel %vm4240_vm8, %v12742_v50, -inf  ;;  %v5269_v50 = vsel %vm4240_vm8, %v12748_v61, -inf  ;;  %v12755_v61 = vld [vmem:[#allocation94_spill] sm:$0xff] }
 0x3d7   :  { %5243 = vmax.xlane.f32.xlu1 %v5242_v36  ;;  %v9561_v36 = vpop.xlane.xlu0 %3741 }
 0x3d8   :  { %12744 = vst [vmem:[#allocation78_spill] sm:$0xff] %v9561_v36  ;;  %v9575_v36 = vpop.xlane.xlu1 %3744 }
 0x3d9   :  { %12751 = vst [vmem:[#allocation68_spill] sm:$0xff] %v9575_v36  ;;  %v12758_v36 = vld [vmem:[#allocation144_spill] sm:$0xff] }
 0x3da   :  { %5252 = vmax.xlane.f32.xlu0 %v5251_v51  ;;  %v5263_v51 = vsel %vm4240_vm8, %v12745_v18, -inf  ;;  %v12752_v18 = vld [vmem:[#allocation160_spill] sm:$0xff] }
 0x3db   :  { %5249 = vmax.xlane.f32.xlu1 %v5248_v58  ;;  %v5260_v58 = vsel %vm4240_vm8, %v12747_v38, -inf  ;;  %v5272_v38 = vsel %vm4240_vm8, %v12753_v46, -inf  ;;  %v12760_v46 = vld [vmem:[#allocation142_spill] sm:$0xff] }
 0x3de   :  { %5258 = vmax.xlane.f32.xlu0 %v5257_v60  ;;  %v9571_v60 = vpop.xlane.xlu0 %3747 }
 0x3df   :  { %5255 = vmax.xlane.f32.xlu1 %v5254_v26  ;;  %12749 = vst [vmem:[#allocation73_spill] sm:$0xff] %v9571_v60  ;;  %v5266_v26 = vsel %vm4240_vm8, %v12750_v7, -inf  ;;  %v9585_v60 = vpop.xlane.xlu1 %3750  ;;  %v12757_v7 = vld [vmem:[#allocation99_spill] sm:$0xff] }
 0x3e0   :  { %12756 = vst [vmem:[#allocation84_spill] sm:$0xff] %v9585_v60  ;;  %v12763_v60 = vld [vmem:[#allocation36_spill] sm:$0xff] }
 0x3e2   :  { %5264 = vmax.xlane.f32.xlu0 %v5263_v51  ;;  %v5275_v51 = vsel %vm4240_vm8, %v12752_v18, -inf  ;;  %v5104_v18 = vsel %vm4240_vm8, %v12758_v36, -inf  ;;  %v12765_v36 = vld [vmem:[#allocation89_spill] sm:$0xff] }
 0x3e3   :  { %5261 = vmax.xlane.f32.xlu1 %v5260_v58  ;;  %v9581_v58 = vpop.xlane.xlu0 %3753 }
 0x3e4   :  { %12754 = vst [vmem:[#allocation70_spill] sm:$0xff] %v9581_v58  ;;  %v9595_v58 = vpop.xlane.xlu1 %3756 }
 0x3e5   :  { %12761 = vst [vmem:[#allocation92_spill] sm:$0xff] %v9595_v58 }
 0x3e6   :  { %5270 = vmax.xlane.f32.xlu0 %v5269_v50  ;;  %v5281_v50 = vsel %vm4240_vm8, %v12755_v61, -inf  ;;  %v12762_v61 = vld [vmem:[#allocation146_spill] sm:$0xff] }
 0x3e7   :  { %5267 = vmax.xlane.f32.xlu1 %v5266_v26  ;;  %v5278_v26 = vsel %vm4240_vm8, %v12757_v7, -inf  ;;  %v5107_v7 = vsel %vm4240_vm8, %v12763_v60, -inf  ;;  %v12769_v60 = vld [vmem:[#allocation90_spill] sm:$0xff] }
 0x3ea   :  { %5276 = vmax.xlane.f32.xlu0 %v5275_v51  ;;  %v9591_v51 = vpop.xlane.xlu0 %3759 }
 0x3eb   :  { %5273 = vmax.xlane.f32.xlu1 %v5272_v38  ;;  %12759 = vst [vmem:[#allocation72_spill] sm:$0xff] %v9591_v51  ;;  %v5095_v38 = vsel %vm4240_vm8, %v12760_v46, -inf  ;;  %v9605_v51 = vpop.xlane.xlu1 %3762  ;;  %v12767_v46 = vld [vmem:[#allocation50_spill] sm:$0xff] }
 0x3ec   :  { %12766 = vst [vmem:[#allocation82_spill] sm:$0xff] %v9605_v51 }
 0x3ee   :  { %5282 = vmax.xlane.f32.xlu0 %v5281_v50  ;;  %v5116_v50 = vsel %vm4240_vm8, %v12762_v61, -inf  ;;  %v5296_v61 = vsel %vm4240_vm8, %v8947_v19, -inf  ;;  %v12773_v19 = vld [vmem:[#allocation140_spill] sm:$0xff] }
 0x3ef   :  { %5279 = vmax.xlane.f32.xlu1 %v5278_v26  ;;  %v9601_v26 = vpop.xlane.xlu0 %3765 }
 0x3f0   :  { %12764 = vst [vmem:[#allocation85_spill] sm:$0xff] %v9601_v26  ;;  %v9615_v26 = vpop.xlane.xlu1 %3768 }
 0x3f1   :  { %12770 = vst [vmem:[#allocation93_spill] sm:$0xff] %v9615_v26 }
 0x3f2   :  { %5105 = vmax.xlane.f32.xlu0 %v5104_v18  ;;  %v5284_v18 = vsel %vm4240_vm8, %v12765_v36, -inf  ;;  %v5308_v36 = vsel %vm4240_vm8, %v8978_v13, -inf }
 0x3f3   :  { %5096 = vmax.xlane.f32.xlu1 %v5095_v38  ;;  %v5119_v38 = vsel %vm4240_vm8, %v12767_v46, -inf }
 0x3f6   :  { %5117 = vmax.xlane.f32.xlu0 %v5116_v50  ;;  %v9611_v50 = vpop.xlane.xlu0 %3771 }
 0x3f7   :  { %5108 = vmax.xlane.f32.xlu1 %v5107_v7  ;;  %12768 = vst [vmem:[#allocation81_spill] sm:$0xff] %v9611_v50  ;;  %v5287_v7 = vsel %vm4240_vm8, %v12769_v60, -inf  ;;  %v9625_v50 = vpop.xlane.xlu1 %3774  ;;  %v5311_v60 = vsel %vm4240_vm8, %v8990_v32, -inf }
 0x3f8   :  { %12774 = vst [vmem:[#allocation160_spill] sm:$0xff] %v9625_v50  ;;  %v12780_v50 = vld [vmem:[#allocation33_spill] sm:$0xff] }
 0x3f9   :  { %v5113_v32 = vsel %vm4240_vm8, %v12780_v50, -inf }
 0x3fa   :  { %5285 = vmax.xlane.f32.xlu0 %v5284_v18  ;;  %v12771_v18 = vld [vmem:[#allocation117_spill] sm:$0xff] }
 0x3fb   :  { %5120 = vmax.xlane.f32.xlu1 %v5119_v38  ;;  %v5299_v46 = vsel %vm4240_vm8, %v12771_v18, -inf  ;;  %v9621_v38 = vpop.xlane.xlu0 %3777  ;;  %v12777_v18 = vld [vmem:[#allocation148_spill] sm:$0xff] }
 0x3fc   :  { %12772 = vst [vmem:[#allocation157_spill] sm:$0xff] %v9621_v38  ;;  %v9635_v38 = vpop.xlane.xlu1 %3780 }
 0x3fd   :  { %12778 = vst [vmem:[#allocation94_spill] sm:$0xff] %v9635_v38  ;;  %v12785_v38 = vld [vmem:[#allocation46_spill] sm:$0xff] }
 0x3fe   :  { %5297 = vmax.xlane.f32.xlu0 %v5296_v61  ;;  %v5098_v61 = vsel %vm4240_vm8, %v12773_v19, -inf  ;;  %v12779_v19 = vld [vmem:[#allocation12_spill] sm:$0xff]  ;;  %v9651_v51 = vsel %vm4240_vm8, %v12785_v38, -inf  ;;  %v12793_v38 = vld [vmem:[#allocation59_spill] sm:$0xff] }
 0x3ff   :  { %5288 = vmax.xlane.f32.xlu1 %v5287_v7  ;;  %v12775_v7 = vld [vmem:[#allocation145_spill] sm:$0xff] }
 0x400   :  { %v5110_v13 = vsel %vm4240_vm8, %v12775_v7, -inf  ;;  %v12782_v7 = vld [vmem:[#allocation20_spill] sm:$0xff]  ;;  %v9669_v58 = vpop.xlane.xlu1 %3786 }
 0x401   :  { %12792 = vst [vmem:[#allocation146_spill] sm:$0xff] %v9669_v58 }
 0x402   :  { %5309 = vmax.xlane.f32.xlu0 %v5308_v36  ;;  %v9631_v36 = vpop.xlane.xlu0 %3783 }
 0x403   :  { %5300 = vmax.xlane.f32.xlu1 %v5299_v46  ;;  %12776 = vst [vmem:[#allocation159_spill] sm:$0xff] %v9631_v36  ;;  %v5101_v46 = vsel %vm4240_vm8, %v12777_v18, -inf  ;;  %v12783_v36 = vld [vmem:[#allocation41_spill] sm:$0xff]  ;;  %v12784_v18 = vld [vmem:[#allocation42_spill] sm:$0xff] }
 0x404   :  { %v5125_v26 = vsel %vm4240_vm8, %v12783_v36, -inf  ;;  %v12790_v36 = vld [vmem:[#allocation150_spill] sm:$0xff] }
 0x406   :  { %5099 = vmax.xlane.f32.xlu0 %v5098_v61  ;;  %v5122_v61 = vsel %vm4240_vm8, %v12779_v19, -inf  ;;  %v12786_v19 = vld [vmem:[#allocation47_spill] sm:$0xff] }
 0x407   :  { %5312 = vmax.xlane.f32.xlu1 %v5311_v60  ;;  %v9641_v60 = vpop.xlane.xlu0 %3789  ;;  %v9655_v50 = vsel %vm4240_vm8, %v12786_v19, -inf  ;;  %v12795_v19 = vld [vmem:[#allocation56_spill] sm:$0xff] }
 0x408   :  { %12781 = vst [vmem:[#allocation99_spill] sm:$0xff] %v9641_v60  ;;  %v9677_v12 = vsel %vm4240_vm8, %v12795_v19, -inf }
 0x409   :  { %12796 = vst [vmem:[#allocation89_spill] sm:$0xff] %v9677_v12  ;;  %v12805_v12 = vld [vmem:[#allocation153_spill] sm:$0xff] }
 0x40a   :  { %5111 = vmax.xlane.f32.xlu0 %v5110_v13  ;;  %v5290_v13 = vsel %vm4240_vm8, %v12782_v7, -inf  ;;  %v12788_v7 = vld [vmem:[#allocation13_spill] sm:$0xff] }
 0x40b   :  { %5102 = vmax.xlane.f32.xlu1 %v5101_v46  ;;  %v5128_v46 = vsel %vm4240_vm8, %v12784_v18, -inf  ;;  %v9663_v60 = vsel %vm4240_vm8, %v12788_v7, -inf  ;;  %v9667_v18 = vsel %vm4240_vm8, %v12790_v36, -inf  ;;  %v12799_v7 = vld [vmem:[#allocation55_spill] sm:$0xff]  ;;  %v12801_v36 = vld [vmem:[#allocation48_spill] sm:$0xff] }
 0x40c   :  { %12789 = vst [vmem:[#allocation144_spill] sm:$0xff] %v9663_v60  ;;  %12791 = vst [vmem:[#allocation142_spill] sm:$0xff] %v9667_v18  ;;  %v9685_v48 = vsel %vm4240_vm8, %v12799_v7, -inf  ;;  %v9689_v58 = vsel %vm4240_vm8, %v12801_v36, -inf  ;;  %v12802_v18 = vld [vmem:[#allocation39_spill] sm:$0xff]  ;;  %v5302_v7 = vsel %vm4240_vm8, %v8963_v9, -inf }
 0x40d   :  { %12800 = vst [vmem:[#allocation90_spill] sm:$0xff] %v9685_v48  ;;  %v12809_v36 = vld [vmem:[#allocation57_spill] sm:$0xff] }
 0x40e   :  { %5123 = vmax.xlane.f32.xlu0 %v5122_v61  ;;  %v12787_v61 = vld [vmem:[#allocation37_spill] sm:$0xff] }
 0x40f   :  { %5114 = vmax.xlane.f32.xlu1 %v5113_v32  ;;  %v9659_v32 = vsel %vm4240_vm8, %v12787_v61, -inf  ;;  %v12797_v61 = vld [vmem:[#allocation151_spill] sm:$0xff] }
 0x410   :  { %v9681_v15 = vsel %vm4240_vm8, %v12797_v61, -inf  ;;  %v9701_v61 = vsel %vm4240_vm8, %v12805_v12, -inf }
 0x411   :  { %12798 = vst [vmem:[#allocation50_spill] sm:$0xff] %v9681_v15  ;;  %12806 = vst [vmem:[#allocation140_spill] sm:$0xff] %v9701_v61  ;;  %v9711_v15 = vsel %vm4240_vm8, %v12809_v36, -inf  ;;  %v12815_v61 = vld [vmem:[#allocation154_spill] sm:$0xff] }
 0x412   :  { %5291 = vmax.xlane.f32.xlu0 %v5290_v13  ;;  %v9673_v13 = vsel %vm4240_vm8, %v12793_v38, -inf  ;;  %v9693_v38 = vsel %vm4240_vm8, %v12802_v18, -inf  ;;  %12810 = vst [vmem:[#allocation148_spill] sm:$0xff] %v9711_v15  ;;  %v12811_v18 = vld [vmem:[#allocation54_spill] sm:$0xff]  ;;  %v9723_v9 = vsel %vm4240_vm8, %v12815_v61, -inf  ;;  %v9733_v15 = vpop.permute.xlu0 %3801 }
 0x413   :  { %12794 = vst [vmem:[#allocation36_spill] sm:$0xff] %v9673_v13  ;;  %5126 = vmax.xlane.f32.xlu1 %v5125_v26  ;;  %v12803_v13 = vld [vmem:[#allocation51_spill] sm:$0xff]  ;;  %v12807_v26 = vld [vmem:[#allocation45_spill] sm:$0xff]  ;;  %v9715_v60 = vsel %vm4240_vm8, %v12811_v18, -inf  ;;  %12816 = vst [vmem:[#allocation20_spill] sm:$0xff] %v9723_v9 }
 0x414   :  { %v9697_v19 = vsel %vm4240_vm8, %v12803_v13, -inf  ;;  %v9707_v48 = vsel %vm4240_vm8, %v12807_v26, -inf  ;;  %12812 = vst [vmem:[#allocation12_spill] sm:$0xff] %v9715_v60  ;;  %v12813_v13 = vld [vmem:[#allocation152_spill] sm:$0xff]  ;;  %v12821_v18 = vld [vmem:[#allocation95_spill] sm:$0xff] }
 0x415   :  { %12804 = vst [vmem:[#allocation117_spill] sm:$0xff] %v9697_v19  ;;  %12808 = vst [vmem:[#allocation145_spill] sm:$0xff] %v9707_v48  ;;  %v9719_v12 = vsel %vm4240_vm8, %v12813_v13, -inf  ;;  %v12817_v19 = vld [vmem:[#allocation65_spill] sm:$0xff]  ;;  %v12819_v48 = vld [vmem:[#allocation156_spill] sm:$0xff] }
 0x416   :  { %5303 = vmax.xlane.f32.xlu0 %v5302_v7  ;;  %12814 = vst [vmem:[#allocation33_spill] sm:$0xff] %v9719_v12  ;;  %v9727_v26 = vsel %vm4240_vm8, %v12817_v19, -inf  ;;  %v9731_v36 = vsel %vm4240_vm8, %v12819_v48, -inf  ;;  %v5293_v7 = vsel %vm4240_vm8, %v12821_v18, -inf  ;;  %v12822_v60 = vld [vmem:[#allocation63_spill] sm:$0xff]  ;;  %v12824_v12 = vld [vmem:[#allocation61_spill] sm:$0xff] }
 0x417   :  { %12818 = vst [vmem:[#allocation41_spill] sm:$0xff] %v9727_v26  ;;  %12820 = vst [vmem:[#allocation42_spill] sm:$0xff] %v9731_v36  ;;  %v9739_v13 = vsel %vm4240_vm8, %v12822_v60, -inf  ;;  %v9743_v61 = vsel %vm4240_vm8, %v12824_v12, -inf  ;;  %v12826_v9 = vld [vmem:[#allocation64_spill] sm:$0xff]  ;;  %5294 = vmax.xlane.f32.xlu1 %v5293_v7  ;;  %v12828_v48 = vld [vmem:[#allocation49_spill] sm:$0xff] }
 0x418   :  { %12823 = vst [vmem:[#allocation46_spill] sm:$0xff] %v9739_v13  ;;  %12825 = vst [vmem:[#allocation47_spill] sm:$0xff] %v9743_v61  ;;  %v9747_v19 = vsel %vm4240_vm8, %v12826_v9, -inf  ;;  %v9751_v36 = vsel %vm4240_vm8, %v12828_v48, -inf  ;;  %v12829_v26 = vld [vmem:[#allocation40_spill] sm:$0xff]  ;;  %v9759_v60 = vsel %vm4240_vm8, %v12831_v28, -inf  ;;  %v9765_v61 = vpop.permute.xlu1 %3797 }
 0x419   :  { %12827 = vst [vmem:[#allocation37_spill] sm:$0xff] %v9747_v19  ;;  %v9755_v18 = vsel %vm4240_vm8, %v12829_v26, -inf  ;;  %12832 = vst [vmem:[#allocation150_spill] sm:$0xff] %v9759_v60  ;;  %v12833_v13 = vld [vmem:[#allocation53_spill] sm:$0xff]  ;;  %v5314_v9 = vsel %vm4240_vm8, %v9003_v53, -inf  ;;  %v12835_v7 = vld [vmem:[#allocation15_spill] sm:$0xff] }
 0x41a   :  { %12830 = vst [vmem:[#allocation13_spill] sm:$0xff] %v9755_v18  ;;  %v9763_v12 = vsel %vm4240_vm8, %v12833_v13, -inf  ;;  %v9771_v48 = vsel %vm4240_vm8, %v12835_v7, -inf  ;;  %v12837_v19 = vld [vmem:[#allocation155_spill] sm:$0xff]  ;;  %v9779_v28 = vsel %vm4240_vm8, %v12838_v44, -inf  ;;  %5315 = vmax.xlane.f32.xlu0 %v5314_v9  ;;  %v5320_v13 = vsel %vm4240_vm8, %v9027_v37, -inf }
 0x41b   :  { %12834 = vst [vmem:[#allocation59_spill] sm:$0xff] %v9763_v12  ;;  %12836 = vst [vmem:[#allocation56_spill] sm:$0xff] %v9771_v48  ;;  %v9775_v26 = vsel %vm4240_vm8, %v12837_v19, -inf  ;;  %v12840_v12 = vld [vmem:[#allocation62_spill] sm:$0xff]  ;;  %v12842_v53 = vld [vmem:[#allocation111_spill] sm:$0xff]  ;;  %v5305_v19 = vsel %vm4240_vm8, %v8970_v0, -inf }
 0x41c   :  { %12839 = vst [vmem:[#allocation151_spill] sm:$0xff] %v9779_v28  ;;  %v9785_v60 = vsel %vm4240_vm8, %v12840_v12, -inf  ;;  %v3828_v7 = vadd.f32 %v9733_v15, %v12842_v53  ;;  %v12843_v48 = vld [vmem:[#allocation113_spill] sm:$0xff]  ;;  %v9795_v44 = vsel %vm4240_vm8, %v9097_v22, -inf  ;;  %v9799_v37 = vsel %vm4240_vm8, %v9165_v23, -inf  ;;  %5306 = vmax.xlane.f32.xlu1 %v5305_v19  ;;  %v12845_v53 = vld [vmem:[#allocation107_spill] sm:$0xff] }
 0x41d   :  { %12841 = vst [vmem:[#allocation55_spill] sm:$0xff] %v9785_v60  ;;  %v3832_v18 = vadd.f32 %v9733_v15, %v12843_v48  ;;  %v9803_v12 = vsel %vm4240_vm8, %v9202_v33, -inf  ;;  %v9807_v9 = vsel %vm4240_vm8, %v9247_v57, -inf  ;;  %v9811_v0 = vsel %vm4240_vm8, %v9294_v39, -inf  ;;  %v12844_v48 = vld [vmem:[#allocation123_spill] sm:$0xff] }
 0x41e   :  { %v3827_v22 = vadd.f32 %v9765_v61, %v12844_v48  ;;  %v3831_v23 = vadd.f32 %v9765_v61, %v12845_v53  ;;  %v5317_v60 = vsel %vm4240_vm8, %v9019_v17, -inf  ;;  %v5323_v33 = vsel %vm4240_vm8, %v9048_v16, -inf  ;;  %5129 = vmax.xlane.f32.xlu0 %v5128_v46 }
 0x41f   :  { %v5326_v57 = vsel %vm4240_vm8, %v9067_v63, -inf  ;;  %v9825_v19 = vsel %vm4240_vm8, %v9131_v2, -inf  ;;  %v9829_v39 = vsel %vm4240_vm8, %v9087_v40, -inf  ;;  %v9833_v48 = vsel %vm4240_vm8, %v9151_v56, -inf }
 0x420   :  { %v3956_v17 = vmax.f32 %v3828_v7, 0.0  ;;  %v3960_v53 = vmax.f32 %v3832_v18, 0.0  ;;  %v9837_v16 = vsel %vm4240_vm8, %v9162_v1, -inf  ;;  %v9841_v63 = vsel %vm4240_vm8, %v9179_v31, -inf  ;;  %5318 = vmax.xlane.f32.xlu1 %v5317_v60  ;;  %v12846_v60 = vld [vmem:[#allocation103_spill] sm:$0xff] }
 0x421   :  { %v9845_v2 = vsel %vm4240_vm8, %v9187_v25, -inf  ;;  %v9849_v40 = vsel %vm4240_vm8, %v9194_v4, -inf  ;;  %v9853_v56 = vsel %vm4240_vm8, %v9212_v49, -inf  ;;  %v3836_v1 = vadd.f32 %v9733_v15, %v8999_v54  ;;  %v9869_v49 = vpop.permute.xlu1 %3805 }
 0x422   :  { %v3955_v46 = vmax.f32 %v3827_v22, 0.0  ;;  %v3959_v18 = vmax.f32 %v3831_v23, 0.0  ;;  %v9859_v31 = vsel %vm4240_vm8, %v9254_v20, -inf  ;;  %v9863_v25 = vsel %vm4240_vm8, %v9305_v8, -inf  ;;  %5321 = vmax.xlane.f32.xlu0 %v5320_v13 }
 0x423   :  { %v9867_v4 = vsel %vm4240_vm8, %v9224_v45, -inf  ;;  %v9873_v54 = vsel %vm4240_vm8, %v9263_v5, -inf  ;;  %v3835_v7 = vadd.f32 %v9765_v61, %v12846_v60  ;;  %v9878_v20 = vsel %vm4071_vm9, %v3956_v17, -inf }
 0x424   :  { %v4142_v8 = vsel %vm4071_vm9, %v3960_v53, -inf  ;;  %v9883_v22 = vsel %vm4240_vm8, %v9234_v24, -inf  ;;  %v9887_v45 = vsel %vm4240_vm8, %v9316_v43, -inf  ;;  %v9891_v5 = vsel %vm4240_vm8, %v9277_v52, -inf  ;;  %5132 = vmax.xlane.f32.xlu1 %v9689_v58 }
 0x425   :  { %v9895_v13 = vsel %vm4240_vm8, %v9327_v42, -inf  ;;  %v3840_v23 = vadd.f32 %v9733_v15, %v9063_v14  ;;  %v3964_v17 = vmax.f32 %v3836_v1, 0.0  ;;  %v9901_v24 = vsel %vm4071_vm9, %v3955_v46, -inf  ;;  %v12850_v42 = vld [vmem:[#allocation101_spill] sm:$0xff] }
 0x426   :  { %12847 = vst [vmem:[#allocation48_spill] sm:$0xff] %v9895_v13  ;;  %v4136_v43 = vsel %vm4071_vm9, %v3959_v18, -inf  ;;  %v9906_v53 = vsel %vm4240_vm8, %v9334_v35, -inf  ;;  %v9910_v52 = vsel %vm4240_vm8, %v9360_v59, -inf  ;;  %v3839_v58 = vadd.f32 %v9765_v61, %v12850_v42  ;;  %5135 = vmax.xlane.f32.xlu0 %v9651_v51  ;;  %v12853_v35 = vld [vmem:[#allocation131_spill] sm:$0xff] }
 0x427   :  { %12848 = vst [vmem:[#allocation39_spill] sm:$0xff] %v9906_v53  ;;  %12849 = vst [vmem:[#allocation51_spill] sm:$0xff] %v9910_v52  ;;  %v4143_v60 = vmax.f32 %v9878_v20, %v4142_v8  ;;  %v9918_v14 = vsel %vm4240_vm8, %v9347_v10, -inf  ;;  %v9922_v1 = vsel %vm4240_vm8, %v9370_v55, -inf  ;;  %v3843_v46 = vadd.f32 %v9765_v61, %v12853_v35  ;;  %v9939_v55 = vpop.permute.xlu1 %3809  ;;  %v12857_v35 = vld [vmem:[#allocation88_spill] sm:$0xff] }
 0x428   :  { %12851 = vst [vmem:[#allocation153_spill] sm:$0xff] %v9918_v14  ;;  %12852 = vst [vmem:[#allocation45_spill] sm:$0xff] %v9922_v1  ;;  %v3963_v59 = vmax.f32 %v3835_v7, 0.0  ;;  %v9928_v18 = vsel %vm4240_vm8, %v12657_v27, -inf  ;;  %v9932_v8 = vsel %vm4240_vm8, %v9354_v47, -inf  ;;  %v9936_v10 = vsel %vm4240_vm8, %v12662_v11, -inf  ;;  %5324 = vmax.xlane.f32.xlu1 %v5323_v33 }
 0x429   :  { %12854 = vst [vmem:[#allocation57_spill] sm:$0xff] %v9928_v18  ;;  %12855 = vst [vmem:[#allocation54_spill] sm:$0xff] %v9932_v8  ;;  %v4137_v51 = vmax.f32 %v9901_v24, %v4136_v43  ;;  %v3968_v42 = vmax.f32 %v3840_v23, 0.0  ;;  %v4144_v7 = vsel %vm4071_vm9, %v3964_v17, -inf  ;;  %v3829_v27 = vadd.f32 %v9869_v49, %v12857_v35  ;;  %v12858_v1 = vld [vmem:[#allocation22_spill] sm:$0xff]  ;;  %v12860_v11 = vld [vmem:[#allocation21_spill] sm:$0xff] }
 0x42a   :  { %12856 = vst [vmem:[#allocation152_spill] sm:$0xff] %v9936_v10  ;;  %v3833_v52 = vadd.f32 %v9869_v49, %v12858_v1  ;;  %v9948_v47 = vsel %vm4240_vm8, %v9376_v21, -inf  ;;  %v3844_v10 = vadd.f32 %v9733_v15, %v12860_v11  ;;  %v3967_v43 = vmax.f32 %v3839_v58, 0.0  ;;  %5327 = vmax.xlane.f32.xlu0 %v5326_v57  ;;  %v12862_v11 = vld [vmem:[#allocation100_spill] sm:$0xff]  ;;  %v12863_v57 = vld [vmem:[#allocation105_spill] sm:$0xff] }
 0x42b   :  { %12859 = vst [vmem:[#allocation154_spill] sm:$0xff] %v9948_v47  ;;  %v4145_v8 = vmax.f32 %v4143_v60, %v4144_v7  ;;  %v3971_v33 = vmax.f32 %v3843_v46, 0.0  ;;  %v4138_v23 = vsel %vm4071_vm9, %v3963_v59, -inf  ;;  %v9955_v17 = vadd.f32 %v9765_v61, %v9427_v3  ;;  %v5037_v35 = vpop.xlane.xlu0 %5036  ;;  %v12861_v47 = vld [vmem:[#allocation115_spill] sm:$0xff]  ;;  %v12864_v46 = vld [vmem:[#allocation98_spill] sm:$0xff] }
 0x42c   :  { %v9959_v1 = vadd.f32 %v9765_v61, %v9435_v62  ;;  %v4139_v21 = vmax.f32 %v4137_v51, %v4138_v23  ;;  %v3830_v28 = vadd.f32 %v9939_v55, %v12861_v47  ;;  %v3834_v58 = vadd.f32 %v9939_v55, %v12862_v11  ;;  %5138 = vmax.xlane.f32.xlu1 %v9751_v36  ;;  %v12865_v11 = vld [vmem:[#allocation104_spill] sm:$0xff] }
 0x42d   :  { %v3841_v60 = vadd.f32 %v9869_v49, %v12863_v57  ;;  %v9969_v3 = vsel %vm4071_vm9, %v3968_v42, -inf  ;;  %v3845_v62 = vadd.f32 %v9869_v49, %v12864_v46  ;;  %v3957_v59 = vmax.f32 %v3829_v27, 0.0  ;;  %v12866_v42 = vld [vmem:[#allocation109_spill] sm:$0xff]  ;;  %v12867_v46 = vld [vmem:[#allocation28_spill] sm:$0xff] }
 0x42e   :  { %v3961_v7 = vmax.f32 %v3833_v52, 0.0  ;;  %v3972_v51 = vmax.f32 %v3844_v10, 0.0  ;;  %v9974_v23 = vsel %vm4071_vm9, %v3967_v43, -inf  ;;  %v4147_v47 = vmax.f32 %v4145_v8, %v9969_v3  ;;  %5141 = vmax.xlane.f32.xlu0 %v9655_v50  ;;  %v12868_v10 = vld [vmem:[#allocation11_spill] sm:$0xff] }
 0x42f   :  { %v3837_v14 = vadd.f32 %v9869_v49, %v12865_v11  ;;  %v9981_v36 = vsel %vm4071_vm9, %v3971_v33, -inf  ;;  %v3838_v57 = vadd.f32 %v9939_v55, %v12866_v42  ;;  %v3842_v52 = vadd.f32 %v9939_v55, %v12867_v46  ;;  %v5040_v43 = vpop.xlane.xlu0 %5039 }
 0x430   :  { %v3846_v27 = vadd.f32 %v9939_v55, %v12868_v10  ;;  %v4141_v8 = vmax.f32 %v4139_v21, %v9974_v23  ;;  %v3958_v18 = vmax.f32 %v3830_v28, 0.0  ;;  %v3962_v53 = vmax.f32 %v3834_v58, 0.0  ;;  %5330 = vmax.xlane.f32.xlu1 %v9829_v39  ;;  %v5034_v13 = vpop.xlane.xlu1 %5033 }
 0x431   :  { %v3969_v11 = vmax.f32 %v3841_v60, 0.0  ;;  %v3973_v50 = vmax.f32 %v3845_v62, 0.0  ;;  %v9992_v33 = vsel %vm4071_vm9, %v3957_v59, -inf  ;;  %v4148_v42 = vsel %vm4071_vm9, %v3961_v7, -inf }
 0x432   :  { %v9997_v46 = vadd.f32 %v9765_v61, %v9445_v41  ;;  %v9999_v10 = vpack.c.bf16 %v4147_v47, %v4141_v8  ;;  %v10004_v21 = vsel %vm4071_vm9, %v3972_v51, -inf  ;;  %v3965_v39 = vmax.f32 %v3837_v14, 0.0  ;;  %5333 = vmax.xlane.f32.xlu0 %v9795_v44 }
 0x433   :  { %v5416_v58 = vadd.f32 %v5034_v13, %v9765_v61  ;;  %v3966_v60 = vmax.f32 %v3838_v57, 0.0  ;;  %v3970_v62 = vmax.f32 %v3842_v52, 0.0  ;;  %v3974_v59 = vmax.f32 %v3846_v27, 0.0  ;;  %v5046_v7 = vpop.xlane.xlu0 %5045 }
 0x434   :  { %12869 = vst [vmem:[#allocation65_spill] sm:$0xff] %v9999_v10  ;;  %v10009_v41 = vsel %vm4071_vm9, %v3958_v18, -inf  ;;  %v4149_v47 = vmax.f32 %v9992_v33, %v4148_v42  ;;  %v10013_v8 = vsel %vm4071_vm9, %v3969_v11, -inf  ;;  %v4154_v51 = vsel %vm4071_vm9, %v3962_v53, -inf  ;;  %5144 = vmax.xlane.f32.xlu1 %v9693_v38  ;;  %v5043_v57 = vpop.xlane.xlu1 %5042  ;;  %v12872_v42 = vld [vmem:[#allocation114_spill] sm:$0xff] }
 0x435   :  { %v5418_v14 = vadd.f32 %v5040_v43, %v9869_v49  ;;  %v5544_v28 = vmax.f32 %v5416_v58, 0.0  ;;  %v5420_v13 = vadd.f32 %v5046_v7, %v9765_v61  ;;  %v10020_v44 = vsel %vm4071_vm9, %v3973_v50, -inf }
 0x436   :  { %v5417_v18 = vadd.f32 %v5037_v35, %v9733_v15  ;;  %v4150_v53 = vsel %vm4071_vm9, %v3965_v39, -inf  ;;  %5147 = vmax.xlane.f32.xlu0 %v9659_v32  ;;  %v4155_v43 = vmax.f32 %v10009_v41, %v4154_v51  ;;  %v10030_v38 = vsel %vm4071_vm9, %v3970_v62, -inf }
 0x437   :  { %v5548_v11 = vmax.f32 %v5420_v13, 0.0  ;;  %v10033_v50 = vsel %vm4071_vm9, %v3974_v59, -inf  ;;  %v5052_v35 = vpop.xlane.xlu0 %5051  ;;  %v10036_v58 = vmax.f32 %v4149_v47, %v4150_v53  ;;  %v4156_v7 = vsel %vm4071_vm9, %v3966_v60, -inf }
 0x438   :  { %v5546_v13 = vmax.f32 %v5418_v14, 0.0  ;;  %v5672_v32 = vsel %vm4071_vm9, %v5544_v28, -inf  ;;  %v5422_v62 = vadd.f32 %v5052_v35, %v9869_v49  ;;  %5336 = vmax.xlane.f32.xlu1 %v9825_v19  ;;  %v5545_v59 = vmax.f32 %v5417_v18, 0.0  ;;  %v5049_v27 = vpop.xlane.xlu1 %5048 }
 0x439   :  { %v5673_v51 = vsel %vm4071_vm9, %v5548_v11, -inf  ;;  %v10049_v60 = vadd.f32 %v9733_v15, %v9429_v30  ;;  %v5419_v14 = vadd.f32 %v5043_v57, %v9939_v55  ;;  %v5421_v28 = vadd.f32 %v5049_v27, %v9733_v15 }
 0x43a   :  { %v5674_v52 = vmax.f32 %v5672_v32, %v5673_v51  ;;  %v5550_v53 = vmax.f32 %v5422_v62, 0.0  ;;  %5339 = vmax.xlane.f32.xlu0 %v9833_v48  ;;  %v4157_v11 = vmax.f32 %v4155_v43, %v4156_v7  ;;  %v4153_v19 = vmax.f32 %v10036_v58, %v10013_v8  ;;  %v12870_v58 = vld [vmem:[#allocation13_spill] sm:$0xff]  ;;  %v12871_v62 = vld [vmem:[#allocation108_spill] sm:$0xff] }
 0x43b   :  { %v5058_v35 = vpop.xlane.xlu0 %5057  ;;  %v10058_v18 = vadd.f32 %v9733_v15, %v9437_v34  ;;  %v10062_v30 = vadd.f32 %v9733_v15, %v9449_v29  ;;  %v10066_v57 = vadd.f32 %v9765_v61, %v9461_v6  ;;  %v5686_v27 = vsel %vm4071_vm9, %v5546_v13, -inf }
 0x43c   :  { %v5687_v48 = vsel %vm4071_vm9, %v5550_v53, -inf  ;;  %v5549_v43 = vmax.f32 %v5421_v28, 0.0  ;;  %v5424_v7 = vadd.f32 %v5058_v35, %v9765_v61  ;;  %5150 = vmax.xlane.f32.xlu1 %v12870_v58  ;;  %v5679_v34 = vsel %vm4071_vm9, %v5545_v59, -inf  ;;  %v5055_v51 = vpop.xlane.xlu1 %5054  ;;  %v12873_v28 = vld [vmem:[#allocation144_spill] sm:$0xff] }
 0x43d   :  { %v5688_v32 = vmax.f32 %v5686_v27, %v5687_v48  ;;  %v3904_v29 = vadd.f32 %v9733_v15, %v12871_v62  ;;  %v3907_v6 = vadd.f32 %v9765_v61, %v12872_v42  ;;  %v5547_v39 = vmax.f32 %v5419_v14, 0.0  ;;  %v12874_v27 = vld [vmem:[#allocation116_spill] sm:$0xff] }
 0x43e   :  { %v5680_v13 = vsel %vm4071_vm9, %v5549_v43, -inf  ;;  %v5552_v47 = vmax.f32 %v5424_v7, 0.0  ;;  %v5423_v53 = vadd.f32 %v5055_v51, %v9939_v55  ;;  %5153 = vmax.xlane.f32.xlu0 %v12873_v28  ;;  %v4159_v59 = vmax.f32 %v4157_v11, %v10030_v38 }
 0x43f   :  { %v5681_v35 = vmax.f32 %v5679_v34, %v5680_v13  ;;  %v5064_v58 = vpop.xlane.xlu0 %5063  ;;  %v3908_v48 = vadd.f32 %v9733_v15, %v12874_v27  ;;  %v4019_v62 = vmax.f32 %v9955_v17, 0.0  ;;  %v4023_v43 = vmax.f32 %v9959_v1, 0.0 }
 0x440   :  { %v5675_v10 = vsel %vm4071_vm9, %v5552_v47, -inf  ;;  %v5551_v42 = vmax.f32 %v5423_v53, 0.0  ;;  %v5426_v14 = vadd.f32 %v5064_v58, %v9869_v49  ;;  %5342 = vmax.xlane.f32.xlu1 %v9837_v16  ;;  %v5061_v34 = vpop.xlane.xlu1 %5060  ;;  %v4020_v51 = vmax.f32 %v10049_v60, 0.0  ;;  %v12875_v58 = vld [vmem:[#allocation145_spill] sm:$0xff] }
 0x441   :  { %v10088_v7 = vmax.f32 %v5674_v52, %v5675_v10  ;;  %v4024_v11 = vmax.f32 %v10058_v18, 0.0  ;;  %v4027_v13 = vmax.f32 %v9997_v46, 0.0  ;;  %v5693_v17 = vsel %vm4071_vm9, %v5547_v39, -inf }
 0x442   :  { %v5694_v47 = vsel %vm4071_vm9, %v5551_v42, -inf  ;;  %v5554_v53 = vmax.f32 %v5426_v14, 0.0  ;;  %v5425_v28 = vadd.f32 %v5061_v34, %v9733_v15  ;;  %5345 = vmax.xlane.f32.xlu0 %v9799_v37  ;;  %v4028_v10 = vmax.f32 %v10062_v30, 0.0 }
 0x443   :  { %v5695_v16 = vmax.f32 %v5693_v17, %v5694_v47  ;;  %v5070_v1 = vpop.xlane.xlu0 %5069  ;;  %v4031_v52 = vmax.f32 %v10066_v57, 0.0  ;;  %v10100_v60 = vsel %vm4071_vm9, %v4019_v62, -inf  ;;  %v4160_v27 = vsel %vm4071_vm9, %v4023_v43, -inf  ;;  %v12877_v47 = vld [vmem:[#allocation142_spill] sm:$0xff] }
 0x444   :  { %v5689_v46 = vsel %vm4071_vm9, %v5554_v53, -inf  ;;  %v5553_v18 = vmax.f32 %v5425_v28, 0.0  ;;  %v5428_v39 = vadd.f32 %v5070_v1, %v9765_v61  ;;  %5156 = vmax.xlane.f32.xlu1 %v12875_v58  ;;  %v5067_v37 = vpop.xlane.xlu1 %5066  ;;  %v10108_v14 = vpack.c.bf16 %v4159_v59, %v4153_v19 }
 0x445   :  { %v10106_v42 = vmax.f32 %v5688_v32, %v5689_v46  ;;  %v4032_v30 = vmax.f32 %v3904_v29, 0.0  ;;  %v4035_v34 = vmax.f32 %v3907_v6, 0.0  ;;  %v5427_v17 = vadd.f32 %v5067_v37, %v9939_v55 }
 0x446   :  { %12876 = vst [vmem:[#allocation156_spill] sm:$0xff] %v10108_v14  ;;  %v5682_v57 = vsel %vm4071_vm9, %v5553_v18, -inf  ;;  %v5556_v62 = vmax.f32 %v5428_v39, 0.0  ;;  %5159 = vmax.xlane.f32.xlu0 %v12877_v47  ;;  %v4036_v53 = vmax.f32 %v3908_v48, 0.0  ;;  %v10114_v58 = vsel %vm4071_vm9, %v4020_v51, -inf }
 0x447   :  { %v5683_v28 = vmax.f32 %v5681_v35, %v5682_v57  ;;  %v5076_v1 = vpop.xlane.xlu0 %5075  ;;  %v4161_v32 = vmax.f32 %v10100_v60, %v4160_v27  ;;  %v4162_v19 = vsel %vm4071_vm9, %v4027_v13, -inf  ;;  %v5555_v6 = vmax.f32 %v5427_v17, 0.0  ;;  %v12882_v17 = vld [vmem:[#allocation150_spill] sm:$0xff] }
 0x448   :  { %v10119_v29 = vsel %vm4071_vm9, %v5556_v62, -inf  ;;  %v5430_v59 = vadd.f32 %v5076_v1, %v9869_v49  ;;  %5348 = vmax.xlane.f32.xlu1 %v9841_v63  ;;  %v4166_v43 = vsel %vm4071_vm9, %v4024_v11, -inf  ;;  %v5073_v48 = vpop.xlane.xlu1 %5072  ;;  %v10127_v51 = vsel %vm4071_vm9, %v4031_v52, -inf  ;;  %v12889_v52 = vld [vmem:[#allocation106_spill] sm:$0xff]  ;;  %v12895_v1 = vld [vmem:[#allocation148_spill] sm:$0xff] }
 0x449   :  { %v5678_v35 = vmax.f32 %v10088_v7, %v10119_v29  ;;  %12878 = vst [vmem:[#allocation95_spill] sm:$0xff] %v10127_v51  ;;  %v10130_v46 = vsel %vm4071_vm9, %v4032_v30, -inf  ;;  %v10133_v13 = vsel %vm4071_vm9, %v4035_v34, -inf  ;;  %v5696_v18 = vsel %vm4071_vm9, %v5555_v6, -inf }
 0x44a   :  { %12879 = vst [vmem:[#allocation63_spill] sm:$0xff] %v10130_v46  ;;  %12880 = vst [vmem:[#allocation61_spill] sm:$0xff] %v10133_v13  ;;  %v5558_v39 = vmax.f32 %v5430_v59, 0.0  ;;  %v5429_v63 = vadd.f32 %v5073_v48, %v9733_v15  ;;  %5351 = vmax.xlane.f32.xlu0 %v9845_v2  ;;  %v10139_v11 = vsel %vm4071_vm9, %v4036_v53, -inf  ;;  %v5697_v7 = vmax.f32 %v5695_v16, %v5696_v18  ;;  %v12883_v18 = vld [vmem:[#allocation36_spill] sm:$0xff] }
 0x44b   :  { %12881 = vst [vmem:[#allocation64_spill] sm:$0xff] %v10139_v11  ;;  %v5082_v27 = vpop.xlane.xlu0 %5081  ;;  %v4167_v30 = vmax.f32 %v10114_v58, %v4166_v43  ;;  %v4163_v2 = vmax.f32 %v4161_v32, %v4162_v19  ;;  %v4168_v53 = vsel %vm4071_vm9, %v4028_v10, -inf  ;;  %v12884_v32 = vld [vmem:[#allocation175_spill] sm:$0xff]  ;;  %v12905_v11 = vld [vmem:[#allocation129_spill] sm:$0xff] }
 0x44c   :  { %v10145_v34 = vsel %vm4071_vm9, %v5558_v39, -inf  ;;  %v5557_v57 = vmax.f32 %v5429_v63, 0.0  ;;  %v5432_v62 = vadd.f32 %v5082_v27, %v9765_v61  ;;  %5162 = vmax.xlane.f32.xlu1 %v12882_v17  ;;  %v5079_v16 = vpop.xlane.xlu1 %5078  ;;  %v12885_v63 = vld [vmem:[#allocation176_spill] sm:$0xff]  ;;  %v12886_v17 = vld [vmem:[#allocation177_spill] sm:$0xff] }
 0x44d   :  { %v5692_v47 = vmax.f32 %v10106_v42, %v10145_v34  ;;  %v5431_v48 = vadd.f32 %v5079_v16, %v9939_v55  ;;  %v3893_v42 = vadd.f32 %v9869_v49, %v12884_v32  ;;  %v4169_v39 = vmax.f32 %v4167_v30, %v4168_v53  ;;  %v12888_v53 = vld [vmem:[#allocation43_spill] sm:$0xff] }
 0x44e   :  { %v10157_v59 = vsel %vm4071_vm9, %v5557_v57, -inf  ;;  %v5560_v43 = vmax.f32 %v5432_v62, 0.0  ;;  %5165 = vmax.xlane.f32.xlu0 %v12883_v18  ;;  %v3894_v27 = vadd.f32 %v9939_v55, %v12885_v63  ;;  %v3897_v37 = vadd.f32 %v9869_v49, %v12886_v17 }
 0x44f   :  { %v5685_v19 = vmax.f32 %v5683_v28, %v10157_v59  ;;  %v5088_v10 = vpop.xlane.xlu0 %5087  ;;  %v5559_v62 = vmax.f32 %v5431_v48, 0.0  ;;  %v4165_v18 = vmax.f32 %v4163_v2, %v10127_v51  ;;  %v3898_v63 = vadd.f32 %v9939_v55, %v12888_v53  ;;  %v12892_v2 = vld [vmem:[#allocation102_spill] sm:$0xff] }
 0x450   :  { %v5869_v57 = vsel %vm4071_vm9, %v5560_v43, -inf  ;;  %v5434_v16 = vadd.f32 %v5088_v10, %v9869_v49  ;;  %5354 = vmax.xlane.f32.xlu1 %v9849_v40  ;;  %v5085_v30 = vpop.xlane.xlu1 %5084  ;;  %v3901_v17 = vadd.f32 %v9869_v49, %v12889_v52  ;;  %v12891_v40 = vld [vmem:[#allocation89_spill] sm:$0xff]  ;;  %v12893_v53 = vld [vmem:[#allocation110_spill] sm:$0xff]  ;;  %v4025_v14 = vmax.f32 %v3897_v37, 0.0 }
 0x451   :  { %v10172_v32 = vpack.c.bf16 %v5685_v19, %v5678_v35  ;;  %v5870_v28 = vmax.f32 %v10119_v29, %v5869_v57  ;;  %v10180_v43 = vsel %vm4071_vm9, %v5559_v62, -inf  ;;  %v5433_v10 = vadd.f32 %v5085_v30, %v9733_v15  ;;  %v12894_v62 = vld [vmem:[#allocation112_spill] sm:$0xff] }
 0x452   :  { %12890 = vst [vmem:[#allocation40_spill] sm:$0xff] %v10180_v43  ;;  %v5562_v48 = vmax.f32 %v5434_v16, 0.0  ;;  %5177 = vmax.xlane.f32.xlu0 %v12891_v40  ;;  %v10186_v35 = vadd.f32 %v9939_v55, %v12892_v2  ;;  %v5699_v29 = vmax.f32 %v5697_v7, %v10180_v43  ;;  %v4171_v57 = vmax.f32 %v4169_v39, %v10130_v46  ;;  %v12899_v39 = vld [vmem:[#allocation120_spill] sm:$0xff] }
 0x453   :  { %12887 = vst [vmem:[#allocation49_spill] sm:$0xff] %v10172_v32  ;;  %v5094_v19 = vpop.xlane.xlu0 %5093  ;;  %v10192_v52 = vadd.f32 %v9869_v49, %v12893_v53  ;;  %v10196_v16 = vadd.f32 %v9939_v55, %v12894_v62  ;;  %v5561_v40 = vmax.f32 %v5433_v10, 0.0  ;;  %v4021_v7 = vmax.f32 %v3893_v42, 0.0  ;;  %v12897_v10 = vld [vmem:[#allocation50_spill] sm:$0xff] }
 0x454   :  { %v10199_v30 = vsel %vm4071_vm9, %v5562_v48, -inf  ;;  %v5436_v2 = vadd.f32 %v5094_v19, %v9765_v61  ;;  %5168 = vmax.xlane.f32.xlu1 %v12895_v1  ;;  %v10203_v6 = vpack.c.bf16 %v5699_v29, %v5692_v47  ;;  %v5091_v53 = vpop.xlane.xlu1 %5090  ;;  %v4022_v32 = vmax.f32 %v3894_v27, 0.0  ;;  %v12898_v42 = vld [vmem:[#allocation118_spill] sm:$0xff] }
 0x455   :  { %v10208_v62 = vsel %vm4071_vm9, %v5561_v40, -inf  ;;  %v5435_v48 = vadd.f32 %v5091_v53, %v9939_v55  ;;  %v4026_v19 = vmax.f32 %v3898_v63, 0.0  ;;  %v10216_v29 = vadd.f32 %v9869_v49, %v12898_v42 }
 0x456   :  { %12896 = vst [vmem:[#allocation14_spill] sm:$0xff] %v10203_v6  ;;  %v5564_v13 = vmax.f32 %v5436_v2, 0.0  ;;  %5189 = vmax.xlane.f32.xlu0 %v12897_v10  ;;  %v10220_v37 = vadd.f32 %v9939_v55, %v12899_v39  ;;  %v4029_v27 = vmax.f32 %v3901_v17, 0.0  ;;  %v12900_v10 = vld [vmem:[#allocation12_spill] sm:$0xff]  ;;  %v10225_v63 = vpack.c.bf16 %v4171_v57, %v4165_v18 }
 0x457   :  { %v5229_v47 = vpop.xlane.xlu0 %5228  ;;  %v5563_v2 = vmax.f32 %v5435_v48, 0.0  ;;  %v4030_v42 = vmax.f32 %v10186_v35, 0.0  ;;  %v10231_v51 = vsel %vm4071_vm9, %v4021_v7, -inf  ;;  %v10234_v39 = vsel %vm4071_vm9, %v4022_v32, -inf }
 0x458   :  { %v5871_v40 = vsel %vm4071_vm9, %v5564_v13, -inf  ;;  %v5481_v53 = vadd.f32 %v5229_v47, %v9733_v15  ;;  %5180 = vmax.xlane.f32.xlu1 %v12900_v10  ;;  %12901 = vst [vmem:[#allocation53_spill] sm:$0xff] %v10225_v63  ;;  %v5226_v6 = vpop.xlane.xlu1 %5225  ;;  %v4172_v18 = vsel %vm4071_vm9, %v4025_v14, -inf  ;;  %v4033_v7 = vmax.f32 %v10192_v52, 0.0  ;;  %v12907_v63 = vld [vmem:[#allocation80_spill] sm:$0xff] }
 0x459   :  { %v10227_v1 = vmax.f32 %v5870_v28, %v5871_v40  ;;  %v10237_v13 = vsel %vm4071_vm9, %v5563_v2, -inf  ;;  %v5480_v17 = vadd.f32 %v5226_v6, %v9765_v61  ;;  %v4178_v28 = vsel %vm4071_vm9, %v4026_v19, -inf  ;;  %v12903_v6 = vld [vmem:[#allocation33_spill] sm:$0xff] }
 0x45a   :  { %12902 = vst [vmem:[#allocation15_spill] sm:$0xff] %v10237_v13  ;;  %5357 = vmax.xlane.f32.xlu0 %v9803_v12  ;;  %v4034_v32 = vmax.f32 %v10196_v16, 0.0  ;;  %v4037_v48 = vmax.f32 %v10216_v29, 0.0  ;;  %v5609_v47 = vmax.f32 %v5481_v53, 0.0  ;;  %v4038_v14 = vmax.f32 %v10220_v37, 0.0 }
 0x45b   :  { %v5241_v57 = vpop.xlane.xlu0 %5240  ;;  %v4173_v10 = vmax.f32 %v10231_v51, %v4172_v18  ;;  %v4174_v52 = vsel %vm4071_vm9, %v4029_v27, -inf  ;;  %v4179_v16 = vmax.f32 %v10234_v39, %v4178_v28  ;;  %v5608_v35 = vmax.f32 %v5480_v17, 0.0  ;;  %v12906_v18 = vld [vmem:[#allocation66_spill] sm:$0xff] }
 0x45c   :  { %v5485_v40 = vadd.f32 %v5241_v57, %v9733_v15  ;;  %5192 = vmax.xlane.f32.xlu1 %v12903_v6  ;;  %v5238_v19 = vpop.xlane.xlu1 %5237  ;;  %v12904_v57 = vld [vmem:[#allocation74_spill] sm:$0xff]  ;;  %v4180_v37 = vsel %vm4071_vm9, %v4030_v42, -inf  ;;  %v3816_v2 = vadd.f32 %v9733_v15, %v12905_v11  ;;  %v3819_v27 = vadd.f32 %v9765_v61, %v12906_v18 }
 0x45d   :  { %v5484_v53 = vadd.f32 %v5238_v19, %v9765_v61  ;;  %v3815_v6 = vadd.f32 %v9765_v61, %v12904_v57  ;;  %v3820_v17 = vadd.f32 %v9733_v15, %v12907_v63  ;;  %v10268_v28 = vsel %vm4071_vm9, %v5609_v47, -inf }
 0x45e   :  { %v5613_v29 = vmax.f32 %v5485_v40, 0.0  ;;  %5369 = vmax.xlane.f32.xlu0 %v9807_v9  ;;  %v4175_v57 = vmax.f32 %v4173_v10, %v4174_v52  ;;  %v10278_v18 = vsel %vm4071_vm9, %v4033_v7, -inf  ;;  %v4181_v63 = vmax.f32 %v4179_v16, %v4180_v37 }
 0x45f   :  { %v5235_v12 = vpop.xlane.xlu0 %5234  ;;  %v5612_v40 = vmax.f32 %v5484_v53, 0.0  ;;  %12908 = vst [vmem:[#allocation155_spill] sm:$0xff] %v10278_v18  ;;  %v10281_v47 = vsel %vm4071_vm9, %v5608_v35, -inf  ;;  %v3944_v10 = vmax.f32 %v3816_v2, 0.0  ;;  %v3947_v52 = vmax.f32 %v3819_v27, 0.0  ;;  %v12912_v2 = vld [vmem:[#allocation158_spill] sm:$0xff] }
 0x460   :  { %v10271_v9 = vsel %vm4071_vm9, %v5613_v29, -inf  ;;  %v5483_v19 = vadd.f32 %v5235_v12, %v9939_v55  ;;  %5360 = vmax.xlane.f32.xlu1 %v9853_v56  ;;  %v5232_v42 = vpop.xlane.xlu1 %5231  ;;  %v3943_v56 = vmax.f32 %v3815_v6, 0.0  ;;  %v3948_v7 = vmax.f32 %v3820_v17, 0.0  ;;  %v12913_v17 = vld [vmem:[#allocation96_spill] sm:$0xff] }
 0x461   :  { %v10284_v29 = vsel %vm4071_vm9, %v5612_v40, -inf  ;;  %v5482_v53 = vadd.f32 %v5232_v42, %v9869_v49  ;;  %v10293_v35 = vsel %vm4071_vm9, %v4034_v32, -inf  ;;  %v10296_v37 = vsel %vm4071_vm9, %v4037_v48, -inf  ;;  %v12914_v42 = vld [vmem:[#allocation90_spill] sm:$0xff] }
 0x462   :  { %5381 = vmax.xlane.f32.xlu0 %v9811_v0  ;;  %v5702_v12 = vmax.f32 %v10281_v47, %v10284_v29  ;;  %v5611_v46 = vmax.f32 %v5483_v19, 0.0  ;;  %12909 = vst [vmem:[#allocation58_spill] sm:$0xff] %v10293_v35  ;;  %12910 = vst [vmem:[#allocation62_spill] sm:$0xff] %v10296_v37  ;;  %v4177_v6 = vmax.f32 %v4175_v57, %v10278_v18  ;;  %v10300_v40 = vsel %vm4071_vm9, %v4038_v14, -inf  ;;  %v12917_v37 = vld [vmem:[#allocation59_spill] sm:$0xff]  ;;  %v12919_v18 = vld [vmem:[#allocation17_spill] sm:$0xff] }
 0x463   :  { %v5247_v11 = vpop.xlane.xlu0 %5246  ;;  %12911 = vst [vmem:[#allocation111_spill] sm:$0xff] %v10300_v40  ;;  %v3823_v27 = vadd.f32 %v9765_v61, %v12912_v2  ;;  %v3824_v19 = vadd.f32 %v9733_v15, %v12913_v17  ;;  %v4183_v48 = vmax.f32 %v4181_v63, %v10293_v35  ;;  %v4072_v57 = vsel %vm4071_vm9, %v3943_v56, -inf }
 0x464   :  { %v5487_v16 = vadd.f32 %v5247_v11, %v9939_v55  ;;  %5372 = vmax.xlane.f32.xlu1 %v9859_v31  ;;  %v5244_v0 = vpop.xlane.xlu1 %5243  ;;  %v5610_v11 = vmax.f32 %v5482_v53, 0.0  ;;  %v4073_v14 = vsel %vm4071_vm9, %v3947_v52, -inf  ;;  %v4079_v29 = vsel %vm4071_vm9, %v3944_v10, -inf }
 0x465   :  { %v5486_v32 = vadd.f32 %v5244_v0, %v9869_v49  ;;  %v4080_v2 = vsel %vm4071_vm9, %v3948_v7, -inf  ;;  %v10314_v13 = vsel %vm4071_vm9, %v5611_v46, -inf  ;;  %v3951_v52 = vmax.f32 %v3823_v27, 0.0  ;;  %v12920_v27 = vld [vmem:[#allocation18_spill] sm:$0xff] }
 0x466   :  { %v5615_v31 = vmax.f32 %v5487_v16, 0.0  ;;  %5171 = vmax.xlane.f32.xlu0 %v12914_v42  ;;  %v3952_v7 = vmax.f32 %v3824_v19, 0.0  ;;  %v10326_v46 = vsel %vm4071_vm9, %v5610_v11, -inf  ;;  %v4074_v19 = vmax.f32 %v4072_v57, %v4073_v14 }
 0x467   :  { %v5253_v47 = vpop.xlane.xlu0 %5252  ;;  %v5614_v16 = vmax.f32 %v5486_v32, 0.0  ;;  %v12915_v32 = vld [vmem:[#allocation117_spill] sm:$0xff]  ;;  %v4081_v10 = vmax.f32 %v4079_v29, %v4080_v2  ;;  %v3818_v43 = vadd.f32 %v9939_v55, %v12919_v18  ;;  %v3821_v57 = vadd.f32 %v9869_v49, %v12920_v27  ;;  %v12921_v2 = vld [vmem:[#allocation140_spill] sm:$0xff] }
 0x468   :  { %v10317_v53 = vsel %vm4071_vm9, %v5615_v31, -inf  ;;  %v5489_v0 = vadd.f32 %v5253_v47, %v9733_v15  ;;  %5384 = vmax.xlane.f32.xlu1 %v9863_v25  ;;  %v5250_v56 = vpop.xlane.xlu1 %5249  ;;  %v10333_v25 = vpack.c.bf16 %v4183_v48, %v4177_v6  ;;  %v4075_v48 = vsel %vm4071_vm9, %v3951_v52, -inf }
 0x469   :  { %v10329_v17 = vsel %vm4071_vm9, %v5614_v16, -inf  ;;  %v5488_v31 = vadd.f32 %v5250_v56, %v9765_v61  ;;  %v12918_v56 = vld [vmem:[#allocation87_spill] sm:$0xff]  ;;  %v4082_v42 = vsel %vm4071_vm9, %v3952_v7, -inf }
 0x46a   :  { %5183 = vmax.xlane.f32.xlu0 %v12915_v32  ;;  %12916 = vst [vmem:[#allocation113_spill] sm:$0xff] %v10333_v25  ;;  %v5617_v11 = vmax.f32 %v5489_v0, 0.0  ;;  %v3817_v32 = vadd.f32 %v9869_v49, %v12918_v56  ;;  %v12922_v0 = vld [vmem:[#allocation97_spill] sm:$0xff]  ;;  %v10359_v18 = vmax.f32 %v4081_v10, %v4082_v42  ;;  %v12923_v56 = vld [vmem:[#allocation91_spill] sm:$0xff]  ;;  %v3946_v42 = vmax.f32 %v3818_v43, 0.0  ;;  %v12951_v25 = vld [vmem:[#allocation42_spill] sm:$0xff] }
 0x46b   :  { %v5259_v47 = vpop.xlane.xlu0 %5258  ;;  %v5616_v63 = vmax.f32 %v5488_v31, 0.0  ;;  %v10355_v31 = vadd.f32 %v9939_v55, %v12922_v0  ;;  %v10363_v27 = vadd.f32 %v9869_v49, %v12923_v56  ;;  %v12945_v0 = vld [vmem:[#allocation48_spill] sm:$0xff] }
 0x46c   :  { %v5491_v16 = vadd.f32 %v5259_v47, %v9939_v55  ;;  %5174 = vmax.xlane.f32.xlu1 %v12917_v37  ;;  %v5256_v6 = vpop.xlane.xlu1 %5255  ;;  %v10357_v47 = vmax.f32 %v4074_v19, %v4075_v48  ;;  %v12924_v37 = vld [vmem:[#allocation56_spill] sm:$0xff]  ;;  %v3945_v10 = vmax.f32 %v3817_v32, 0.0  ;;  %v3949_v48 = vmax.f32 %v3821_v57, 0.0 }
 0x46d   :  { %v5703_v14 = vsel %vm4071_vm9, %v5616_v63, -inf  ;;  %v5490_v29 = vadd.f32 %v5256_v6, %v9869_v49  ;;  %v5710_v63 = vsel %vm4071_vm9, %v5617_v11, -inf  ;;  %v3950_v11 = vmax.f32 %v10355_v31, 0.0  ;;  %v12927_v31 = vld [vmem:[#allocation164_spill] sm:$0xff] }
 0x46e   :  { %5195 = vmax.xlane.f32.xlu0 %v12921_v2  ;;  %v5704_v52 = vmax.f32 %v5702_v12, %v5703_v14  ;;  %v5619_v6 = vmax.f32 %v5491_v16, 0.0  ;;  %v12925_v12 = vld [vmem:[#allocation119_spill] sm:$0xff]  ;;  %v12926_v16 = vmax.f32 %v10268_v28, %v10271_v9  ;;  %v4085_v43 = vmax.f32 %v10359_v18, %v9878_v20 }
 0x46f   :  { %v5265_v7 = vpop.xlane.xlu0 %5264  ;;  %v10371_v19 = vadd.f32 %v9939_v55, %v12925_v12  ;;  %v5618_v14 = vmax.f32 %v5490_v29, 0.0  ;;  %v4078_v12 = vmax.f32 %v10357_v47, %v9901_v24  ;;  %v3953_v32 = vmax.f32 %v10363_v27, 0.0  ;;  %v12928_v47 = vld [vmem:[#allocation168_spill] sm:$0xff] }
 0x470   :  { %v5493_v2 = vadd.f32 %v5265_v7, %v9733_v15  ;;  %5186 = vmax.xlane.f32.xlu1 %v12924_v37  ;;  %v5262_v40 = vpop.xlane.xlu1 %5261  ;;  %v5711_v37 = vmax.f32 %v12926_v16, %v5710_v63  ;;  %v5724_v57 = vsel %vm4071_vm9, %v5619_v6, -inf  ;;  %v3880_v20 = vadd.f32 %v9733_v15, %v12927_v31 }
 0x471   :  { %v5492_v35 = vadd.f32 %v5262_v40, %v9765_v61  ;;  %v3954_v24 = vmax.f32 %v10371_v19, 0.0  ;;  %v3884_v18 = vadd.f32 %v9733_v15, %v12928_v47  ;;  %v5717_v27 = vsel %vm4071_vm9, %v5618_v14, -inf }
 0x472   :  { %v5621_v56 = vmax.f32 %v5493_v2, 0.0  ;;  %5363 = vmax.xlane.f32.xlu0 %v9867_v4  ;;  %v10409_v16 = vsel %vm4071_vm9, %v3945_v10, -inf  ;;  %v10412_v14 = vsel %vm4071_vm9, %v3949_v48, -inf  ;;  %v4008_v47 = vmax.f32 %v3880_v20, 0.0 }
 0x473   :  { %v5271_v7 = vpop.xlane.xlu0 %5270  ;;  %v5620_v4 = vmax.f32 %v5492_v35, 0.0  ;;  %v4088_v20 = vmax.f32 %v10409_v16, %v10412_v14 }
 0x474   :  { %v10386_v40 = vsel %vm4071_vm9, %v5621_v56, -inf  ;;  %v5495_v29 = vadd.f32 %v5271_v7, %v9939_v55  ;;  %5198 = vmax.xlane.f32.xlu1 %v9775_v26  ;;  %v5268_v9 = vpop.xlane.xlu1 %5267  ;;  %v12929_v26 = vmax.f32 %v10314_v13, %v10317_v53  ;;  %v12931_v13 = vld [vmem:[#allocation149_spill] sm:$0xff]  ;;  %v4107_v16 = vsel %vm4071_vm9, %v4008_v47, -inf }
 0x475   :  { %v5713_v28 = vmax.f32 %v5711_v37, %v10386_v40  ;;  %v10398_v63 = vsel %vm4071_vm9, %v5620_v4, -inf  ;;  %v5494_v6 = vadd.f32 %v5268_v9, %v9869_v49  ;;  %v3879_v53 = vadd.f32 %v9765_v61, %v12931_v13 }
 0x476   :  { %v5623_v35 = vmax.f32 %v5495_v29, 0.0  ;;  %5375 = vmax.xlane.f32.xlu0 %v9873_v54  ;;  %v5725_v2 = vmax.f32 %v12929_v26, %v5724_v57  ;;  %v5706_v19 = vmax.f32 %v5704_v52, %v10398_v63  ;;  %v10419_v54 = vsel %vm4071_vm9, %v3946_v42, -inf  ;;  %v12934_v29 = vld [vmem:[#allocation167_spill] sm:$0xff]  ;;  %v12936_v42 = vld [vmem:[#allocation172_spill] sm:$0xff] }
 0x477   :  { %v10406_v56 = vpop.xlane.xlu0 %5276  ;;  %v5622_v7 = vmax.f32 %v5494_v6, 0.0  ;;  %v12932_v52 = vmax.f32 %v10326_v46, %v10329_v17  ;;  %v3883_v9 = vadd.f32 %v9765_v61, %v12934_v29  ;;  %v3888_v31 = vadd.f32 %v9733_v15, %v12936_v42  ;;  %v12938_v6 = vld [vmem:[#allocation166_spill] sm:$0xff]  ;;  %v12943_v42 = vld [vmem:[#allocation171_spill] sm:$0xff] }
 0x478   :  { %v10415_v37 = vsel %vm4071_vm9, %v5623_v35, -inf  ;;  %5366 = vmax.xlane.f32.xlu1 %v9883_v22  ;;  %v10426_v57 = vpack.c.bf16 %v5713_v28, %v5706_v19  ;;  %v10429_v4 = vpop.xlane.xlu1 %5273  ;;  %v4012_v46 = vmax.f32 %v3884_v18, 0.0  ;;  %v3882_v26 = vadd.f32 %v9939_v55, %v12938_v6 }
 0x479   :  { %12930 = vst [vmem:[#allocation123_spill] sm:$0xff] %v10415_v37  ;;  %v5718_v10 = vmax.f32 %v12932_v52, %v5717_v27  ;;  %v5727_v48 = vmax.f32 %v5725_v2, %v10415_v37  ;;  %v10434_v22 = vsel %vm4071_vm9, %v5622_v7, -inf  ;;  %v12937_v27 = vld [vmem:[#allocation165_spill] sm:$0xff]  ;;  %v4094_v18 = vsel %vm4071_vm9, %v3950_v11, -inf  ;;  %v12941_v7 = vld [vmem:[#allocation170_spill] sm:$0xff] }
 0x47a   :  { %12933 = vst [vmem:[#allocation107_spill] sm:$0xff] %v10426_v57  ;;  %12935 = vst [vmem:[#allocation103_spill] sm:$0xff] %v10434_v22  ;;  %5387 = vmax.xlane.f32.xlu0 %v9887_v45  ;;  %v3881_v35 = vadd.f32 %v9869_v49, %v12937_v27  ;;  %v12939_v2 = vld [vmem:[#allocation169_spill] sm:$0xff]  ;;  %v10449_v45 = vpack.c.bf16 %v4085_v43, %v4078_v12  ;;  %v3886_v13 = vadd.f32 %v9939_v55, %v12941_v7  ;;  %v12944_v12 = vld [vmem:[#allocation20_spill] sm:$0xff] }
 0x47b   :  { %v5720_v17 = vmax.f32 %v5718_v10, %v10434_v22  ;;  %v10440_v28 = vpop.xlane.xlu0 %5282  ;;  %v3885_v19 = vadd.f32 %v9869_v49, %v12939_v2  ;;  %v4089_v29 = vsel %vm4071_vm9, %v3953_v32, -inf  ;;  %v3887_v27 = vadd.f32 %v9765_v61, %v12943_v42 }
 0x47c   :  { %5378 = vmax.xlane.f32.xlu1 %v9891_v5  ;;  %12940 = vst [vmem:[#allocation101_spill] sm:$0xff] %v10449_v45  ;;  %v10458_v10 = vpop.xlane.xlu1 %5279  ;;  %v4007_v5 = vmax.f32 %v3879_v53, 0.0  ;;  %v4011_v43 = vmax.f32 %v3883_v9, 0.0  ;;  %v4016_v6 = vmax.f32 %v3888_v31, 0.0  ;;  %v4108_v11 = vsel %vm4071_vm9, %v4012_v46, -inf }
 0x47d   :  { %v10456_v52 = vpack.c.bf16 %v5727_v48, %v5720_v17  ;;  %v4095_v48 = vmax.f32 %v10419_v54, %v4094_v18  ;;  %v4009_v17 = vmax.f32 %v3881_v35, 0.0  ;;  %v4010_v2 = vmax.f32 %v3882_v26, 0.0  ;;  %v12946_v35 = vld [vmem:[#allocation39_spill] sm:$0xff] }
 0x47e   :  { %5201 = vmax.xlane.f32.xlu0 %v12944_v12  ;;  %v4013_v7 = vmax.f32 %v3885_v19, 0.0  ;;  %v4096_v42 = vsel %vm4071_vm9, %v3954_v24, -inf  ;;  %v4014_v9 = vmax.f32 %v3886_v13, 0.0  ;;  %v4015_v12 = vmax.f32 %v3887_v27, 0.0  ;;  %v12947_v19 = vld [vmem:[#allocation174_spill] sm:$0xff]  ;;  %v12948_v13 = vld [vmem:[#allocation173_spill] sm:$0xff] }
 0x47f   :  { %12942 = vst [vmem:[#allocation131_spill] sm:$0xff] %v10456_v52  ;;  %v5106_v14 = vpop.xlane.xlu0 %5105  ;;  %v4100_v46 = vsel %vm4071_vm9, %v4007_v5, -inf  ;;  %v4109_v52 = vmax.f32 %v4107_v16, %v4108_v11  ;;  %v4101_v26 = vsel %vm4071_vm9, %v4011_v43, -inf  ;;  %v3890_v18 = vadd.f32 %v9939_v55, %v12947_v19 }
 0x480   :  { %v5440_v32 = vadd.f32 %v5106_v14, %v9765_v61  ;;  %5390 = vmax.xlane.f32.xlu1 %v12945_v0  ;;  %v5097_v31 = vpop.xlane.xlu1 %5096  ;;  %v4110_v0 = vsel %vm4071_vm9, %v4016_v6, -inf  ;;  %v3889_v14 = vadd.f32 %v9869_v49, %v12948_v13  ;;  %v4114_v27 = vsel %vm4071_vm9, %v4009_v17, -inf  ;;  %v12950_v6 = vld [vmem:[#allocation23_spill] sm:$0xff] }
 0x481   :  { %v5437_v54 = vadd.f32 %v5097_v31, %v9733_v15  ;;  %v4115_v5 = vsel %vm4071_vm9, %v4013_v7, -inf  ;;  %v4121_v16 = vsel %vm4071_vm9, %v4010_v2, -inf  ;;  %v4122_v43 = vsel %vm4071_vm9, %v4014_v9, -inf }
 0x482   :  { %5393 = vmax.xlane.f32.xlu0 %v12946_v35  ;;  %v5568_v11 = vmax.f32 %v5440_v32, 0.0  ;;  %v12949_v35 = vld [vmem:[#allocation41_spill] sm:$0xff]  ;;  %v3848_v19 = vadd.f32 %v9733_v15, %v12950_v6  ;;  %v4090_v53 = vmax.f32 %v4088_v20, %v4089_v29  ;;  %v4097_v57 = vmax.f32 %v4095_v48, %v4096_v42  ;;  %v12952_v32 = vld [vmem:[#allocation127_spill] sm:$0xff]  ;;  %v12955_v42 = vld [vmem:[#allocation162_spill] sm:$0xff] }
 0x483   :  { %v10479_v24 = vpop.xlane.xlu0 %5117  ;;  %v5565_v31 = vmax.f32 %v5437_v54, 0.0  ;;  %v4102_v45 = vmax.f32 %v4100_v46, %v4101_v26  ;;  %v4111_v13 = vmax.f32 %v4109_v52, %v4110_v0  ;;  %v4018_v2 = vmax.f32 %v3890_v18, 0.0  ;;  %v12954_v48 = vld [vmem:[#allocation57_spill] sm:$0xff] }
 0x484   :  { %5204 = vmax.xlane.f32.xlu1 %v12949_v35  ;;  %v5109_v47 = vpop.xlane.xlu1 %5108  ;;  %v3847_v54 = vadd.f32 %v9765_v61, %v12952_v32  ;;  %v4103_v9 = vsel %vm4071_vm9, %v4015_v12, -inf  ;;  %v4017_v6 = vmax.f32 %v3889_v14, 0.0  ;;  %v4116_v22 = vmax.f32 %v4114_v27, %v4115_v5  ;;  %v12958_v5 = vld [vmem:[#allocation153_spill] sm:$0xff] }
 0x485   :  { %v5877_v17 = vsel %vm4071_vm9, %v5565_v31, -inf  ;;  %v5441_v7 = vadd.f32 %v5109_v47, %v9733_v15  ;;  %v4123_v20 = vmax.f32 %v4121_v16, %v4122_v43  ;;  %v10499_v29 = vsel %vm4071_vm9, %v5568_v11, -inf  ;;  %v12959_v11 = vld [vmem:[#allocation161_spill] sm:$0xff] }
 0x486   :  { %5207 = vmax.xlane.f32.xlu0 %v12951_v25  ;;  %12953 = vst [vmem:[#allocation88_spill] sm:$0xff] %v10499_v29  ;;  %v3852_v25 = vadd.f32 %v9733_v15, %v12955_v42  ;;  %v3976_v47 = vmax.f32 %v3848_v19, 0.0  ;;  %v12956_v46 = vmax.f32 %v10157_v59, %v10208_v62  ;;  %v4099_v12 = vmax.f32 %v4097_v57, %v10009_v41 }
 0x487   :  { %v10495_v35 = vpop.xlane.xlu0 %5285  ;;  %v5569_v52 = vmax.f32 %v5441_v7, 0.0  ;;  %v4104_v18 = vmax.f32 %v4102_v45, %v4103_v9  ;;  %v4113_v14 = vmax.f32 %v4111_v13, %v10114_v58  ;;  %v4124_v16 = vsel %vm4071_vm9, %v4018_v2, -inf  ;;  %v12960_v45 = vld [vmem:[#allocation151_spill] sm:$0xff]  ;;  %v12961_v13 = vld [vmem:[#allocation141_spill] sm:$0xff] }
 0x488   :  { %5396 = vmax.xlane.f32.xlu1 %v12954_v48  ;;  %v5878_v26 = vmax.f32 %v12956_v46, %v5877_v17  ;;  %v10507_v0 = vpop.xlane.xlu1 %5120  ;;  %v3851_v31 = vadd.f32 %v9765_v61, %v12959_v11  ;;  %v3975_v43 = vmax.f32 %v3847_v54, 0.0  ;;  %v5874_v59 = vmax.f32 %v10227_v1, %v10499_v29  ;;  %v12963_v9 = vld [vmem:[#allocation137_spill] sm:$0xff] }
 0x489   :  { %v10512_v27 = vsel %vm4071_vm9, %v5569_v52, -inf  ;;  %v4117_v58 = vsel %vm4071_vm9, %v4017_v6, -inf  ;;  %v4125_v57 = vmax.f32 %v4123_v20, %v4124_v16  ;;  %v3855_v17 = vadd.f32 %v9765_v61, %v12961_v13 }
 0x48a   :  { %12957 = vst [vmem:[#allocation22_spill] sm:$0xff] %v10512_v27  ;;  %5399 = vmax.xlane.f32.xlu0 %v12958_v5  ;;  %v5880_v62 = vmax.f32 %v5878_v26, %v10512_v27  ;;  %v4118_v19 = vmax.f32 %v4116_v22, %v4117_v58  ;;  %v3980_v7 = vmax.f32 %v3852_v25, 0.0  ;;  %v4473_v2 = vsel %vm4071_vm9, %v3976_v47, -inf  ;;  %v12965_v22 = vld [vmem:[#allocation46_spill] sm:$0xff]  ;;  %v12966_v47 = vld [vmem:[#allocation121_spill] sm:$0xff] }
 0x48b   :  { %v10521_v41 = vpop.xlane.xlu0 %5297  ;;  %v4092_v1 = vmax.f32 %v4090_v53, %v9992_v33  ;;  %v3856_v52 = vadd.f32 %v9733_v15, %v12963_v9  ;;  %v12964_v6 = vmax.f32 %v9969_v3, %v10004_v21  ;;  %v4106_v48 = vmax.f32 %v4104_v18, %v10100_v60  ;;  %v12968_v5 = vld [vmem:[#allocation125_spill] sm:$0xff]  ;;  %v12969_v60 = vld [vmem:[#allocation54_spill] sm:$0xff] }
 0x48c   :  { %5210 = vmax.xlane.f32.xlu1 %v12960_v45  ;;  %v10528_v32 = vpack.c.bf16 %v5880_v62, %v5874_v59  ;;  %v10530_v54 = vpop.xlane.xlu1 %5288  ;;  %v3979_v42 = vmax.f32 %v3851_v31, 0.0  ;;  %v4467_v25 = vsel %vm4071_vm9, %v3975_v43, -inf  ;;  %v3850_v46 = vadd.f32 %v9939_v55, %v12966_v47  ;;  %v12971_v62 = vld [vmem:[#allocation147_spill] sm:$0xff] }
 0x48d   :  { %v4474_v20 = vmax.f32 %v12964_v6, %v4473_v2  ;;  %v10545_v33 = vpack.c.bf16 %v4099_v12, %v4092_v1  ;;  %v4127_v53 = vmax.f32 %v4125_v57, %v10234_v39  ;;  %v12967_v3 = vmax.f32 %v9974_v23, %v9981_v36  ;;  %v12970_v23 = vld [vmem:[#allocation163_spill] sm:$0xff] }
 0x48e   :  { %12962 = vst [vmem:[#allocation21_spill] sm:$0xff] %v10528_v32  ;;  %5213 = vmax.xlane.f32.xlu0 %v12965_v22  ;;  %v3849_v16 = vadd.f32 %v9869_v49, %v12968_v5  ;;  %v10554_v18 = vpack.c.bf16 %v4113_v14, %v4106_v48  ;;  %v4120_v11 = vmax.f32 %v4118_v19, %v10231_v51  ;;  %v3983_v31 = vmax.f32 %v3855_v17, 0.0  ;;  %v12972_v57 = vld [vmem:[#allocation51_spill] sm:$0xff]  ;;  %v12973_v51 = vld [vmem:[#allocation133_spill] sm:$0xff]  ;;  %v12989_v22 = vld [vmem:[#allocation134_spill] sm:$0xff] }
 0x48f   :  { %v10543_v26 = vpop.xlane.xlu0 %5309  ;;  %v4468_v21 = vmax.f32 %v12967_v3, %v4467_v25  ;;  %v10558_v43 = vsel %vm4071_vm9, %v3980_v7, -inf  ;;  %v3984_v39 = vmax.f32 %v3856_v52, 0.0  ;;  %v3853_v36 = vadd.f32 %v9869_v49, %v12970_v23  ;;  %v12974_v19 = vld [vmem:[#allocation143_spill] sm:$0xff]  ;;  %v12977_v5 = vld [vmem:[#allocation37_spill] sm:$0xff] }
 0x490   :  { %5402 = vmax.xlane.f32.xlu1 %v12969_v60  ;;  %v10560_v12 = vpop.xlane.xlu1 %5300  ;;  %v4476_v59 = vmax.f32 %v4474_v20, %v10558_v43  ;;  %v3854_v58 = vadd.f32 %v9939_v55, %v12971_v62  ;;  %v10569_v14 = vsel %vm4071_vm9, %v3979_v42, -inf  ;;  %v3857_v45 = vadd.f32 %v9869_v49, %v12973_v51  ;;  %v12975_v6 = vld [vmem:[#allocation47_spill] sm:$0xff] }
 0x491   :  { %v3858_v13 = vadd.f32 %v9939_v55, %v12974_v19  ;;  %v3978_v17 = vmax.f32 %v3850_v46, 0.0  ;;  %v10576_v1 = vpack.c.bf16 %v4127_v53, %v4120_v11  ;;  %v4470_v9 = vmax.f32 %v4468_v21, %v10569_v14  ;;  %v12994_v51 = vld [vmem:[#allocation15_spill] sm:$0xff] }
 0x492   :  { %5405 = vmax.xlane.f32.xlu0 %v12972_v57  ;;  %v3977_v52 = vmax.f32 %v3849_v16, 0.0  ;;  %v10584_v42 = vsel %vm4071_vm9, %v3983_v31, -inf  ;;  %v10591_v46 = vsel %vm4071_vm9, %v3984_v39, -inf  ;;  %v3981_v53 = vmax.f32 %v3853_v36, 0.0  ;;  %v12979_v57 = vld [vmem:[#allocation152_spill] sm:$0xff] }
 0x493   :  { %v5100_v7 = vpop.xlane.xlu0 %5099  ;;  %v10588_v47 = vpack.c.bf16 %v4476_v59, %v4470_v9  ;;  %v3982_v3 = vmax.f32 %v3854_v58, 0.0  ;;  %v3985_v16 = vmax.f32 %v3857_v45, 0.0  ;;  %v3986_v60 = vmax.f32 %v3858_v13, 0.0  ;;  %v12981_v9 = vld [vmem:[#allocation124_spill] sm:$0xff] }
 0x494   :  { %5216 = vmax.xlane.f32.xlu1 %v12975_v6  ;;  %v10586_v25 = vpop.xlane.xlu1 %5312  ;;  %v5438_v21 = vadd.f32 %v5100_v7, %v9869_v49  ;;  %v4485_v11 = vsel %vm4071_vm9, %v3978_v17, -inf  ;;  %v4479_v59 = vsel %vm4071_vm9, %v3977_v52, -inf  ;;  %v12978_v39 = vmax.f32 %v10030_v38, %v10033_v50 }
 0x495   :  { %12976 = vst [vmem:[#allocation115_spill] sm:$0xff] %v10588_v47  ;;  %v12980_v19 = vmax.f32 %v10013_v8, %v10020_v44  ;;  %v10613_v38 = vsel %vm4071_vm9, %v3981_v53, -inf  ;;  %v10616_v50 = vsel %vm4071_vm9, %v3982_v3, -inf  ;;  %v3912_v52 = vadd.f32 %v9733_v15, %v12981_v9  ;;  %v12985_v9 = vld [vmem:[#allocation55_spill] sm:$0xff]  ;;  %v13000_v47 = vld [vmem:[#allocation130_spill] sm:$0xff] }
 0x496   :  { %5219 = vmax.xlane.f32.xlu0 %v12977_v5  ;;  %v4486_v36 = vmax.f32 %v12978_v39, %v4485_v11  ;;  %v5566_v6 = vmax.f32 %v5438_v21, 0.0  ;;  %v12982_v11 = vld [vmem:[#allocation45_spill] sm:$0xff]  ;;  %v10623_v8 = vsel %vm4071_vm9, %v3985_v16, -inf  ;;  %v10626_v44 = vsel %vm4071_vm9, %v3986_v60, -inf  ;;  %v12984_v21 = vld [vmem:[#allocation128_spill] sm:$0xff]  ;;  %v12986_v60 = vld [vmem:[#allocation30_spill] sm:$0xff] }
 0x497   :  { %v5112_v23 = vpop.xlane.xlu0 %5111  ;;  %v4480_v13 = vmax.f32 %v12980_v19, %v4479_v59  ;;  %v12983_v59 = vld [vmem:[#allocation122_spill] sm:$0xff]  ;;  %v3920_v20 = vadd.f32 %v9733_v15, %v12989_v22 }
 0x498   :  { %v5442_v58 = vadd.f32 %v5112_v23, %v9869_v49  ;;  %5408 = vmax.xlane.f32.xlu1 %v12979_v57  ;;  %v5103_v17 = vpop.xlane.xlu1 %5102  ;;  %v4488_v3 = vmax.f32 %v4486_v36, %v10616_v50  ;;  %v3911_v39 = vadd.f32 %v9765_v61, %v12983_v59  ;;  %v3915_v57 = vadd.f32 %v9765_v61, %v12984_v21  ;;  %v12987_v59 = vld [vmem:[#allocation136_spill] sm:$0xff] }
 0x499   :  { %v5439_v5 = vadd.f32 %v5103_v17, %v9939_v55  ;;  %v4482_v16 = vmax.f32 %v4480_v13, %v10613_v38  ;;  %v3919_v62 = vadd.f32 %v9765_v61, %v12987_v59  ;;  %v4040_v21 = vmax.f32 %v3912_v52, 0.0  ;;  %v12990_v59 = vld [vmem:[#allocation154_spill] sm:$0xff] }
 0x49a   :  { %5411 = vmax.xlane.f32.xlu0 %v12982_v11  ;;  %v5570_v19 = vmax.f32 %v5442_v58, 0.0  ;;  %v3916_v11 = vadd.f32 %v9733_v15, %v12986_v60  ;;  %v5883_v58 = vsel %vm4071_vm9, %v5566_v6, -inf  ;;  %v4039_v2 = vmax.f32 %v3911_v39, 0.0 }
 0x49b   :  { %v10628_v23 = vpop.xlane.xlu0 %5123  ;;  %v5567_v17 = vmax.f32 %v5439_v5, 0.0  ;;  %v10653_v48 = vpack.c.bf16 %v4488_v3, %v4482_v16  ;;  %v4043_v53 = vmax.f32 %v3915_v57, 0.0  ;;  %v12993_v16 = vld [vmem:[#allocation40_spill] sm:$0xff]  ;;  %v4047_v57 = vmax.f32 %v3919_v62, 0.0 }
 0x49c   :  { %5222 = vmax.xlane.f32.xlu1 %v12985_v9  ;;  %v5115_v7 = vpop.xlane.xlu1 %5114  ;;  %v12988_v9 = vld [vmem:[#allocation126_spill] sm:$0xff]  ;;  %v10658_v52 = vsel %vm4071_vm9, %v5570_v19, -inf  ;;  %v12995_v45 = vmax.f32 %v12993_v16, %v12994_v51  ;;  %v4497_v19 = vsel %vm4071_vm9, %v4040_v21, -inf  ;;  %v4048_v62 = vmax.f32 %v3920_v20, 0.0 }
 0x49d   :  { %v5889_v5 = vsel %vm4071_vm9, %v5567_v17, -inf  ;;  %v5443_v13 = vadd.f32 %v5115_v7, %v9939_v55  ;;  %v3914_v60 = vadd.f32 %v9939_v55, %v12988_v9  ;;  %v4044_v17 = vmax.f32 %v3916_v11, 0.0  ;;  %v12991_v7 = vld [vmem:[#allocation29_spill] sm:$0xff]  ;;  %v12997_v11 = vld [vmem:[#allocation63_spill] sm:$0xff] }
 0x49e   :  { %v3913_v36 = vadd.f32 %v9869_v49, %v12991_v7  ;;  %v12992_v9 = vmax.f32 %v10145_v34, %v10199_v30  ;;  %v5890_v22 = vmax.f32 %v12995_v45, %v5889_v5  ;;  %v3918_v34 = vadd.f32 %v9939_v55, %v13000_v47 }
 0x49f   :  { %v10651_v31 = vpop.xlane.xlu0 %5291  ;;  %v5571_v6 = vmax.f32 %v5443_v13, 0.0  ;;  %v4042_v30 = vmax.f32 %v3914_v60, 0.0  ;;  %v4491_v21 = vsel %vm4071_vm9, %v4039_v2, -inf  ;;  %v10699_v20 = vsel %vm4071_vm9, %v4044_v17, -inf  ;;  %v13009_v17 = vld [vmem:[#allocation138_spill] sm:$0xff] }
 0x4a0   :  { %5414 = vmax.xlane.f32.xlu1 %v12990_v59  ;;  %v5884_v3 = vmax.f32 %v12992_v9, %v5883_v58  ;;  %v10669_v39 = vpop.xlane.xlu1 %5126  ;;  %v12998_v59 = vld [vmem:[#allocation64_spill] sm:$0xff]  ;;  %v13003_v9 = vld [vmem:[#allocation61_spill] sm:$0xff]  ;;  %v4041_v47 = vmax.f32 %v3913_v36, 0.0  ;;  %v10702_v2 = vsel %vm4071_vm9, %v4047_v57, -inf  ;;  %v3922_v57 = vadd.f32 %v9939_v55, %v13009_v17  ;;  %v13014_v17 = vld [vmem:[#allocation155_spill] sm:$0xff] }
 0x4a1   :  { %v10673_v13 = vsel %vm4071_vm9, %v5571_v6, -inf  ;;  %v12999_v32 = vmax.f32 %v12997_v11, %v12998_v59  ;;  %v13002_v6 = vld [vmem:[#allocation95_spill] sm:$0xff]  ;;  %v4509_v36 = vsel %vm4071_vm9, %v4042_v30, -inf }
 0x4a2   :  { %12996 = vst [vmem:[#allocation100_spill] sm:$0xff] %v10673_v13  ;;  %v5886_v58 = vmax.f32 %v5884_v3, %v10658_v52  ;;  %v5892_v51 = vmax.f32 %v5890_v22, %v10673_v13  ;;  %v13004_v16 = vmax.f32 %v13002_v6, %v13003_v9  ;;  %v10696_v22 = vsel %vm4071_vm9, %v4043_v53, -inf }
 0x4a3   :  { %v4498_v7 = vmax.f32 %v12999_v32, %v4497_v19  ;;  %v10682_v45 = vpop.xlane.xlu0 %5303  ;;  %v13005_v32 = vld [vmem:[#allocation132_spill] sm:$0xff]  ;;  %v4046_v9 = vmax.f32 %v3918_v34, 0.0  ;;  %v10713_v53 = vsel %vm4071_vm9, %v4048_v62, -inf  ;;  %v5496_v34 = vadd.f32 %v10429_v4, %v9765_v61 }
 0x4a4   :  { %13001 = vst [vmem:[#allocation105_spill] sm:$0xff] %v10682_v45  ;;  %v4492_v11 = vmax.f32 %v13004_v16, %v4491_v21  ;;  %v3917_v19 = vadd.f32 %v9869_v49, %v13005_v32  ;;  %v10691_v60 = vpack.c.bf16 %v5892_v51, %v5886_v58  ;;  %v10693_v3 = vpop.xlane.xlu1 %5294  ;;  %v13007_v21 = vld [vmem:[#allocation16_spill] sm:$0xff]  ;;  %v5497_v58 = vadd.f32 %v10406_v56, %v9733_v15  ;;  %v13010_v16 = vld [vmem:[#allocation58_spill] sm:$0xff]  ;;  %v13011_v32 = vld [vmem:[#allocation111_spill] sm:$0xff] }
 0x4a5   :  { %v4500_v59 = vmax.f32 %v4498_v7, %v10699_v20  ;;  %v3921_v6 = vadd.f32 %v9869_v49, %v13007_v21  ;;  %v13012_v7 = vmax.f32 %v13010_v16, %v13011_v32  ;;  %v4503_v56 = vsel %vm4071_vm9, %v4041_v47, -inf }
 0x4a6   :  { %13006 = vst [vmem:[#allocation98_spill] sm:$0xff] %v10691_v60  ;;  %v4494_v30 = vmax.f32 %v4492_v11, %v10696_v22  ;;  %v4045_v21 = vmax.f32 %v3917_v19, 0.0  ;;  %v10739_v47 = vsel %vm4071_vm9, %v4046_v9, -inf  ;;  %v4050_v13 = vmax.f32 %v3922_v57, 0.0  ;;  %v13022_v57 = vld [vmem:[#allocation32_spill] sm:$0xff] }
 0x4a7   :  { %v10710_v51 = vpop.xlane.xlu0 %5315  ;;  %v4510_v5 = vmax.f32 %v13012_v7, %v4509_v36  ;;  %v13017_v36 = vld [vmem:[#allocation135_spill] sm:$0xff]  ;;  %v4049_v19 = vmax.f32 %v3921_v6, 0.0  ;;  %v5625_v7 = vmax.f32 %v5497_v58, 0.0 }
 0x4a8   :  { %13008 = vst [vmem:[#allocation104_spill] sm:$0xff] %v10710_v51  ;;  %v13015_v51 = vld [vmem:[#allocation62_spill] sm:$0xff]  ;;  %v3860_v32 = vadd.f32 %v9733_v15, %v13017_v36  ;;  %v10734_v4 = vpack.c.bf16 %v4500_v59, %v4494_v30  ;;  %v5499_v59 = vadd.f32 %v10440_v28, %v9939_v55  ;;  %v5498_v30 = vadd.f32 %v10458_v10, %v9869_v49 }
 0x4a9   :  { %v10724_v60 = vpop.xlane.xlu1 %5306  ;;  %v13016_v45 = vmax.f32 %v13014_v17, %v13015_v51  ;;  %v13020_v51 = vld [vmem:[#allocation139_spill] sm:$0xff]  ;;  %v10751_v6 = vsel %vm4071_vm9, %v4045_v21, -inf  ;;  %v10763_v10 = vsel %vm4071_vm9, %v4049_v19, -inf  ;;  %v13024_v21 = vld [vmem:[#allocation34_spill] sm:$0xff] }
 0x4aa   :  { %13013 = vst [vmem:[#allocation109_spill] sm:$0xff] %v10724_v60  ;;  %13018 = vst [vmem:[#allocation28_spill] sm:$0xff] %v10734_v4  ;;  %v4512_v60 = vmax.f32 %v4510_v5, %v10739_v47  ;;  %v3863_v5 = vadd.f32 %v9765_v61, %v13022_v57  ;;  %v13023_v17 = vld [vmem:[#allocation31_spill] sm:$0xff]  ;;  %v3867_v11 = vadd.f32 %v9765_v61, %v13024_v21  ;;  %v5627_v28 = vmax.f32 %v5499_v59, 0.0 }
 0x4ab   :  { %v4504_v16 = vmax.f32 %v13016_v45, %v4503_v56  ;;  %v10741_v62 = vpop.xlane.xlu0 %5129  ;;  %v3859_v45 = vadd.f32 %v9765_v61, %v13020_v51  ;;  %v5624_v56 = vmax.f32 %v5496_v34, 0.0  ;;  %v3864_v36 = vadd.f32 %v9733_v15, %v13023_v17  ;;  %v13028_v21 = vld [vmem:[#allocation67_spill] sm:$0xff] }
 0x4ac   :  { %13019 = vst [vmem:[#allocation11_spill] sm:$0xff] %v10741_v62  ;;  %v3988_v34 = vmax.f32 %v3860_v32, 0.0  ;;  %v10775_v17 = vsel %vm4071_vm9, %v4050_v13, -inf  ;;  %v5626_v19 = vmax.f32 %v5498_v30, 0.0  ;;  %v13026_v62 = vld [vmem:[#allocation65_spill] sm:$0xff]  ;;  %v5500_v59 = vadd.f32 %v10495_v35, %v9765_v61 }
 0x4ad   :  { %v10753_v9 = vpop.xlane.xlu1 %5318  ;;  %v4506_v58 = vmax.f32 %v4504_v16, %v10751_v6  ;;  %v3987_v32 = vmax.f32 %v3859_v45, 0.0  ;;  %v10778_v51 = vsel %vm4071_vm9, %v5624_v56, -inf  ;;  %v13027_v4 = vunpack.c.l.b16 %v13026_v62 }
 0x4ae   :  { %13021 = vst [vmem:[#allocation13_spill] sm:$0xff] %v10753_v9  ;;  %v10768_v9 = vsel %vm4071_vm9, %v5625_v7, -inf  ;;  %v3868_v7 = vadd.f32 %v9733_v15, %v13028_v21  ;;  %v3991_v45 = vmax.f32 %v3863_v5, 0.0  ;;  %v4662_v56 = vsel %vm4071_vm9, %v3988_v34, -inf }
 0x4af   :  { %v10770_v16 = vpop.xlane.xlu0 %5321  ;;  %v10772_v57 = vpack.c.bf16 %v4512_v60, %v4506_v58  ;;  %v13029_v60 = vunpack.c.h.b16 %v13026_v62  ;;  %v3992_v58 = vmax.f32 %v3864_v36, 0.0  ;;  %v3995_v30 = vmax.f32 %v3867_v11, 0.0 }
 0x4b0   :  { %13025 = vst [vmem:[#allocation108_spill] sm:$0xff] %v10770_v16  ;;  %4206 = vperm.xlu0 %6907, %v13027_v4   ;;  %v5444_v16 = vadd.f32 %v10479_v24, %v9765_v61  ;;  %v13030_v21 = vmax.f32 %v10558_v43, %v10591_v46  ;;  %v5894_v5 = vmax.f32 %v10398_v63, %v10778_v51  ;;  %v4656_v35 = vsel %vm4071_vm9, %v3987_v32, -inf  ;;  %v13033_v43 = vld [vmem:[#allocation156_spill] sm:$0xff] }
 0x4b1   :  { %4209 = vperm.xlu1 %6908, %v13029_v60   ;;  %v10788_v13 = vpop.xlane.xlu1 %5132  ;;  %v10808_v60 = vsel %vm4071_vm9, %v5627_v28, -inf  ;;  %v10811_v11 = vsel %vm4071_vm9, %v5626_v19, -inf  ;;  %v13034_v46 = vunpack.c.h.b16 %v13033_v43  ;;  %v13035_v63 = vmax.f32 %v10569_v14, %v10584_v42 }
 0x4b2   :  { %v4663_v24 = vmax.f32 %v13030_v21, %v4662_v56  ;;  %13032 = vst [vmem:[#allocation144_spill] sm:$0xff] %v10808_v60  ;;  %v5572_v21 = vmax.f32 %v5444_v16, 0.0  ;;  %v13036_v4 = vunpack.c.l.b16 %v13033_v43  ;;  %v3996_v28 = vmax.f32 %v3868_v7, 0.0 }
 0x4b3   :  { %v10802_v36 = vpop.xlane.xlu0 %5135  ;;  %v4657_v51 = vmax.f32 %v13035_v63, %v4656_v35  ;;  %v10824_v34 = vsel %vm4071_vm9, %v3991_v45, -inf  ;;  %v10827_v19 = vsel %vm4071_vm9, %v3992_v58, -inf  ;;  %v5445_v56 = vadd.f32 %v10507_v0, %v9733_v15  ;;  %v13041_v35 = vld [vmem:[#allocation53_spill] sm:$0xff]  ;;  %v13043_v63 = vld [vmem:[#allocation24_spill] sm:$0xff] }
 0x4b4   :  { %13031 = vst [vmem:[#allocation114_spill] sm:$0xff] %v10802_v36  ;;  %4215 = vperm.xlu0 %6907, %v13034_v46   ;;  %v5628_v46 = vmax.f32 %v5500_v59, 0.0  ;;  %v4665_v14 = vmax.f32 %v4663_v24, %v10827_v19  ;;  %v10833_v42 = vsel %vm4071_vm9, %v3995_v30, -inf  ;;  %v5504_v16 = vadd.f32 %v10521_v41, %v9765_v61  ;;  %v13040_v24 = vld [vmem:[#allocation103_spill] sm:$0xff] }
 0x4b5   :  { %4212 = vperm.xlu1 %6908, %v13036_v4   ;;  %v10821_v32 = vpop.xlane.xlu1 %5324  ;;  %v5501_v7 = vadd.f32 %v10530_v54, %v9733_v15  ;;  %v13039_v4 = vld [vmem:[#allocation44_spill] sm:$0xff]  ;;  %v13042_v43 = vunpack.c.h.b16 %v13041_v35  ;;  %v4659_v41 = vmax.f32 %v4657_v51, %v10824_v34  ;;  %v3861_v54 = vadd.f32 %v9869_v49, %v13043_v63 }
 0x4b6   :  { %13037 = vst [vmem:[#allocation116_spill] sm:$0xff] %v10821_v32  ;;  %v3862_v59 = vadd.f32 %v9939_v55, %v13039_v4  ;;  %v10854_v62 = vsel %vm4071_vm9, %v5572_v21, -inf  ;;  %v5505_v4 = vadd.f32 %v10560_v12, %v9733_v15  ;;  %v13045_v58 = vunpack.c.l.b16 %v13041_v35  ;;  %v13047_v21 = vld [vmem:[#allocation35_spill] sm:$0xff] }
 0x4b7   :  { %v10839_v45 = vpop.xlane.xlu0 %5327  ;;  %13044 = vst [vmem:[#allocation142_spill] sm:$0xff] %v10854_v62  ;;  %v5895_v51 = vsel %vm4071_vm9, %v5628_v46, -inf  ;;  %v5573_v63 = vmax.f32 %v5445_v56, 0.0  ;;  %v10868_v60 = vpack.c.bf16 %v4665_v14, %v4659_v41  ;;  %v3865_v37 = vadd.f32 %v9869_v49, %v13047_v21  ;;  %v13049_v56 = vld [vmem:[#allocation113_spill] sm:$0xff]  ;;  %v13051_v41 = vld [vmem:[#allocation75_spill] sm:$0xff] }
 0x4b8   :  { %13038 = vst [vmem:[#allocation145_spill] sm:$0xff] %v10839_v45  ;;  %4221 = vperm.xlu0 %6907, %v13042_v43   ;;  %v10865_v43 = vsel %vm4071_vm9, %v3996_v28, -inf  ;;  %v5632_v12 = vmax.f32 %v5504_v16, 0.0  ;;  %v5629_v45 = vmax.f32 %v5501_v7, 0.0  ;;  %v3990_v32 = vmax.f32 %v3862_v59, 0.0  ;;  %v13053_v28 = vld [vmem:[#allocation86_spill] sm:$0xff] }
 0x4b9   :  { %4218 = vperm.xlu1 %6908, %v13045_v58   ;;  %v10860_v0 = vpop.xlane.xlu1 %5138  ;;  %v13048_v58 = vld [vmem:[#allocation52_spill] sm:$0xff]  ;;  %v5508_v46 = vadd.f32 %v10543_v26, %v9765_v61  ;;  %v13050_v14 = vunpack.c.h.b16 %v13049_v56  ;;  %v3869_v21 = vadd.f32 %v9869_v49, %v13051_v41  ;;  %v3989_v16 = vmax.f32 %v3861_v54, 0.0 }
 0x4ba   :  { %13046 = vst [vmem:[#allocation150_spill] sm:$0xff] %v10860_v0  ;;  %v3866_v0 = vadd.f32 %v9939_v55, %v13048_v58  ;;  %v5896_v7 = vmax.f32 %v5894_v5, %v5895_v51  ;;  %v5633_v30 = vmax.f32 %v5505_v4, 0.0  ;;  %v13052_v36 = vunpack.c.l.b16 %v13049_v56 }
 0x4bb   :  { %v10872_v35 = vpop.xlane.xlu0 %5141  ;;  %v3870_v26 = vadd.f32 %v9939_v55, %v13053_v28  ;;  %v10893_v62 = vsel %vm4071_vm9, %v5573_v63, -inf  ;;  %v3993_v5 = vmax.f32 %v3865_v37, 0.0  ;;  %v10898_v4 = vsel %vm4071_vm9, %v5632_v12, -inf  ;;  %v13055_v28 = vld [vmem:[#allocation101_spill] sm:$0xff] }
 0x4bc   :  { %4227 = vperm.xlu0 %6907, %v13050_v14   ;;  %13054 = vst [vmem:[#allocation36_spill] sm:$0xff] %v10893_v62  ;;  %v3994_v56 = vmax.f32 %v3866_v0, 0.0  ;;  %v4674_v41 = vsel %vm4071_vm9, %v3990_v32, -inf  ;;  %v5636_v59 = vmax.f32 %v5508_v46, 0.0  ;;  %v13056_v29 = vunpack.c.h.b16 %v13055_v28 }
 0x4bd   :  { %4224 = vperm.xlu1 %6908, %v13052_v36   ;;  %v10886_v58 = vpop.xlane.xlu1 %5330  ;;  %v5901_v36 = vsel %vm4071_vm9, %v5629_v45, -inf  ;;  %v3997_v63 = vmax.f32 %v3869_v21, 0.0  ;;  %v4668_v14 = vsel %vm4071_vm9, %v3989_v16, -inf  ;;  %v13057_v37 = vmax.f32 %v10616_v50, %v10626_v44  ;;  %v13062_v16 = vld [vmem:[#allocation76_spill] sm:$0xff] }
 0x4be   :  { %v10911_v12 = vsel %vm4071_vm9, %v5633_v30, -inf  ;;  %v5509_v45 = vadd.f32 %v10586_v25, %v9733_v15  ;;  %v13059_v0 = vunpack.c.l.b16 %v13055_v28  ;;  %v3998_v46 = vmax.f32 %v3870_v26, 0.0 }
 0x4bf   :  { %v10901_v51 = vpop.xlane.xlu0 %5333  ;;  %v4675_v54 = vmax.f32 %v13057_v37, %v4674_v41  ;;  %13058 = vst [vmem:[#allocation175_spill] sm:$0xff] %v10911_v12  ;;  %v13061_v50 = vmax.f32 %v10386_v40, %v10768_v9  ;;  %v5446_v30 = vadd.f32 %v10628_v23, %v9869_v49  ;;  %v3923_v25 = vadd.f32 %v9765_v61, %v13062_v16  ;;  %v13063_v41 = vld [vmem:[#allocation79_spill] sm:$0xff] }
 0x4c0   :  { %4350 = vperm.xlu0 %6907, %v13056_v29   ;;  %v13060_v29 = vmax.f32 %v10613_v38, %v10623_v8  ;;  %v3924_v28 = vadd.f32 %v9733_v15, %v13063_v41  ;;  %v5898_v37 = vmax.f32 %v5896_v7, %v10898_v4  ;;  %v10937_v8 = vsel %vm4071_vm9, %v3993_v5, -inf }
 0x4c1   :  { %4347 = vperm.xlu1 %6908, %v13059_v0   ;;  %v10917_v32 = vpop.xlane.xlu1 %5144  ;;  %v5902_v44 = vmax.f32 %v13061_v50, %v5901_v36  ;;  %v10940_v40 = vsel %vm4071_vm9, %v3994_v56, -inf  ;;  %v10943_v23 = vsel %vm4071_vm9, %v5636_v59, -inf  ;;  %v10950_v7 = vsel %vm4071_vm9, %v3997_v63, -inf  ;;  %v13066_v59 = vld [vmem:[#allocation68_spill] sm:$0xff] }
 0x4c2   :  { %v4669_v21 = vmax.f32 %v13060_v29, %v4668_v14  ;;  %v13064_v14 = vunpack.c.h.b16 %v10545_v33  ;;  %v4677_v36 = vmax.f32 %v4675_v54, %v10940_v40  ;;  %v5637_v0 = vmax.f32 %v5509_v45, 0.0 }
 0x4c3   :  { %v10934_v38 = vpop.xlane.xlu0 %5147  ;;  %v5904_v9 = vmax.f32 %v5902_v44, %v10911_v12  ;;  %v13065_v5 = vunpack.c.l.b16 %v10545_v33  ;;  %v10957_v56 = vsel %vm4071_vm9, %v3998_v46, -inf  ;;  %v3927_v50 = vadd.f32 %v9765_v61, %v13066_v59  ;;  %v13067_v44 = vld [vmem:[#allocation73_spill] sm:$0xff]  ;;  %v13069_v59 = vld [vmem:[#allocation72_spill] sm:$0xff] }
 0x4c4   :  { %4356 = vperm.xlu0 %6907, %v13064_v14   ;;  %v3928_v16 = vadd.f32 %v9733_v15, %v13067_v44  ;;  %v5574_v41 = vmax.f32 %v5446_v30, 0.0  ;;  %v4671_v54 = vmax.f32 %v4669_v21, %v10937_v8  ;;  %v4051_v63 = vmax.f32 %v3923_v25, 0.0  ;;  %v13076_v25 = vld [vmem:[#allocation19_spill] sm:$0xff]  ;;  %v13091_v12 = vld [vmem:[#allocation69_spill] sm:$0xff] }
 0x4c5   :  { %4353 = vperm.xlu1 %6908, %v13065_v5   ;;  %v10954_v29 = vpop.xlane.xlu1 %5336  ;;  %v4052_v14 = vmax.f32 %v3924_v28, 0.0  ;;  %v13068_v5 = vld [vmem:[#allocation92_spill] sm:$0xff]  ;;  %v3932_v62 = vadd.f32 %v9733_v15, %v13069_v59  ;;  %v10974_v44 = vpack.c.bf16 %v5904_v9, %v5898_v37  ;;  %v13071_v21 = vunpack.c.h.b16 %v10554_v18  ;;  %v13072_v28 = vld [vmem:[#allocation78_spill] sm:$0xff] }
 0x4c6   :  { %v3931_v26 = vadd.f32 %v9765_v61, %v13068_v5  ;;  %v10978_v30 = vpack.c.bf16 %v4677_v36, %v4671_v54  ;;  %v3926_v33 = vadd.f32 %v9939_v55, %v13072_v28  ;;  %v10985_v46 = vsel %vm4071_vm9, %v5637_v0, -inf }
 0x4c7   :  { %v10966_v45 = vpop.xlane.xlu0 %5339  ;;  %13070 = vst [vmem:[#allocation176_spill] sm:$0xff] %v10974_v44  ;;  %13073 = vst [vmem:[#allocation177_spill] sm:$0xff] %v10985_v46  ;;  %v5502_v5 = vadd.f32 %v10651_v31, %v9869_v49  ;;  %v13074_v37 = vunpack.c.l.b16 %v10554_v18  ;;  %v4055_v59 = vmax.f32 %v3927_v50, 0.0  ;;  %v4056_v36 = vmax.f32 %v3928_v16, 0.0 }
 0x4c8   :  { %4362 = vperm.xlu0 %6907, %v13071_v21   ;;  %v10994_v54 = vsel %vm4071_vm9, %v5574_v41, -inf  ;;  %v4680_v21 = vsel %vm4071_vm9, %v4051_v63, -inf  ;;  %v4686_v28 = vsel %vm4071_vm9, %v4052_v14, -inf  ;;  %v3925_v0 = vadd.f32 %v9869_v49, %v13076_v25  ;;  %v13080_v25 = vld [vmem:[#allocation70_spill] sm:$0xff] }
 0x4c9   :  { %4359 = vperm.xlu1 %6908, %v13074_v37   ;;  %v10991_v9 = vpop.xlane.xlu1 %5150  ;;  %13075 = vst [vmem:[#allocation43_spill] sm:$0xff] %v10994_v54  ;;  %v4059_v31 = vmax.f32 %v3931_v26, 0.0  ;;  %v4060_v27 = vmax.f32 %v3932_v62, 0.0  ;;  %v13077_v18 = vmax.f32 %v10696_v22, %v10702_v2  ;;  %v13078_v50 = vmax.f32 %v10699_v20, %v10713_v53  ;;  %v13087_v14 = vld [vmem:[#allocation38_spill] sm:$0xff] }
 0x4ca   :  { %v13079_v63 = vunpack.c.h.b16 %v10576_v1  ;;  %v3930_v26 = vadd.f32 %v9939_v55, %v13080_v25  ;;  %v4054_v62 = vmax.f32 %v3926_v33, 0.0  ;;  %v5630_v2 = vmax.f32 %v5502_v5, 0.0 }
 0x4cb   :  { %v11000_v44 = vpop.xlane.xlu0 %5153  ;;  %v4681_v37 = vmax.f32 %v13077_v18, %v4680_v21  ;;  %v4687_v16 = vmax.f32 %v13078_v50, %v4686_v28  ;;  %v11019_v20 = vadd.f32 %v10669_v39, %v9939_v55  ;;  %v13081_v53 = vunpack.c.l.b16 %v10576_v1  ;;  %v13082_v50 = vld [vmem:[#allocation84_spill] sm:$0xff] }
 0x4cc   :  { %4368 = vperm.xlu0 %6907, %v13079_v63   ;;  %v11027_v18 = vsel %vm4071_vm9, %v4055_v59, -inf  ;;  %v11030_v33 = vsel %vm4071_vm9, %v4056_v36, -inf  ;;  %v3929_v5 = vadd.f32 %v9869_v49, %v13082_v50  ;;  %v4053_v63 = vmax.f32 %v3925_v0, 0.0  ;;  %v13084_v59 = vld [vmem:[#allocation115_spill] sm:$0xff]  ;;  %v13086_v36 = vld [vmem:[#allocation85_spill] sm:$0xff] }
 0x4cd   :  { %4365 = vperm.xlu1 %6908, %v13081_v53   ;;  %v11023_v21 = vpop.xlane.xlu1 %5342  ;;  %v4683_v39 = vmax.f32 %v4681_v37, %v11027_v18  ;;  %v4689_v1 = vmax.f32 %v4687_v16, %v11030_v33  ;;  %v11039_v53 = vsel %vm4071_vm9, %v4059_v31, -inf  ;;  %v11042_v41 = vsel %vm4071_vm9, %v4060_v27, -inf }
 0x4ce   :  { %v13085_v22 = vunpack.c.h.b16 %v13084_v59  ;;  %v3934_v28 = vadd.f32 %v9939_v55, %v13086_v36  ;;  %v4058_v50 = vmax.f32 %v3930_v26, 0.0  ;;  %v4698_v0 = vsel %vm4071_vm9, %v4054_v62, -inf  ;;  %v13090_v62 = vld [vmem:[#allocation82_spill] sm:$0xff] }
 0x4cf   :  { %v11034_v25 = vpop.xlane.xlu0 %5345  ;;  %v3872_v37 = vadd.f32 %v9733_v15, %v13087_v14  ;;  %v5907_v16 = vsel %vm4071_vm9, %v5630_v2, -inf  ;;  %v11055_v27 = vadd.f32 %v10693_v3, %v9939_v55  ;;  %v13089_v26 = vmax.f32 %v10739_v47, %v10775_v17  ;;  %v13092_v3 = vld [vmem:[#allocation105_spill] sm:$0xff] }
 0x4d0   :  { %13083 = vst [vmem:[#allocation106_spill] sm:$0xff] %v11034_v25  ;;  %4538 = vperm.xlu0 %6907, %v13085_v22   ;;  %v13088_v25 = vunpack.c.l.b16 %v13084_v59  ;;  %v3933_v46 = vadd.f32 %v9869_v49, %v13090_v62  ;;  %v4057_v14 = vmax.f32 %v3929_v5, 0.0  ;;  %v4692_v2 = vsel %vm4071_vm9, %v4053_v63, -inf }
 0x4d1   :  { %v5157_v22 = vpop.xlane.xlu1 %5156  ;;  %v4699_v36 = vmax.f32 %v13089_v26, %v4698_v0  ;;  %v3871_v31 = vadd.f32 %v9765_v61, %v13091_v12  ;;  %v11069_v54 = vadd.f32 %v13092_v3, %v9869_v49  ;;  %v13094_v17 = vmax.f32 %v10751_v6, %v10763_v10  ;;  %v13096_v26 = vld [vmem:[#allocation71_spill] sm:$0xff] }
 0x4d2   :  { %4535 = vperm.xlu1 %6908, %v13088_v25   ;;  %v11073_v25 = vpack.c.bf16 %v4689_v1, %v4683_v39  ;;  %v13095_v63 = vunpack.c.h.b16 %v10653_v48  ;;  %v4062_v0 = vmax.f32 %v3934_v28, 0.0  ;;  %v11083_v12 = vsel %vm4071_vm9, %v4058_v50, -inf }
 0x4d3   :  { %v11071_v59 = vpop.xlane.xlu0 %5159  ;;  %v4693_v5 = vmax.f32 %v13094_v17, %v4692_v2  ;;  %v3876_v62 = vadd.f32 %v9733_v15, %v13096_v26  ;;  %v4000_v3 = vmax.f32 %v3872_v37, 0.0  ;;  %v13097_v39 = vmax.f32 %v13040_v24, %v10811_v11  ;;  %v13100_v17 = vld [vmem:[#allocation26_spill] sm:$0xff] }
 0x4d4   :  { %13093 = vst [vmem:[#allocation89_spill] sm:$0xff] %v11071_v59  ;;  %4544 = vperm.xlu0 %6907, %v13095_v63   ;;  %v13098_v6 = vunpack.c.l.b16 %v10653_v48  ;;  %v4701_v50 = vmax.f32 %v4699_v36, %v11083_v12  ;;  %v4061_v2 = vmax.f32 %v3933_v46, 0.0  ;;  %v11101_v37 = vsel %vm4071_vm9, %v4057_v14, -inf  ;;  %v13103_v36 = vld [vmem:[#allocation28_spill] sm:$0xff] }
 0x4d5   :  { %v11090_v1 = vmax.f32 %v13097_v39, %v5907_v16  ;;  %v11095_v10 = vpop.xlane.xlu1 %5348  ;;  %v3875_v11 = vadd.f32 %v9765_v61, %v13100_v17  ;;  %v3999_v24 = vmax.f32 %v3871_v31, 0.0  ;;  %v13101_v16 = vld [vmem:[#allocation104_spill] sm:$0xff]  ;;  %v5452_v48 = vadd.f32 %v10872_v35, %v9765_v61  ;;  %v13106_v35 = vld [vmem:[#allocation109_spill] sm:$0xff] }
 0x4d6   :  { %4541 = vperm.xlu1 %6908, %v13098_v6   ;;  %13099 = vst [vmem:[#allocation102_spill] sm:$0xff] %v11095_v10  ;;  %v11107_v63 = vadd.f32 %v13101_v16, %v9869_v49  ;;  %v4695_v46 = vmax.f32 %v4693_v5, %v11101_v37  ;;  %v13104_v14 = vunpack.c.h.b16 %v13103_v36  ;;  %v11118_v6 = vsel %vm4071_vm9, %v4062_v0, -inf  ;;  %v13105_v16 = vld [vmem:[#allocation25_spill] sm:$0xff]  ;;  %v13109_v10 = vld [vmem:[#allocation60_spill] sm:$0xff] }
 0x4d7   :  { %v11111_v26 = vpop.xlane.xlu0 %5351  ;;  %v4004_v31 = vmax.f32 %v3876_v62, 0.0  ;;  %v4851_v17 = vsel %vm4071_vm9, %v4000_v3, -inf  ;;  %v3873_v47 = vadd.f32 %v9869_v49, %v13105_v16  ;;  %v11125_v28 = vadd.f32 %v13106_v35, %v9939_v55 }
 0x4d8   :  { %13102 = vst [vmem:[#allocation110_spill] sm:$0xff] %v11111_v26  ;;  %4550 = vperm.xlu0 %6907, %v13104_v14   ;;  %v13107_v39 = vunpack.c.l.b16 %v13103_v36  ;;  %v11132_v26 = vpack.c.bf16 %v4701_v50, %v4695_v46  ;;  %v13108_v0 = vmax.f32 %v10827_v19, %v10865_v43  ;;  %v11138_v3 = vsel %vm4071_vm9, %v4061_v2, -inf  ;;  %v13111_v19 = vld [vmem:[#allocation77_spill] sm:$0xff] }
 0x4d9   :  { %v11129_v5 = vpop.xlane.xlu1 %5162  ;;  %v4003_v16 = vmax.f32 %v3875_v11, 0.0  ;;  %v4845_v35 = vsel %vm4071_vm9, %v3999_v24, -inf  ;;  %v3874_v36 = vadd.f32 %v9939_v55, %v13109_v10  ;;  %v13110_v50 = vmax.f32 %v10824_v34, %v10833_v42  ;;  %v13116_v14 = vld [vmem:[#allocation81_spill] sm:$0xff] }
 0x4da   :  { %4547 = vperm.xlu1 %6908, %v13107_v39   ;;  %v4852_v62 = vmax.f32 %v13108_v0, %v4851_v17  ;;  %v5580_v39 = vmax.f32 %v5452_v48, 0.0  ;;  %v3877_v43 = vadd.f32 %v9869_v49, %v13111_v19  ;;  %v5456_v2 = vadd.f32 %v11000_v44, %v9765_v61  ;;  %v13115_v44 = vld [vmem:[#allocation27_spill] sm:$0xff] }
 0x4db   :  { %v5166_v59 = vpop.xlane.xlu0 %5165  ;;  %v4846_v46 = vmax.f32 %v13110_v50, %v4845_v35  ;;  %v5457_v11 = vadd.f32 %v5157_v22, %v9733_v15  ;;  %v13112_v24 = vunpack.c.h.b16 %v10772_v57  ;;  %v4853_v10 = vsel %vm4071_vm9, %v4004_v31, -inf }
 0x4dc   :  { %v4001_v48 = vmax.f32 %v3873_v47, 0.0  ;;  %v5453_v17 = vadd.f32 %v10917_v32, %v9733_v15  ;;  %v13113_v34 = vunpack.c.l.b16 %v10772_v57  ;;  %v4854_v35 = vmax.f32 %v4852_v62, %v4853_v10 }
 0x4dd   :  { %4556 = vperm.xlu0 %6907, %v13112_v24   ;;  %v11160_v42 = vpop.xlane.xlu1 %5354  ;;  %v3878_v22 = vadd.f32 %v9939_v55, %v13115_v44  ;;  %v5460_v50 = vadd.f32 %v5166_v59, %v9765_v61  ;;  %v4847_v47 = vsel %vm4071_vm9, %v4003_v16, -inf  ;;  %v4002_v31 = vmax.f32 %v3874_v36, 0.0 }
 0x4de   :  { %4553 = vperm.xlu1 %6908, %v13113_v34   ;;  %13114 = vst [vmem:[#allocation112_spill] sm:$0xff] %v11160_v42  ;;  %v11169_v32 = vsel %vm4071_vm9, %v5580_v39, -inf  ;;  %v4848_v24 = vmax.f32 %v4846_v46, %v4847_v47  ;;  %v4005_v34 = vmax.f32 %v3877_v43, 0.0  ;;  %v3936_v0 = vadd.f32 %v9733_v15, %v13116_v14 }
 0x4df   :  { %v5178_v57 = vpop.xlane.xlu0 %5177  ;;  %v5584_v62 = vmax.f32 %v5456_v2, 0.0  ;;  %v5585_v10 = vmax.f32 %v5457_v11, 0.0  ;;  %v13117_v59 = vunpack.c.h.b16 %v10868_v60  ;;  %v4857_v19 = vsel %vm4071_vm9, %v4001_v48, -inf }
 0x4e0   :  { %v5464_v44 = vadd.f32 %v5178_v57, %v9765_v61  ;;  %v5581_v16 = vmax.f32 %v5453_v17, 0.0  ;;  %v13118_v36 = vunpack.c.l.b16 %v10868_v60  ;;  %v11179_v42 = vpack.c.bf16 %v4854_v35, %v4848_v24  ;;  %v13120_v57 = vld [vmem:[#allocation93_spill] sm:$0xff]  ;;  %v13122_v24 = vld [vmem:[#allocation159_spill] sm:$0xff] }
 0x4e1   :  { %4727 = vperm.xlu0 %6907, %v13117_v59   ;;  %v5169_v39 = vpop.xlane.xlu1 %5168  ;;  %v4006_v46 = vmax.f32 %v3878_v22, 0.0  ;;  %v13119_v14 = vmax.f32 %v10937_v8, %v10950_v7  ;;  %v5588_v2 = vmax.f32 %v5460_v50, 0.0  ;;  %v4863_v47 = vsel %vm4071_vm9, %v4002_v31, -inf }
 0x4e2   :  { %4724 = vperm.xlu1 %6908, %v13118_v36   ;;  %v5461_v11 = vadd.f32 %v5169_v39, %v9733_v15  ;;  %v3935_v48 = vadd.f32 %v9765_v61, %v13120_v57  ;;  %v4859_v60 = vsel %vm4071_vm9, %v4005_v34, -inf  ;;  %v13121_v35 = vmax.f32 %v10940_v40, %v10957_v56 }
 0x4e3   :  { %v11184_v43 = vmax.f32 %v13119_v14, %v4857_v19  ;;  %v11190_v17 = vpop.xlane.xlu0 %5189  ;;  %v3940_v8 = vadd.f32 %v9733_v15, %v13122_v24  ;;  %v4064_v7 = vmax.f32 %v3936_v0, 0.0  ;;  %v6247_v50 = vsel %vm4071_vm9, %v5584_v62, -inf  ;;  %v13125_v14 = vld [vmem:[#allocation94_spill] sm:$0xff]  ;;  %v13126_v62 = vld [vmem:[#allocation157_spill] sm:$0xff]  ;;  %v13127_v24 = vld [vmem:[#allocation160_spill] sm:$0xff] }
 0x4e4   :  { %v4864_v22 = vmax.f32 %v13121_v35, %v4863_v47  ;;  %v6253_v19 = vsel %vm4071_vm9, %v5585_v10, -inf  ;;  %v5592_v31 = vmax.f32 %v5464_v44, 0.0  ;;  %v5589_v59 = vmax.f32 %v5461_v11, 0.0 }
 0x4e5   :  { %v13123_v36 = vunpack.c.h.b16 %v10978_v30  ;;  %v11203_v39 = vsel %vm4071_vm9, %v5581_v16, -inf  ;;  %v13124_v34 = vunpack.c.l.b16 %v10978_v30  ;;  %v5181_v40 = vpop.xlane.xlu1 %5180  ;;  %v4865_v56 = vsel %vm4071_vm9, %v4006_v46, -inf }
 0x4e6   :  { %v3939_v0 = vadd.f32 %v9765_v61, %v13125_v14  ;;  %v3938_v10 = vadd.f32 %v9939_v55, %v13126_v62  ;;  %v6249_v44 = vsel %vm4071_vm9, %v5588_v2, -inf  ;;  %v6255_v11 = vsel %vm4071_vm9, %v5589_v59, -inf }
 0x4e7   :  { %4733 = vperm.xlu0 %6907, %v13123_v36   ;;  %4730 = vperm.xlu1 %6908, %v13124_v34   ;;  %v5465_v47 = vadd.f32 %v5181_v40, %v9733_v15  ;;  %v4063_v16 = vmax.f32 %v3935_v48, 0.0  ;;  %v6248_v57 = vmax.f32 %v11169_v32, %v6247_v50  ;;  %v6254_v30 = vmax.f32 %v11203_v39, %v6253_v19  ;;  %v11217_v35 = vpop.xlane.xlu0 %5357 }
 0x4e8   :  { %v4866_v46 = vmax.f32 %v4864_v22, %v4865_v56  ;;  %v3937_v36 = vadd.f32 %v9869_v49, %v13127_v24  ;;  %v11222_v34 = vsel %vm4071_vm9, %v5592_v31, -inf  ;;  %v13128_v2 = vunpack.c.h.b16 %v11073_v25  ;;  %v13130_v22 = vld [vmem:[#allocation99_spill] sm:$0xff] }
 0x4e9   :  { %v5593_v14 = vmax.f32 %v5465_v47, 0.0  ;;  %v4068_v59 = vmax.f32 %v3940_v8, 0.0  ;;  %v4875_v48 = vsel %vm4071_vm9, %v4064_v7, -inf  ;;  %v6250_v40 = vmax.f32 %v6248_v57, %v6249_v44  ;;  %v11229_v62 = vpop.xlane.xlu1 %5192  ;;  %v13132_v57 = vld [vmem:[#allocation146_spill] sm:$0xff] }
 0x4ea   :  { %v6256_v50 = vmax.f32 %v6254_v30, %v6255_v11  ;;  %v13129_v19 = vunpack.c.l.b16 %v11073_v25  ;;  %v3942_v56 = vadd.f32 %v9939_v55, %v13130_v22  ;;  %v4066_v24 = vmax.f32 %v3938_v10, 0.0 }
 0x4eb   :  { %4739 = vperm.xlu0 %6907, %v13128_v2   ;;  %v11234_v31 = vsel %vm4071_vm9, %v5593_v14, -inf  ;;  %v4067_v47 = vmax.f32 %v3939_v0, 0.0  ;;  %v4869_v2 = vsel %vm4071_vm9, %v4063_v16, -inf  ;;  %v13131_v8 = vmax.f32 %v11030_v33, %v11042_v41  ;;  %v11242_v11 = vpop.xlane.xlu0 %5369  ;;  %v13133_v14 = vld [vmem:[#allocation11_spill] sm:$0xff] }
 0x4ec   :  { %4736 = vperm.xlu1 %6908, %v13129_v19   ;;  %v6252_v44 = vmax.f32 %v6250_v40, %v11222_v34  ;;  %v6258_v25 = vmax.f32 %v6256_v50, %v11234_v31  ;;  %v3941_v30 = vadd.f32 %v9869_v49, %v13132_v57  ;;  %v4065_v10 = vmax.f32 %v3937_v36, 0.0 }
 0x4ed   :  { %v4876_v7 = vmax.f32 %v13131_v8, %v4875_v48  ;;  %v11248_v19 = vadd.f32 %v13133_v14, %v9765_v61  ;;  %v4880_v0 = vmax.f32 %v11101_v37, %v11138_v3  ;;  %v13134_v41 = vunpack.c.h.b16 %v11132_v26  ;;  %v11262_v50 = vpop.xlane.xlu1 %5360  ;;  %v6944_v14 = vld [vmem:[#allocation5] sm:$0xff]  }
 0x4ee   :  { %v4860_v33 = vmax.f32 %v11184_v43, %v4859_v60  ;;  %v13135_v16 = vmax.f32 %v11027_v18, %v11039_v53  ;;  %v11258_v40 = vpack.c.bf16 %v6258_v25, %v6252_v44  ;;  %v13136_v36 = vunpack.c.l.b16 %v11132_v26  ;;  %v6942_v60 = vld [vmem:[#allocation5 + $0x20] sm:$0xff]  }
 0x4ef   :  { %4745 = vperm.xlu0 %6907, %v13134_v41   ;;  %v4877_v22 = vsel %vm4071_vm9, %v4068_v59, -inf  ;;  %v4070_v8 = vmax.f32 %v3942_v56, 0.0  ;;  %v4887_v37 = vsel %vm4071_vm9, %v4066_v24, -inf  ;;  %v4905_v3 = vunpack.c.h.b16 %v11179_v42  ;;  %v13138_v56 = vld [vmem:[#allocation13_spill] sm:$0xff] }
 0x4f0   :  { %v4870_v48 = vmax.f32 %v13135_v16, %v4869_v2  ;;  %4742 = vperm.xlu1 %6908, %v13136_v36   ;;  %v4892_v57 = vpack.c.bf16 %v4866_v46, %v4860_v33  ;;  %v4878_v43 = vmax.f32 %v4876_v7, %v4877_v22  ;;  %v13137_v18 = vmax.f32 %v11083_v12, %v11118_v6  ;;  %v11270_v2 = vpop.xlane.xlu0 %5381 }
 0x4f1   :  { %v4904_v26 = vunpack.c.l.b16 %v11179_v42  ;;  %v4871_v44 = vsel %vm4071_vm9, %v4067_v47, -inf  ;;  %v4069_v25 = vmax.f32 %v3941_v30, 0.0  ;;  %v4881_v59 = vsel %vm4071_vm9, %v4065_v10, -inf  ;;  %v11283_v42 = vpop.xlane.xlu1 %5372 }
 0x4f2   :  { %v4888_v53 = vmax.f32 %v13137_v18, %v4887_v37  ;;  %v5511_v24 = vadd.f32 %v13138_v56, %v9939_v55  ;;  %v4872_v46 = vmax.f32 %v4870_v48, %v4871_v44  ;;  %v4882_v7 = vmax.f32 %v4880_v0, %v4881_v59  ;;  %v6943_v48 = vld [vmem:[#allocation5 + $0x28] sm:$0xff]   ;;  %v13145_v56 = vld [vmem:[#allocation150_spill] sm:$0xff] }
 0x4f3   :  { %4916 = vperm.xlu0 %6907, %v4905_v3   ;;  %v13139_v12 = vmax.f32 %v11019_v20, 0.0  ;;  %v5634_v41 = vmax.f32 %v11069_v54, 0.0  ;;  %v4889_v47 = vsel %vm4071_vm9, %v4070_v8, -inf  ;;  %v12245_v30 = vmov 0.0  }
 0x4f4   :  { %4913 = vperm.xlu1 %6908, %v4904_v26   ;;  %6762 = vmatprep.subr.bf16.mxu0 %v12245_v30  ;;  %v13140_v10 = vmax.f32 %v11055_v27, 0.0  ;;  %v4907_v33 = vunpack.c.h.b16 %v4892_v57  ;;  %v4893_v16 = vpack.c.bf16 %v4878_v43, %v4872_v46  ;;  %v4890_v20 = vmax.f32 %v4888_v53, %v4889_v47  ;;  %v11294_v22 = vpop.xlane.xlu0 %5171  ;;  %v13141_v43 = vld [vmem:[#allocation108_spill] sm:$0xff]  ;;  %v13147_v47 = vld [vmem:[#allocation123_spill] sm:$0xff] }
 0x4f5   :  { %v11280_v6 = vsel %vm4071_vm9, %v13139_v12, -inf  ;;  %6763 = vmatpush3.bf16.msra.mxu0 %v6942_v60  ;;  %6766 = vmatprep.mubr.msk.bf16.mxu0 %vm7049_vm10, %v12245_v30  ;;  %v5638_v54 = vmax.f32 %v11107_v63, 0.0  ;;  %v5635_v36 = vmax.f32 %v11125_v28, 0.0  ;;  %v4906_v8 = vunpack.c.l.b16 %v4892_v57  ;;  %v6945_v63 = vld [vmem:[#allocation5 + $0x8] sm:$0xff]   ;;  %v13142_v57 = vld [vmem:[#allocation114_spill] sm:$0xff] }
 0x4f6   :  { %v5913_v0 = vsel %vm4071_vm9, %v13140_v10, -inf  ;;  %v4883_v27 = vsel %vm4071_vm9, %v4069_v25, -inf  ;;  %6764 = vmatprep.subr.bf16.mxu0 %v12245_v30  ;;  %6770 = vmatprep.subr.bf16.mxu1 %v12245_v30  ;;  %v5576_v37 = vmax.f32 %v11248_v19, 0.0  ;;  %v5639_v3 = vmax.f32 %v5511_v24, 0.0  ;;  %v13143_v26 = vld [vmem:[#allocation116_spill] sm:$0xff]  ;;  %v11308_v25 = vpop.xlane.xlu1 %5384  ;;  %v13144_v19 = vld [vmem:[#allocation145_spill] sm:$0xff] }
 0x4f7   :  { %v5512_v18 = vadd.f32 %v13141_v43, %v9765_v61  ;;  %4922 = vperm.xlu0 %6907, %v4907_v33   ;;  %v4884_v53 = vmax.f32 %v4882_v7, %v4883_v27  ;;  %6771 = vmatpush3.bf16.msra.mxu1 %v6944_v14  ;;  %v5449_v28 = vadd.f32 %v10788_v13, %v9733_v15  ;;  %v4909_v46 = vunpack.c.h.b16 %v4893_v16  ;;  %v13146_v13 = vld [vmem:[#allocation100_spill] sm:$0xff] }
 0x4f8   :  { %v5450_v60 = vadd.f32 %v13142_v57, %v9869_v49  ;;  %v5513_v44 = vadd.f32 %v13143_v26, %v9733_v15  ;;  %4919 = vperm.xlu1 %6908, %v4906_v8   ;;  %6772 = vmatprep.subr.bf16.mxu1 %v12245_v30  ;;  %v5514_v59 = vadd.f32 %v13144_v19, %v9869_v49  ;;  %v11320_v12 = vsel %vm4071_vm9, %v5634_v41, -inf  ;;  %v13148_v10 = vld [vmem:[#allocation144_spill] sm:$0xff]  ;;  %v11327_v27 = vpop.xlane.xlu0 %5183 }
 0x4f9   :  { %v5451_v24 = vadd.f32 %v13145_v56, %v9939_v55  ;;  %v4894_v7 = vpack.c.bf16 %v4890_v20, %v4884_v53  ;;  %6765 = vmatpush3.bf16.msra.mxu0 %v6943_v48  ;;  %6774 = vmatprep.mubr.msk.bf16.mxu1 %vm7049_vm10, %v12245_v30  ;;  %v6077_v14 = vmax.f32 %v13146_v13, %v11280_v6  ;;  %v4908_v43 = vunpack.c.l.b16 %v4893_v16  ;;  %v13151_v56 = vld [vmem:[#allocation142_spill] sm:$0xff] }
 0x4fa   :  { %v13149_v33 = vmax.f32 %v13147_v47, %v13148_v10  ;;  %6778 = vmatprep.subr.bf16.mxu0 %v12245_v30  ;;  %v6094_v20 = vsel %vm4071_vm9, %v5638_v54, -inf  ;;  %v11332_v48 = vsel %vm4071_vm9, %v5635_v36, -inf  ;;  %v6060_v6 = vsel %vm4071_vm9, %v5576_v37, -inf  ;;  %v11338_v16 = vpop.xlane.xlu1 %5174 }
 0x4fb   :  { %v11336_v41 = vsel %vm4071_vm9, %v5639_v3, -inf  ;;  %4928 = vperm.xlu0 %6907, %v4909_v46   ;;  %6773 = vmatpush3.bf16.msra.mxu1 %v6945_v63  ;;  %v5640_v53 = vmax.f32 %v5512_v18, 0.0  ;;  %v5578_v57 = vmax.f32 %v5450_v60, 0.0  ;;  %v5641_v26 = vmax.f32 %v5513_v44, 0.0  ;;  %v13160_v44 = vld [vmem:[#allocation175_spill] sm:$0xff] }
 0x4fc   :  { %v11325_v8 = vmax.f32 %v13149_v33, %v5913_v0  ;;  %v5577_v0 = vmax.f32 %v5449_v28, 0.0  ;;  %4925 = vperm.xlu1 %6908, %v4908_v43   ;;  %6786 = vmatprep.subr.bf16.mxu1 %v12245_v30  ;;  %v5642_v54 = vmax.f32 %v5514_v59, 0.0  ;;  %v5579_v19 = vmax.f32 %v5451_v24, 0.0  ;;  %v11348_v28 = vpop.xlane.xlu0 %5195  ;;  %v13150_v59 = vld [vmem:[#allocation88_spill] sm:$0xff] }
 0x4fd   :  { %v5515_v36 = vadd.f32 %v10886_v58, %v9939_v55  ;;  %v4911_v37 = vunpack.c.h.b16 %v4894_v7  ;;  %v6095_v63 = vmax.f32 %v11320_v12, %v6094_v20  ;;  %v5516_v18 = vadd.f32 %v10901_v51, %v9765_v61 }
 0x4fe   :  { %v4910_v60 = vunpack.c.l.b16 %v4894_v7  ;;  %v13152_v24 = vmax.f32 %v13150_v59, %v13151_v56  ;;  %v6101_v58 = vmax.f32 %v11332_v48, %v11336_v41  ;;  %v5517_v13 = vadd.f32 %v10954_v29, %v9733_v15  ;;  %v11365_v33 = vpop.xlane.xlu1 %5186  ;;  %v13153_v41 = vld [vmem:[#allocation49_spill] sm:$0xff] }
 0x4ff   :  { %4934 = vperm.xlu0 %6907, %v4911_v37   ;;  %v6084_v51 = vsel %vm4071_vm9, %v5640_v53, -inf  ;;  %v6066_v47 = vsel %vm4071_vm9, %v5577_v0, -inf  ;;  %v6072_v7 = vsel %vm4071_vm9, %v5578_v57, -inf  ;;  %v6090_v10 = vsel %vm4071_vm9, %v5641_v26, -inf }
 0x500   :  { %v11355_v46 = vmax.f32 %v13152_v24, %v6060_v6  ;;  %4931 = vperm.xlu1 %6908, %v4910_v60   ;;  %v6096_v43 = vsel %vm4071_vm9, %v5642_v54, -inf  ;;  %v6078_v20 = vsel %vm4071_vm9, %v5579_v19, -inf  ;;  %v5643_v6 = vmax.f32 %v5515_v36, 0.0  ;;  %v11374_v57 = vpop.xlane.xlu0 %5363  ;;  %v13156_v60 = vld [vmem:[#allocation36_spill] sm:$0xff]  ;;  %v13158_v24 = vld [vmem:[#allocation43_spill] sm:$0xff] }
 0x501   :  { %v5741_v59 = vunpack.c.l.b16 %v13153_v41  ;;  %v5644_v29 = vmax.f32 %v5516_v18, 0.0  ;;  %v5455_v53 = vadd.f32 %v10991_v9, %v9939_v55  ;;  %v5519_v0 = vadd.f32 %v11023_v21, %v9939_v55  ;;  %v13155_v9 = vld [vmem:[#allocation22_spill] sm:$0xff] }
 0x502   :  { %v5742_v26 = vunpack.c.h.b16 %v13153_v41  ;;  %v13154_v37 = vmax.f32 %v10898_v4, %v10943_v23  ;;  %v5454_v19 = vadd.f32 %v10934_v38, %v9869_v49  ;;  %v5645_v36 = vmax.f32 %v5517_v13, 0.0  ;;  %v13161_v4 = vld [vmem:[#allocation177_spill] sm:$0xff]  ;;  %v11397_v38 = vpop.xlane.xlu1 %5198 }
 0x503   :  { %v5518_v18 = vadd.f32 %v10966_v45, %v9869_v49  ;;  %5750 = vperm.xlu0 %6907, %v5741_v59   ;;  %v13157_v56 = vmax.f32 %v13155_v9, %v13156_v60  ;;  %v13159_v30 = vmax.f32 %v10658_v52, %v13158_v24  ;;  %v13162_v23 = vmax.f32 %v13160_v44, %v13161_v4  ;;  %v13163_v59 = vld [vmem:[#allocation107_spill] sm:$0xff] }
 0x504   :  { %v6085_v54 = vmax.f32 %v13154_v37, %v6084_v51  ;;  %v11395_v37 = vmax.f32 %v6095_v63, %v6096_v43  ;;  %5753 = vperm.xlu1 %6908, %v5742_v26   ;;  %v6079_v45 = vmax.f32 %v6077_v14, %v6078_v20  ;;  %v6063_v13 = vmax.f32 %v11355_v46, %v11169_v32  ;;  %v11406_v44 = vpop.xlane.xlu0 %5375  ;;  %v13164_v32 = vld [vmem:[#allocation106_spill] sm:$0xff]  ;;  %v13165_v20 = vld [vmem:[#allocation89_spill] sm:$0xff]  ;;  %v13169_v4 = vld [vmem:[#allocation131_spill] sm:$0xff] }
 0x505   :  { %v6067_v21 = vmax.f32 %v13157_v56, %v6066_v47  ;;  %v11390_v41 = vmax.f32 %v13159_v30, %v6072_v7  ;;  %v6091_v51 = vmax.f32 %v13162_v23, %v6090_v10  ;;  %v6102_v47 = vsel %vm4071_vm9, %v5643_v6, -inf  ;;  %v13168_v56 = vld [vmem:[#allocation112_spill] sm:$0xff] }
 0x506   :  { %v5746_v9 = vunpack.c.h.b16 %v13163_v59  ;;  %v11404_v52 = vsel %vm4071_vm9, %v5644_v29, -inf  ;;  %v5583_v30 = vmax.f32 %v5455_v53, 0.0  ;;  %v5647_v7 = vmax.f32 %v5519_v0, 0.0  ;;  %v13166_v29 = vld [vmem:[#allocation102_spill] sm:$0xff] }
 0x507   :  { %v5745_v63 = vunpack.c.l.b16 %v13163_v59  ;;  %v5582_v10 = vmax.f32 %v5454_v19, 0.0  ;;  %v11410_v43 = vsel %vm4071_vm9, %v5645_v36, -inf  ;;  %v5646_v14 = vmax.f32 %v5518_v18, 0.0  ;;  %v13167_v0 = vld [vmem:[#allocation110_spill] sm:$0xff]  ;;  %v11422_v36 = vpop.xlane.xlu1 %5366 }
 0x508   :  { %v5520_v46 = vadd.f32 %v13164_v32, %v9765_v61  ;;  %5765 = vperm.xlu0 %6907, %v5746_v9   ;;  %v5458_v6 = vadd.f32 %v13165_v20, %v9869_v49  ;;  %v5521_v53 = vadd.f32 %v13166_v29, %v9733_v15  ;;  %v5522_v26 = vadd.f32 %v13167_v0, %v9869_v49 }
 0x509   :  { %v5459_v19 = vadd.f32 %v11129_v5, %v9939_v55  ;;  %5762 = vperm.xlu1 %6908, %v5745_v63   ;;  %v6103_v18 = vmax.f32 %v6101_v58, %v6102_v47  ;;  %v6087_v60 = vmax.f32 %v6085_v54, %v11404_v52  ;;  %v5523_v24 = vadd.f32 %v13168_v56, %v9939_v55  ;;  %v11435_v5 = vpop.xlane.xlu0 %5387  ;;  %v13171_v63 = vld [vmem:[#allocation14_spill] sm:$0xff] }
 0x50a   :  { %v5747_v23 = vunpack.c.l.b16 %v13169_v4  ;;  %v6069_v59 = vmax.f32 %v6067_v21, %v11203_v39  ;;  %v11430_v9 = vsel %vm4071_vm9, %v5583_v30, -inf  ;;  %v11433_v32 = vsel %vm4071_vm9, %v5647_v7, -inf  ;;  %13170 = vst [vmem:[#allocation148_spill] sm:$0xff] %v11435_v5 }
 0x50b   :  { %v5743_v20 = vunpack.c.l.b16 %v13171_v63  ;;  %v11439_v58 = vsel %vm4071_vm9, %v5582_v10, -inf  ;;  %v6093_v54 = vmax.f32 %v6091_v51, %v11410_v43  ;;  %v11443_v47 = vsel %vm4071_vm9, %v5646_v14, -inf  ;;  %v11445_v7 = vpop.xlane.xlu1 %5378 }
 0x50c   :  { %v5648_v29 = vmax.f32 %v5520_v46, 0.0  ;;  %5768 = vperm.xlu0 %6907, %v5747_v23   ;;  %v5586_v39 = vmax.f32 %v5458_v6, 0.0  ;;  %v5649_v21 = vmax.f32 %v5521_v53, 0.0  ;;  %v5650_v30 = vmax.f32 %v5522_v26, 0.0 }
 0x50d   :  { %v5587_v0 = vmax.f32 %v5459_v19, 0.0  ;;  %5756 = vperm.xlu1 %6908, %v5743_v20   ;;  %v6081_v56 = vmax.f32 %v6079_v45, %v11430_v9  ;;  %v6105_v3 = vmax.f32 %v6103_v18, %v11433_v32  ;;  %v5651_v10 = vmax.f32 %v5523_v24, 0.0  ;;  %v11462_v26 = vpop.xlane.xlu0 %5201 }
 0x50e   :  { %v5748_v5 = vunpack.c.h.b16 %v13169_v4  ;;  %v13172_v51 = vmax.f32 %v11090_v1, %v11320_v12  ;;  %v13173_v14 = vmax.f32 %v11325_v8, %v11332_v48  ;;  %v11458_v6 = vpack.c.bf16 %v6069_v59, %v6063_v13  ;;  %v13174_v4 = vld [vmem:[#allocation21_spill] sm:$0xff] }
 0x50f   :  { %v5468_v53 = vadd.f32 %v11190_v17, %v9765_v61  ;;  %v5744_v45 = vunpack.c.h.b16 %v13171_v63  ;;  %v6075_v19 = vmax.f32 %v11390_v41, %v11439_v58  ;;  %v11467_v18 = vpack.c.bf16 %v6093_v54, %v6087_v60  ;;  %v11486_v13 = vpop.xlane.xlu1 %5390 }
 0x510   :  { %v11456_v46 = vpack.c.bf16 %v13173_v14, %v13172_v51  ;;  %v6099_v1 = vmax.f32 %v11395_v37, %v11443_v47  ;;  %v11472_v12 = vsel %vm4071_vm9, %v5648_v29, -inf  ;;  %5771 = vperm.xlu0 %6907, %v5748_v5   ;;  %v11475_v8 = vsel %vm4071_vm9, %v5586_v39, -inf  ;;  %v13176_v51 = vld [vmem:[#allocation98_spill] sm:$0xff] }
 0x511   :  { %v11478_v17 = vsel %vm4071_vm9, %v5649_v21, -inf  ;;  %v11481_v48 = vsel %vm4071_vm9, %v5650_v30, -inf  ;;  %v11484_v41 = vsel %vm4071_vm9, %v5587_v0, -inf  ;;  %5759 = vperm.xlu1 %6908, %v5744_v45   ;;  %v11488_v37 = vpack.c.bf16 %v6081_v56, %v6075_v19  ;;  %v11500_v20 = vpop.xlane.xlu0 %5393  ;;  %v13175_v0 = vld [vmem:[#allocation176_spill] sm:$0xff] }
 0x512   :  { %v11490_v60 = vpack.c.bf16 %v6105_v3, %v6099_v1  ;;  %v11493_v24 = vsel %vm4071_vm9, %v5651_v10, -inf  ;;  %v5931_v23 = vunpack.c.h.b16 %v13174_v4  ;;  %v6272_v59 = vmax.f32 %v11404_v52, %v11472_v12 }
 0x513   :  { %v5596_v5 = vmax.f32 %v5468_v53, 0.0  ;;  %v5524_v63 = vadd.f32 %v11217_v35, %v9765_v61  ;;  %v5930_v54 = vunpack.c.l.b16 %v13174_v4  ;;  %v6278_v29 = vmax.f32 %v11410_v43, %v11478_v17  ;;  %v11515_v30 = vpop.xlane.xlu1 %5204 }
 0x514   :  { %5942 = vperm.xlu0 %6907, %v5931_v23   ;;  %v5525_v21 = vadd.f32 %v11262_v50, %v9733_v15  ;;  %v5935_v56 = vunpack.c.h.b16 %v13175_v0  ;;  %v5934_v43 = vunpack.c.l.b16 %v13175_v0  ;;  %v5936_v10 = vunpack.c.l.b16 %v11456_v46 }
 0x515   :  { %5939 = vperm.xlu1 %6908, %v5930_v54   ;;  %v5932_v14 = vunpack.c.l.b16 %v13176_v51  ;;  %v5937_v53 = vunpack.c.h.b16 %v11456_v46  ;;  %v5933_v45 = vunpack.c.h.b16 %v13176_v51  ;;  %v11524_v19 = vsel %vm4071_vm9, %v5596_v5, -inf  ;;  %v11530_v17 = vpop.xlane.xlu0 %5207  ;;  %v13178_v51 = vld [vmem:[#allocation83_spill] sm:$0xff] }
 0x516   :  { %v5652_v1 = vmax.f32 %v5524_v63, 0.0  ;;  %v5469_v50 = vadd.f32 %v11229_v62, %v9733_v15  ;;  %v5529_v12 = vadd.f32 %v11283_v42, %v9733_v15  ;;  %v6120_v4 = vunpack.c.h.b16 %v11458_v6 }
 0x517   :  { %v13177_v54 = vlaneseq  ;;  %v5528_v5 = vadd.f32 %v11242_v11, %v9765_v61  ;;  %v5653_v63 = vmax.f32 %v5525_v21, 0.0  ;;  %v11538_v62 = vpop.xlane.xlu1 %5396  ;;  %v5532_v35 = vadd.f32 %v11270_v2, %v9765_v61 }
 0x518   :  { %5954 = vperm.xlu0 %6907, %v5935_v56   ;;  %v6273_v11 = vsel %vm4071_vm9, %v5652_v1, -inf  ;;  %v5597_v21 = vmax.f32 %v5469_v50, 0.0  ;;  %v5463_v46 = vadd.f32 %v11338_v16, %v9939_v55  ;;  %v5467_v1 = vadd.f32 %v11365_v33, %v9939_v55 }
 0x519   :  { %v4230_v0 = vand.u32 127, %v13177_v54  ;;  %5951 = vperm.xlu1 %6908, %v5934_v43   ;;  %v5657_v43 = vmax.f32 %v5529_v12, 0.0  ;;  %v11551_v42 = vpop.xlane.xlu0 %5399  ;;  %v5656_v2 = vmax.f32 %v5528_v5, 0.0  ;;  %v6279_v39 = vsel %vm4071_vm9, %v5653_v63, -inf }
 0x51a   :  { %v5462_v54 = vadd.f32 %v11294_v22, %v9869_v49  ;;  %v6274_v16 = vmax.f32 %v6272_v59, %v6273_v11  ;;  %v5660_v12 = vmax.f32 %v5532_v35, 0.0  ;;  %v11567_v5 = vsel %vm4071_vm9, %v5597_v21, -inf }
 0x51b   :  { %v4235_v56 = vadd.s32 4294967288, %v4230_v0  ;;  %v4249_v3 = vadd.s32 4294967272, %v4230_v0  ;;  %v4242_v52 = vadd.s32 4294967280, %v4230_v0  ;;  %v11559_v50 = vpop.xlane.xlu1 %5210  ;;  %v11564_v23 = vsub.s32 %v4230_v0, %v13178_v51 }
 0x51c   :  { %5957 = vperm.xlu0 %6907, %v5936_v10   ;;  %v5533_v10 = vadd.f32 %v11308_v25, %v9733_v15  ;;  %v11570_v63 = vsel %vm4071_vm9, %v5657_v43, -inf  ;;  %v5466_v22 = vadd.f32 %v11327_v27, %v9869_v49  ;;  %v5591_v33 = vmax.f32 %v5463_v46, 0.0 }
 0x51d   :  { %5945 = vperm.xlu1 %6908, %v5932_v14   ;;  %v11574_v14 = vpop.xlane.xlu0 %5213  ;;  %v6280_v59 = vmax.f32 %v6278_v29, %v6279_v39  ;;  %v11577_v35 = vsub.s32 %v4235_v56, %v13178_v51  ;;  %v11580_v25 = vsub.s32 %v4249_v3, %v13178_v51  ;;  %v11583_v0 = vsub.s32 %v4242_v52, %v13178_v51 }
 0x51e   :  { %v11586_v11 = vsel %vm4071_vm9, %v5656_v2, -inf  ;;  %v5590_v21 = vmax.f32 %v5462_v54, 0.0  ;;  %v5595_v43 = vmax.f32 %v5467_v1, 0.0  ;;  %v5526_v27 = vadd.f32 %v11374_v57, %v9869_v49 }
 0x51f   :  { %v11590_v29 = vpop.xlane.xlu1 %5402  ;;  %v11595_v3 = vsel %vm4071_vm9, %v5660_v12, -inf  ;;  %v6282_v52 = vmax.f32 %v6280_v59, %v11570_v63  ;;  %v5594_v46 = vmax.f32 %v5466_v22, 0.0  ;;  %v6267_v51 = vsel %vm4071_vm9, %v5591_v33, -inf }
 0x520   :  { %5960 = vperm.xlu0 %6907, %v5937_v53   ;;  %v5661_v53 = vmax.f32 %v5533_v10, 0.0  ;;  %v5470_v56 = vadd.f32 %v11348_v28, %v9869_v49  ;;  %v5527_v57 = vadd.f32 %v11422_v36, %v9939_v55  ;;  %v6276_v54 = vmax.f32 %v6274_v16, %v11586_v11 }
 0x521   :  { %5948 = vperm.xlu1 %6908, %v5933_v45   ;;  %v11603_v45 = vpop.xlane.xlu0 %5405  ;;  %v5471_v2 = vadd.f32 %v11397_v38, %v9939_v55  ;;  %v5530_v1 = vadd.f32 %v11406_v44, %v9869_v49  ;;  %v6309_v12 = vunpack.c.h.b16 %v11258_v40  ;;  %v6261_v10 = vsel %vm4071_vm9, %v5590_v21, -inf }
 0x522   :  { %v11613_v28 = vsel %vm4071_vm9, %v5595_v43, -inf  ;;  %v5654_v22 = vmax.f32 %v5526_v27, 0.0  ;;  %v5531_v36 = vadd.f32 %v11445_v7, %v9939_v55  ;;  %v13179_v16 = vunpack.c.l.b16 %v11458_v6 }
 0x523   :  { %v5217_v33 = vpop.xlane.xlu1 %5216  ;;  %v11621_v44 = vpack.c.bf16 %v6282_v52, %v6276_v54  ;;  %v6308_v21 = vunpack.c.l.b16 %v11258_v40  ;;  %v11628_v43 = vsel %vm4071_vm9, %v5661_v53, -inf  ;;  %v11631_v7 = vsel %vm4071_vm9, %v5594_v46, -inf  ;;  %v13183_v53 = vld [vmem:[#allocation148_spill] sm:$0xff] }
 0x524   :  { %6131 = vperm.xlu0 %6907, %v6120_v4   ;;  %v13180_v4 = vmax.f32 %v11430_v9, %v11484_v41  ;;  %v5598_v6 = vmax.f32 %v5470_v56, 0.0  ;;  %v5655_v27 = vmax.f32 %v5527_v57, 0.0  ;;  %v5599_v54 = vmax.f32 %v5471_v2, 0.0 }
 0x525   :  { %6128 = vperm.xlu1 %6908, %v13179_v16   ;;  %v13181_v16 = vmax.f32 %v11439_v58, %v11475_v8  ;;  %v5658_v39 = vmax.f32 %v5530_v1, 0.0  ;;  %v13182_v9 = vunpack.c.h.b16 %v11467_v18  ;;  %v6285_v41 = vsel %vm4071_vm9, %v5654_v22, -inf  ;;  %v11644_v57 = vpop.xlane.xlu0 %5219 }
 0x526   :  { %v6268_v59 = vmax.f32 %v13180_v4, %v6267_v51  ;;  %v5534_v51 = vadd.f32 %v13183_v53, %v9869_v49  ;;  %v5659_v46 = vmax.f32 %v5531_v36, 0.0  ;;  %v5472_v56 = vadd.f32 %v11462_v26, %v9765_v61 }
 0x527   :  { %v6262_v38 = vmax.f32 %v13181_v16, %v6261_v10  ;;  %v13184_v58 = vunpack.c.l.b16 %v11467_v18  ;;  %v5409_v8 = vpop.xlane.xlu1 %5408  ;;  %v6467_v2 = vmax.f32 %v11570_v63, %v11628_v43  ;;  %v5535_v10 = vadd.f32 %v11486_v13, %v9939_v55 }
 0x528   :  { %v6270_v52 = vmax.f32 %v6268_v59, %v11613_v28  ;;  %6143 = vperm.xlu0 %6907, %v13182_v9   ;;  %v6313_v22 = vunpack.c.h.b16 %v11621_v44  ;;  %v11655_v36 = vsel %vm4071_vm9, %v5598_v6, -inf  ;;  %v6291_v26 = vsel %vm4071_vm9, %v5655_v27, -inf }
 0x529   :  { %6140 = vperm.xlu1 %6908, %v13184_v58   ;;  %v6264_v1 = vmax.f32 %v6262_v38, %v11631_v7  ;;  %v5473_v18 = vadd.f32 %v11515_v30, %v9733_v15  ;;  %v6312_v4 = vunpack.c.l.b16 %v11621_v44  ;;  %v13185_v38 = vmax.f32 %v11443_v47, %v11481_v48 }
 0x52a   :  { %v11667_v13 = vsel %vm4071_vm9, %v5599_v54, -inf  ;;  %v11670_v9 = vsel %vm4071_vm9, %v5658_v39, -inf  ;;  %v13186_v6 = vunpack.c.l.b16 %v11490_v60  ;;  %v5662_v27 = vmax.f32 %v5534_v51, 0.0 }
 0x52b   :  { %v11661_v59 = vpack.c.bf16 %v6270_v52, %v6264_v1  ;;  %v6286_v16 = vmax.f32 %v13185_v38, %v6285_v41  ;;  %v11675_v30 = vsel %vm4071_vm9, %v5659_v46, -inf  ;;  %v5600_v53 = vmax.f32 %v5472_v56, 0.0  ;;  %v5223_v48 = vpop.xlane.xlu1 %5222  ;;  %v5412_v38 = vpop.xlane.xlu0 %5411 }
 0x52c   :  { %6146 = vperm.xlu0 %6907, %v13186_v6   ;;  %v5536_v52 = vadd.f32 %v11500_v20, %v9765_v61  ;;  %v13187_v47 = vunpack.c.l.b16 %v11488_v37  ;;  %v13188_v54 = vmax.f32 %v11433_v32, %v11493_v24  ;;  %v5663_v41 = vmax.f32 %v5535_v10, 0.0 }
 0x52d   :  { %v5537_v58 = vadd.f32 %v11538_v62, %v9733_v15  ;;  %v5477_v51 = vadd.f32 %v5217_v33, %v9733_v15  ;;  %v6449_v46 = vmax.f32 %v11631_v7, %v11655_v36  ;;  %v6455_v20 = vmax.f32 %v11613_v28, %v11667_v13 }
 0x52e   :  { %6134 = vperm.xlu1 %6908, %v13187_v47   ;;  %v6292_v39 = vmax.f32 %v13188_v54, %v6291_v26  ;;  %v5601_v56 = vmax.f32 %v5473_v18, 0.0  ;;  %v5476_v1 = vadd.f32 %v11574_v14, %v9765_v61  ;;  %v6288_v32 = vmax.f32 %v6286_v16, %v11670_v9 }
 0x52f   :  { %v13189_v10 = vunpack.c.h.b16 %v11490_v60  ;;  %v6310_v62 = vunpack.c.l.b16 %v11661_v59  ;;  %v11700_v26 = vsel %vm4071_vm9, %v5662_v27, -inf  ;;  %v6438_v18 = vsel %vm4071_vm9, %v5600_v53, -inf  ;;  %v5415_v47 = vpop.xlane.xlu1 %5414  ;;  %v11716_v33 = vpop.permute.xlu0 %4206 }
 0x530   :  { %v6294_v24 = vmax.f32 %v6292_v39, %v11675_v30  ;;  %v5664_v6 = vmax.f32 %v5536_v52, 0.0  ;;  %v5474_v14 = vadd.f32 %v11530_v17, %v9869_v49  ;;  %v13190_v16 = vunpack.c.h.b16 %v11488_v37 }
 0x531   :  { %6149 = vperm.xlu0 %6907, %v13189_v10   ;;  %v11708_v60 = vsel %vm4071_vm9, %v5663_v41, -inf  ;;  %v5665_v54 = vmax.f32 %v5537_v58, 0.0  ;;  %v5538_v39 = vadd.f32 %v11551_v42, %v9869_v49  ;;  %v5605_v10 = vmax.f32 %v5477_v51, 0.0 }
 0x532   :  { %6137 = vperm.xlu1 %6908, %v13190_v16   ;;  %v6444_v27 = vsel %vm4071_vm9, %v5601_v56, -inf  ;;  %v5475_v53 = vadd.f32 %v11559_v50, %v9939_v55  ;;  %v5604_v52 = vmax.f32 %v5476_v1, 0.0  ;;  %v5541_v17 = vadd.f32 %v5409_v8, %v9733_v15 }
 0x533   :  { %v6473_v37 = vmax.f32 %v11670_v9, %v11700_v26  ;;  %v11720_v41 = vpack.c.bf16 %v6294_v24, %v6288_v32  ;;  %v5539_v58 = vadd.f32 %v11590_v29, %v9939_v55  ;;  %v5540_v42 = vadd.f32 %v11603_v45, %v9765_v61  ;;  %v4210_v29 = vpop.permute.xlu1 %4209  ;;  %v11743_v24 = vpop.permute.xlu0 %4215 }
 0x534   :  { %v13191_v50 = vmax.f32 %v11222_v34, %v11524_v19  ;;  %v6479_v8 = vmax.f32 %v11675_v30, %v11708_v60  ;;  %v6462_v9 = vsel %vm4071_vm9, %v5664_v6, -inf  ;;  %v5602_v51 = vmax.f32 %v5474_v14, 0.0 }
 0x535   :  { %6320 = vperm.xlu0 %6907, %v6309_v12   ;;  %v13192_v61 = vmax.f32 %v11234_v31, %v11567_v5  ;;  %v6468_v12 = vsel %vm4071_vm9, %v5665_v54, -inf  ;;  %v5666_v56 = vmax.f32 %v5538_v39, 0.0  ;;  %v6446_v34 = vsel %vm4071_vm9, %v5605_v10, -inf }
 0x536   :  { %v6439_v15 = vmax.f32 %v13191_v50, %v6438_v18  ;;  %6317 = vperm.xlu1 %6908, %v6308_v21   ;;  %v5603_v19 = vmax.f32 %v5475_v53, 0.0  ;;  %v6440_v1 = vsel %vm4071_vm9, %v5604_v52, -inf  ;;  %v5669_v30 = vmax.f32 %v5541_v17, 0.0 }
 0x537   :  { %v6445_v45 = vmax.f32 %v13192_v61, %v6444_v27  ;;  %v5543_v32 = vadd.f32 %v5415_v47, %v9939_v55  ;;  %v5667_v40 = vmax.f32 %v5539_v58, 0.0  ;;  %v5668_v21 = vmax.f32 %v5540_v42, 0.0  ;;  %v4213_v6 = vpop.permute.xlu1 %4212  ;;  %v4222_v60 = vpop.permute.xlu0 %4221 }
 0x538   :  { %v5478_v31 = vadd.f32 %v11644_v57, %v9869_v49  ;;  %v5479_v5 = vadd.f32 %v5223_v48, %v9939_v55  ;;  %v5542_v18 = vadd.f32 %v5412_v38, %v9869_v49  ;;  %v6314_v14 = vunpack.c.l.b16 %v11720_v41 }
 0x539   :  { %6332 = vperm.xlu0 %6907, %v6313_v22   ;;  %v6447_v26 = vmax.f32 %v6445_v45, %v6446_v34  ;;  %v6315_v16 = vunpack.c.h.b16 %v11720_v41  ;;  %v13193_v47 = vmax.f32 %v11586_v11, %v11595_v3  ;;  %v6450_v55 = vsel %vm4071_vm9, %v5602_v51, -inf }
 0x53a   :  { %6329 = vperm.xlu1 %6908, %v6312_v4   ;;  %v6469_v22 = vmax.f32 %v6467_v2, %v6468_v12  ;;  %v6474_v49 = vsel %vm4071_vm9, %v5666_v56, -inf  ;;  %v6456_v44 = vsel %vm4071_vm9, %v5603_v19, -inf  ;;  %v6441_v4 = vmax.f32 %v6439_v15, %v6440_v1 }
 0x53b   :  { %v6463_v57 = vmax.f32 %v13193_v47, %v6462_v9  ;;  %v6470_v48 = vsel %vm4071_vm9, %v5669_v30, -inf  ;;  %v5671_v38 = vmax.f32 %v5543_v32, 0.0  ;;  %v6480_v11 = vsel %vm4071_vm9, %v5667_v40, -inf  ;;  %v4219_v27 = vpop.permute.xlu1 %4218 }
 0x53c   :  { %v6464_v3 = vsel %vm4071_vm9, %v5668_v21, -inf  ;;  %v5606_v54 = vmax.f32 %v5478_v31, 0.0  ;;  %v5607_v39 = vmax.f32 %v5479_v5, 0.0  ;;  %v6484_v63 = vpack.c.bf16 %v6447_v26, %v6441_v4 }
 0x53d   :  { %6335 = vperm.xlu0 %6907, %v6314_v14   ;;  %v5670_v43 = vmax.f32 %v5542_v18, 0.0  ;;  %v4234_v2 = vrot.slane %v11716_v33, %v11564_v23  ;;  %v4239_v10 = vrot.slane %v4210_v29, %v11577_v35  ;;  %v6451_v53 = vmax.f32 %v6449_v46, %v6450_v55  ;;  %v6946_v18 = vld [vmem:[#allocation5 + $0x40] sm:$0xff]  }
 0x53e   :  { %6323 = vperm.xlu1 %6908, %v6310_v62   ;;  %v6475_v52 = vmax.f32 %v6473_v37, %v6474_v49  ;;  %v6471_v17 = vmax.f32 %v6469_v22, %v6470_v48  ;;  %v4246_v41 = vrot.slane %v4213_v6, %v11583_v0  ;;  %v6457_v58 = vmax.f32 %v6455_v20, %v6456_v44  ;;  %v4228_v62 = vpop.permute.xlu0 %4227  ;;  %v6947_v22 = vld [vmem:[#allocation5 + $0x48] sm:$0xff]  }
 0x53f   :  { %v6482_v33 = vsel %vm4071_vm9, %v5671_v38, -inf  ;;  %v4263_v42 = vrot.slane %v4222_v60, %v11577_v35  ;;  %v4259_v50 = vrot.slane %v4219_v27, %v11564_v23  ;;  %v6481_v15 = vmax.f32 %v6479_v8, %v6480_v11  ;;  %v4225_v13 = vpop.permute.xlu1 %4224 }
 0x540   :  { %v6465_v9 = vmax.f32 %v6463_v57, %v6464_v3  ;;  %v6452_v7 = vsel %vm4071_vm9, %v5606_v54, -inf  ;;  %v6458_v36 = vsel %vm4071_vm9, %v5607_v39, -inf  ;;  %v6476_v46 = vsel %vm4071_vm9, %v5670_v43, -inf }
 0x541   :  { %6338 = vperm.xlu0 %6907, %v6315_v16   ;;  %v4241_v37 = vsel %vm4240_vm8, %v4239_v10, %v4234_v2  ;;  %v13194_v28 = vunpack.c.h.b16 %v11661_v59  ;;  %v6498_v20 = vunpack.c.h.b16 %v6484_v63  ;;  %v6497_v51 = vunpack.c.l.b16 %v6484_v63 }
 0x542   :  { %v6486_v29 = vpack.c.bf16 %v6471_v17, %v6465_v9  ;;  %v6483_v61 = vmax.f32 %v6481_v15, %v6482_v33  ;;  %v4248_v8 = vsel %vm4247_vm11, %v4246_v41, %v4241_v37  ;;  %v4268_v45 = vrot.slane %v4225_v13, %v11583_v0  ;;  %v4351_v1 = vpop.permute.xlu0 %4350  ;;  %v6948_v9 = vld [vmem:[#allocation5 + $0x60] sm:$0xff]   ;;  %v6949_v37 = vld [vmem:[#allocation5 + $0x68] sm:$0xff]  }
 0x543   :  { %6326 = vperm.xlu1 %6908, %v13194_v28   ;;  %v6459_v12 = vmax.f32 %v6457_v58, %v6458_v36  ;;  %v4253_v56 = vrot.slane %v11743_v24, %v11580_v25  ;;  %v4264_v34 = vsel %vm4240_vm8, %v4263_v42, %v4259_v50  ;;  %v4273_v19 = vrot.slane %v4228_v62, %v11580_v25  ;;  %v4348_v31 = vpop.permute.xlu1 %4347 }
 0x544   :  { %v6477_v59 = vmax.f32 %v6475_v52, %v6476_v46  ;;  %v4269_v30 = vsel %vm4247_vm11, %v4268_v45, %v4264_v34  ;;  %v6453_v32 = vmax.f32 %v6451_v53, %v6452_v7  ;;  %v6502_v24 = vunpack.c.h.b16 %v6486_v29 }
 0x545   :  { %6509 = vperm.xlu0 %6907, %v6498_v20   ;;  %v4255_v40 = vsel %vm4254_vm12, %v4253_v56, %v4248_v8  ;;  %v4274_v21 = vsel %vm4254_vm12, %v4273_v19, %v4269_v30  ;;  %v6501_v47 = vunpack.c.l.b16 %v6486_v29  ;;  %v13195_v49 = vmov 0.0  }
 0x546   :  { %v6487_v5 = vpack.c.bf16 %v6483_v61, %v6477_v59  ;;  %v4276_v26 = vsel %vm4275_vm13, %v4274_v21, %v4255_v40  ;;  %v6485_v6 = vpack.c.bf16 %v6459_v12, %v6453_v32  ;;  %v4357_v16 = vpop.permute.xlu0 %4356  ;;  %v4377_v48 = vrot.slane %v4351_v1, %v11577_v35 }
 0x547   :  { %6506 = vperm.xlu1 %6908, %v6497_v51   ;;  %v4277_v14 = vpack.c.b16 %v4276_v26, %v4276_v26  ;;  %v4354_v57 = vpop.permute.xlu1 %4353  ;;  %v4373_v38 = vrot.slane %v4348_v31, %v11564_v23  ;;  %v4387_v52 = vrot.slane %v4357_v16, %v11580_v25  ;;  %v6951_v16 = vld [vmem:[#allocation5 + $0x88] sm:$0xff]  }
 0x548   :  { %v6503_v55 = vunpack.c.l.b16 %v6487_v5  ;;  %v6499_v4 = vunpack.c.l.b16 %v6485_v6  ;;  %v4382_v11 = vrot.slane %v4354_v57, %v11583_v0  ;;  %v6504_v3 = vunpack.c.h.b16 %v6487_v5 }
 0x549   :  { %6521 = vperm.xlu0 %6907, %v6502_v24   ;;  %6767 = vmatmul.mubr.msk.bf16.vlgmr.msra.gmra.mrb[12].mxu0 %vm4290_vm14, %v4277_v14  ;;  %v6500_v43 = vunpack.c.h.b16 %v6485_v6  ;;  %v4378_v2 = vsel %vm4240_vm8, %v4377_v48, %v4373_v38  ;;  %v6950_v24 = vld [vmem:[#allocation5 + $0x80] sm:$0xff]  }
 0x54a   :  { %6779 = vmatpush3.bf16.msra.mxu0 %v6946_v18  ;;  %6782 = vmatprep.mubr.msk.bf16.mxu0 %vm7049_vm10, %v13195_v49  ;;  %v4363_v44 = vpop.permute.xlu0 %4362  ;;  %v4383_v27 = vsel %vm4247_vm11, %v4382_v11, %v4378_v2 }
 0x54b   :  { %6518 = vperm.xlu1 %6908, %v6501_v47   ;;  %6780 = vmatprep.subr.bf16.mxu0 %v13195_v49  ;;  %v4360_v60 = vpop.permute.xlu1 %4359  ;;  %v4396_v54 = vrot.slane %v4363_v44, %v11577_v35  ;;  %v4388_v42 = vsel %vm4254_vm12, %v4387_v52, %v4383_v27 }
 0x54c   :  { %v4392_v39 = vrot.slane %v4360_v60, %v11564_v23 }
 0x54d   :  { %6524 = vperm.xlu0 %6907, %v6503_v55  }
 0x54e   :  { %6781 = vmatpush3.bf16.msra.mxu0 %v6947_v22  ;;  %v4369_v63 = vpop.permute.xlu0 %4368  ;;  %v4397_v17 = vsel %vm4240_vm8, %v4396_v54, %v4392_v39 }
 0x54f   :  { %6512 = vperm.xlu1 %6908, %v6499_v4   ;;  %6794 = vmatprep.subr.bf16.mxu0 %v13195_v49  ;;  %v4366_v10 = vpop.permute.xlu1 %4365  ;;  %v4406_v41 = vrot.slane %v4369_v63, %v11580_v25 }
 0x550   :  { %v4401_v53 = vrot.slane %v4366_v10, %v11583_v0 }
 0x551   :  { %6527 = vperm.xlu0 %6907, %v6504_v3  }
 0x552   :  { %v4539_v58 = vpop.permute.xlu0 %4538  ;;  %v4402_v33 = vsel %vm4247_vm11, %v4401_v53, %v4397_v17 }
 0x553   :  { %6515 = vperm.xlu1 %6908, %v6500_v43   ;;  %v4407_v50 = vsel %vm4254_vm12, %v4406_v41, %v4402_v33  ;;  %v4536_v62 = vpop.permute.xlu1 %4535  ;;  %v4565_v13 = vrot.slane %v4539_v58, %v11577_v35  ;;  %v6952_v41 = vld [vmem:[#allocation5 + $0x10] sm:$0xff]  }
 0x554   :  { %v4408_v15 = vsel %vm4275_vm13, %v4407_v50, %v4388_v42  ;;  %v4561_v20 = vrot.slane %v4536_v62, %v11564_v23  ;;  %v6953_v50 = vld [vmem:[#allocation5 + $0x18] sm:$0xff]  }
 0x555   :  { %v4409_v7 = vpack.c.b16 %v4408_v15, %v4408_v15 }
 0x556   :  { %v4545_v36 = vpop.permute.xlu0 %4544  ;;  %v4566_v12 = vsel %vm4240_vm8, %v4565_v13, %v4561_v20 }
 0x557   :  { %6775 = vmatmul.mubr.msk.bf16.vlgmr.msra.gmra.mrb[12].mxu1 %vm4290_vm14, %v4409_v7  ;;  %v4542_v46 = vpop.permute.xlu1 %4541  ;;  %v4575_v1 = vrot.slane %v4545_v36, %v11580_v25 }
 0x558   :  { %6787 = vmatpush3.bf16.msra.mxu1 %v6948_v9  ;;  %6790 = vmatprep.mubr.msk.bf16.mxu1 %vm7049_vm10, %v13195_v49  ;;  %v4570_v29 = vrot.slane %v4542_v46, %v11583_v0 }
 0x559   :  { %6788 = vmatprep.subr.bf16.mxu1 %v13195_v49 }
 0x55a   :  { %v4551_v28 = vpop.permute.xlu0 %4550  ;;  %v4571_v34 = vsel %vm4247_vm11, %v4570_v29, %v4566_v12 }
 0x55b   :  { %v4548_v51 = vpop.permute.xlu1 %4547  ;;  %v4584_v61 = vrot.slane %v4551_v28, %v11577_v35  ;;  %v4576_v21 = vsel %vm4254_vm12, %v4575_v1, %v4571_v34 }
 0x55c   :  { %6789 = vmatpush3.bf16.msra.mxu1 %v6949_v37  ;;  %v4580_v8 = vrot.slane %v4548_v51, %v11564_v23 }
 0x55d   :  { %6802 = vmatprep.subr.bf16.mxu1 %v13195_v49 }
 0x55e   :  { %v4557_v45 = vpop.permute.xlu0 %4556  ;;  %v4585_v59 = vsel %vm4240_vm8, %v4584_v61, %v4580_v8 }
 0x55f   :  { %v4554_v56 = vpop.permute.xlu1 %4553  ;;  %v4594_v30 = vrot.slane %v4557_v45, %v11580_v25 }
 0x560   :  { %v4589_v19 = vrot.slane %v4554_v56, %v11583_v0 }
 0x562   :  { %v4728_v32 = vpop.permute.xlu0 %4727  ;;  %v4590_v40 = vsel %vm4247_vm11, %v4589_v19, %v4585_v59 }
 0x563   :  { %v4595_v31 = vsel %vm4254_vm12, %v4594_v30, %v4590_v40  ;;  %v4725_v5 = vpop.permute.xlu1 %4724  ;;  %v4754_v57 = vrot.slane %v4728_v32, %v11577_v35  ;;  %v6954_v30 = vld [vmem:[#allocation5 + $0x30] sm:$0xff]  }
 0x564   :  { %v4596_v26 = vsel %vm4275_vm13, %v4595_v31, %v4576_v21  ;;  %v4750_v55 = vrot.slane %v4725_v5, %v11564_v23  ;;  %v6955_v31 = vld [vmem:[#allocation5 + $0x38] sm:$0xff]  }
 0x565   :  { %v4597_v18 = vpack.c.b16 %v4596_v26, %v4596_v26 }
 0x566   :  { %v4734_v6 = vpop.permute.xlu0 %4733  ;;  %v4755_v60 = vsel %vm4240_vm8, %v4754_v57, %v4750_v55 }
 0x567   :  { %6783 = vmatmul.mubr.msk.bf16.vlgmr.msra.gmra.mrb[16].mxu0 %vm4290_vm14, %v4597_v18  ;;  %v4731_v14 = vpop.permute.xlu1 %4730  ;;  %v4764_v39 = vrot.slane %v4734_v6, %v11580_v25 }
 0x568   :  { %6795 = vmatpush3.bf16.msra.mxu0 %v6950_v24  ;;  %6798 = vmatprep.mubr.msk.bf16.mxu0 %vm7049_vm10, %v13195_v49  ;;  %v4759_v44 = vrot.slane %v4731_v14, %v11583_v0 }
 0x569   :  { %6796 = vmatprep.subr.bf16.mxu0 %v13195_v49 }
 0x56a   :  { %v4740_v47 = vpop.permute.xlu0 %4739  ;;  %v4760_v3 = vsel %vm4247_vm11, %v4759_v44, %v4755_v60 }
 0x56b   :  { %v4737_v22 = vpop.permute.xlu1 %4736  ;;  %v4773_v4 = vrot.slane %v4740_v47, %v11577_v35  ;;  %v4765_v27 = vsel %vm4254_vm12, %v4764_v39, %v4760_v3 }
 0x56c   :  { %6797 = vmatpush3.bf16.msra.mxu0 %v6951_v16  ;;  %v4769_v48 = vrot.slane %v4737_v22, %v11564_v23 }
 0x56d   :  { %6810 = vmatprep.subr.bf16.mxu0 %v13195_v49 }
 0x56e   :  { %v4746_v38 = vpop.permute.xlu0 %4745  ;;  %v4774_v63 = vsel %vm4240_vm8, %v4773_v4, %v4769_v48 }
 0x56f   :  { %v4743_v11 = vpop.permute.xlu1 %4742  ;;  %v4783_v43 = vrot.slane %v4746_v38, %v11580_v25 }
 0x570   :  { %v4778_v54 = vrot.slane %v4743_v11, %v11583_v0 }
 0x572   :  { %v4917_v2 = vpop.permute.xlu0 %4916  ;;  %v4779_v10 = vsel %vm4247_vm11, %v4778_v54, %v4774_v63 }
 0x573   :  { %v4784_v53 = vsel %vm4254_vm12, %v4783_v43, %v4779_v10  ;;  %v4914_v52 = vpop.permute.xlu1 %4913  ;;  %v4943_v15 = vrot.slane %v4917_v2, %v11577_v35  ;;  %v6956_v43 = vld [vmem:[#allocation5 + $0x50] sm:$0xff]  }
 0x574   :  { %v4785_v17 = vsel %vm4275_vm13, %v4784_v53, %v4765_v27  ;;  %v4939_v9 = vrot.slane %v4914_v52, %v11564_v23  ;;  %v6957_v53 = vld [vmem:[#allocation5 + $0x58] sm:$0xff]  }
 0x575   :  { %v4786_v58 = vpack.c.b16 %v4785_v17, %v4785_v17 }
 0x576   :  { %v4923_v33 = vpop.permute.xlu0 %4922  ;;  %v4944_v13 = vsel %vm4240_vm8, %v4943_v15, %v4939_v9 }
 0x577   :  { %6791 = vmatmul.mubr.msk.bf16.vlgmr.msra.gmra.mrb[16].mxu1 %vm4290_vm14, %v4786_v58  ;;  %v4920_v42 = vpop.permute.xlu1 %4919  ;;  %v4953_v61 = vrot.slane %v4923_v33, %v11580_v25 }
 0x578   :  { %6803 = vmatpush3.bf16.msra.mxu1 %v6952_v41  ;;  %6806 = vmatprep.mubr.msk.bf16.mxu1 %vm7049_vm10, %v13195_v49  ;;  %v4948_v36 = vrot.slane %v4920_v42, %v11583_v0 }
 0x579   :  { %6804 = vmatprep.subr.bf16.mxu1 %v13195_v49 }
 0x57a   :  { %v4929_v62 = vpop.permute.xlu0 %4928  ;;  %v4949_v51 = vsel %vm4247_vm11, %v4948_v36, %v4944_v13 }
 0x57b   :  { %v4926_v7 = vpop.permute.xlu1 %4925  ;;  %v4962_v46 = vrot.slane %v4929_v62, %v11577_v35  ;;  %v4954_v34 = vsel %vm4254_vm12, %v4953_v61, %v4949_v51 }
 0x57c   :  { %6805 = vmatpush3.bf16.msra.mxu1 %v6953_v50  ;;  %v4958_v37 = vrot.slane %v4926_v7, %v11564_v23 }
 0x57d   :  { %6818 = vmatprep.subr.bf16.mxu1 %v13195_v49 }
 0x57e   :  { %v4935_v28 = vpop.permute.xlu0 %4934  ;;  %v4963_v8 = vsel %vm4240_vm8, %v4962_v46, %v4958_v37 }
 0x57f   :  { %v4932_v20 = vpop.permute.xlu1 %4931  ;;  %v4972_v45 = vrot.slane %v4935_v28, %v11580_v25 }
 0x580   :  { %v4967_v29 = vrot.slane %v4932_v20, %v11583_v0 }
 0x582   :  { %v5751_v12 = vpop.permute.xlu0 %5750  ;;  %v4968_v56 = vsel %vm4247_vm11, %v4967_v29, %v4963_v8 }
 0x583   :  { %v4973_v19 = vsel %vm4254_vm12, %v4972_v45, %v4968_v56  ;;  %v5754_v1 = vpop.permute.xlu1 %5753  ;;  %v5776_v14 = vrot.slane %v5751_v12, %v11564_v23  ;;  %v6958_v45 = vld [vmem:[#allocation5 + $0x70] sm:$0xff]  }
 0x584   :  { %v4974_v59 = vsel %vm4275_vm13, %v4973_v19, %v4954_v34  ;;  %v5780_v16 = vrot.slane %v5754_v1, %v11577_v35  ;;  %v6959_v19 = vld [vmem:[#allocation5 + $0x78] sm:$0xff]  }
 0x585   :  { %v4975_v32 = vpack.c.b16 %v4974_v59, %v4974_v59 }
 0x586   :  { %v5781_v48 = vsel %vm4240_vm8, %v5780_v16, %v5776_v14 }
 0x587   :  { %v5766_v40 = vpop.permute.xlu0 %5765  ;;  %6799 = vmatmul.mubr.msk.bf16.vlgmr.msra.gmra.mrb[20].mxu0 %vm4290_vm14, %v4975_v32 }
 0x588   :  { %v5763_v21 = vpop.permute.xlu1 %5762  ;;  %6811 = vmatpush3.bf16.msra.mxu0 %v6954_v30  ;;  %6814 = vmatprep.mubr.msk.bf16.mxu0 %vm7049_vm10, %v13195_v49  ;;  %v5799_v26 = vrot.slane %v5766_v40, %v11577_v35 }
 0x589   :  { %6812 = vmatprep.subr.bf16.mxu0 %v13195_v49  ;;  %v5795_v24 = vrot.slane %v5763_v21, %v11564_v23 }
 0x58b   :  { %v5769_v5 = vpop.permute.xlu0 %5768  ;;  %v5800_v55 = vsel %vm4240_vm8, %v5799_v26, %v5795_v24 }
 0x58c   :  { %v5804_v18 = vrot.slane %v5769_v5, %v11583_v0  ;;  %v5757_v6 = vpop.permute.xlu1 %5756  ;;  %6813 = vmatpush3.bf16.msra.mxu0 %v6955_v31 }
 0x58d   :  { %v5785_v47 = vrot.slane %v5757_v6, %v11583_v0  ;;  %6826 = vmatprep.subr.bf16.mxu0 %v13195_v49 }
 0x58e   :  { %v5805_v44 = vsel %vm4247_vm11, %v5804_v18, %v5800_v55 }
 0x58f   :  { %v5772_v57 = vpop.permute.xlu0 %5771  ;;  %v5786_v11 = vsel %vm4247_vm11, %v5785_v47, %v5781_v48 }
 0x590   :  { %v5809_v22 = vrot.slane %v5772_v57, %v11580_v25  ;;  %v5760_v4 = vpop.permute.xlu1 %5759 }
 0x591   :  { %v5790_v60 = vrot.slane %v5760_v4, %v11580_v25 }
 0x592   :  { %v5810_v38 = vsel %vm4254_vm12, %v5809_v22, %v5805_v44 }
 0x593   :  { %v5943_v3 = vpop.permute.xlu0 %5942  ;;  %v5791_v54 = vsel %vm4254_vm12, %v5790_v60, %v5786_v11 }
 0x594   :  { %v5811_v39 = vsel %vm4275_vm13, %v5810_v38, %v5791_v54  ;;  %v5940_v63 = vpop.permute.xlu1 %5939  ;;  %v5969_v42 = vrot.slane %v5943_v3, %v11577_v35  ;;  %v6960_v38 = vld [vmem:[#allocation5 + $0x90] sm:$0xff]   ;;  %v6961_v54 = vld [vmem:[#allocation5 + $0x98] sm:$0xff]  }
 0x595   :  { %v5812_v2 = vpack.c.b16 %v5811_v39, %v5811_v39  ;;  %v5965_v50 = vrot.slane %v5940_v63, %v11564_v23 }
 0x597   :  { %v5955_v10 = vpop.permute.xlu0 %5954  ;;  %6807 = vmatmul.mubr.msk.bf16.vlgmr.msra.gmra.mrb[20].mxu1 %vm4290_vm14, %v5812_v2  ;;  %v5970_v37 = vsel %vm4240_vm8, %v5969_v42, %v5965_v50 }
 0x598   :  { %v5952_v27 = vpop.permute.xlu1 %5951  ;;  %6819 = vmatpush3.bf16.msra.mxu1 %v6956_v43  ;;  %6822 = vmatprep.mubr.msk.bf16.mxu1 %vm7049_vm10, %v13195_v49  ;;  %v5988_v17 = vrot.slane %v5955_v10, %v11577_v35 }
 0x599   :  { %6820 = vmatprep.subr.bf16.mxu1 %v13195_v49  ;;  %v5984_v41 = vrot.slane %v5952_v27, %v11564_v23 }
 0x59b   :  { %v5958_v52 = vpop.permute.xlu0 %5957  ;;  %v5989_v9 = vsel %vm4240_vm8, %v5988_v17, %v5984_v41 }
 0x59c   :  { %v5993_v58 = vrot.slane %v5958_v52, %v11583_v0  ;;  %v5946_v33 = vpop.permute.xlu1 %5945  ;;  %6821 = vmatpush3.bf16.msra.mxu1 %v6957_v53 }
 0x59d   :  { %6834 = vmatprep.subr.bf16.mxu1 %v13195_v49  ;;  %v5974_v62 = vrot.slane %v5946_v33, %v11583_v0 }
 0x59e   :  { %v5994_v36 = vsel %vm4247_vm11, %v5993_v58, %v5989_v9 }
 0x59f   :  { %v5961_v15 = vpop.permute.xlu0 %5960  ;;  %v5975_v20 = vsel %vm4247_vm11, %v5974_v62, %v5970_v37 }
 0x5a0   :  { %v5998_v7 = vrot.slane %v5961_v15, %v11580_v25  ;;  %v5949_v46 = vpop.permute.xlu1 %5948 }
 0x5a1   :  { %v5979_v13 = vrot.slane %v5949_v46, %v11580_v25 }
 0x5a2   :  { %v5999_v28 = vsel %vm4254_vm12, %v5998_v7, %v5994_v36 }
 0x5a3   :  { %v6132_v51 = vpop.permute.xlu0 %6131  ;;  %v5980_v29 = vsel %vm4254_vm12, %v5979_v13, %v5975_v20 }
 0x5a4   :  { %v6000_v61 = vsel %vm4275_vm13, %v5999_v28, %v5980_v29  ;;  %v6129_v8 = vpop.permute.xlu1 %6128  ;;  %v6158_v21 = vrot.slane %v6132_v51, %v11577_v35 }
 0x5a5   :  { %v6001_v12 = vpack.c.b16 %v6000_v61, %v6000_v61  ;;  %v6154_v31 = vrot.slane %v6129_v8, %v11564_v23 }
 0x5a7   :  { %v6144_v56 = vpop.permute.xlu0 %6143  ;;  %6815 = vmatmul.mubr.msk.bf16.vlgmr.msra.gmra.mrb[24].mxu0 %vm4290_vm14, %v6001_v12  ;;  %v6159_v16 = vsel %vm4240_vm8, %v6158_v21, %v6154_v31 }
 0x5a8   :  { %v6141_v34 = vpop.permute.xlu1 %6140  ;;  %6827 = vmatpush3.bf16.msra.mxu0 %v6958_v45  ;;  %6830 = vmatprep.mubr.msk.bf16.mxu0 %vm7049_vm10, %v13195_v49  ;;  %v6177_v59 = vrot.slane %v6144_v56, %v11577_v35 }
 0x5a9   :  { %6828 = vmatprep.subr.bf16.mxu0 %v13195_v49  ;;  %v6173_v30 = vrot.slane %v6141_v34, %v11564_v23 }
 0x5ab   :  { %v6147_v1 = vpop.permute.xlu0 %6146  ;;  %v6178_v24 = vsel %vm4240_vm8, %v6177_v59, %v6173_v30 }
 0x5ac   :  { %v6182_v32 = vrot.slane %v6147_v1, %v11583_v0  ;;  %6829 = vmatpush3.bf16.msra.mxu0 %v6959_v19 }
 0x5ad   :  { %v6135_v40 = vpop.permute.xlu1 %6134 }
 0x5ae   :  { %v6163_v5 = vrot.slane %v6135_v40, %v11583_v0  ;;  %v6183_v6 = vsel %vm4247_vm11, %v6182_v32, %v6178_v24 }
 0x5b0   :  { %v6150_v26 = vpop.permute.xlu0 %6149  ;;  %v6164_v55 = vsel %vm4247_vm11, %v6163_v5, %v6159_v16 }
 0x5b1   :  { %v6187_v18 = vrot.slane %v6150_v26, %v11580_v25  ;;  %v6138_v14 = vpop.permute.xlu1 %6137 }
 0x5b2   :  { %v6168_v57 = vrot.slane %v6138_v14, %v11580_v25 }
 0x5b3   :  { %v6188_v47 = vsel %vm4254_vm12, %v6187_v18, %v6183_v6 }
 0x5b4   :  { %v6321_v22 = vpop.permute.xlu0 %6320  ;;  %v6169_v44 = vsel %vm4254_vm12, %v6168_v57, %v6164_v55 }
 0x5b5   :  { %v6189_v4 = vsel %vm4275_vm13, %v6188_v47, %v6169_v44  ;;  %v6318_v48 = vpop.permute.xlu1 %6317  ;;  %v6347_v27 = vrot.slane %v6321_v22, %v11577_v35 }
 0x5b6   :  { %v6190_v60 = vpack.c.b16 %v6189_v4, %v6189_v4  ;;  %v6343_v53 = vrot.slane %v6318_v48, %v11564_v23 }
 0x5b8   :  { %v6333_v11 = vpop.permute.xlu0 %6332  ;;  %6823 = vmatmul.mubr.msk.bf16.vlgmr.msra.gmra.mrb[24].mxu1 %vm4290_vm14, %v6190_v60  ;;  %v6348_v42 = vsel %vm4240_vm8, %v6347_v27, %v6343_v53 }
 0x5b9   :  { %v6330_v3 = vpop.permute.xlu1 %6329  ;;  %6835 = vmatpush3.bf16.msra.mxu1 %v6960_v38  ;;  %6838 = vmatprep.mubr.msk.bf16.mxu1 %vm7049_vm10, %v13195_v49  ;;  %v6366_v63 = vrot.slane %v6333_v11, %v11577_v35 }
 0x5ba   :  { %6836 = vmatprep.subr.bf16.mxu1 %v13195_v49  ;;  %v6362_v43 = vrot.slane %v6330_v3, %v11564_v23 }
 0x5bc   :  { %v6336_v39 = vpop.permute.xlu0 %6335  ;;  %v6367_v41 = vsel %vm4240_vm8, %v6366_v63, %v6362_v43 }
 0x5bd   :  { %v6371_v2 = vrot.slane %v6336_v39, %v11583_v0  ;;  %v6324_v10 = vpop.permute.xlu1 %6323  ;;  %6837 = vmatpush3.bf16.msra.mxu1 %v6961_v54 }
 0x5be   :  { %v6352_v52 = vrot.slane %v6324_v10, %v11583_v0 }
 0x5bf   :  { %v6372_v58 = vsel %vm4247_vm11, %v6371_v2, %v6367_v41 }
 0x5c0   :  { %v6339_v17 = vpop.permute.xlu0 %6338  ;;  %v6353_v15 = vsel %vm4247_vm11, %v6352_v52, %v6348_v42 }
 0x5c1   :  { %v6376_v49 = vrot.slane %v6339_v17, %v11580_v25 }
 0x5c2   :  { %v6327_v33 = vpop.permute.xlu1 %6326 }
 0x5c3   :  { %v6377_v50 = vsel %vm4254_vm12, %v6376_v49, %v6372_v58  ;;  %v6357_v62 = vrot.slane %v6327_v33, %v11580_v25 }
 0x5c4   :  { %v6510_v9 = vpop.permute.xlu0 %6509 }
 0x5c5   :  { %v6358_v7 = vsel %vm4254_vm12, %v6357_v62, %v6353_v15  ;;  %v6536_v45 = vrot.slane %v6510_v9, %v11577_v35 }
 0x5c6   :  { %v6378_v36 = vsel %vm4275_vm13, %v6377_v50, %v6358_v7  ;;  %v6507_v46 = vpop.permute.xlu1 %6506 }
 0x5c7   :  { %v6379_v37 = vpack.c.b16 %v6378_v36, %v6378_v36  ;;  %v6532_v12 = vrot.slane %v6507_v46, %v11564_v23 }
 0x5c8   :  { %v6522_v28 = vpop.permute.xlu0 %6521 }
 0x5c9   :  { %6831 = vmatmul.mubr.msk.bf16.vlgmr.msra.gmra.mrb[28].mxu0 %vm4290_vm14, %v6379_v37  ;;  %v6555_v51 = vrot.slane %v6522_v28, %v11577_v35  ;;  %v6537_v32 = vsel %vm4240_vm8, %v6536_v45, %v6532_v12 }
 0x5ca   :  { %v6519_v13 = vpop.permute.xlu1 %6518 }
 0x5cb   :  { %v6551_v29 = vrot.slane %v6519_v13, %v11564_v23 }
 0x5cc   :  { %v6525_v20 = vpop.permute.xlu0 %6524 }
 0x5cd   :  { %v6560_v61 = vrot.slane %v6525_v20, %v11583_v0  ;;  %v6556_v19 = vsel %vm4240_vm8, %v6555_v51, %v6551_v29  ;;  %v6731_v20 = vld [vmem:[%s11991_s3 + $0x1] ss:$0 sm:$0xff] }
 0x5ce   :  { %v6513_v8 = vpop.permute.xlu1 %6512 }
 0x5cf   :  { %v6541_v56 = vrot.slane %v6513_v8, %v11583_v0  ;;  %v6561_v59 = vsel %vm4247_vm11, %v6560_v61, %v6556_v19 }
 0x5d0   :  { %v6528_v34 = vpop.permute.xlu0 %6527 }
 0x5d1   :  { %v6565_v1 = vrot.slane %v6528_v34, %v11580_v25  ;;  %v6542_v35 = vsel %vm4247_vm11, %v6541_v56, %v6537_v32 }
 0x5d2   :  { %v6516_v30 = vpop.permute.xlu1 %6515 }
 0x5d3   :  { %v6566_v40 = vsel %vm4254_vm12, %v6565_v1, %v6561_v59  ;;  %v6546_v21 = vrot.slane %v6516_v30, %v11580_v25 }
 0x5d5   :  { %v6547_v23 = vsel %vm4254_vm12, %v6546_v21, %v6542_v35 }
 0x5d6   :  { %v6567_v0 = vsel %vm4275_vm13, %v6566_v40, %v6547_v23 }
 0x5d7   :  { %v6568_v31 = vpack.c.b16 %v6567_v0, %v6567_v0 }
 0x5d9   :  { %6839 = vmatmul.mubr.msk.bf16.vlgmr.msra.gmra.mrb[28].mxu1 %vm4290_vm14, %v6568_v31 }
 0x61c   :  { %v4328_v5 = vpop.f32.mrb[12].mxu0 }
 0x61d   :  { %v6768_v26 = vpop.f32.mrb[13].mxu0 }
 0x61e   :  { %v4331_v24 = vpop.f32.mrb[14].mxu0 }
 0x61f   :  { %v6769_v18 = vpop.f32.mrb[15].mxu0 }
 0x62a   :  { %v4459_v6 = vpop.f32.mrb[12].mxu1 }
 0x62b   :  { %v4460_v14 = vadd.f32 %v4459_v6, %v4328_v5  ;;  %v6776_v16 = vpop.f32.mrb[13].mxu1 }
 0x62c   :  { %v4462_v47 = vpop.f32.mrb[14].mxu1 }
 0x62d   :  { %v6777_v57 = vpop.f32.mrb[15].mxu1 }
 0x63a   :  { %v4647_v55 = vpop.f32.mrb[16].mxu0 }
 0x63b   :  { %v4653_v25 = vadd.f32 %v4647_v55, %v4460_v14  ;;  %v6784_v22 = vpop.f32.mrb[17].mxu0 }
 0x63c   :  { %v4650_v44 = vpop.f32.mrb[18].mxu0 }
 0x63d   :  { %v6785_v4 = vpop.f32.mrb[19].mxu0 }
 0x64a   :  { %v4836_v48 = vpop.f32.mrb[16].mxu1 }
 0x64b   :  { %v4842_v38 = vadd.f32 %v4836_v48, %v4653_v25  ;;  %v6792_v60 = vpop.f32.mrb[17].mxu1 }
 0x64c   :  { %v4839_v11 = vpop.f32.mrb[18].mxu1 }
 0x64d   :  { %v6793_v3 = vpop.f32.mrb[19].mxu1 }
 0x65a   :  { %v5025_v54 = vpop.f32.mrb[20].mxu0 }
 0x65b   :  { %v5031_v39 = vadd.f32 %v5025_v54, %v4842_v38  ;;  %v6800_v63 = vpop.f32.mrb[21].mxu0 }
 0x65c   :  { %v5028_v43 = vpop.f32.mrb[22].mxu0 }
 0x65d   :  { %v6801_v2 = vpop.f32.mrb[23].mxu0 }
 0x66a   :  { %v5862_v10 = vpop.f32.mrb[20].mxu1 }
 0x66b   :  { %v5868_v27 = vadd.f32 %v5862_v10, %v5031_v39  ;;  %v6808_v53 = vpop.f32.mrb[21].mxu1 }
 0x66c   :  { %v5865_v52 = vpop.f32.mrb[22].mxu1 }
 0x66d   :  { %v6809_v17 = vpop.f32.mrb[23].mxu1 }
 0x67a   :  { %v6051_v41 = vpop.f32.mrb[24].mxu0 }
 0x67b   :  { %v6057_v49 = vadd.f32 %v6051_v41, %v5868_v27  ;;  %v6816_v58 = vpop.f32.mrb[25].mxu0 }
 0x67c   :  { %v6054_v33 = vpop.f32.mrb[26].mxu0 }
 0x67d   :  { %v6817_v42 = vpop.f32.mrb[27].mxu0 }
 0x68b   :  { %v6240_v50 = vpop.f32.mrb[24].mxu1 }
 0x68c   :  { %v6246_v62 = vadd.f32 %v6240_v50, %v6057_v49  ;;  %v6824_v15 = vpop.f32.mrb[25].mxu1 }
 0x68d   :  { %v6243_v9 = vpop.f32.mrb[26].mxu1 }
 0x68e   :  { %v6825_v7 = vpop.f32.mrb[27].mxu1 }
 0x69c   :  { %v6429_v36 = vpop.f32.mrb[28].mxu0 }
 0x69d   :  { %v6435_v46 = vadd.f32 %v6429_v36, %v6246_v62  ;;  %v6832_v37 = vpop.f32.mrb[29].mxu0 }
 0x69e   :  { %v6432_v28 = vpop.f32.mrb[30].mxu0 }
 0x69f   :  { %v6833_v13 = vpop.f32.mrb[31].mxu0 }
 0x6ac   :  { %v6618_v51 = vpop.f32.mrb[28].mxu1 }
 0x6ad   :  { %v6624_v29 = vadd.f32 %v6618_v51, %v6435_v46  ;;  %v6840_v61 = vpop.f32.mrb[29].mxu1 }
 0x6ae   :  { %v6621_v8 = vpop.f32.mrb[30].mxu1 }
 0x6af   :  { %v6631_v45 = vadd.f32 %v6731_v20, %v6624_v29  ;;  %v6841_v12 = vpop.f32.mrb[31].mxu1 }
 0x6b1   :  { %6632 = vst [vmem:[#allocation7] sm:$0x3] %v6631_v45 }
 0x6b2   :  { %7017 = shalt.err (!%p7014_p6)
}
 0x6b3   :  { %s7018_s3 = scalar_lea.hbm %s11992_s4, 32 }
 0x6b4   :  { %p7019_p7 = scmp.ne.s32.totalorder %s11992_s4, %s7018_s3  ;;  %p7022_p8 = scmp.lt.u32.totalorder %s7018_s3, %s11992_s4 }
 0x6b6   :  { %p7024_p9 = pnand %p7022_p8, %p7019_p7 }
 0x6b8   :  { %7027 = shalt.err (!%p7024_p9)
}
 0x6b9   :  { %6642 = dma.vmem_to_hbm [thread:$0]  %s6640_s30, 32, %s11992_s4, [#allocation4]  }
 0x6ba   :  { %7032 = dma.done.wait [#allocation4], 32  }
 0x6bb   :  { %7033 = vsyncadd [#allocation4], 4294967264 }
 0x6bc   :  { %6646 = vsyncpa [#allocation3], 1 }
 0x6bd   :  { %6647 = vsyncpa [#allocation6], 1 }
 0x6be   :  { %6648 = vsyncpa [#allocation4], 1 }

</bundles_post_ra>
